<compile_context>
chip_gen: v7x
topology: tpu7x:2x2x1
jax: 0.10.0
libtpu: 0.0.40
codegen_flags: <defaults>
</compile_context>

<pallas_src>
import jax
import jax.numpy as jnp
from jax.experimental import pallas as pl
from jax.experimental.pallas import tpu as pltpu

SCALE = (1, 3, 5, 7)          # kernel size per channel group (PyTorch default)
KMAX = max(SCALE)
PAD = KMAX // 2


def _group_channels(dim, scale=SCALE):
    s = len(scale)
    return [dim - dim // s * (s - 1)] + [dim // s] * (s - 1)


# ----------------------------------------------------------------------------
# Pallas kernel: fused multi-scale depthwise conv (+ bias), in-kernel gather
# ----------------------------------------------------------------------------
def msdw_kernel(x_ref, w_ref, b_ref, o_ref):
    # x_ref: (1, Hp, Wp, C) zero-padded image of batch b (resident across row tiles)
    # w_ref: (KMAX, KMAX, C) zero-embedded per-channel depthwise taps
    # b_ref: (1, C)          bias
    # o_ref: (1, TH, W, C)   output row tile
    _, th, w, c = o_ref.shape
    kmax = w_ref.shape[0]

    row0 = pl.multiple_of(pl.program_id(1) * th, th)
    bias = b_ref[...].astype(jnp.float32)                          # (1, c)

    acc = jnp.zeros((th, w, c), jnp.float32)
    # Static unroll over KMAX*KMAX taps: each tap is a shifted VMEM window
    # times a per-channel (lane) weight row -- pure VPU FMA, no HBM patches.
    for ky in range(kmax):
        for kx in range(kmax):
            win = x_ref[0, pl.ds(row0 + ky, th), pl.ds(kx, w), :]  # (th, w, c)
            tap = w_ref[ky, kx:kx + 1, :]                          # (1, c)
            acc = acc + win.astype(jnp.float32) * tap.astype(jnp.float32)

    o_ref[0] = (acc + bias).astype(o_ref.dtype)


def _row_tile(h, w, c, budget_bytes=6 << 20):
    """Largest divisor of h whose double-buffered output tile fits the budget."""
    for cand in range(h, 0, -1):
        if h % cand == 0 and 2 * cand * w * c * 4 <= budget_bytes:
            return cand
    return 1


def fused_msdwconv(x_nhwc, w_fused, b_fused):
    """x_nhwc: (B, H, W, C); w_fused: (KMAX, KMAX, C); b_fused: (C,)."""
    b, h, w, c = x_nhwc.shape

    # Lane density: pad channels to a multiple of 128 (no-op when C == 128).
    cpad = ((c + 127) // 128) * 128
    if cpad != c:
        x_nhwc = jnp.pad(x_nhwc, ((0, 0), (0, 0), (0, 0), (0, cpad - c)))
        w_fused = jnp.pad(w_fused, ((0, 0), (0, 0), (0, cpad - c)))
        b_fused = jnp.pad(b_fused, ((0, cpad - c),))

    xp = jnp.pad(x_nhwc, ((0, 0), (PAD, PAD), (PAD, PAD), (0, 0)))
    hp, wp = h + 2 * PAD, w + 2 * PAD
    th = _row_tile(h, w, cpad)
    rt = h // th

    y = pl.pallas_call(
        msdw_kernel,
        out_shape=jax.ShapeDtypeStruct((b, h, w, cpad), x_nhwc.dtype),
        grid=(b, rt),
        in_specs=[
            # Whole padded image of batch i; same block index for every row
            # tile -> stays resident in VMEM across the inner grid axis.
            pl.BlockSpec((1, hp, wp, cpad), lambda i, r: (i, 0, 0, 0)),
            pl.BlockSpec((KMAX, KMAX, cpad), lambda i, r: (0, 0, 0)),
            pl.BlockSpec((1, cpad), lambda i, r: (0, 0)),
        ],
        out_specs=pl.BlockSpec((1, th, w, cpad), lambda i, r: (i, r, 0, 0)),
        compiler_params=pltpu.CompilerParams(
            dimension_semantics=("parallel", "arbitrary")),
    )(xp, w_fused, b_fused.reshape(1, cpad))

    return y[..., :c] if cpad != c else y


# ----------------------------------------------------------------------------
# Parameter fusion: embed every group's (k,k) depthwise kernel centered into a
# single (KMAX, KMAX, C) tap tensor (identical math, extra taps are zero).
# ----------------------------------------------------------------------------
def build_fused_params(weights, biases):
    taps = []
    for k_size, wg in zip(SCALE, weights):
        wk = jnp.transpose(wg[:, 0], (1, 2, 0))          # (k, k, ch)
        off = (KMAX - k_size) // 2
        wk = jnp.pad(wk, ((off, KMAX - k_size - off),
                          (off, KMAX - k_size - off), (0, 0)))
        taps.append(wk)
    return jnp.concatenate(taps, axis=-1), jnp.concatenate(biases)


@jax.jit
def multi_scale_dwconv_forward(x_nchw, weights, biases):
    """Matches MultiScaleDWConv.forward: x (B, C, H, W) -> (B, C, H, W)."""
    w_fused, b_fused = build_fused_params(weights, biases)
    x = jnp.transpose(x_nchw, (0, 2, 3, 1))              # NCHW -> NHWC (lanes=C)
    y = fused_msdwconv(x, w_fused, b_fused)
    return jnp.transpose(y, (0, 3, 1, 2))


# ----------------------------------------------------------------------------
# Pure-JAX reference (independent per-group depthwise convs, as in PyTorch)
# ----------------------------------------------------------------------------
def reference_forward(x_nchw, weights, biases):
    outs, c0 = [], 0
    for k_size, wg, bg in zip(SCALE, weights, biases):
        ch = wg.shape[0]
        xi = jnp.transpose(x_nchw[:, c0:c0 + ch], (0, 2, 3, 1))
        wk = jnp.transpose(wg, (2, 3, 1, 0))             # (k, k, 1, ch) HWIO
        y = jax.lax.conv_general_dilated(
            xi, wk, window_strides=(1, 1),
            padding=[(k_size // 2, k_size // 2)] * 2,
            dimension_numbers=("NHWC", "HWIO", "NHWC"),
            feature_group_count=ch)
        outs.append(jnp.transpose(y + bg[None, None, None, :], (0, 3, 1, 2)))
        c0 += ch
    return jnp.concatenate(outs, axis=1)


# ----------------------------------------------------------------------------
if __name__ == "__main__":
    key = jax.random.PRNGKey(0)
    B, DIM, H, W = 2, 128, 16, 16       # DIM=128 -> lane-dense loads/stores
    chans = _group_channels(DIM)        # [32, 32, 32, 32]

    keys = jax.random.split(key, 2 * len(SCALE) + 1)
    weights, biases = [], []
    for i, (k_size, ch) in enumerate(zip(SCALE, chans)):
        bound = 1.0 / float(k_size)     # depthwise fan_in = k*k -> 1/sqrt(k*k)
        weights.append(jax.random.uniform(
            keys[2 * i], (ch, 1, k_size, k_size), jnp.float32, -bound, bound))
        biases.append(jax.random.uniform(
            keys[2 * i + 1], (ch,), jnp.float32, -bound, bound))
    x = jax.random.normal(keys[-1], (B, DIM, H, W), jnp.float32)

    out = multi_scale_dwconv_forward(x, weights, biases)
    jax.block_until_ready(out)

    assert out.shape == (B, DIM, H, W), out.shape
    assert bool(jnp.all(jnp.isfinite(out)))

    ref = reference_forward(x, weights, biases)
    err = float(jnp.max(jnp.abs(out - ref)))
    assert err < 1e-4, f"max abs err {err}"

    print("KERNEL_OK")
</pallas_src>

<mosaic_0001>
module attributes {stable_mosaic.version = 11 : i64} {
  func.func @msdw_kernel(%arg0: i32, %arg1: i32, %arg2: memref<1x22x22x128xf32, #tpu.memory_space<vmem>>, %arg3: memref<7x7x128xf32, #tpu.memory_space<vmem>>, %arg4: memref<1x128xf32, #tpu.memory_space<vmem>>, %arg5: memref<1x16x16x128xf32, #tpu.memory_space<vmem>>) attributes {dimension_semantics = [#tpu.dimension_semantics<parallel>, #tpu.dimension_semantics<arbitrary>], iteration_bounds = array<i64: 2, 1>, scalar_prefetch = 0 : i64, scratch_operands = 0 : i64, tpu.core_type = #tpu.core_type<tc>, window_params = [{transform_indices = @transform_0, window_bounds = array<i64: 1, 22, 22, 128>}, {pipeline_mode = #tpu.pipeline_mode<synchronous>, transform_indices = @transform_1, window_bounds = array<i64: 7, 7, 128>}, {pipeline_mode = #tpu.pipeline_mode<synchronous>, transform_indices = @transform_2, window_bounds = array<i64: 1, 128>}, {transform_indices = @transform_3, window_bounds = array<i64: 1, 16, 16, 128>}]} {
    %c16_i32 = arith.constant 16 : i32
    %0 = arith.muli %arg1, %c16_i32 : i32
    %1 = tpu.assume_multiple %0, 16 : i32
    %c0 = arith.constant 0 : index
    %c0_0 = arith.constant 0 : index
    %2 = vector.load %arg4[%c0, %c0_0] : memref<1x128xf32, #tpu.memory_space<vmem>>, vector<1x128xf32>
    %cst = arith.constant 0.000000e+00 : f32
    %3 = vector.broadcast %cst : f32 to vector<16x16x128xf32>
    %c0_i32 = arith.constant 0 : i32
    %4 = arith.addi %1, %c0_i32 : i32
    %c0_1 = arith.constant 0 : index
    %5 = arith.index_cast %4 : i32 to index
    %c0_2 = arith.constant 0 : index
    %c0_3 = arith.constant 0 : index
    %6 = vector.load %arg2[%c0_1, %5, %c0_2, %c0_3] : memref<1x22x22x128xf32, #tpu.memory_space<vmem>>, vector<1x16x16x128xf32>
    %7 = vector.shape_cast %6 : vector<1x16x16x128xf32> to vector<16x16x128xf32>
    %c0_4 = arith.constant 0 : index
    %c0_5 = arith.constant 0 : index
    %c0_6 = arith.constant 0 : index
    %8 = vector.load %arg3[%c0_4, %c0_5, %c0_6] : memref<7x7x128xf32, #tpu.memory_space<vmem>>, vector<1x1x128xf32>
    %9 = vector.shape_cast %8 : vector<1x1x128xf32> to vector<1x128xf32>
    %10 = vector.shape_cast %9 : vector<1x128xf32> to vector<1x1x128xf32>
    %11 = vector.broadcast %10 : vector<1x1x128xf32> to vector<16x16x128xf32>
    %12 = arith.mulf %7, %11 : vector<16x16x128xf32>
    %13 = arith.addf %3, %12 : vector<16x16x128xf32>
    %c0_i32_7 = arith.constant 0 : i32
    %14 = arith.addi %1, %c0_i32_7 : i32
    %c0_8 = arith.constant 0 : index
    %15 = arith.index_cast %14 : i32 to index
    %c1 = arith.constant 1 : index
    %c0_9 = arith.constant 0 : index
    %16 = vector.load %arg2[%c0_8, %15, %c1, %c0_9] : memref<1x22x22x128xf32, #tpu.memory_space<vmem>>, vector<1x16x16x128xf32>
    %17 = vector.shape_cast %16 : vector<1x16x16x128xf32> to vector<16x16x128xf32>
    %c0_10 = arith.constant 0 : index
    %c1_11 = arith.constant 1 : index
    %c0_12 = arith.constant 0 : index
    %18 = vector.load %arg3[%c0_10, %c1_11, %c0_12] : memref<7x7x128xf32, #tpu.memory_space<vmem>>, vector<1x1x128xf32>
    %19 = vector.shape_cast %18 : vector<1x1x128xf32> to vector<1x128xf32>
    %20 = vector.shape_cast %19 : vector<1x128xf32> to vector<1x1x128xf32>
    %21 = vector.broadcast %20 : vector<1x1x128xf32> to vector<16x16x128xf32>
    %22 = arith.mulf %17, %21 : vector<16x16x128xf32>
    %23 = arith.addf %13, %22 : vector<16x16x128xf32>
    %c0_i32_13 = arith.constant 0 : i32
    %24 = arith.addi %1, %c0_i32_13 : i32
    %c0_14 = arith.constant 0 : index
    %25 = arith.index_cast %24 : i32 to index
    %c2 = arith.constant 2 : index
    %c0_15 = arith.constant 0 : index
    %26 = vector.load %arg2[%c0_14, %25, %c2, %c0_15] : memref<1x22x22x128xf32, #tpu.memory_space<vmem>>, vector<1x16x16x128xf32>
    %27 = vector.shape_cast %26 : vector<1x16x16x128xf32> to vector<16x16x128xf32>
    %c0_16 = arith.constant 0 : index
    %c2_17 = arith.constant 2 : index
    %c0_18 = arith.constant 0 : index
    %28 = vector.load %arg3[%c0_16, %c2_17, %c0_18] : memref<7x7x128xf32, #tpu.memory_space<vmem>>, vector<1x1x128xf32>
    %29 = vector.shape_cast %28 : vector<1x1x128xf32> to vector<1x128xf32>
    %30 = vector.shape_cast %29 : vector<1x128xf32> to vector<1x1x128xf32>
    %31 = vector.broadcast %30 : vector<1x1x128xf32> to vector<16x16x128xf32>
    %32 = arith.mulf %27, %31 : vector<16x16x128xf32>
    %33 = arith.addf %23, %32 : vector<16x16x128xf32>
    %c0_i32_19 = arith.constant 0 : i32
    %34 = arith.addi %1, %c0_i32_19 : i32
    %c0_20 = arith.constant 0 : index
    %35 = arith.index_cast %34 : i32 to index
    %c3 = arith.constant 3 : index
    %c0_21 = arith.constant 0 : index
    %36 = vector.load %arg2[%c0_20, %35, %c3, %c0_21] : memref<1x22x22x128xf32, #tpu.memory_space<vmem>>, vector<1x16x16x128xf32>
    %37 = vector.shape_cast %36 : vector<1x16x16x128xf32> to vector<16x16x128xf32>
    %c0_22 = arith.constant 0 : index
    %c3_23 = arith.constant 3 : index
    %c0_24 = arith.constant 0 : index
    %38 = vector.load %arg3[%c0_22, %c3_23, %c0_24] : memref<7x7x128xf32, #tpu.memory_space<vmem>>, vector<1x1x128xf32>
    %39 = vector.shape_cast %38 : vector<1x1x128xf32> to vector<1x128xf32>
    %40 = vector.shape_cast %39 : vector<1x128xf32> to vector<1x1x128xf32>
    %41 = vector.broadcast %40 : vector<1x1x128xf32> to vector<16x16x128xf32>
    %42 = arith.mulf %37, %41 : vector<16x16x128xf32>
    %43 = arith.addf %33, %42 : vector<16x16x128xf32>
    %c0_i32_25 = arith.constant 0 : i32
    %44 = arith.addi %1, %c0_i32_25 : i32
    %c0_26 = arith.constant 0 : index
    %45 = arith.index_cast %44 : i32 to index
    %c4 = arith.constant 4 : index
    %c0_27 = arith.constant 0 : index
    %46 = vector.load %arg2[%c0_26, %45, %c4, %c0_27] : memref<1x22x22x128xf32, #tpu.memory_space<vmem>>, vector<1x16x16x128xf32>
    %47 = vector.shape_cast %46 : vector<1x16x16x128xf32> to vector<16x16x128xf32>
    %c0_28 = arith.constant 0 : index
    %c4_29 = arith.constant 4 : index
    %c0_30 = arith.constant 0 : index
    %48 = vector.load %arg3[%c0_28, %c4_29, %c0_30] : memref<7x7x128xf32, #tpu.memory_space<vmem>>, vector<1x1x128xf32>
    %49 = vector.shape_cast %48 : vector<1x1x128xf32> to vector<1x128xf32>
    %50 = vector.shape_cast %49 : vector<1x128xf32> to vector<1x1x128xf32>
    %51 = vector.broadcast %50 : vector<1x1x128xf32> to vector<16x16x128xf32>
    %52 = arith.mulf %47, %51 : vector<16x16x128xf32>
    %53 = arith.addf %43, %52 : vector<16x16x128xf32>
    %c0_i32_31 = arith.constant 0 : i32
    %54 = arith.addi %1, %c0_i32_31 : i32
    %c0_32 = arith.constant 0 : index
    %55 = arith.index_cast %54 : i32 to index
    %c5 = arith.constant 5 : index
    %c0_33 = arith.constant 0 : index
    %56 = vector.load %arg2[%c0_32, %55, %c5, %c0_33] : memref<1x22x22x128xf32, #tpu.memory_space<vmem>>, vector<1x16x16x128xf32>
    %57 = vector.shape_cast %56 : vector<1x16x16x128xf32> to vector<16x16x128xf32>
    %c0_34 = arith.constant 0 : index
    %c5_35 = arith.constant 5 : index
    %c0_36 = arith.constant 0 : index
    %58 = vector.load %arg3[%c0_34, %c5_35, %c0_36] : memref<7x7x128xf32, #tpu.memory_space<vmem>>, vector<1x1x128xf32>
    %59 = vector.shape_cast %58 : vector<1x1x128xf32> to vector<1x128xf32>
    %60 = vector.shape_cast %59 : vector<1x128xf32> to vector<1x1x128xf32>
    %61 = vector.broadcast %60 : vector<1x1x128xf32> to vector<16x16x128xf32>
    %62 = arith.mulf %57, %61 : vector<16x16x128xf32>
    %63 = arith.addf %53, %62 : vector<16x16x128xf32>
    %c0_i32_37 = arith.constant 0 : i32
    %64 = arith.addi %1, %c0_i32_37 : i32
    %c0_38 = arith.constant 0 : index
    %65 = arith.index_cast %64 : i32 to index
    %c6 = arith.constant 6 : index
    %c0_39 = arith.constant 0 : index
    %66 = vector.load %arg2[%c0_38, %65, %c6, %c0_39] : memref<1x22x22x128xf32, #tpu.memory_space<vmem>>, vector<1x16x16x128xf32>
    %67 = vector.shape_cast %66 : vector<1x16x16x128xf32> to vector<16x16x128xf32>
    %c0_40 = arith.constant 0 : index
    %c6_41 = arith.constant 6 : index
    %c0_42 = arith.constant 0 : index
    %68 = vector.load %arg3[%c0_40, %c6_41, %c0_42] : memref<7x7x128xf32, #tpu.memory_space<vmem>>, vector<1x1x128xf32>
    %69 = vector.shape_cast %68 : vector<1x1x128xf32> to vector<1x128xf32>
    %70 = vector.shape_cast %69 : vector<1x128xf32> to vector<1x1x128xf32>
    %71 = vector.broadcast %70 : vector<1x1x128xf32> to vector<16x16x128xf32>
    %72 = arith.mulf %67, %71 : vector<16x16x128xf32>
    %73 = arith.addf %63, %72 : vector<16x16x128xf32>
    %c1_i32 = arith.constant 1 : i32
    %74 = arith.addi %1, %c1_i32 : i32
    %c0_43 = arith.constant 0 : index
    %75 = arith.index_cast %74 : i32 to index
    %c0_44 = arith.constant 0 : index
    %c0_45 = arith.constant 0 : index
    %76 = vector.load %arg2[%c0_43, %75, %c0_44, %c0_45] : memref<1x22x22x128xf32, #tpu.memory_space<vmem>>, vector<1x16x16x128xf32>
    %77 = vector.shape_cast %76 : vector<1x16x16x128xf32> to vector<16x16x128xf32>
    %c1_46 = arith.constant 1 : index
    %c0_47 = arith.constant 0 : index
    %c0_48 = arith.constant 0 : index
    %78 = vector.load %arg3[%c1_46, %c0_47, %c0_48] : memref<7x7x128xf32, #tpu.memory_space<vmem>>, vector<1x1x128xf32>
    %79 = vector.shape_cast %78 : vector<1x1x128xf32> to vector<1x128xf32>
    %80 = vector.shape_cast %79 : vector<1x128xf32> to vector<1x1x128xf32>
    %81 = vector.broadcast %80 : vector<1x1x128xf32> to vector<16x16x128xf32>
    %82 = arith.mulf %77, %81 : vector<16x16x128xf32>
    %83 = arith.addf %73, %82 : vector<16x16x128xf32>
    %c1_i32_49 = arith.constant 1 : i32
    %84 = arith.addi %1, %c1_i32_49 : i32
    %c0_50 = arith.constant 0 : index
    %85 = arith.index_cast %84 : i32 to index
    %c1_51 = arith.constant 1 : index
    %c0_52 = arith.constant 0 : index
    %86 = vector.load %arg2[%c0_50, %85, %c1_51, %c0_52] : memref<1x22x22x128xf32, #tpu.memory_space<vmem>>, vector<1x16x16x128xf32>
    %87 = vector.shape_cast %86 : vector<1x16x16x128xf32> to vector<16x16x128xf32>
    %c1_53 = arith.constant 1 : index
    %c1_54 = arith.constant 1 : index
    %c0_55 = arith.constant 0 : index
    %88 = vector.load %arg3[%c1_53, %c1_54, %c0_55] : memref<7x7x128xf32, #tpu.memory_space<vmem>>, vector<1x1x128xf32>
    %89 = vector.shape_cast %88 : vector<1x1x128xf32> to vector<1x128xf32>
    %90 = vector.shape_cast %89 : vector<1x128xf32> to vector<1x1x128xf32>
    %91 = vector.broadcast %90 : vector<1x1x128xf32> to vector<16x16x128xf32>
    %92 = arith.mulf %87, %91 : vector<16x16x128xf32>
    %93 = arith.addf %83, %92 : vector<16x16x128xf32>
    %c1_i32_56 = arith.constant 1 : i32
    %94 = arith.addi %1, %c1_i32_56 : i32
    %c0_57 = arith.constant 0 : index
    %95 = arith.index_cast %94 : i32 to index
    %c2_58 = arith.constant 2 : index
    %c0_59 = arith.constant 0 : index
    %96 = vector.load %arg2[%c0_57, %95, %c2_58, %c0_59] : memref<1x22x22x128xf32, #tpu.memory_space<vmem>>, vector<1x16x16x128xf32>
    %97 = vector.shape_cast %96 : vector<1x16x16x128xf32> to vector<16x16x128xf32>
    %c1_60 = arith.constant 1 : index
    %c2_61 = arith.constant 2 : index
    %c0_62 = arith.constant 0 : index
    %98 = vector.load %arg3[%c1_60, %c2_61, %c0_62] : memref<7x7x128xf32, #tpu.memory_space<vmem>>, vector<1x1x128xf32>
    %99 = vector.shape_cast %98 : vector<1x1x128xf32> to vector<1x128xf32>
    %100 = vector.shape_cast %99 : vector<1x128xf32> to vector<1x1x128xf32>
    %101 = vector.broadcast %100 : vector<1x1x128xf32> to vector<16x16x128xf32>
    %102 = arith.mulf %97, %101 : vector<16x16x128xf32>
    %103 = arith.addf %93, %102 : vector<16x16x128xf32>
    %c1_i32_63 = arith.constant 1 : i32
    %104 = arith.addi %1, %c1_i32_63 : i32
    %c0_64 = arith.constant 0 : index
    %105 = arith.index_cast %104 : i32 to index
    %c3_65 = arith.constant 3 : index
    %c0_66 = arith.constant 0 : index
    %106 = vector.load %arg2[%c0_64, %105, %c3_65, %c0_66] : memref<1x22x22x128xf32, #tpu.memory_space<vmem>>, vector<1x16x16x128xf32>
    %107 = vector.shape_cast %106 : vector<1x16x16x128xf32> to vector<16x16x128xf32>
    %c1_67 = arith.constant 1 : index
    %c3_68 = arith.constant 3 : index
    %c0_69 = arith.constant 0 : index
    %108 = vector.load %arg3[%c1_67, %c3_68, %c0_69] : memref<7x7x128xf32, #tpu.memory_space<vmem>>, vector<1x1x128xf32>
    %109 = vector.shape_cast %108 : vector<1x1x128xf32> to vector<1x128xf32>
    %110 = vector.shape_cast %109 : vector<1x128xf32> to vector<1x1x128xf32>
    %111 = vector.broadcast %110 : vector<1x1x128xf32> to vector<16x16x128xf32>
    %112 = arith.mulf %107, %111 : vector<16x16x128xf32>
    %113 = arith.addf %103, %112 : vector<16x16x128xf32>
    %c1_i32_70 = arith.constant 1 : i32
    %114 = arith.addi %1, %c1_i32_70 : i32
    %c0_71 = arith.constant 0 : index
    %115 = arith.index_cast %114 : i32 to index
    %c4_72 = arith.constant 4 : index
    %c0_73 = arith.constant 0 : index
    %116 = vector.load %arg2[%c0_71, %115, %c4_72, %c0_73] : memref<1x22x22x128xf32, #tpu.memory_space<vmem>>, vector<1x16x16x128xf32>
    %117 = vector.shape_cast %116 : vector<1x16x16x128xf32> to vector<16x16x128xf32>
    %c1_74 = arith.constant 1 : index
    %c4_75 = arith.constant 4 : index
    %c0_76 = arith.constant 0 : index
    %118 = vector.load %arg3[%c1_74, %c4_75, %c0_76] : memref<7x7x128xf32, #tpu.memory_space<vmem>>, vector<1x1x128xf32>
    %119 = vector.shape_cast %118 : vector<1x1x128xf32> to vector<1x128xf32>
    %120 = vector.shape_cast %119 : vector<1x128xf32> to vector<1x1x128xf32>
    %121 = vector.broadcast %120 : vector<1x1x128xf32> to vector<16x16x128xf32>
    %122 = arith.mulf %117, %121 : vector<16x16x128xf32>
    %123 = arith.addf %113, %122 : vector<16x16x128xf32>
    %c1_i32_77 = arith.constant 1 : i32
    %124 = arith.addi %1, %c1_i32_77 : i32
    %c0_78 = arith.constant 0 : index
    %125 = arith.index_cast %124 : i32 to index
    %c5_79 = arith.constant 5 : index
    %c0_80 = arith.constant 0 : index
    %126 = vector.load %arg2[%c0_78, %125, %c5_79, %c0_80] : memref<1x22x22x128xf32, #tpu.memory_space<vmem>>, vector<1x16x16x128xf32>
    %127 = vector.shape_cast %126 : vector<1x16x16x128xf32> to vector<16x16x128xf32>
    %c1_81 = arith.constant 1 : index
    %c5_82 = arith.constant 5 : index
    %c0_83 = arith.constant 0 : index
    %128 = vector.load %arg3[%c1_81, %c5_82, %c0_83] : memref<7x7x128xf32, #tpu.memory_space<vmem>>, vector<1x1x128xf32>
    %129 = vector.shape_cast %128 : vector<1x1x128xf32> to vector<1x128xf32>
    %130 = vector.shape_cast %129 : vector<1x128xf32> to vector<1x1x128xf32>
    %131 = vector.broadcast %130 : vector<1x1x128xf32> to vector<16x16x128xf32>
    %132 = arith.mulf %127, %131 : vector<16x16x128xf32>
    %133 = arith.addf %123, %132 : vector<16x16x128xf32>
    %c1_i32_84 = arith.constant 1 : i32
    %134 = arith.addi %1, %c1_i32_84 : i32
    %c0_85 = arith.constant 0 : index
    %135 = arith.index_cast %134 : i32 to index
    %c6_86 = arith.constant 6 : index
    %c0_87 = arith.constant 0 : index
    %136 = vector.load %arg2[%c0_85, %135, %c6_86, %c0_87] : memref<1x22x22x128xf32, #tpu.memory_space<vmem>>, vector<1x16x16x128xf32>
    %137 = vector.shape_cast %136 : vector<1x16x16x128xf32> to vector<16x16x128xf32>
    %c1_88 = arith.constant 1 : index
    %c6_89 = arith.constant 6 : index
    %c0_90 = arith.constant 0 : index
    %138 = vector.load %arg3[%c1_88, %c6_89, %c0_90] : memref<7x7x128xf32, #tpu.memory_space<vmem>>, vector<1x1x128xf32>
    %139 = vector.shape_cast %138 : vector<1x1x128xf32> to vector<1x128xf32>
    %140 = vector.shape_cast %139 : vector<1x128xf32> to vector<1x1x128xf32>
    %141 = vector.broadcast %140 : vector<1x1x128xf32> to vector<16x16x128xf32>
    %142 = arith.mulf %137, %141 : vector<16x16x128xf32>
    %143 = arith.addf %133, %142 : vector<16x16x128xf32>
    %c2_i32 = arith.constant 2 : i32
    %144 = arith.addi %1, %c2_i32 : i32
    %c0_91 = arith.constant 0 : index
    %145 = arith.index_cast %144 : i32 to index
    %c0_92 = arith.constant 0 : index
    %c0_93 = arith.constant 0 : index
    %146 = vector.load %arg2[%c0_91, %145, %c0_92, %c0_93] : memref<1x22x22x128xf32, #tpu.memory_space<vmem>>, vector<1x16x16x128xf32>
    %147 = vector.shape_cast %146 : vector<1x16x16x128xf32> to vector<16x16x128xf32>
    %c2_94 = arith.constant 2 : index
    %c0_95 = arith.constant 0 : index
    %c0_96 = arith.constant 0 : index
    %148 = vector.load %arg3[%c2_94, %c0_95, %c0_96] : memref<7x7x128xf32, #tpu.memory_space<vmem>>, vector<1x1x128xf32>
    %149 = vector.shape_cast %148 : vector<1x1x128xf32> to vector<1x128xf32>
    %150 = vector.shape_cast %149 : vector<1x128xf32> to vector<1x1x128xf32>
    %151 = vector.broadcast %150 : vector<1x1x128xf32> to vector<16x16x128xf32>
    %152 = arith.mulf %147, %151 : vector<16x16x128xf32>
    %153 = arith.addf %143, %152 : vector<16x16x128xf32>
    %c2_i32_97 = arith.constant 2 : i32
    %154 = arith.addi %1, %c2_i32_97 : i32
    %c0_98 = arith.constant 0 : index
    %155 = arith.index_cast %154 : i32 to index
    %c1_99 = arith.constant 1 : index
    %c0_100 = arith.constant 0 : index
    %156 = vector.load %arg2[%c0_98, %155, %c1_99, %c0_100] : memref<1x22x22x128xf32, #tpu.memory_space<vmem>>, vector<1x16x16x128xf32>
    %157 = vector.shape_cast %156 : vector<1x16x16x128xf32> to vector<16x16x128xf32>
    %c2_101 = arith.constant 2 : index
    %c1_102 = arith.constant 1 : index
    %c0_103 = arith.constant 0 : index
    %158 = vector.load %arg3[%c2_101, %c1_102, %c0_103] : memref<7x7x128xf32, #tpu.memory_space<vmem>>, vector<1x1x128xf32>
    %159 = vector.shape_cast %158 : vector<1x1x128xf32> to vector<1x128xf32>
    %160 = vector.shape_cast %159 : vector<1x128xf32> to vector<1x1x128xf32>
    %161 = vector.broadcast %160 : vector<1x1x128xf32> to vector<16x16x128xf32>
    %162 = arith.mulf %157, %161 : vector<16x16x128xf32>
    %163 = arith.addf %153, %162 : vector<16x16x128xf32>
    %c2_i32_104 = arith.constant 2 : i32
    %164 = arith.addi %1, %c2_i32_104 : i32
    %c0_105 = arith.constant 0 : index
    %165 = arith.index_cast %164 : i32 to index
    %c2_106 = arith.constant 2 : index
    %c0_107 = arith.constant 0 : index
    %166 = vector.load %arg2[%c0_105, %165, %c2_106, %c0_107] : memref<1x22x22x128xf32, #tpu.memory_space<vmem>>, vector<1x16x16x128xf32>
    %167 = vector.shape_cast %166 : vector<1x16x16x128xf32> to vector<16x16x128xf32>
    %c2_108 = arith.constant 2 : index
    %c2_109 = arith.constant 2 : index
    %c0_110 = arith.constant 0 : index
    %168 = vector.load %arg3[%c2_108, %c2_109, %c0_110] : memref<7x7x128xf32, #tpu.memory_space<vmem>>, vector<1x1x128xf32>
    %169 = vector.shape_cast %168 : vector<1x1x128xf32> to vector<1x128xf32>
    %170 = vector.shape_cast %169 : vector<1x128xf32> to vector<1x1x128xf32>
    %171 = vector.broadcast %170 : vector<1x1x128xf32> to vector<16x16x128xf32>
    %172 = arith.mulf %167, %171 : vector<16x16x128xf32>
    %173 = arith.addf %163, %172 : vector<16x16x128xf32>
    %c2_i32_111 = arith.constant 2 : i32
    %174 = arith.addi %1, %c2_i32_111 : i32
    %c0_112 = arith.constant 0 : index
    %175 = arith.index_cast %174 : i32 to index
    %c3_113 = arith.constant 3 : index
    %c0_114 = arith.constant 0 : index
    %176 = vector.load %arg2[%c0_112, %175, %c3_113, %c0_114] : memref<1x22x22x128xf32, #tpu.memory_space<vmem>>, vector<1x16x16x128xf32>
    %177 = vector.shape_cast %176 : vector<1x16x16x128xf32> to vector<16x16x128xf32>
    %c2_115 = arith.constant 2 : index
    %c3_116 = arith.constant 3 : index
    %c0_117 = arith.constant 0 : index
    %178 = vector.load %arg3[%c2_115, %c3_116, %c0_117] : memref<7x7x128xf32, #tpu.memory_space<vmem>>, vector<1x1x128xf32>
    %179 = vector.shape_cast %178 : vector<1x1x128xf32> to vector<1x128xf32>
    %180 = vector.shape_cast %179 : vector<1x128xf32> to vector<1x1x128xf32>
    %181 = vector.broadcast %180 : vector<1x1x128xf32> to vector<16x16x128xf32>
    %182 = arith.mulf %177, %181 : vector<16x16x128xf32>
    %183 = arith.addf %173, %182 : vector<16x16x128xf32>
    %c2_i32_118 = arith.constant 2 : i32
    %184 = arith.addi %1, %c2_i32_118 : i32
    %c0_119 = arith.constant 0 : index
    %185 = arith.index_cast %184 : i32 to index
    %c4_120 = arith.constant 4 : index
    %c0_121 = arith.constant 0 : index
    %186 = vector.load %arg2[%c0_119, %185, %c4_120, %c0_121] : memref<1x22x22x128xf32, #tpu.memory_space<vmem>>, vector<1x16x16x128xf32>
    %187 = vector.shape_cast %186 : vector<1x16x16x128xf32> to vector<16x16x128xf32>
    %c2_122 = arith.constant 2 : index
    %c4_123 = arith.constant 4 : index
    %c0_124 = arith.constant 0 : index
    %188 = vector.load %arg3[%c2_122, %c4_123, %c0_124] : memref<7x7x128xf32, #tpu.memory_space<vmem>>, vector<1x1x128xf32>
    %189 = vector.shape_cast %188 : vector<1x1x128xf32> to vector<1x128xf32>
    %190 = vector.shape_cast %189 : vector<1x128xf32> to vector<1x1x128xf32>
    %191 = vector.broadcast %190 : vector<1x1x128xf32> to vector<16x16x128xf32>
    %192 = arith.mulf %187, %191 : vector<16x16x128xf32>
    %193 = arith.addf %183, %192 : vector<16x16x128xf32>
    %c2_i32_125 = arith.constant 2 : i32
    %194 = arith.addi %1, %c2_i32_125 : i32
    %c0_126 = arith.constant 0 : index
    %195 = arith.index_cast %194 : i32 to index
    %c5_127 = arith.constant 5 : index
    %c0_128 = arith.constant 0 : index
    %196 = vector.load %arg2[%c0_126, %195, %c5_127, %c0_128] : memref<1x22x22x128xf32, #tpu.memory_space<vmem>>, vector<1x16x16x128xf32>
    %197 = vector.shape_cast %196 : vector<1x16x16x128xf32> to vector<16x16x128xf32>
    %c2_129 = arith.constant 2 : index
    %c5_130 = arith.constant 5 : index
    %c0_131 = arith.constant 0 : index
    %198 = vector.load %arg3[%c2_129, %c5_130, %c0_131] : memref<7x7x128xf32, #tpu.memory_space<vmem>>, vector<1x1x128xf32>
    %199 = vector.shape_cast %198 : vector<1x1x128xf32> to vector<1x128xf32>
    %200 = vector.shape_cast %199 : vector<1x128xf32> to vector<1x1x128xf32>
    %201 = vector.broadcast %200 : vector<1x1x128xf32> to vector<16x16x128xf32>
    %202 = arith.mulf %197, %201 : vector<16x16x128xf32>
    %203 = arith.addf %193, %202 : vector<16x16x128xf32>
    %c2_i32_132 = arith.constant 2 : i32
    %204 = arith.addi %1, %c2_i32_132 : i32
    %c0_133 = arith.constant 0 : index
    %205 = arith.index_cast %204 : i32 to index
    %c6_134 = arith.constant 6 : index
    %c0_135 = arith.constant 0 : index
    %206 = vector.load %arg2[%c0_133, %205, %c6_134, %c0_135] : memref<1x22x22x128xf32, #tpu.memory_space<vmem>>, vector<1x16x16x128xf32>
    %207 = vector.shape_cast %206 : vector<1x16x16x128xf32> to vector<16x16x128xf32>
    %c2_136 = arith.constant 2 : index
    %c6_137 = arith.constant 6 : index
    %c0_138 = arith.constant 0 : index
    %208 = vector.load %arg3[%c2_136, %c6_137, %c0_138] : memref<7x7x128xf32, #tpu.memory_space<vmem>>, vector<1x1x128xf32>
    %209 = vector.shape_cast %208 : vector<1x1x128xf32> to vector<1x128xf32>
    %210 = vector.shape_cast %209 : vector<1x128xf32> to vector<1x1x128xf32>
    %211 = vector.broadcast %210 : vector<1x1x128xf32> to vector<16x16x128xf32>
    %212 = arith.mulf %207, %211 : vector<16x16x128xf32>
    %213 = arith.addf %203, %212 : vector<16x16x128xf32>
    %c3_i32 = arith.constant 3 : i32
    %214 = arith.addi %1, %c3_i32 : i32
    %c0_139 = arith.constant 0 : index
    %215 = arith.index_cast %214 : i32 to index
    %c0_140 = arith.constant 0 : index
    %c0_141 = arith.constant 0 : index
    %216 = vector.load %arg2[%c0_139, %215, %c0_140, %c0_141] : memref<1x22x22x128xf32, #tpu.memory_space<vmem>>, vector<1x16x16x128xf32>
    %217 = vector.shape_cast %216 : vector<1x16x16x128xf32> to vector<16x16x128xf32>
    %c3_142 = arith.constant 3 : index
    %c0_143 = arith.constant 0 : index
    %c0_144 = arith.constant 0 : index
    %218 = vector.load %arg3[%c3_142, %c0_143, %c0_144] : memref<7x7x128xf32, #tpu.memory_space<vmem>>, vector<1x1x128xf32>
    %219 = vector.shape_cast %218 : vector<1x1x128xf32> to vector<1x128xf32>
    %220 = vector.shape_cast %219 : vector<1x128xf32> to vector<1x1x128xf32>
    %221 = vector.broadcast %220 : vector<1x1x128xf32> to vector<16x16x128xf32>
    %222 = arith.mulf %217, %221 : vector<16x16x128xf32>
    %223 = arith.addf %213, %222 : vector<16x16x128xf32>
    %c3_i32_145 = arith.constant 3 : i32
    %224 = arith.addi %1, %c3_i32_145 : i32
    %c0_146 = arith.constant 0 : index
    %225 = arith.index_cast %224 : i32 to index
    %c1_147 = arith.constant 1 : index
    %c0_148 = arith.constant 0 : index
    %226 = vector.load %arg2[%c0_146, %225, %c1_147, %c0_148] : memref<1x22x22x128xf32, #tpu.memory_space<vmem>>, vector<1x16x16x128xf32>
    %227 = vector.shape_cast %226 : vector<1x16x16x128xf32> to vector<16x16x128xf32>
    %c3_149 = arith.constant 3 : index
    %c1_150 = arith.constant 1 : index
    %c0_151 = arith.constant 0 : index
    %228 = vector.load %arg3[%c3_149, %c1_150, %c0_151] : memref<7x7x128xf32, #tpu.memory_space<vmem>>, vector<1x1x128xf32>
    %229 = vector.shape_cast %228 : vector<1x1x128xf32> to vector<1x128xf32>
    %230 = vector.shape_cast %229 : vector<1x128xf32> to vector<1x1x128xf32>
    %231 = vector.broadcast %230 : vector<1x1x128xf32> to vector<16x16x128xf32>
    %232 = arith.mulf %227, %231 : vector<16x16x128xf32>
    %233 = arith.addf %223, %232 : vector<16x16x128xf32>
    %c3_i32_152 = arith.constant 3 : i32
    %234 = arith.addi %1, %c3_i32_152 : i32
    %c0_153 = arith.constant 0 : index
    %235 = arith.index_cast %234 : i32 to index
    %c2_154 = arith.constant 2 : index
    %c0_155 = arith.constant 0 : index
    %236 = vector.load %arg2[%c0_153, %235, %c2_154, %c0_155] : memref<1x22x22x128xf32, #tpu.memory_space<vmem>>, vector<1x16x16x128xf32>
    %237 = vector.shape_cast %236 : vector<1x16x16x128xf32> to vector<16x16x128xf32>
    %c3_156 = arith.constant 3 : index
    %c2_157 = arith.constant 2 : index
    %c0_158 = arith.constant 0 : index
    %238 = vector.load %arg3[%c3_156, %c2_157, %c0_158] : memref<7x7x128xf32, #tpu.memory_space<vmem>>, vector<1x1x128xf32>
    %239 = vector.shape_cast %238 : vector<1x1x128xf32> to vector<1x128xf32>
    %240 = vector.shape_cast %239 : vector<1x128xf32> to vector<1x1x128xf32>
    %241 = vector.broadcast %240 : vector<1x1x128xf32> to vector<16x16x128xf32>
    %242 = arith.mulf %237, %241 : vector<16x16x128xf32>
    %243 = arith.addf %233, %242 : vector<16x16x128xf32>
    %c3_i32_159 = arith.constant 3 : i32
    %244 = arith.addi %1, %c3_i32_159 : i32
    %c0_160 = arith.constant 0 : index
    %245 = arith.index_cast %244 : i32 to index
    %c3_161 = arith.constant 3 : index
    %c0_162 = arith.constant 0 : index
    %246 = vector.load %arg2[%c0_160, %245, %c3_161, %c0_162] : memref<1x22x22x128xf32, #tpu.memory_space<vmem>>, vector<1x16x16x128xf32>
    %247 = vector.shape_cast %246 : vector<1x16x16x128xf32> to vector<16x16x128xf32>
    %c3_163 = arith.constant 3 : index
    %c3_164 = arith.constant 3 : index
    %c0_165 = arith.constant 0 : index
    %248 = vector.load %arg3[%c3_163, %c3_164, %c0_165] : memref<7x7x128xf32, #tpu.memory_space<vmem>>, vector<1x1x128xf32>
    %249 = vector.shape_cast %248 : vector<1x1x128xf32> to vector<1x128xf32>
    %250 = vector.shape_cast %249 : vector<1x128xf32> to vector<1x1x128xf32>
    %251 = vector.broadcast %250 : vector<1x1x128xf32> to vector<16x16x128xf32>
    %252 = arith.mulf %247, %251 : vector<16x16x128xf32>
    %253 = arith.addf %243, %252 : vector<16x16x128xf32>
    %c3_i32_166 = arith.constant 3 : i32
    %254 = arith.addi %1, %c3_i32_166 : i32
    %c0_167 = arith.constant 0 : index
    %255 = arith.index_cast %254 : i32 to index
    %c4_168 = arith.constant 4 : index
    %c0_169 = arith.constant 0 : index
    %256 = vector.load %arg2[%c0_167, %255, %c4_168, %c0_169] : memref<1x22x22x128xf32, #tpu.memory_space<vmem>>, vector<1x16x16x128xf32>
    %257 = vector.shape_cast %256 : vector<1x16x16x128xf32> to vector<16x16x128xf32>
    %c3_170 = arith.constant 3 : index
    %c4_171 = arith.constant 4 : index
    %c0_172 = arith.constant 0 : index
    %258 = vector.load %arg3[%c3_170, %c4_171, %c0_172] : memref<7x7x128xf32, #tpu.memory_space<vmem>>, vector<1x1x128xf32>
    %259 = vector.shape_cast %258 : vector<1x1x128xf32> to vector<1x128xf32>
    %260 = vector.shape_cast %259 : vector<1x128xf32> to vector<1x1x128xf32>
    %261 = vector.broadcast %260 : vector<1x1x128xf32> to vector<16x16x128xf32>
    %262 = arith.mulf %257, %261 : vector<16x16x128xf32>
    %263 = arith.addf %253, %262 : vector<16x16x128xf32>
    %c3_i32_173 = arith.constant 3 : i32
    %264 = arith.addi %1, %c3_i32_173 : i32
    %c0_174 = arith.constant 0 : index
    %265 = arith.index_cast %264 : i32 to index
    %c5_175 = arith.constant 5 : index
    %c0_176 = arith.constant 0 : index
    %266 = vector.load %arg2[%c0_174, %265, %c5_175, %c0_176] : memref<1x22x22x128xf32, #tpu.memory_space<vmem>>, vector<1x16x16x128xf32>
    %267 = vector.shape_cast %266 : vector<1x16x16x128xf32> to vector<16x16x128xf32>
    %c3_177 = arith.constant 3 : index
    %c5_178 = arith.constant 5 : index
    %c0_179 = arith.constant 0 : index
    %268 = vector.load %arg3[%c3_177, %c5_178, %c0_179] : memref<7x7x128xf32, #tpu.memory_space<vmem>>, vector<1x1x128xf32>
    %269 = vector.shape_cast %268 : vector<1x1x128xf32> to vector<1x128xf32>
    %270 = vector.shape_cast %269 : vector<1x128xf32> to vector<1x1x128xf32>
    %271 = vector.broadcast %270 : vector<1x1x128xf32> to vector<16x16x128xf32>
    %272 = arith.mulf %267, %271 : vector<16x16x128xf32>
    %273 = arith.addf %263, %272 : vector<16x16x128xf32>
    %c3_i32_180 = arith.constant 3 : i32
    %274 = arith.addi %1, %c3_i32_180 : i32
    %c0_181 = arith.constant 0 : index
    %275 = arith.index_cast %274 : i32 to index
    %c6_182 = arith.constant 6 : index
    %c0_183 = arith.constant 0 : index
    %276 = vector.load %arg2[%c0_181, %275, %c6_182, %c0_183] : memref<1x22x22x128xf32, #tpu.memory_space<vmem>>, vector<1x16x16x128xf32>
    %277 = vector.shape_cast %276 : vector<1x16x16x128xf32> to vector<16x16x128xf32>
    %c3_184 = arith.constant 3 : index
    %c6_185 = arith.constant 6 : index
    %c0_186 = arith.constant 0 : index
    %278 = vector.load %arg3[%c3_184, %c6_185, %c0_186] : memref<7x7x128xf32, #tpu.memory_space<vmem>>, vector<1x1x128xf32>
    %279 = vector.shape_cast %278 : vector<1x1x128xf32> to vector<1x128xf32>
    %280 = vector.shape_cast %279 : vector<1x128xf32> to vector<1x1x128xf32>
    %281 = vector.broadcast %280 : vector<1x1x128xf32> to vector<16x16x128xf32>
    %282 = arith.mulf %277, %281 : vector<16x16x128xf32>
    %283 = arith.addf %273, %282 : vector<16x16x128xf32>
    %c4_i32 = arith.constant 4 : i32
    %284 = arith.addi %1, %c4_i32 : i32
    %c0_187 = arith.constant 0 : index
    %285 = arith.index_cast %284 : i32 to index
    %c0_188 = arith.constant 0 : index
    %c0_189 = arith.constant 0 : index
    %286 = vector.load %arg2[%c0_187, %285, %c0_188, %c0_189] : memref<1x22x22x128xf32, #tpu.memory_space<vmem>>, vector<1x16x16x128xf32>
    %287 = vector.shape_cast %286 : vector<1x16x16x128xf32> to vector<16x16x128xf32>
    %c4_190 = arith.constant 4 : index
    %c0_191 = arith.constant 0 : index
    %c0_192 = arith.constant 0 : index
    %288 = vector.load %arg3[%c4_190, %c0_191, %c0_192] : memref<7x7x128xf32, #tpu.memory_space<vmem>>, vector<1x1x128xf32>
    %289 = vector.shape_cast %288 : vector<1x1x128xf32> to vector<1x128xf32>
    %290 = vector.shape_cast %289 : vector<1x128xf32> to vector<1x1x128xf32>
    %291 = vector.broadcast %290 : vector<1x1x128xf32> to vector<16x16x128xf32>
    %292 = arith.mulf %287, %291 : vector<16x16x128xf32>
    %293 = arith.addf %283, %292 : vector<16x16x128xf32>
    %c4_i32_193 = arith.constant 4 : i32
    %294 = arith.addi %1, %c4_i32_193 : i32
    %c0_194 = arith.constant 0 : index
    %295 = arith.index_cast %294 : i32 to index
    %c1_195 = arith.constant 1 : index
    %c0_196 = arith.constant 0 : index
    %296 = vector.load %arg2[%c0_194, %295, %c1_195, %c0_196] : memref<1x22x22x128xf32, #tpu.memory_space<vmem>>, vector<1x16x16x128xf32>
    %297 = vector.shape_cast %296 : vector<1x16x16x128xf32> to vector<16x16x128xf32>
    %c4_197 = arith.constant 4 : index
    %c1_198 = arith.constant 1 : index
    %c0_199 = arith.constant 0 : index
    %298 = vector.load %arg3[%c4_197, %c1_198, %c0_199] : memref<7x7x128xf32, #tpu.memory_space<vmem>>, vector<1x1x128xf32>
    %299 = vector.shape_cast %298 : vector<1x1x128xf32> to vector<1x128xf32>
    %300 = vector.shape_cast %299 : vector<1x128xf32> to vector<1x1x128xf32>
    %301 = vector.broadcast %300 : vector<1x1x128xf32> to vector<16x16x128xf32>
    %302 = arith.mulf %297, %301 : vector<16x16x128xf32>
    %303 = arith.addf %293, %302 : vector<16x16x128xf32>
    %c4_i32_200 = arith.constant 4 : i32
    %304 = arith.addi %1, %c4_i32_200 : i32
    %c0_201 = arith.constant 0 : index
    %305 = arith.index_cast %304 : i32 to index
    %c2_202 = arith.constant 2 : index
    %c0_203 = arith.constant 0 : index
    %306 = vector.load %arg2[%c0_201, %305, %c2_202, %c0_203] : memref<1x22x22x128xf32, #tpu.memory_space<vmem>>, vector<1x16x16x128xf32>
    %307 = vector.shape_cast %306 : vector<1x16x16x128xf32> to vector<16x16x128xf32>
    %c4_204 = arith.constant 4 : index
    %c2_205 = arith.constant 2 : index
    %c0_206 = arith.constant 0 : index
    %308 = vector.load %arg3[%c4_204, %c2_205, %c0_206] : memref<7x7x128xf32, #tpu.memory_space<vmem>>, vector<1x1x128xf32>
    %309 = vector.shape_cast %308 : vector<1x1x128xf32> to vector<1x128xf32>
    %310 = vector.shape_cast %309 : vector<1x128xf32> to vector<1x1x128xf32>
    %311 = vector.broadcast %310 : vector<1x1x128xf32> to vector<16x16x128xf32>
    %312 = arith.mulf %307, %311 : vector<16x16x128xf32>
    %313 = arith.addf %303, %312 : vector<16x16x128xf32>
    %c4_i32_207 = arith.constant 4 : i32
    %314 = arith.addi %1, %c4_i32_207 : i32
    %c0_208 = arith.constant 0 : index
    %315 = arith.index_cast %314 : i32 to index
    %c3_209 = arith.constant 3 : index
    %c0_210 = arith.constant 0 : index
    %316 = vector.load %arg2[%c0_208, %315, %c3_209, %c0_210] : memref<1x22x22x128xf32, #tpu.memory_space<vmem>>, vector<1x16x16x128xf32>
    %317 = vector.shape_cast %316 : vector<1x16x16x128xf32> to vector<16x16x128xf32>
    %c4_211 = arith.constant 4 : index
    %c3_212 = arith.constant 3 : index
    %c0_213 = arith.constant 0 : index
    %318 = vector.load %arg3[%c4_211, %c3_212, %c0_213] : memref<7x7x128xf32, #tpu.memory_space<vmem>>, vector<1x1x128xf32>
    %319 = vector.shape_cast %318 : vector<1x1x128xf32> to vector<1x128xf32>
    %320 = vector.shape_cast %319 : vector<1x128xf32> to vector<1x1x128xf32>
    %321 = vector.broadcast %320 : vector<1x1x128xf32> to vector<16x16x128xf32>
    %322 = arith.mulf %317, %321 : vector<16x16x128xf32>
    %323 = arith.addf %313, %322 : vector<16x16x128xf32>
    %c4_i32_214 = arith.constant 4 : i32
    %324 = arith.addi %1, %c4_i32_214 : i32
    %c0_215 = arith.constant 0 : index
    %325 = arith.index_cast %324 : i32 to index
    %c4_216 = arith.constant 4 : index
    %c0_217 = arith.constant 0 : index
    %326 = vector.load %arg2[%c0_215, %325, %c4_216, %c0_217] : memref<1x22x22x128xf32, #tpu.memory_space<vmem>>, vector<1x16x16x128xf32>
    %327 = vector.shape_cast %326 : vector<1x16x16x128xf32> to vector<16x16x128xf32>
    %c4_218 = arith.constant 4 : index
    %c4_219 = arith.constant 4 : index
    %c0_220 = arith.constant 0 : index
    %328 = vector.load %arg3[%c4_218, %c4_219, %c0_220] : memref<7x7x128xf32, #tpu.memory_space<vmem>>, vector<1x1x128xf32>
    %329 = vector.shape_cast %328 : vector<1x1x128xf32> to vector<1x128xf32>
    %330 = vector.shape_cast %329 : vector<1x128xf32> to vector<1x1x128xf32>
    %331 = vector.broadcast %330 : vector<1x1x128xf32> to vector<16x16x128xf32>
    %332 = arith.mulf %327, %331 : vector<16x16x128xf32>
    %333 = arith.addf %323, %332 : vector<16x16x128xf32>
    %c4_i32_221 = arith.constant 4 : i32
    %334 = arith.addi %1, %c4_i32_221 : i32
    %c0_222 = arith.constant 0 : index
    %335 = arith.index_cast %334 : i32 to index
    %c5_223 = arith.constant 5 : index
    %c0_224 = arith.constant 0 : index
    %336 = vector.load %arg2[%c0_222, %335, %c5_223, %c0_224] : memref<1x22x22x128xf32, #tpu.memory_space<vmem>>, vector<1x16x16x128xf32>
    %337 = vector.shape_cast %336 : vector<1x16x16x128xf32> to vector<16x16x128xf32>
    %c4_225 = arith.constant 4 : index
    %c5_226 = arith.constant 5 : index
    %c0_227 = arith.constant 0 : index
    %338 = vector.load %arg3[%c4_225, %c5_226, %c0_227] : memref<7x7x128xf32, #tpu.memory_space<vmem>>, vector<1x1x128xf32>
    %339 = vector.shape_cast %338 : vector<1x1x128xf32> to vector<1x128xf32>
    %340 = vector.shape_cast %339 : vector<1x128xf32> to vector<1x1x128xf32>
    %341 = vector.broadcast %340 : vector<1x1x128xf32> to vector<16x16x128xf32>
    %342 = arith.mulf %337, %341 : vector<16x16x128xf32>
    %343 = arith.addf %333, %342 : vector<16x16x128xf32>
    %c4_i32_228 = arith.constant 4 : i32
    %344 = arith.addi %1, %c4_i32_228 : i32
    %c0_229 = arith.constant 0 : index
    %345 = arith.index_cast %344 : i32 to index
    %c6_230 = arith.constant 6 : index
    %c0_231 = arith.constant 0 : index
    %346 = vector.load %arg2[%c0_229, %345, %c6_230, %c0_231] : memref<1x22x22x128xf32, #tpu.memory_space<vmem>>, vector<1x16x16x128xf32>
    %347 = vector.shape_cast %346 : vector<1x16x16x128xf32> to vector<16x16x128xf32>
    %c4_232 = arith.constant 4 : index
    %c6_233 = arith.constant 6 : index
    %c0_234 = arith.constant 0 : index
    %348 = vector.load %arg3[%c4_232, %c6_233, %c0_234] : memref<7x7x128xf32, #tpu.memory_space<vmem>>, vector<1x1x128xf32>
    %349 = vector.shape_cast %348 : vector<1x1x128xf32> to vector<1x128xf32>
    %350 = vector.shape_cast %349 : vector<1x128xf32> to vector<1x1x128xf32>
    %351 = vector.broadcast %350 : vector<1x1x128xf32> to vector<16x16x128xf32>
    %352 = arith.mulf %347, %351 : vector<16x16x128xf32>
    %353 = arith.addf %343, %352 : vector<16x16x128xf32>
    %c5_i32 = arith.constant 5 : i32
    %354 = arith.addi %1, %c5_i32 : i32
    %c0_235 = arith.constant 0 : index
    %355 = arith.index_cast %354 : i32 to index
    %c0_236 = arith.constant 0 : index
    %c0_237 = arith.constant 0 : index
    %356 = vector.load %arg2[%c0_235, %355, %c0_236, %c0_237] : memref<1x22x22x128xf32, #tpu.memory_space<vmem>>, vector<1x16x16x128xf32>
    %357 = vector.shape_cast %356 : vector<1x16x16x128xf32> to vector<16x16x128xf32>
    %c5_238 = arith.constant 5 : index
    %c0_239 = arith.constant 0 : index
    %c0_240 = arith.constant 0 : index
    %358 = vector.load %arg3[%c5_238, %c0_239, %c0_240] : memref<7x7x128xf32, #tpu.memory_space<vmem>>, vector<1x1x128xf32>
    %359 = vector.shape_cast %358 : vector<1x1x128xf32> to vector<1x128xf32>
    %360 = vector.shape_cast %359 : vector<1x128xf32> to vector<1x1x128xf32>
    %361 = vector.broadcast %360 : vector<1x1x128xf32> to vector<16x16x128xf32>
    %362 = arith.mulf %357, %361 : vector<16x16x128xf32>
    %363 = arith.addf %353, %362 : vector<16x16x128xf32>
    %c5_i32_241 = arith.constant 5 : i32
    %364 = arith.addi %1, %c5_i32_241 : i32
    %c0_242 = arith.constant 0 : index
    %365 = arith.index_cast %364 : i32 to index
    %c1_243 = arith.constant 1 : index
    %c0_244 = arith.constant 0 : index
    %366 = vector.load %arg2[%c0_242, %365, %c1_243, %c0_244] : memref<1x22x22x128xf32, #tpu.memory_space<vmem>>, vector<1x16x16x128xf32>
    %367 = vector.shape_cast %366 : vector<1x16x16x128xf32> to vector<16x16x128xf32>
    %c5_245 = arith.constant 5 : index
    %c1_246 = arith.constant 1 : index
    %c0_247 = arith.constant 0 : index
    %368 = vector.load %arg3[%c5_245, %c1_246, %c0_247] : memref<7x7x128xf32, #tpu.memory_space<vmem>>, vector<1x1x128xf32>
    %369 = vector.shape_cast %368 : vector<1x1x128xf32> to vector<1x128xf32>
    %370 = vector.shape_cast %369 : vector<1x128xf32> to vector<1x1x128xf32>
    %371 = vector.broadcast %370 : vector<1x1x128xf32> to vector<16x16x128xf32>
    %372 = arith.mulf %367, %371 : vector<16x16x128xf32>
    %373 = arith.addf %363, %372 : vector<16x16x128xf32>
    %c5_i32_248 = arith.constant 5 : i32
    %374 = arith.addi %1, %c5_i32_248 : i32
    %c0_249 = arith.constant 0 : index
    %375 = arith.index_cast %374 : i32 to index
    %c2_250 = arith.constant 2 : index
    %c0_251 = arith.constant 0 : index
    %376 = vector.load %arg2[%c0_249, %375, %c2_250, %c0_251] : memref<1x22x22x128xf32, #tpu.memory_space<vmem>>, vector<1x16x16x128xf32>
    %377 = vector.shape_cast %376 : vector<1x16x16x128xf32> to vector<16x16x128xf32>
    %c5_252 = arith.constant 5 : index
    %c2_253 = arith.constant 2 : index
    %c0_254 = arith.constant 0 : index
    %378 = vector.load %arg3[%c5_252, %c2_253, %c0_254] : memref<7x7x128xf32, #tpu.memory_space<vmem>>, vector<1x1x128xf32>
    %379 = vector.shape_cast %378 : vector<1x1x128xf32> to vector<1x128xf32>
    %380 = vector.shape_cast %379 : vector<1x128xf32> to vector<1x1x128xf32>
    %381 = vector.broadcast %380 : vector<1x1x128xf32> to vector<16x16x128xf32>
    %382 = arith.mulf %377, %381 : vector<16x16x128xf32>
    %383 = arith.addf %373, %382 : vector<16x16x128xf32>
    %c5_i32_255 = arith.constant 5 : i32
    %384 = arith.addi %1, %c5_i32_255 : i32
    %c0_256 = arith.constant 0 : index
    %385 = arith.index_cast %384 : i32 to index
    %c3_257 = arith.constant 3 : index
    %c0_258 = arith.constant 0 : index
    %386 = vector.load %arg2[%c0_256, %385, %c3_257, %c0_258] : memref<1x22x22x128xf32, #tpu.memory_space<vmem>>, vector<1x16x16x128xf32>
    %387 = vector.shape_cast %386 : vector<1x16x16x128xf32> to vector<16x16x128xf32>
    %c5_259 = arith.constant 5 : index
    %c3_260 = arith.constant 3 : index
    %c0_261 = arith.constant 0 : index
    %388 = vector.load %arg3[%c5_259, %c3_260, %c0_261] : memref<7x7x128xf32, #tpu.memory_space<vmem>>, vector<1x1x128xf32>
    %389 = vector.shape_cast %388 : vector<1x1x128xf32> to vector<1x128xf32>
    %390 = vector.shape_cast %389 : vector<1x128xf32> to vector<1x1x128xf32>
    %391 = vector.broadcast %390 : vector<1x1x128xf32> to vector<16x16x128xf32>
    %392 = arith.mulf %387, %391 : vector<16x16x128xf32>
    %393 = arith.addf %383, %392 : vector<16x16x128xf32>
    %c5_i32_262 = arith.constant 5 : i32
    %394 = arith.addi %1, %c5_i32_262 : i32
    %c0_263 = arith.constant 0 : index
    %395 = arith.index_cast %394 : i32 to index
    %c4_264 = arith.constant 4 : index
    %c0_265 = arith.constant 0 : index
    %396 = vector.load %arg2[%c0_263, %395, %c4_264, %c0_265] : memref<1x22x22x128xf32, #tpu.memory_space<vmem>>, vector<1x16x16x128xf32>
    %397 = vector.shape_cast %396 : vector<1x16x16x128xf32> to vector<16x16x128xf32>
    %c5_266 = arith.constant 5 : index
    %c4_267 = arith.constant 4 : index
    %c0_268 = arith.constant 0 : index
    %398 = vector.load %arg3[%c5_266, %c4_267, %c0_268] : memref<7x7x128xf32, #tpu.memory_space<vmem>>, vector<1x1x128xf32>
    %399 = vector.shape_cast %398 : vector<1x1x128xf32> to vector<1x128xf32>
    %400 = vector.shape_cast %399 : vector<1x128xf32> to vector<1x1x128xf32>
    %401 = vector.broadcast %400 : vector<1x1x128xf32> to vector<16x16x128xf32>
    %402 = arith.mulf %397, %401 : vector<16x16x128xf32>
    %403 = arith.addf %393, %402 : vector<16x16x128xf32>
    %c5_i32_269 = arith.constant 5 : i32
    %404 = arith.addi %1, %c5_i32_269 : i32
    %c0_270 = arith.constant 0 : index
    %405 = arith.index_cast %404 : i32 to index
    %c5_271 = arith.constant 5 : index
    %c0_272 = arith.constant 0 : index
    %406 = vector.load %arg2[%c0_270, %405, %c5_271, %c0_272] : memref<1x22x22x128xf32, #tpu.memory_space<vmem>>, vector<1x16x16x128xf32>
    %407 = vector.shape_cast %406 : vector<1x16x16x128xf32> to vector<16x16x128xf32>
    %c5_273 = arith.constant 5 : index
    %c5_274 = arith.constant 5 : index
    %c0_275 = arith.constant 0 : index
    %408 = vector.load %arg3[%c5_273, %c5_274, %c0_275] : memref<7x7x128xf32, #tpu.memory_space<vmem>>, vector<1x1x128xf32>
    %409 = vector.shape_cast %408 : vector<1x1x128xf32> to vector<1x128xf32>
    %410 = vector.shape_cast %409 : vector<1x128xf32> to vector<1x1x128xf32>
    %411 = vector.broadcast %410 : vector<1x1x128xf32> to vector<16x16x128xf32>
    %412 = arith.mulf %407, %411 : vector<16x16x128xf32>
    %413 = arith.addf %403, %412 : vector<16x16x128xf32>
    %c5_i32_276 = arith.constant 5 : i32
    %414 = arith.addi %1, %c5_i32_276 : i32
    %c0_277 = arith.constant 0 : index
    %415 = arith.index_cast %414 : i32 to index
    %c6_278 = arith.constant 6 : index
    %c0_279 = arith.constant 0 : index
    %416 = vector.load %arg2[%c0_277, %415, %c6_278, %c0_279] : memref<1x22x22x128xf32, #tpu.memory_space<vmem>>, vector<1x16x16x128xf32>
    %417 = vector.shape_cast %416 : vector<1x16x16x128xf32> to vector<16x16x128xf32>
    %c5_280 = arith.constant 5 : index
    %c6_281 = arith.constant 6 : index
    %c0_282 = arith.constant 0 : index
    %418 = vector.load %arg3[%c5_280, %c6_281, %c0_282] : memref<7x7x128xf32, #tpu.memory_space<vmem>>, vector<1x1x128xf32>
    %419 = vector.shape_cast %418 : vector<1x1x128xf32> to vector<1x128xf32>
    %420 = vector.shape_cast %419 : vector<1x128xf32> to vector<1x1x128xf32>
    %421 = vector.broadcast %420 : vector<1x1x128xf32> to vector<16x16x128xf32>
    %422 = arith.mulf %417, %421 : vector<16x16x128xf32>
    %423 = arith.addf %413, %422 : vector<16x16x128xf32>
    %c6_i32 = arith.constant 6 : i32
    %424 = arith.addi %1, %c6_i32 : i32
    %c0_283 = arith.constant 0 : index
    %425 = arith.index_cast %424 : i32 to index
    %c0_284 = arith.constant 0 : index
    %c0_285 = arith.constant 0 : index
    %426 = vector.load %arg2[%c0_283, %425, %c0_284, %c0_285] : memref<1x22x22x128xf32, #tpu.memory_space<vmem>>, vector<1x16x16x128xf32>
    %427 = vector.shape_cast %426 : vector<1x16x16x128xf32> to vector<16x16x128xf32>
    %c6_286 = arith.constant 6 : index
    %c0_287 = arith.constant 0 : index
    %c0_288 = arith.constant 0 : index
    %428 = vector.load %arg3[%c6_286, %c0_287, %c0_288] : memref<7x7x128xf32, #tpu.memory_space<vmem>>, vector<1x1x128xf32>
    %429 = vector.shape_cast %428 : vector<1x1x128xf32> to vector<1x128xf32>
    %430 = vector.shape_cast %429 : vector<1x128xf32> to vector<1x1x128xf32>
    %431 = vector.broadcast %430 : vector<1x1x128xf32> to vector<16x16x128xf32>
    %432 = arith.mulf %427, %431 : vector<16x16x128xf32>
    %433 = arith.addf %423, %432 : vector<16x16x128xf32>
    %c6_i32_289 = arith.constant 6 : i32
    %434 = arith.addi %1, %c6_i32_289 : i32
    %c0_290 = arith.constant 0 : index
    %435 = arith.index_cast %434 : i32 to index
    %c1_291 = arith.constant 1 : index
    %c0_292 = arith.constant 0 : index
    %436 = vector.load %arg2[%c0_290, %435, %c1_291, %c0_292] : memref<1x22x22x128xf32, #tpu.memory_space<vmem>>, vector<1x16x16x128xf32>
    %437 = vector.shape_cast %436 : vector<1x16x16x128xf32> to vector<16x16x128xf32>
    %c6_293 = arith.constant 6 : index
    %c1_294 = arith.constant 1 : index
    %c0_295 = arith.constant 0 : index
    %438 = vector.load %arg3[%c6_293, %c1_294, %c0_295] : memref<7x7x128xf32, #tpu.memory_space<vmem>>, vector<1x1x128xf32>
    %439 = vector.shape_cast %438 : vector<1x1x128xf32> to vector<1x128xf32>
    %440 = vector.shape_cast %439 : vector<1x128xf32> to vector<1x1x128xf32>
    %441 = vector.broadcast %440 : vector<1x1x128xf32> to vector<16x16x128xf32>
    %442 = arith.mulf %437, %441 : vector<16x16x128xf32>
    %443 = arith.addf %433, %442 : vector<16x16x128xf32>
    %c6_i32_296 = arith.constant 6 : i32
    %444 = arith.addi %1, %c6_i32_296 : i32
    %c0_297 = arith.constant 0 : index
    %445 = arith.index_cast %444 : i32 to index
    %c2_298 = arith.constant 2 : index
    %c0_299 = arith.constant 0 : index
    %446 = vector.load %arg2[%c0_297, %445, %c2_298, %c0_299] : memref<1x22x22x128xf32, #tpu.memory_space<vmem>>, vector<1x16x16x128xf32>
    %447 = vector.shape_cast %446 : vector<1x16x16x128xf32> to vector<16x16x128xf32>
    %c6_300 = arith.constant 6 : index
    %c2_301 = arith.constant 2 : index
    %c0_302 = arith.constant 0 : index
    %448 = vector.load %arg3[%c6_300, %c2_301, %c0_302] : memref<7x7x128xf32, #tpu.memory_space<vmem>>, vector<1x1x128xf32>
    %449 = vector.shape_cast %448 : vector<1x1x128xf32> to vector<1x128xf32>
    %450 = vector.shape_cast %449 : vector<1x128xf32> to vector<1x1x128xf32>
    %451 = vector.broadcast %450 : vector<1x1x128xf32> to vector<16x16x128xf32>
    %452 = arith.mulf %447, %451 : vector<16x16x128xf32>
    %453 = arith.addf %443, %452 : vector<16x16x128xf32>
    %c6_i32_303 = arith.constant 6 : i32
    %454 = arith.addi %1, %c6_i32_303 : i32
    %c0_304 = arith.constant 0 : index
    %455 = arith.index_cast %454 : i32 to index
    %c3_305 = arith.constant 3 : index
    %c0_306 = arith.constant 0 : index
    %456 = vector.load %arg2[%c0_304, %455, %c3_305, %c0_306] : memref<1x22x22x128xf32, #tpu.memory_space<vmem>>, vector<1x16x16x128xf32>
    %457 = vector.shape_cast %456 : vector<1x16x16x128xf32> to vector<16x16x128xf32>
    %c6_307 = arith.constant 6 : index
    %c3_308 = arith.constant 3 : index
    %c0_309 = arith.constant 0 : index
    %458 = vector.load %arg3[%c6_307, %c3_308, %c0_309] : memref<7x7x128xf32, #tpu.memory_space<vmem>>, vector<1x1x128xf32>
    %459 = vector.shape_cast %458 : vector<1x1x128xf32> to vector<1x128xf32>
    %460 = vector.shape_cast %459 : vector<1x128xf32> to vector<1x1x128xf32>
    %461 = vector.broadcast %460 : vector<1x1x128xf32> to vector<16x16x128xf32>
    %462 = arith.mulf %457, %461 : vector<16x16x128xf32>
    %463 = arith.addf %453, %462 : vector<16x16x128xf32>
    %c6_i32_310 = arith.constant 6 : i32
    %464 = arith.addi %1, %c6_i32_310 : i32
    %c0_311 = arith.constant 0 : index
    %465 = arith.index_cast %464 : i32 to index
    %c4_312 = arith.constant 4 : index
    %c0_313 = arith.constant 0 : index
    %466 = vector.load %arg2[%c0_311, %465, %c4_312, %c0_313] : memref<1x22x22x128xf32, #tpu.memory_space<vmem>>, vector<1x16x16x128xf32>
    %467 = vector.shape_cast %466 : vector<1x16x16x128xf32> to vector<16x16x128xf32>
    %c6_314 = arith.constant 6 : index
    %c4_315 = arith.constant 4 : index
    %c0_316 = arith.constant 0 : index
    %468 = vector.load %arg3[%c6_314, %c4_315, %c0_316] : memref<7x7x128xf32, #tpu.memory_space<vmem>>, vector<1x1x128xf32>
    %469 = vector.shape_cast %468 : vector<1x1x128xf32> to vector<1x128xf32>
    %470 = vector.shape_cast %469 : vector<1x128xf32> to vector<1x1x128xf32>
    %471 = vector.broadcast %470 : vector<1x1x128xf32> to vector<16x16x128xf32>
    %472 = arith.mulf %467, %471 : vector<16x16x128xf32>
    %473 = arith.addf %463, %472 : vector<16x16x128xf32>
    %c6_i32_317 = arith.constant 6 : i32
    %474 = arith.addi %1, %c6_i32_317 : i32
    %c0_318 = arith.constant 0 : index
    %475 = arith.index_cast %474 : i32 to index
    %c5_319 = arith.constant 5 : index
    %c0_320 = arith.constant 0 : index
    %476 = vector.load %arg2[%c0_318, %475, %c5_319, %c0_320] : memref<1x22x22x128xf32, #tpu.memory_space<vmem>>, vector<1x16x16x128xf32>
    %477 = vector.shape_cast %476 : vector<1x16x16x128xf32> to vector<16x16x128xf32>
    %c6_321 = arith.constant 6 : index
    %c5_322 = arith.constant 5 : index
    %c0_323 = arith.constant 0 : index
    %478 = vector.load %arg3[%c6_321, %c5_322, %c0_323] : memref<7x7x128xf32, #tpu.memory_space<vmem>>, vector<1x1x128xf32>
    %479 = vector.shape_cast %478 : vector<1x1x128xf32> to vector<1x128xf32>
    %480 = vector.shape_cast %479 : vector<1x128xf32> to vector<1x1x128xf32>
    %481 = vector.broadcast %480 : vector<1x1x128xf32> to vector<16x16x128xf32>
    %482 = arith.mulf %477, %481 : vector<16x16x128xf32>
    %483 = arith.addf %473, %482 : vector<16x16x128xf32>
    %c6_i32_324 = arith.constant 6 : i32
    %484 = arith.addi %1, %c6_i32_324 : i32
    %c0_325 = arith.constant 0 : index
    %485 = arith.index_cast %484 : i32 to index
    %c6_326 = arith.constant 6 : index
    %c0_327 = arith.constant 0 : index
    %486 = vector.load %arg2[%c0_325, %485, %c6_326, %c0_327] : memref<1x22x22x128xf32, #tpu.memory_space<vmem>>, vector<1x16x16x128xf32>
    %487 = vector.shape_cast %486 : vector<1x16x16x128xf32> to vector<16x16x128xf32>
    %c6_328 = arith.constant 6 : index
    %c6_329 = arith.constant 6 : index
    %c0_330 = arith.constant 0 : index
    %488 = vector.load %arg3[%c6_328, %c6_329, %c0_330] : memref<7x7x128xf32, #tpu.memory_space<vmem>>, vector<1x1x128xf32>
    %489 = vector.shape_cast %488 : vector<1x1x128xf32> to vector<1x128xf32>
    %490 = vector.shape_cast %489 : vector<1x128xf32> to vector<1x1x128xf32>
    %491 = vector.broadcast %490 : vector<1x1x128xf32> to vector<16x16x128xf32>
    %492 = arith.mulf %487, %491 : vector<16x16x128xf32>
    %493 = arith.addf %483, %492 : vector<16x16x128xf32>
    %494 = vector.shape_cast %2 : vector<1x128xf32> to vector<1x1x128xf32>
    %495 = vector.broadcast %494 : vector<1x1x128xf32> to vector<16x16x128xf32>
    %496 = arith.addf %493, %495 : vector<16x16x128xf32>
    %c0_331 = arith.constant 0 : index
    %c0_332 = arith.constant 0 : index
    %c0_333 = arith.constant 0 : index
    %c0_334 = arith.constant 0 : index
    %497 = vector.load %arg5[%c0_331, %c0_332, %c0_333, %c0_334] : memref<1x16x16x128xf32, #tpu.memory_space<vmem>>, vector<1x16x16x128xf32>
    %498 = vector.shape_cast %497 : vector<1x16x16x128xf32> to vector<16x16x128xf32>
    %499 = vector.shape_cast %496 : vector<16x16x128xf32> to vector<1x16x16x128xf32>
    tpu.vector_store %arg5[%c0_331, %c0_332, %c0_333, %c0_334], %499 {strides = array<i32>} : memref<1x16x16x128xf32, #tpu.memory_space<vmem>>, vector<1x16x16x128xf32>,
    return
  }
  func.func @transform_0(%arg0: i32, %arg1: i32) -> (i32, i32, i32, i32) {
    %c0_i32 = arith.constant 0 : i32
    %c0_i32_0 = arith.constant 0 : i32
    %c0_i32_1 = arith.constant 0 : i32
    %c0_i32_2 = arith.constant 0 : i32
    return %arg0, %c0_i32, %c0_i32_0, %c0_i32_1 : i32, i32, i32, i32
  }
  func.func @transform_1(%arg0: i32, %arg1: i32) -> (i32, i32, i32) {
    %c0_i32 = arith.constant 0 : i32
    %c0_i32_0 = arith.constant 0 : i32
    %c0_i32_1 = arith.constant 0 : i32
    %c0_i32_2 = arith.constant 0 : i32
    return %c0_i32, %c0_i32_0, %c0_i32_1 : i32, i32, i32
  }
  func.func @transform_2(%arg0: i32, %arg1: i32) -> (i32, i32) {
    %c0_i32 = arith.constant 0 : i32
    %c0_i32_0 = arith.constant 0 : i32
    %c0_i32_1 = arith.constant 0 : i32
    return %c0_i32, %c0_i32_0 : i32, i32
  }
  func.func @transform_3(%arg0: i32, %arg1: i32) -> (i32, i32, i32, i32) {
    %c0_i32 = arith.constant 0 : i32
    %c0_i32_0 = arith.constant 0 : i32
    %c0_i32_1 = arith.constant 0 : i32
    return %arg0, %arg1, %c0_i32, %c0_i32_0 : i32, i32, i32, i32
  }
}

</mosaic_0001>

<bundles_post_ra>
// kernel: multi_scale_dwconv_forward.1
= control target key start
LH: loop header
LB: loop body
LE: loop exit
PB: predicated region body
PF: predicated region fallthrough
CT: control target
= control target key end

     0   :  { %8 = vsyncpa [#allocation3], 0  ;;  %s13779_s0 = inlined_call_operand.vmem [shape: f32[2,22,22,128], index: 0, kind: input, shape index: {}]   ;;  %s13780_s1 = inlined_call_operand.vmem [shape: f32[7,7,128], index: 1, kind: input, shape index: {}]   ;;  %s13781_s2 = inlined_call_operand.vmem [shape: f32[1,128], index: 2, kind: input, shape index: {}]   ;;  %s13782_s3 = inlined_call_operand.hbm [shape: f32[2,16,16,128], index: 3, kind: output, shape index: {}]  }
   0x1   :  { %10 = vsyncpa [#allocation3 + $0x1], 0  ;;  %s6957_s12 = smov 0   ;;  %s6959_s13 = smov 0  }
   0x2   :  { %s6961_s14 = smov 0   ;;  %s6963_s15 = smov 0  }
   0x3   :  { %s6965_s16 = smov 0   ;;  %s6967_s17 = smov 0  }
   0x4 LB: > { %s5347_s18 = sadd.s32 4294967295, %s6932_s17   ;;  %s5348_s19 = sadd.s32 4294967294, %s6932_s17   ;;  %s6932_s17 = sphi %s6967_s17, %s16_s17   ;;  %s6928_s16 = sphi %s6965_s16, %s15383_s16   ;;  %s6924_s15 = sphi %s6963_s15, %s15382_s15   ;;  %s6920_s14 = sphi %s6961_s14, %s15381_s14   ;;  %s6916_s13 = sphi %s6959_s13, %s15380_s13   ;;  %s6912_s12 = sphi %s6957_s12, %s15379_s12  }
   0x5   : > { %s28_s20 = sadd.s32 1, %s6928_s16  ;;  %s105_s21 = sadd.s32 1, %s6920_s14 }
   0x6   : > { %p30_p0 = scmp.ge.s32.totalorder %s28_s20, 2  ;;  %p115_p1 = scmp.ne.s32.totalorder %s6920_s14, %s6916_s13 }
   0x7   : > { %p116_p2 = scmp.eq.s32.totalorder %s5347_s18, 1  ;;  %p121_p3 = scmp.ne.s32.totalorder %s6916_s13, %s6912_s12 }
   0x8   : > { %s15385_s20 = smov (%p30_p0, %s28_s20), 0  ;;  %p122_p5 = scmp.eq.s32.totalorder %s5348_s19, 1 }
   0x9   : > { %p6997_p4 = por %p116_p2, %p115_p1  ;;  %s100_s23 = ssub.s32 %s6928_s16, %s15385_s20 }
   0xa   : > { %p5351_p6 = scmp.ge.s32.totalorder %s6932_s17, 1  ;;  %p103_p7 = scmp.eq.s32.totalorder %s100_s23, 0 }
   0xb   : > { %p7004_p8 = por %p122_p5, %p121_p3  ;;  %p154_p9 = scmp.lt.s32.totalorder %s6932_s17, 3 }
   0xc   : > { %s7010_s25 = scalar_select %p103_p7, %s6920_s14, %s105_s21  }
   0xd   : > { %p155_p10 = pnand %p5351_p6, %p154_p9 }
   0xf   : > { %158 = sbr.rel (%p155_p10) target bundleno = 1000 (0x3e8), region = 32 }
  0x16   : > { %p178_p11 = scmp.lt.s32.totalorder %s6924_s15, 1  ;;  %v7022_v0 = vld [vmem:[%s13780_s1] ss:$0 sm:$0xff]  ;;  %v7084_v34 = vld [vmem:[%s13780_s1 + $0x1] ss:$0 sm:$0xff]  ;;  %s6795_s10 = sshll.u32 %s6924_s15, 12 }
  0x17   : > { %s13711_s19 = scalar_lea.hbm %s13782_s3, %s6795_s10 }
  0x18   : > { %s179_s26 = scalar_select %p178_p11, %s6924_s15, 1 }
  0x1a   : > { %s6796_s27 = smul.u32 528, %s179_s26  ;;  %s6934_s26 = smov [#allocation2]  }
  0x1c   : > { %s7017_s30 = scalar_lea.vmem %s13779_s0, %s6796_s27  ;;  %s6858_s27 = sshll.u32 %s6934_s26, 4  ;;  %s6859_s27 = int_to_ptr.vmem [resolvable:$false] %s6858_s27 }
  0x1d   : > { %v188_v1 = vld [vmem:[%s7017_s30] sm:$0xff]  ;;  %v189_v2 = vld [vmem:[%s7017_s30 + $0x8] sm:$0xff]  ;;  %v190_v3 = vld [vmem:[%s7017_s30 + $0x18] sm:$0xff]  ;;  %s6860_s28 = scalar_lea.vmem %s6859_s27, 8192 }
  0x1e   : > { %v191_v4 = vld [vmem:[%s7017_s30 + $0x20] sm:$0xff]  ;;  %v192_v5 = vld [vmem:[%s7017_s30 + $0x30] sm:$0xff]  ;;  %v193_v6 = vld [vmem:[%s7017_s30 + $0x38] sm:$0xff]  ;;  %v7040_v16 = vmul.f32 %v7022_v0, %v188_v1  ;;  %v7043_v17 = vmul.f32 %v7022_v0, %v189_v2  ;;  %v7046_v18 = vmul.f32 %v7022_v0, %v190_v3 }
  0x1f   : > { %v194_v7 = vld [vmem:[%s7017_s30 + $0x48] sm:$0xff]  ;;  %v195_v8 = vld [vmem:[%s7017_s30 + $0x50] sm:$0xff]  ;;  %v196_v9 = vld [vmem:[%s7017_s30 + $0x60] sm:$0xff]  ;;  %v7049_v19 = vmul.f32 %v7022_v0, %v191_v4  ;;  %v7055_v23 = vmul.f32 %v7022_v0, %v192_v5  ;;  %v7058_v24 = vmul.f32 %v7022_v0, %v193_v6 }
  0x20   : > { %v197_v10 = vld [vmem:[%s7017_s30 + $0x68] sm:$0xff]  ;;  %v198_v11 = vld [vmem:[%s7017_s30 + $0x78] sm:$0xff]  ;;  %v199_v12 = vld [vmem:[%s7017_s30 + $0x80] sm:$0xff]  ;;  %v7061_v25 = vmul.f32 %v7022_v0, %v194_v7  ;;  %v7064_v26 = vmul.f32 %v7022_v0, %v195_v8  ;;  %v7070_v30 = vmul.f32 %v7022_v0, %v196_v9 }
  0x21   : > { %v200_v13 = vld [vmem:[%s7017_s30 + $0x90] sm:$0xff]  ;;  %v201_v14 = vld [vmem:[%s7017_s30 + $0x98] sm:$0xff]  ;;  %v202_v15 = vld [vmem:[%s7017_s30 + $0xa8] sm:$0xff]  ;;  %v7073_v31 = vmul.f32 %v7022_v0, %v197_v10  ;;  %v7076_v32 = vmul.f32 %v7022_v0, %v198_v11  ;;  %v7079_v33 = vmul.f32 %v7022_v0, %v199_v12 }
  0x22   : > { %v203_v20 = vld [vmem:[%s7017_s30 + $0xb0] sm:$0xff]  ;;  %v204_v21 = vld [vmem:[%s7017_s30 + $0xc0] sm:$0xff]  ;;  %v205_v22 = vld [vmem:[%s7017_s30 + $0xc8] sm:$0xff]  ;;  %v7090_v38 = vmul.f32 %v7022_v0, %v200_v13  ;;  %v7093_v39 = vmul.f32 %v7022_v0, %v201_v14  ;;  %v7096_v40 = vmul.f32 %v7022_v0, %v202_v15 }
  0x23   : > { %v206_v27 = vld [vmem:[%s7017_s30 + $0xd8] sm:$0xff]  ;;  %v207_v28 = vld [vmem:[%s7017_s30 + $0xe0] sm:$0xff]  ;;  %v208_v29 = vld [vmem:[%s7017_s30 + $0xf0] sm:$0xff]  ;;  %v7099_v41 = vmul.f32 %v7022_v0, %v203_v20  ;;  %v7105_v45 = vmul.f32 %v7022_v0, %v204_v21  ;;  %v7108_v46 = vmul.f32 %v7022_v0, %v205_v22 }
  0x24   : > { %v209_v35 = vld [vmem:[%s7017_s30 + $0xf8] sm:$0xff]  ;;  %v210_v36 = vld [vmem:[%s7017_s30 + $0x108] sm:$0xff]  ;;  %v211_v37 = vld [vmem:[%s7017_s30 + $0x110] sm:$0xff]  ;;  %v7111_v47 = vmul.f32 %v7022_v0, %v206_v27  ;;  %v7114_v48 = vmul.f32 %v7022_v0, %v207_v28  ;;  %v7120_v52 = vmul.f32 %v7022_v0, %v208_v29 }
  0x25   : > { %v212_v42 = vld [vmem:[%s7017_s30 + $0x120] sm:$0xff]  ;;  %v213_v43 = vld [vmem:[%s7017_s30 + $0x128] sm:$0xff]  ;;  %v214_v44 = vld [vmem:[%s7017_s30 + $0x138] sm:$0xff]  ;;  %v7123_v53 = vmul.f32 %v7022_v0, %v209_v35  ;;  %v7126_v54 = vmul.f32 %v7022_v0, %v210_v36  ;;  %v7129_v55 = vmul.f32 %v7022_v0, %v211_v37 }
  0x26   : > { %v215_v49 = vld [vmem:[%s7017_s30 + $0x140] sm:$0xff]  ;;  %v216_v50 = vld [vmem:[%s7017_s30 + $0x150] sm:$0xff]  ;;  %v217_v51 = vld [vmem:[%s7017_s30 + $0x158] sm:$0xff]  ;;  %v7134_v58 = vmul.f32 %v7022_v0, %v212_v42  ;;  %v7137_v59 = vmul.f32 %v7022_v0, %v213_v43  ;;  %v7140_v60 = vmul.f32 %v7022_v0, %v214_v44 }
  0x27   : > { %v218_v56 = vld [vmem:[%s7017_s30 + $0x168] sm:$0xff]  ;;  %v219_v57 = vld [vmem:[%s7017_s30 + $0x170] sm:$0xff]  ;;  %v7143_v61 = vmul.f32 %v7022_v0, %v215_v49  ;;  %v7147_v63 = vmul.f32 %v7022_v0, %v216_v50  ;;  %v7150_v1 = vmul.f32 %v7022_v0, %v217_v51  ;;  %v291_v4 = vld [vmem:[%s7017_s30 + $0x19] sm:$0xff] }
  0x28   : > { %v289_v62 = vld [vmem:[%s7017_s30 + $0x1] sm:$0xff]  ;;  %v7153_v2 = vmul.f32 %v7022_v0, %v218_v56  ;;  %v290_v3 = vld [vmem:[%s7017_s30 + $0x9] sm:$0xff]  ;;  %v7160_v7 = vmul.f32 %v7022_v0, %v219_v57  ;;  %v293_v8 = vld [vmem:[%s7017_s30 + $0x31] sm:$0xff]  ;;  %v328_v12 = vmul.f32 %v7084_v34, %v291_v4 }
  0x29   : > { %v292_v5 = vld [vmem:[%s7017_s30 + $0x21] sm:$0xff]  ;;  %v326_v6 = vmul.f32 %v7084_v34, %v289_v62  ;;  %v294_v9 = vld [vmem:[%s7017_s30 + $0x39] sm:$0xff]  ;;  %v295_v10 = vld [vmem:[%s7017_s30 + $0x49] sm:$0xff]  ;;  %v327_v11 = vmul.f32 %v7084_v34, %v290_v3  ;;  %v330_v21 = vmul.f32 %v7084_v34, %v293_v8 }
  0x2a   : > { %v329_v13 = vmul.f32 %v7084_v34, %v292_v5  ;;  %v296_v14 = vld [vmem:[%s7017_s30 + $0x51] sm:$0xff]  ;;  %v297_v15 = vld [vmem:[%s7017_s30 + $0x61] sm:$0xff]  ;;  %v298_v20 = vld [vmem:[%s7017_s30 + $0x69] sm:$0xff]  ;;  %v331_v0 = vmul.f32 %v7084_v34, %v294_v9  ;;  %v332_v22 = vmul.f32 %v7084_v34, %v295_v10  ;;  %v7193_v57 = vadd.f32 %v328_v12, %v7046_v18 }
  0x2b   : > { %v7175_v27 = vadd.f32 %v326_v6, %v7040_v16  ;;  %v299_v28 = vld [vmem:[%s7017_s30 + $0x79] sm:$0xff]  ;;  %v300_v29 = vld [vmem:[%s7017_s30 + $0x81] sm:$0xff]  ;;  %v301_v35 = vld [vmem:[%s7017_s30 + $0x91] sm:$0xff]  ;;  %v333_v36 = vmul.f32 %v7084_v34, %v296_v14  ;;  %v334_v37 = vmul.f32 %v7084_v34, %v297_v15  ;;  %v335_v42 = vmul.f32 %v7084_v34, %v298_v20 }
  0x2c   : > { %v7184_v43 = vadd.f32 %v327_v11, %v7043_v17  ;;  %v302_v44 = vld [vmem:[%s7017_s30 + $0x99] sm:$0xff]  ;;  %v303_v16 = vld [vmem:[%s7017_s30 + $0xa9] sm:$0xff]  ;;  %v304_v49 = vld [vmem:[%s7017_s30 + $0xb1] sm:$0xff]  ;;  %v336_v50 = vmul.f32 %v7084_v34, %v299_v28  ;;  %v337_v51 = vmul.f32 %v7084_v34, %v300_v29  ;;  %v338_v56 = vmul.f32 %v7084_v34, %v301_v35 }
  0x2d   : > { %v305_v62 = vld [vmem:[%s7017_s30 + $0xc1] sm:$0xff]  ;;  %v306_v17 = vld [vmem:[%s7017_s30 + $0xc9] sm:$0xff]  ;;  %v307_v3 = vld [vmem:[%s7017_s30 + $0xd9] sm:$0xff]  ;;  %v339_v4 = vmul.f32 %v7084_v34, %v302_v44  ;;  %v340_v5 = vmul.f32 %v7084_v34, %v303_v16  ;;  %v341_v6 = vmul.f32 %v7084_v34, %v304_v49  ;;  %v7202_v8 = vadd.f32 %v329_v13, %v7049_v19 }
  0x2e   : > { %v308_v9 = vld [vmem:[%s7017_s30 + $0xe1] sm:$0xff]  ;;  %v309_v18 = vld [vmem:[%s7017_s30 + $0xf1] sm:$0xff]  ;;  %v310_v10 = vld [vmem:[%s7017_s30 + $0xf9] sm:$0xff]  ;;  %v342_v11 = vmul.f32 %v7084_v34, %v305_v62  ;;  %v343_v12 = vmul.f32 %v7084_v34, %v306_v17  ;;  %v344_v14 = vmul.f32 %v7084_v34, %v307_v3  ;;  %v7211_v15 = vadd.f32 %v330_v21, %v7055_v23 }
  0x2f   : > { %v311_v20 = vld [vmem:[%s7017_s30 + $0x109] sm:$0xff]  ;;  %v312_v19 = vld [vmem:[%s7017_s30 + $0x111] sm:$0xff]  ;;  %v313_v13 = vld [vmem:[%s7017_s30 + $0x121] sm:$0xff]  ;;  %v345_v28 = vmul.f32 %v7084_v34, %v308_v9  ;;  %v346_v29 = vmul.f32 %v7084_v34, %v309_v18  ;;  %v347_v35 = vmul.f32 %v7084_v34, %v310_v10  ;;  %v7220_v44 = vadd.f32 %v331_v0, %v7058_v24 }
  0x30   : > { %13785 = vst [vmem:[#allocation5_spill] sm:$0xff] %v7211_v15  ;;  %v314_v16 = vld [vmem:[%s7017_s30 + $0x129] sm:$0xff]  ;;  %v315_v49 = vld [vmem:[%s7017_s30 + $0x139] sm:$0xff]  ;;  %v316_v62 = vld [vmem:[%s7017_s30 + $0x141] sm:$0xff]  ;;  %v348_v23 = vmul.f32 %v7084_v34, %v311_v20  ;;  %v349_v21 = vmul.f32 %v7084_v34, %v312_v19  ;;  %v350_v17 = vmul.f32 %v7084_v34, %v313_v13  ;;  %v7229_v3 = vadd.f32 %v332_v22, %v7061_v25 }
  0x31   : > { %v317_v9 = vld [vmem:[%s7017_s30 + $0x151] sm:$0xff]  ;;  %v318_v18 = vld [vmem:[%s7017_s30 + $0x159] sm:$0xff]  ;;  %v319_v15 = vld [vmem:[%s7017_s30 + $0x169] sm:$0xff]  ;;  %v351_v10 = vmul.f32 %v7084_v34, %v314_v16  ;;  %v352_v24 = vmul.f32 %v7084_v34, %v315_v49  ;;  %v353_v0 = vmul.f32 %v7084_v34, %v316_v62  ;;  %v7238_v20 = vadd.f32 %v333_v36, %v7064_v26 }
  0x32   : > { %v320_v19 = vld [vmem:[%s7017_s30 + $0x171] sm:$0xff]  ;;  %v354_v25 = vmul.f32 %v7084_v34, %v317_v9  ;;  %v355_v22 = vmul.f32 %v7084_v34, %v318_v18  ;;  %v356_v13 = vmul.f32 %v7084_v34, %v319_v15  ;;  %v7245_v16 = vadd.f32 %v334_v37, %v7070_v30 }
  0x33   : > { %v357_v49 = vmul.f32 %v7084_v34, %v320_v19  ;;  %v7249_v62 = vadd.f32 %v335_v42, %v7073_v31  ;;  %v7252_v26 = vadd.f32 %v336_v50, %v7076_v32  ;;  %v7255_v36 = vadd.f32 %v337_v51, %v7079_v33  ;;  %v390_v32 = vld [vmem:[%s7017_s30 + $0x2] sm:$0xff]  ;;  %v391_v37 = vld [vmem:[%s7017_s30 + $0xa] sm:$0xff]  ;;  %v392_v42 = vld [vmem:[%s7017_s30 + $0x1a] sm:$0xff] }
  0x34   : > { %v7258_v9 = vadd.f32 %v338_v56, %v7090_v38  ;;  %v7261_v30 = vadd.f32 %v339_v4, %v7093_v39  ;;  %v7264_v34 = vadd.f32 %v340_v5, %v7096_v40  ;;  %v7267_v31 = vadd.f32 %v341_v6, %v7099_v41  ;;  %v393_v33 = vld [vmem:[%s7017_s30 + $0x22] sm:$0xff]  ;;  %v394_v51 = vld [vmem:[%s7017_s30 + $0x32] sm:$0xff]  ;;  %v395_v56 = vld [vmem:[%s7017_s30 + $0x3a] sm:$0xff] }
  0x35   : > { %v7276_v38 = vld [vmem:[%s13780_s1 + $0x2] ss:$0 sm:$0xff]  ;;  %v7279_v39 = vadd.f32 %v342_v11, %v7105_v45  ;;  %v7282_v40 = vadd.f32 %v343_v12, %v7108_v46  ;;  %v7285_v41 = vadd.f32 %v344_v14, %v7111_v47  ;;  %v7288_v50 = vadd.f32 %v345_v28, %v7114_v48  ;;  %v396_v4 = vld [vmem:[%s7017_s30 + $0x4a] sm:$0xff]  ;;  %v397_v5 = vld [vmem:[%s7017_s30 + $0x52] sm:$0xff] }
  0x36   : > { %v7295_v6 = vadd.f32 %v346_v29, %v7120_v52  ;;  %v7298_v45 = vadd.f32 %v347_v35, %v7123_v53  ;;  %v7301_v46 = vadd.f32 %v348_v23, %v7126_v54  ;;  %v7304_v47 = vadd.f32 %v349_v21, %v7129_v55  ;;  %v398_v48 = vld [vmem:[%s7017_s30 + $0x62] sm:$0xff]  ;;  %v399_v11 = vld [vmem:[%s7017_s30 + $0x6a] sm:$0xff]  ;;  %v400_v12 = vld [vmem:[%s7017_s30 + $0x7a] sm:$0xff] }
  0x37   : > { %v7310_v52 = vadd.f32 %v350_v17, %v7134_v58  ;;  %v7313_v53 = vadd.f32 %v351_v10, %v7137_v59  ;;  %v7316_v54 = vadd.f32 %v352_v24, %v7140_v60  ;;  %v7319_v55 = vadd.f32 %v353_v0, %v7143_v61  ;;  %v401_v14 = vld [vmem:[%s7017_s30 + $0x82] sm:$0xff]  ;;  %v402_v15 = vld [vmem:[%s7017_s30 + $0x92] sm:$0xff]  ;;  %v403_v28 = vld [vmem:[%s7017_s30 + $0x9a] sm:$0xff] }
  0x38   : > { %13786 = vst [vmem:[#allocation6_spill] sm:$0xff] %v7301_v46  ;;  %13787 = vst [vmem:[#allocation7_spill] sm:$0xff] %v7304_v47  ;;  %v7325_v29 = vadd.f32 %v354_v25, %v7147_v63  ;;  %v7328_v58 = vadd.f32 %v355_v22, %v7150_v1  ;;  %v7331_v59 = vadd.f32 %v356_v13, %v7153_v2  ;;  %v404_v61 = vld [vmem:[%s7017_s30 + $0xaa] sm:$0xff]  ;;  %v405_v35 = vld [vmem:[%s7017_s30 + $0xb2] sm:$0xff] }
  0x39   : > { %13788 = vst [vmem:[#allocation8_spill] sm:$0xff] %v7310_v52  ;;  %13789 = vst [vmem:[#allocation9_spill] sm:$0xff] %v7313_v53  ;;  %v7334_v60 = vadd.f32 %v357_v49, %v7160_v7  ;;  %v406_v23 = vld [vmem:[%s7017_s30 + $0xc2] sm:$0xff]  ;;  %v407_v21 = vld [vmem:[%s7017_s30 + $0xca] sm:$0xff]  ;;  %v427_v18 = vmul.f32 %v7276_v38, %v390_v32  ;;  %v428_v1 = vmul.f32 %v7276_v38, %v391_v37 }
  0x3a   : > { %13790 = vst [vmem:[#allocation10_spill] sm:$0xff] %v7316_v54  ;;  %13791 = vst [vmem:[#allocation11_spill] sm:$0xff] %v7319_v55  ;;  %v408_v17 = vld [vmem:[%s7017_s30 + $0xda] sm:$0xff]  ;;  %v409_v63 = vld [vmem:[%s7017_s30 + $0xe2] sm:$0xff]  ;;  %v429_v10 = vmul.f32 %v7276_v38, %v392_v42  ;;  %v430_v2 = vmul.f32 %v7276_v38, %v393_v33  ;;  %v431_v19 = vmul.f32 %v7276_v38, %v394_v51 }
  0x3b   : > { %13792 = vst [vmem:[#allocation12_spill] sm:$0xff] %v7325_v29  ;;  %13793 = vst [vmem:[#allocation13_spill] sm:$0xff] %v7328_v58  ;;  %v410_v7 = vld [vmem:[%s7017_s30 + $0xf2] sm:$0xff]  ;;  %v411_v24 = vld [vmem:[%s7017_s30 + $0xfa] sm:$0xff]  ;;  %v432_v25 = vmul.f32 %v7276_v38, %v395_v56  ;;  %v433_v22 = vmul.f32 %v7276_v38, %v396_v4  ;;  %v434_v13 = vmul.f32 %v7276_v38, %v397_v5 }
  0x3c   : > { %13794 = vst [vmem:[#allocation14_spill] sm:$0xff] %v7331_v59  ;;  %13795 = vst [vmem:[#allocation15_spill] sm:$0xff] %v7334_v60  ;;  %v412_v0 = vld [vmem:[%s7017_s30 + $0x10a] sm:$0xff]  ;;  %v413_v49 = vld [vmem:[%s7017_s30 + $0x112] sm:$0xff]  ;;  %v435_v42 = vmul.f32 %v7276_v38, %v398_v48  ;;  %v436_v33 = vmul.f32 %v7276_v38, %v399_v11  ;;  %v437_v60 = vmul.f32 %v7276_v38, %v400_v12 }
  0x3d   : > { %v414_v32 = vld [vmem:[%s7017_s30 + $0x122] sm:$0xff]  ;;  %v415_v37 = vld [vmem:[%s7017_s30 + $0x12a] sm:$0xff]  ;;  %v438_v51 = vmul.f32 %v7276_v38, %v401_v14  ;;  %v416_v59 = vld [vmem:[%s7017_s30 + $0x13a] sm:$0xff]  ;;  %v439_v4 = vmul.f32 %v7276_v38, %v402_v15  ;;  %v440_v5 = vmul.f32 %v7276_v38, %v403_v28  ;;  %v441_v29 = vmul.f32 %v7276_v38, %v404_v61 }
  0x3e   : > { %v417_v56 = vld [vmem:[%s7017_s30 + $0x142] sm:$0xff]  ;;  %v418_v58 = vld [vmem:[%s7017_s30 + $0x152] sm:$0xff]  ;;  %v442_v55 = vmul.f32 %v7276_v38, %v405_v35  ;;  %v419_v54 = vld [vmem:[%s7017_s30 + $0x15a] sm:$0xff]  ;;  %v443_v11 = vmul.f32 %v7276_v38, %v406_v23  ;;  %v444_v12 = vmul.f32 %v7276_v38, %v407_v21  ;;  %v445_v14 = vmul.f32 %v7276_v38, %v408_v17 }
  0x3f   : > { %v420_v53 = vld [vmem:[%s7017_s30 + $0x16a] sm:$0xff]  ;;  %v421_v48 = vld [vmem:[%s7017_s30 + $0x172] sm:$0xff]  ;;  %v446_v52 = vmul.f32 %v7276_v38, %v409_v63  ;;  %v447_v47 = vmul.f32 %v7276_v38, %v410_v7  ;;  %v448_v15 = vmul.f32 %v7276_v38, %v411_v24  ;;  %v449_v28 = vmul.f32 %v7276_v38, %v412_v0 }
  0x40   : > { %v450_v61 = vmul.f32 %v7276_v38, %v413_v49  ;;  %v451_v35 = vmul.f32 %v7276_v38, %v414_v32  ;;  %v452_v46 = vmul.f32 %v7276_v38, %v415_v37  ;;  %v453_v23 = vmul.f32 %v7276_v38, %v416_v59  ;;  %v501_v32 = vld [vmem:[%s7017_s30 + $0x7b] sm:$0xff] }
  0x41   : > { %v454_v21 = vmul.f32 %v7276_v38, %v417_v56  ;;  %v455_v17 = vmul.f32 %v7276_v38, %v418_v58  ;;  %v456_v63 = vmul.f32 %v7276_v38, %v419_v54  ;;  %v457_v7 = vmul.f32 %v7276_v38, %v420_v53  ;;  %v13796_v54 = vld [vmem:[#allocation5_spill] sm:$0xff]  ;;  %v13802_v37 = vld [vmem:[#allocation8_spill] sm:$0xff] }
  0x42   : > { %v458_v24 = vmul.f32 %v7276_v38, %v421_v48  ;;  %v7387_v0 = vadd.f32 %v427_v18, %v7175_v27  ;;  %v7390_v49 = vadd.f32 %v428_v1, %v7184_v43  ;;  %v7393_v59 = vadd.f32 %v429_v10, %v7193_v57  ;;  %v493_v1 = vld [vmem:[%s7017_s30 + $0x1b] sm:$0xff] }
  0x43   : > { %v7396_v58 = vadd.f32 %v430_v2, %v7202_v8  ;;  %v7399_v53 = vadd.f32 %v431_v19, %v13796_v54  ;;  %v7402_v38 = vadd.f32 %v432_v25, %v7220_v44  ;;  %v7405_v27 = vadd.f32 %v433_v22, %v7229_v3  ;;  %v496_v10 = vld [vmem:[%s7017_s30 + $0x3b] sm:$0xff]  ;;  %v497_v2 = vld [vmem:[%s7017_s30 + $0x4b] sm:$0xff]  ;;  %v498_v19 = vld [vmem:[%s7017_s30 + $0x53] sm:$0xff] }
  0x44   : > { %v7408_v43 = vadd.f32 %v434_v13, %v7238_v20  ;;  %v7411_v57 = vadd.f32 %v435_v42, %v7245_v16  ;;  %v7414_v18 = vadd.f32 %v436_v33, %v7249_v62  ;;  %v7417_v8 = vadd.f32 %v437_v60, %v7252_v26  ;;  %v491_v26 = vld [vmem:[%s7017_s30 + $0x3] sm:$0xff]  ;;  %v492_v60 = vld [vmem:[%s7017_s30 + $0xb] sm:$0xff]  ;;  %v504_v48 = vld [vmem:[%s7017_s30 + $0x9b] sm:$0xff] }
  0x45   : > { %v7420_v44 = vadd.f32 %v438_v51, %v7255_v36  ;;  %v7423_v3 = vadd.f32 %v439_v4, %v7258_v9  ;;  %v7426_v20 = vadd.f32 %v440_v5, %v7261_v30  ;;  %v7429_v16 = vadd.f32 %v441_v29, %v7264_v34  ;;  %v494_v36 = vld [vmem:[%s7017_s30 + $0x23] sm:$0xff]  ;;  %v495_v29 = vld [vmem:[%s7017_s30 + $0x33] sm:$0xff]  ;;  %v500_v13 = vld [vmem:[%s7017_s30 + $0x6b] sm:$0xff] }
  0x46   : > { %v7432_v62 = vadd.f32 %v442_v55, %v7267_v31  ;;  %v7441_v9 = vld [vmem:[%s13780_s1 + $0x3] ss:$0 sm:$0xff]  ;;  %v7444_v30 = vadd.f32 %v443_v11, %v7279_v39  ;;  %v7447_v34 = vadd.f32 %v444_v12, %v7282_v40  ;;  %v7450_v31 = vadd.f32 %v445_v14, %v7285_v41  ;;  %v13798_v40 = vld [vmem:[#allocation6_spill] sm:$0xff]  ;;  %v13800_v41 = vld [vmem:[#allocation7_spill] sm:$0xff] }
  0x47   : > { %v7453_v55 = vadd.f32 %v446_v52, %v7288_v50  ;;  %v7460_v25 = vadd.f32 %v447_v47, %v7295_v6  ;;  %v7463_v39 = vadd.f32 %v448_v15, %v7298_v45  ;;  %v7466_v22 = vadd.f32 %v449_v28, %v13798_v40  ;;  %v499_v52 = vld [vmem:[%s7017_s30 + $0x63] sm:$0xff]  ;;  %v13808_v51 = vld [vmem:[#allocation11_spill] sm:$0xff]  ;;  %v13810_v11 = vld [vmem:[#allocation12_spill] sm:$0xff] }
  0x48   : > { %v7469_v50 = vadd.f32 %v450_v61, %v13800_v41  ;;  %v7475_v6 = vadd.f32 %v451_v35, %v13802_v37  ;;  %v13804_v47 = vld [vmem:[#allocation9_spill] sm:$0xff]  ;;  %v13806_v42 = vld [vmem:[#allocation10_spill] sm:$0xff]  ;;  %v7484_v56 = vadd.f32 %v454_v21, %v13808_v51  ;;  %v503_v5 = vld [vmem:[%s7017_s30 + $0x93] sm:$0xff]  ;;  %v7490_v12 = vadd.f32 %v455_v17, %v13810_v11 }
  0x49   : > { %13797 = vst [vmem:[#allocation5_spill] sm:$0xff] %v7463_v39  ;;  %13799 = vst [vmem:[#allocation6_spill] sm:$0xff] %v7466_v22  ;;  %v7478_v45 = vadd.f32 %v452_v46, %v13804_v47  ;;  %v7481_v33 = vadd.f32 %v453_v23, %v13806_v42  ;;  %v502_v4 = vld [vmem:[%s7017_s30 + $0x83] sm:$0xff]  ;;  %v13816_v61 = vld [vmem:[#allocation15_spill] sm:$0xff]  ;;  %v528_v37 = vmul.f32 %v7441_v9, %v491_v26 }
  0x4a   : > { %13801 = vst [vmem:[#allocation7_spill] sm:$0xff] %v7469_v50  ;;  %13803 = vst [vmem:[#allocation8_spill] sm:$0xff] %v7475_v6  ;;  %v13812_v14 = vld [vmem:[#allocation13_spill] sm:$0xff]  ;;  %v13814_v46 = vld [vmem:[#allocation14_spill] sm:$0xff]  ;;  %v7499_v35 = vadd.f32 %v458_v24, %v13816_v61  ;;  %v530_v47 = vmul.f32 %v7441_v9, %v493_v1  ;;  %v532_v11 = vmul.f32 %v7441_v9, %v495_v29 }
  0x4b   : > { %13805 = vst [vmem:[#allocation9_spill] sm:$0xff] %v7478_v45  ;;  %13807 = vst [vmem:[#allocation10_spill] sm:$0xff] %v7481_v33  ;;  %v7493_v15 = vadd.f32 %v456_v63, %v13812_v14  ;;  %v7496_v28 = vadd.f32 %v457_v7, %v13814_v46  ;;  %v505_v23 = vld [vmem:[%s7017_s30 + $0xab] sm:$0xff]  ;;  %v506_v21 = vld [vmem:[%s7017_s30 + $0xb3] sm:$0xff]  ;;  %v529_v63 = vmul.f32 %v7441_v9, %v492_v60 }
  0x4c   : > { %13809 = vst [vmem:[#allocation11_spill] sm:$0xff] %v7484_v56  ;;  %13811 = vst [vmem:[#allocation12_spill] sm:$0xff] %v7490_v12  ;;  %v507_v54 = vld [vmem:[%s7017_s30 + $0xc3] sm:$0xff]  ;;  %v508_v40 = vld [vmem:[%s7017_s30 + $0xcb] sm:$0xff]  ;;  %v531_v7 = vmul.f32 %v7441_v9, %v494_v36  ;;  %v533_v14 = vmul.f32 %v7441_v9, %v496_v10  ;;  %v534_v46 = vmul.f32 %v7441_v9, %v497_v2 }
  0x4d   : > { %13813 = vst [vmem:[#allocation13_spill] sm:$0xff] %v7493_v15  ;;  %13815 = vst [vmem:[#allocation14_spill] sm:$0xff] %v7496_v28  ;;  %v509_v41 = vld [vmem:[%s7017_s30 + $0xdb] sm:$0xff]  ;;  %v510_v17 = vld [vmem:[%s7017_s30 + $0xe3] sm:$0xff]  ;;  %v535_v26 = vmul.f32 %v7441_v9, %v498_v19  ;;  %v536_v36 = vmul.f32 %v7441_v9, %v499_v52  ;;  %v538_v28 = vmul.f32 %v7441_v9, %v501_v32 }
  0x4e   : > { %13817 = vst [vmem:[#allocation15_spill] sm:$0xff] %v7499_v35  ;;  %v511_v24 = vld [vmem:[%s7017_s30 + $0xf3] sm:$0xff]  ;;  %v512_v42 = vld [vmem:[%s7017_s30 + $0xfb] sm:$0xff]  ;;  %v513_v51 = vld [vmem:[%s7017_s30 + $0x10b] sm:$0xff]  ;;  %v537_v35 = vmul.f32 %v7441_v9, %v500_v13  ;;  %v539_v29 = vmul.f32 %v7441_v9, %v502_v4  ;;  %v540_v2 = vmul.f32 %v7441_v9, %v503_v5  ;;  %v541_v19 = vmul.f32 %v7441_v9, %v504_v48 }
  0x4f   : > { %v514_v60 = vld [vmem:[%s7017_s30 + $0x113] sm:$0xff]  ;;  %v515_v1 = vld [vmem:[%s7017_s30 + $0x123] sm:$0xff]  ;;  %v516_v61 = vld [vmem:[%s7017_s30 + $0x12b] sm:$0xff]  ;;  %v542_v56 = vmul.f32 %v7441_v9, %v505_v23  ;;  %v543_v33 = vmul.f32 %v7441_v9, %v506_v21  ;;  %v544_v13 = vmul.f32 %v7441_v9, %v507_v54  ;;  %v545_v32 = vmul.f32 %v7441_v9, %v508_v40 }
  0x50   : > { %v517_v15 = vld [vmem:[%s7017_s30 + $0x13b] sm:$0xff]  ;;  %v518_v10 = vld [vmem:[%s7017_s30 + $0x143] sm:$0xff]  ;;  %v519_v12 = vld [vmem:[%s7017_s30 + $0x153] sm:$0xff]  ;;  %v546_v4 = vmul.f32 %v7441_v9, %v509_v41  ;;  %v547_v50 = vmul.f32 %v7441_v9, %v510_v17  ;;  %v548_v22 = vmul.f32 %v7441_v9, %v511_v24  ;;  %v549_v5 = vmul.f32 %v7441_v9, %v512_v42 }
  0x51   : > { %v520_v45 = vld [vmem:[%s7017_s30 + $0x15b] sm:$0xff]  ;;  %v521_v6 = vld [vmem:[%s7017_s30 + $0x16b] sm:$0xff]  ;;  %v522_v52 = vld [vmem:[%s7017_s30 + $0x173] sm:$0xff]  ;;  %v550_v48 = vmul.f32 %v7441_v9, %v513_v51  ;;  %v551_v23 = vmul.f32 %v7441_v9, %v514_v60  ;;  %v552_v21 = vmul.f32 %v7441_v9, %v515_v1  ;;  %v553_v39 = vmul.f32 %v7441_v9, %v516_v61 }
  0x52   : > { %v554_v54 = vmul.f32 %v7441_v9, %v517_v15  ;;  %v555_v40 = vmul.f32 %v7441_v9, %v518_v10  ;;  %v556_v41 = vmul.f32 %v7441_v9, %v519_v12  ;;  %v557_v17 = vmul.f32 %v7441_v9, %v520_v45  ;;  %v13828_v61 = vld [vmem:[#allocation10_spill] sm:$0xff] }
  0x53   : > { %v558_v24 = vmul.f32 %v7441_v9, %v521_v6  ;;  %v559_v42 = vmul.f32 %v7441_v9, %v522_v52  ;;  %v7552_v51 = vadd.f32 %v528_v37, %v7387_v0  ;;  %v7555_v60 = vadd.f32 %v529_v63, %v7390_v49  ;;  %v598_v37 = vld [vmem:[%s7017_s30 + $0x4c] sm:$0xff]  ;;  %v599_v63 = vld [vmem:[%s7017_s30 + $0x54] sm:$0xff]  ;;  %v605_v52 = vld [vmem:[%s7017_s30 + $0x9c] sm:$0xff] }
  0x54   : > { %v7558_v15 = vadd.f32 %v530_v47, %v7393_v59  ;;  %v7561_v12 = vadd.f32 %v531_v7, %v7396_v58  ;;  %v7564_v6 = vadd.f32 %v532_v11, %v7399_v53  ;;  %v7567_v9 = vadd.f32 %v533_v14, %v7402_v38  ;;  %v601_v14 = vld [vmem:[%s7017_s30 + $0x6c] sm:$0xff] }
  0x55   : > { %v7570_v0 = vadd.f32 %v534_v46, %v7405_v27  ;;  %v7573_v49 = vadd.f32 %v535_v26, %v7408_v43  ;;  %v7576_v59 = vadd.f32 %v536_v36, %v7411_v57  ;;  %v7579_v45 = vadd.f32 %v537_v35, %v7414_v18  ;;  %v592_v18 = vld [vmem:[%s7017_s30 + $0x4] sm:$0xff]  ;;  %v597_v35 = vld [vmem:[%s7017_s30 + $0x3c] sm:$0xff] }
  0x56   : > { %v7582_v58 = vadd.f32 %v538_v28, %v7417_v8  ;;  %v7585_v53 = vadd.f32 %v539_v29, %v7420_v44  ;;  %v7588_v38 = vadd.f32 %v540_v2, %v7423_v3  ;;  %v7591_v27 = vadd.f32 %v541_v19, %v7426_v20  ;;  %v593_v8 = vld [vmem:[%s7017_s30 + $0xc] sm:$0xff]  ;;  %v594_v28 = vld [vmem:[%s7017_s30 + $0x1c] sm:$0xff]  ;;  %v595_v44 = vld [vmem:[%s7017_s30 + $0x24] sm:$0xff] }
  0x57   : > { %v7594_v43 = vadd.f32 %v542_v56, %v7429_v16  ;;  %v7597_v57 = vadd.f32 %v543_v33, %v7432_v62  ;;  %v7606_v3 = vld [vmem:[%s13780_s1 + $0x4] ss:$0 sm:$0xff]  ;;  %v7609_v20 = vadd.f32 %v544_v13, %v7444_v30  ;;  %v7612_v16 = vadd.f32 %v545_v32, %v7447_v34  ;;  %v596_v56 = vld [vmem:[%s7017_s30 + $0x34] sm:$0xff]  ;;  %v13820_v34 = vld [vmem:[#allocation6_spill] sm:$0xff] }
  0x58   : > { %v7615_v62 = vadd.f32 %v546_v4, %v7450_v31  ;;  %v7618_v33 = vadd.f32 %v547_v50, %v7453_v55  ;;  %v7625_v47 = vadd.f32 %v548_v22, %v7460_v25  ;;  %v13818_v30 = vld [vmem:[#allocation5_spill] sm:$0xff]  ;;  %v7631_v11 = vadd.f32 %v550_v48, %v13820_v34  ;;  %v13822_v31 = vld [vmem:[#allocation7_spill] sm:$0xff]  ;;  %v13824_v26 = vld [vmem:[#allocation8_spill] sm:$0xff] }
  0x59   : > { %v7628_v7 = vadd.f32 %v549_v5, %v13818_v30  ;;  %v7634_v55 = vadd.f32 %v551_v23, %v13822_v31  ;;  %v600_v50 = vld [vmem:[%s7017_s30 + $0x64] sm:$0xff]  ;;  %v602_v46 = vld [vmem:[%s7017_s30 + $0x7c] sm:$0xff]  ;;  %v7640_v25 = vadd.f32 %v552_v21, %v13824_v26  ;;  %v7646_v36 = vadd.f32 %v554_v54, %v13828_v61  ;;  %v13830_v29 = vld [vmem:[#allocation11_spill] sm:$0xff] }
  0x5a   : > { %13821 = vst [vmem:[#allocation6_spill] sm:$0xff] %v7631_v11  ;;  %v13826_v22 = vld [vmem:[#allocation9_spill] sm:$0xff]  ;;  %v7649_v10 = vadd.f32 %v555_v40, %v13830_v29  ;;  %v604_v19 = vld [vmem:[%s7017_s30 + $0x94] sm:$0xff]  ;;  %v606_v54 = vld [vmem:[%s7017_s30 + $0xac] sm:$0xff]  ;;  %v629_v26 = vmul.f32 %v7606_v3, %v592_v18  ;;  %v636_v18 = vmul.f32 %v7606_v3, %v599_v63  ;;  %v642_v63 = vmul.f32 %v7606_v3, %v605_v52 }
  0x5b   : > { %13819 = vst [vmem:[#allocation5_spill] sm:$0xff] %v7628_v7  ;;  %13823 = vst [vmem:[#allocation7_spill] sm:$0xff] %v7634_v55  ;;  %v7643_v1 = vadd.f32 %v553_v39, %v13826_v22  ;;  %v603_v2 = vld [vmem:[%s7017_s30 + $0x84] sm:$0xff]  ;;  %v13832_v13 = vld [vmem:[#allocation12_spill] sm:$0xff]  ;;  %v631_v22 = vmul.f32 %v7606_v3, %v594_v28 }
  0x5c   : > { %13825 = vst [vmem:[#allocation8_spill] sm:$0xff] %v7640_v25  ;;  %13829 = vst [vmem:[#allocation10_spill] sm:$0xff] %v7646_v36  ;;  %v7655_v32 = vadd.f32 %v556_v41, %v13832_v13  ;;  %v13834_v4 = vld [vmem:[#allocation13_spill] sm:$0xff]  ;;  %v13836_v39 = vld [vmem:[#allocation14_spill] sm:$0xff]  ;;  %v633_v13 = vmul.f32 %v7606_v3, %v596_v56  ;;  %v640_v56 = vmul.f32 %v7606_v3, %v603_v2 }
  0x5d   : > { %13827 = vst [vmem:[#allocation9_spill] sm:$0xff] %v7643_v1  ;;  %13831 = vst [vmem:[#allocation11_spill] sm:$0xff] %v7649_v10  ;;  %v7658_v5 = vadd.f32 %v557_v17, %v13834_v4  ;;  %v7661_v48 = vadd.f32 %v558_v24, %v13836_v39  ;;  %v13838_v23 = vld [vmem:[#allocation15_spill] sm:$0xff]  ;;  %v608_v30 = vld [vmem:[%s7017_s30 + $0xc4] sm:$0xff]  ;;  %v630_v17 = vmul.f32 %v7606_v3, %v593_v8 }
  0x5e   : > { %13833 = vst [vmem:[#allocation12_spill] sm:$0xff] %v7655_v32  ;;  %v7664_v21 = vadd.f32 %v559_v42, %v13838_v23  ;;  %v607_v40 = vld [vmem:[%s7017_s30 + $0xb4] sm:$0xff]  ;;  %v609_v34 = vld [vmem:[%s7017_s30 + $0xcc] sm:$0xff]  ;;  %v610_v31 = vld [vmem:[%s7017_s30 + $0xdc] sm:$0xff]  ;;  %v632_v24 = vmul.f32 %v7606_v3, %v595_v44  ;;  %v634_v4 = vmul.f32 %v7606_v3, %v597_v35  ;;  %v635_v39 = vmul.f32 %v7606_v3, %v598_v37 }
  0x5f   : > { %13835 = vst [vmem:[#allocation13_spill] sm:$0xff] %v7658_v5  ;;  %13837 = vst [vmem:[#allocation14_spill] sm:$0xff] %v7661_v48  ;;  %v611_v41 = vld [vmem:[%s7017_s30 + $0xe4] sm:$0xff]  ;;  %v612_v42 = vld [vmem:[%s7017_s30 + $0xf4] sm:$0xff]  ;;  %v637_v44 = vmul.f32 %v7606_v3, %v600_v50  ;;  %v639_v48 = vmul.f32 %v7606_v3, %v602_v46  ;;  %v641_v37 = vmul.f32 %v7606_v3, %v604_v19 }
  0x60   : > { %13839 = vst [vmem:[#allocation15_spill] sm:$0xff] %v7664_v21  ;;  %v613_v61 = vld [vmem:[%s7017_s30 + $0xfc] sm:$0xff]  ;;  %v614_v29 = vld [vmem:[%s7017_s30 + $0x10c] sm:$0xff]  ;;  %v615_v8 = vld [vmem:[%s7017_s30 + $0x114] sm:$0xff]  ;;  %v638_v21 = vmul.f32 %v7606_v3, %v601_v14  ;;  %v643_v10 = vmul.f32 %v7606_v3, %v606_v54  ;;  %v644_v36 = vmul.f32 %v7606_v3, %v607_v40  ;;  %v645_v14 = vmul.f32 %v7606_v3, %v608_v30 }
  0x61   : > { %v616_v28 = vld [vmem:[%s7017_s30 + $0x124] sm:$0xff]  ;;  %v617_v23 = vld [vmem:[%s7017_s30 + $0x12c] sm:$0xff]  ;;  %v618_v5 = vld [vmem:[%s7017_s30 + $0x13c] sm:$0xff]  ;;  %v646_v46 = vmul.f32 %v7606_v3, %v609_v34  ;;  %v647_v2 = vmul.f32 %v7606_v3, %v610_v31  ;;  %v648_v55 = vmul.f32 %v7606_v3, %v611_v41  ;;  %v649_v11 = vmul.f32 %v7606_v3, %v612_v42 }
  0x62   : > { %v619_v35 = vld [vmem:[%s7017_s30 + $0x144] sm:$0xff]  ;;  %v620_v32 = vld [vmem:[%s7017_s30 + $0x154] sm:$0xff]  ;;  %v621_v1 = vld [vmem:[%s7017_s30 + $0x15c] sm:$0xff]  ;;  %v650_v19 = vmul.f32 %v7606_v3, %v613_v61  ;;  %v651_v52 = vmul.f32 %v7606_v3, %v614_v29  ;;  %v652_v54 = vmul.f32 %v7606_v3, %v615_v8  ;;  %v653_v40 = vmul.f32 %v7606_v3, %v616_v28 }
  0x63   : > { %v622_v25 = vld [vmem:[%s7017_s30 + $0x16c] sm:$0xff]  ;;  %v623_v50 = vld [vmem:[%s7017_s30 + $0x174] sm:$0xff]  ;;  %v654_v7 = vmul.f32 %v7606_v3, %v617_v23  ;;  %v655_v30 = vmul.f32 %v7606_v3, %v618_v5  ;;  %v656_v34 = vmul.f32 %v7606_v3, %v619_v35  ;;  %v657_v31 = vmul.f32 %v7606_v3, %v620_v32 }
  0x64   : > { %v658_v41 = vmul.f32 %v7606_v3, %v621_v1  ;;  %v659_v42 = vmul.f32 %v7606_v3, %v622_v25  ;;  %v660_v61 = vmul.f32 %v7606_v3, %v623_v50  ;;  %v7717_v29 = vadd.f32 %v629_v26, %v7552_v51  ;;  %v699_v26 = vld [vmem:[%s7017_s30 + $0x4d] sm:$0xff]  ;;  %v706_v50 = vld [vmem:[%s7017_s30 + $0x9d] sm:$0xff] }
  0x65   : > { %v7720_v8 = vadd.f32 %v630_v17, %v7555_v60  ;;  %v7723_v5 = vadd.f32 %v631_v22, %v7558_v15  ;;  %v7726_v32 = vadd.f32 %v632_v24, %v7561_v12  ;;  %v7729_v25 = vadd.f32 %v633_v13, %v7564_v6  ;;  %v700_v17 = vld [vmem:[%s7017_s30 + $0x55] sm:$0xff]  ;;  %v13850_v23 = vld [vmem:[#allocation10_spill] sm:$0xff] }
  0x66   : > { %v7732_v3 = vadd.f32 %v634_v4, %v7567_v9  ;;  %v7735_v51 = vadd.f32 %v635_v39, %v7570_v0  ;;  %v7738_v60 = vadd.f32 %v636_v18, %v7573_v49  ;;  %v7741_v15 = vadd.f32 %v637_v44, %v7576_v59  ;;  %v702_v4 = vld [vmem:[%s7017_s30 + $0x6d] sm:$0xff]  ;;  %v703_v39 = vld [vmem:[%s7017_s30 + $0x7d] sm:$0xff] }
  0x67   : > { %v7744_v1 = vadd.f32 %v638_v21, %v7579_v45  ;;  %v7747_v12 = vadd.f32 %v639_v48, %v7582_v58  ;;  %v7750_v6 = vadd.f32 %v640_v56, %v7585_v53  ;;  %v7753_v9 = vadd.f32 %v641_v37, %v7588_v38  ;;  %v693_v45 = vld [vmem:[%s7017_s30 + $0x5] sm:$0xff]  ;;  %v694_v58 = vld [vmem:[%s7017_s30 + $0xd] sm:$0xff]  ;;  %v695_v48 = vld [vmem:[%s7017_s30 + $0x1d] sm:$0xff] }
  0x68   : > { %v7756_v0 = vadd.f32 %v642_v63, %v7591_v27  ;;  %v7759_v49 = vadd.f32 %v643_v10, %v7594_v43  ;;  %v7762_v59 = vadd.f32 %v644_v36, %v7597_v57  ;;  %v696_v53 = vld [vmem:[%s7017_s30 + $0x25] sm:$0xff]  ;;  %v7774_v27 = vadd.f32 %v645_v14, %v7609_v20  ;;  %v697_v10 = vld [vmem:[%s7017_s30 + $0x35] sm:$0xff]  ;;  %v698_v21 = vld [vmem:[%s7017_s30 + $0x3d] sm:$0xff] }
  0x69   : > { %v7771_v38 = vld [vmem:[%s13780_s1 + $0x5] ss:$0 sm:$0xff]  ;;  %v7777_v43 = vadd.f32 %v646_v46, %v7612_v16  ;;  %v7780_v57 = vadd.f32 %v647_v2, %v7615_v62  ;;  %v7783_v36 = vadd.f32 %v648_v55, %v7618_v33  ;;  %v7790_v22 = vadd.f32 %v649_v11, %v7625_v47  ;;  %v13842_v16 = vld [vmem:[#allocation6_spill] sm:$0xff]  ;;  %v13844_v62 = vld [vmem:[#allocation7_spill] sm:$0xff] }
  0x6a   : > { %v13840_v20 = vld [vmem:[#allocation5_spill] sm:$0xff]  ;;  %v7796_v13 = vadd.f32 %v651_v52, %v13842_v16  ;;  %v7799_v33 = vadd.f32 %v652_v54, %v13844_v62  ;;  %v13846_v18 = vld [vmem:[#allocation8_spill] sm:$0xff]  ;;  %v7811_v44 = vadd.f32 %v655_v30, %v13850_v23  ;;  %v13852_v56 = vld [vmem:[#allocation11_spill] sm:$0xff] }
  0x6b   : > { %v7793_v24 = vadd.f32 %v650_v19, %v13840_v20  ;;  %v701_v55 = vld [vmem:[%s7017_s30 + $0x65] sm:$0xff]  ;;  %v7805_v47 = vadd.f32 %v653_v40, %v13846_v18  ;;  %v7814_v35 = vadd.f32 %v656_v34, %v13852_v56  ;;  %v705_v63 = vld [vmem:[%s7017_s30 + $0x95] sm:$0xff]  ;;  %v707_v30 = vld [vmem:[%s7017_s30 + $0xad] sm:$0xff]  ;;  %v730_v18 = vmul.f32 %v7771_v38, %v693_v45 }
  0x6c   : > { %13843 = vst [vmem:[#allocation6_spill] sm:$0xff] %v7796_v13  ;;  %13845 = vst [vmem:[#allocation7_spill] sm:$0xff] %v7799_v33  ;;  %v13848_v11 = vld [vmem:[#allocation9_spill] sm:$0xff]  ;;  %v13854_v14 = vld [vmem:[#allocation12_spill] sm:$0xff]  ;;  %v737_v45 = vmul.f32 %v7771_v38, %v700_v17  ;;  %v743_v17 = vmul.f32 %v7771_v38, %v706_v50 }
  0x6d   : > { %13841 = vst [vmem:[#allocation5_spill] sm:$0xff] %v7793_v24  ;;  %13847 = vst [vmem:[#allocation8_spill] sm:$0xff] %v7805_v47  ;;  %v7808_v28 = vadd.f32 %v654_v7, %v13848_v11  ;;  %v704_v37 = vld [vmem:[%s7017_s30 + $0x85] sm:$0xff]  ;;  %v7820_v46 = vadd.f32 %v657_v31, %v13854_v14  ;;  %v13860_v54 = vld [vmem:[#allocation15_spill] sm:$0xff]  ;;  %v732_v11 = vmul.f32 %v7771_v38, %v695_v48 }
  0x6e   : > { %13851 = vst [vmem:[#allocation10_spill] sm:$0xff] %v7811_v44  ;;  %13853 = vst [vmem:[#allocation11_spill] sm:$0xff] %v7814_v35  ;;  %v13856_v2 = vld [vmem:[#allocation13_spill] sm:$0xff]  ;;  %v13858_v7 = vld [vmem:[#allocation14_spill] sm:$0xff]  ;;  %v7829_v40 = vadd.f32 %v660_v61, %v13860_v54  ;;  %v734_v14 = vmul.f32 %v7771_v38, %v697_v10  ;;  %v741_v10 = vmul.f32 %v7771_v38, %v704_v37 }
  0x6f   : > { %13849 = vst [vmem:[#allocation9_spill] sm:$0xff] %v7808_v28  ;;  %13855 = vst [vmem:[#allocation12_spill] sm:$0xff] %v7820_v46  ;;  %v7823_v19 = vadd.f32 %v658_v41, %v13856_v2  ;;  %v7826_v52 = vadd.f32 %v659_v42, %v13858_v7  ;;  %v708_v34 = vld [vmem:[%s7017_s30 + $0xb5] sm:$0xff]  ;;  %v709_v20 = vld [vmem:[%s7017_s30 + $0xc5] sm:$0xff]  ;;  %v731_v41 = vmul.f32 %v7771_v38, %v694_v58 }
  0x70   : > { %13861 = vst [vmem:[#allocation15_spill] sm:$0xff] %v7829_v40  ;;  %v710_v16 = vld [vmem:[%s7017_s30 + $0xcd] sm:$0xff]  ;;  %v711_v62 = vld [vmem:[%s7017_s30 + $0xdd] sm:$0xff]  ;;  %v712_v31 = vld [vmem:[%s7017_s30 + $0xe5] sm:$0xff]  ;;  %v733_v42 = vmul.f32 %v7771_v38, %v696_v53  ;;  %v735_v2 = vmul.f32 %v7771_v38, %v698_v21  ;;  %v736_v7 = vmul.f32 %v7771_v38, %v699_v26  ;;  %v738_v53 = vmul.f32 %v7771_v38, %v701_v55 }
  0x71   : > { %13857 = vst [vmem:[#allocation13_spill] sm:$0xff] %v7823_v19  ;;  %13859 = vst [vmem:[#allocation14_spill] sm:$0xff] %v7826_v52  ;;  %v713_v61 = vld [vmem:[%s7017_s30 + $0xf5] sm:$0xff]  ;;  %v714_v23 = vld [vmem:[%s7017_s30 + $0xfd] sm:$0xff]  ;;  %v739_v40 = vmul.f32 %v7771_v38, %v702_v4  ;;  %v740_v52 = vmul.f32 %v7771_v38, %v703_v39  ;;  %v742_v26 = vmul.f32 %v7771_v38, %v705_v63 }
  0x72   : > { %v715_v56 = vld [vmem:[%s7017_s30 + $0x10d] sm:$0xff]  ;;  %v716_v58 = vld [vmem:[%s7017_s30 + $0x115] sm:$0xff]  ;;  %v717_v48 = vld [vmem:[%s7017_s30 + $0x125] sm:$0xff]  ;;  %v744_v35 = vmul.f32 %v7771_v38, %v707_v30  ;;  %v745_v44 = vmul.f32 %v7771_v38, %v708_v34  ;;  %v746_v4 = vmul.f32 %v7771_v38, %v709_v20  ;;  %v747_v39 = vmul.f32 %v7771_v38, %v710_v16 }
  0x73   : > { %v718_v54 = vld [vmem:[%s7017_s30 + $0x12d] sm:$0xff]  ;;  %v719_v19 = vld [vmem:[%s7017_s30 + $0x13d] sm:$0xff]  ;;  %v720_v21 = vld [vmem:[%s7017_s30 + $0x145] sm:$0xff]  ;;  %v748_v37 = vmul.f32 %v7771_v38, %v711_v62  ;;  %v749_v33 = vmul.f32 %v7771_v38, %v712_v31  ;;  %v750_v13 = vmul.f32 %v7771_v38, %v713_v61  ;;  %v751_v63 = vmul.f32 %v7771_v38, %v714_v23 }
  0x74   : > { %v721_v46 = vld [vmem:[%s7017_s30 + $0x155] sm:$0xff]  ;;  %v722_v28 = vld [vmem:[%s7017_s30 + $0x15d] sm:$0xff]  ;;  %v723_v47 = vld [vmem:[%s7017_s30 + $0x16d] sm:$0xff]  ;;  %v752_v50 = vmul.f32 %v7771_v38, %v715_v56  ;;  %v753_v30 = vmul.f32 %v7771_v38, %v716_v58  ;;  %v754_v34 = vmul.f32 %v7771_v38, %v717_v48  ;;  %v755_v24 = vmul.f32 %v7771_v38, %v718_v54 }
  0x75   : > { %v724_v55 = vld [vmem:[%s7017_s30 + $0x175] sm:$0xff]  ;;  %v756_v20 = vmul.f32 %v7771_v38, %v719_v19  ;;  %v757_v16 = vmul.f32 %v7771_v38, %v720_v21  ;;  %v758_v62 = vmul.f32 %v7771_v38, %v721_v46  ;;  %v759_v31 = vmul.f32 %v7771_v38, %v722_v28  ;;  %v13872_v54 = vld [vmem:[#allocation10_spill] sm:$0xff] }
  0x76   : > { %v760_v61 = vmul.f32 %v7771_v38, %v723_v47  ;;  %v761_v23 = vmul.f32 %v7771_v38, %v724_v55  ;;  %v7882_v56 = vadd.f32 %v730_v18, %v7717_v29  ;;  %v7885_v58 = vadd.f32 %v731_v41, %v7720_v8  ;;  %v800_v18 = vld [vmem:[%s7017_s30 + $0x4e] sm:$0xff]  ;;  %v801_v41 = vld [vmem:[%s7017_s30 + $0x56] sm:$0xff]  ;;  %v807_v55 = vld [vmem:[%s7017_s30 + $0x9e] sm:$0xff] }
  0x77   : > { %v7888_v19 = vadd.f32 %v732_v11, %v7723_v5  ;;  %v7891_v46 = vadd.f32 %v733_v42, %v7726_v32  ;;  %v7894_v47 = vadd.f32 %v734_v14, %v7729_v25  ;;  %v7897_v38 = vadd.f32 %v735_v2, %v7732_v3  ;;  %v803_v2 = vld [vmem:[%s7017_s30 + $0x6e] sm:$0xff] }
  0x78   : > { %v7900_v29 = vadd.f32 %v736_v7, %v7735_v51  ;;  %v7903_v8 = vadd.f32 %v737_v45, %v7738_v60  ;;  %v7906_v5 = vadd.f32 %v738_v53, %v7741_v15  ;;  %v7909_v28 = vadd.f32 %v739_v40, %v7744_v1  ;;  %v794_v1 = vld [vmem:[%s7017_s30 + $0x6] sm:$0xff]  ;;  %v799_v40 = vld [vmem:[%s7017_s30 + $0x3e] sm:$0xff] }
  0x79   : > { %v7912_v32 = vadd.f32 %v740_v52, %v7747_v12  ;;  %v7915_v25 = vadd.f32 %v741_v10, %v7750_v6  ;;  %v7918_v3 = vadd.f32 %v742_v26, %v7753_v9  ;;  %v7921_v51 = vadd.f32 %v743_v17, %v7756_v0  ;;  %v795_v12 = vld [vmem:[%s7017_s30 + $0xe] sm:$0xff]  ;;  %v796_v52 = vld [vmem:[%s7017_s30 + $0x1e] sm:$0xff]  ;;  %v797_v6 = vld [vmem:[%s7017_s30 + $0x26] sm:$0xff] }
  0x7a   : > { %v7924_v60 = vadd.f32 %v744_v35, %v7759_v49  ;;  %v7927_v15 = vadd.f32 %v745_v44, %v7762_v59  ;;  %v7936_v9 = vld [vmem:[%s13780_s1 + $0x6] ss:$0 sm:$0xff]  ;;  %v7939_v0 = vadd.f32 %v746_v4, %v7774_v27  ;;  %v7942_v49 = vadd.f32 %v747_v39, %v7777_v43  ;;  %v798_v35 = vld [vmem:[%s7017_s30 + $0x36] sm:$0xff]  ;;  %v13864_v43 = vld [vmem:[#allocation6_spill] sm:$0xff] }
  0x7b   : > { %v7945_v59 = vadd.f32 %v748_v37, %v7780_v57  ;;  %v7948_v44 = vadd.f32 %v749_v33, %v7783_v36  ;;  %v7955_v11 = vadd.f32 %v750_v13, %v7790_v22  ;;  %v13862_v27 = vld [vmem:[#allocation5_spill] sm:$0xff]  ;;  %v7961_v14 = vadd.f32 %v752_v50, %v13864_v43  ;;  %v13866_v57 = vld [vmem:[#allocation7_spill] sm:$0xff]  ;;  %v13868_v45 = vld [vmem:[#allocation8_spill] sm:$0xff] }
  0x7c   : > { %v7958_v42 = vadd.f32 %v751_v63, %v13862_v27  ;;  %v7964_v36 = vadd.f32 %v753_v30, %v13866_v57  ;;  %v802_v33 = vld [vmem:[%s7017_s30 + $0x66] sm:$0xff]  ;;  %v804_v7 = vld [vmem:[%s7017_s30 + $0x7e] sm:$0xff]  ;;  %v7970_v22 = vadd.f32 %v754_v34, %v13868_v45  ;;  %v7976_v53 = vadd.f32 %v756_v20, %v13872_v54  ;;  %v13874_v10 = vld [vmem:[#allocation11_spill] sm:$0xff] }
  0x7d   : > { %13865 = vst [vmem:[#allocation6_spill] sm:$0xff] %v7961_v14  ;;  %v13870_v13 = vld [vmem:[#allocation9_spill] sm:$0xff]  ;;  %v7979_v21 = vadd.f32 %v757_v16, %v13874_v10  ;;  %v806_v17 = vld [vmem:[%s7017_s30 + $0x96] sm:$0xff]  ;;  %v808_v20 = vld [vmem:[%s7017_s30 + $0xae] sm:$0xff]  ;;  %v831_v45 = vmul.f32 %v7936_v9, %v794_v1  ;;  %v838_v1 = vmul.f32 %v7936_v9, %v801_v41  ;;  %v844_v41 = vmul.f32 %v7936_v9, %v807_v55 }
  0x7e   : > { %13863 = vst [vmem:[#allocation5_spill] sm:$0xff] %v7958_v42  ;;  %13867 = vst [vmem:[#allocation7_spill] sm:$0xff] %v7964_v36  ;;  %v7973_v48 = vadd.f32 %v755_v24, %v13870_v13  ;;  %v805_v26 = vld [vmem:[%s7017_s30 + $0x86] sm:$0xff]  ;;  %v13876_v4 = vld [vmem:[#allocation12_spill] sm:$0xff]  ;;  %v833_v13 = vmul.f32 %v7936_v9, %v796_v52 }
  0x7f   : > { %13869 = vst [vmem:[#allocation8_spill] sm:$0xff] %v7970_v22  ;;  %13873 = vst [vmem:[#allocation10_spill] sm:$0xff] %v7976_v53  ;;  %v7985_v39 = vadd.f32 %v758_v62, %v13876_v4  ;;  %v13878_v37 = vld [vmem:[#allocation13_spill] sm:$0xff]  ;;  %v13880_v24 = vld [vmem:[#allocation14_spill] sm:$0xff]  ;;  %v835_v4 = vmul.f32 %v7936_v9, %v798_v35  ;;  %v842_v35 = vmul.f32 %v7936_v9, %v805_v26 }
  0x80   : > { %13871 = vst [vmem:[#allocation9_spill] sm:$0xff] %v7973_v48  ;;  %13875 = vst [vmem:[#allocation11_spill] sm:$0xff] %v7979_v21  ;;  %v7988_v63 = vadd.f32 %v759_v31, %v13878_v37  ;;  %v7991_v50 = vadd.f32 %v760_v61, %v13880_v24  ;;  %v13882_v30 = vld [vmem:[#allocation15_spill] sm:$0xff]  ;;  %v810_v27 = vld [vmem:[%s7017_s30 + $0xc6] sm:$0xff]  ;;  %v832_v31 = vmul.f32 %v7936_v9, %v795_v12 }
  0x81   : > { %13877 = vst [vmem:[#allocation12_spill] sm:$0xff] %v7985_v39  ;;  %v7994_v34 = vadd.f32 %v761_v23, %v13882_v30  ;;  %v809_v16 = vld [vmem:[%s7017_s30 + $0xb6] sm:$0xff]  ;;  %v811_v43 = vld [vmem:[%s7017_s30 + $0xce] sm:$0xff]  ;;  %v812_v57 = vld [vmem:[%s7017_s30 + $0xde] sm:$0xff]  ;;  %v834_v61 = vmul.f32 %v7936_v9, %v797_v6  ;;  %v836_v37 = vmul.f32 %v7936_v9, %v799_v40  ;;  %v837_v24 = vmul.f32 %v7936_v9, %v800_v18 }
  0x82   : > { %13879 = vst [vmem:[#allocation13_spill] sm:$0xff] %v7988_v63  ;;  %13881 = vst [vmem:[#allocation14_spill] sm:$0xff] %v7991_v50  ;;  %v813_v62 = vld [vmem:[%s7017_s30 + $0xe6] sm:$0xff]  ;;  %v814_v23 = vld [vmem:[%s7017_s30 + $0xf6] sm:$0xff]  ;;  %v839_v6 = vmul.f32 %v7936_v9, %v802_v33  ;;  %v841_v50 = vmul.f32 %v7936_v9, %v804_v7  ;;  %v843_v18 = vmul.f32 %v7936_v9, %v806_v17 }
  0x83   : > { %13883 = vst [vmem:[#allocation15_spill] sm:$0xff] %v7994_v34  ;;  %v815_v54 = vld [vmem:[%s7017_s30 + $0xfe] sm:$0xff]  ;;  %v816_v10 = vld [vmem:[%s7017_s30 + $0x10e] sm:$0xff]  ;;  %v817_v12 = vld [vmem:[%s7017_s30 + $0x116] sm:$0xff]  ;;  %v840_v34 = vmul.f32 %v7936_v9, %v803_v2  ;;  %v845_v21 = vmul.f32 %v7936_v9, %v808_v20  ;;  %v846_v53 = vmul.f32 %v7936_v9, %v809_v16  ;;  %v847_v2 = vmul.f32 %v7936_v9, %v810_v27 }
  0x84   : > { %v818_v52 = vld [vmem:[%s7017_s30 + $0x126] sm:$0xff]  ;;  %v819_v30 = vld [vmem:[%s7017_s30 + $0x12e] sm:$0xff]  ;;  %v820_v63 = vld [vmem:[%s7017_s30 + $0x13e] sm:$0xff]  ;;  %v848_v7 = vmul.f32 %v7936_v9, %v811_v43  ;;  %v849_v26 = vmul.f32 %v7936_v9, %v812_v57  ;;  %v850_v36 = vmul.f32 %v7936_v9, %v813_v62  ;;  %v851_v14 = vmul.f32 %v7936_v9, %v814_v23 }
  0x85   : > { %v821_v40 = vld [vmem:[%s7017_s30 + $0x146] sm:$0xff]  ;;  %v822_v39 = vld [vmem:[%s7017_s30 + $0x156] sm:$0xff]  ;;  %v823_v48 = vld [vmem:[%s7017_s30 + $0x15e] sm:$0xff]  ;;  %v852_v17 = vmul.f32 %v7936_v9, %v815_v54  ;;  %v853_v55 = vmul.f32 %v7936_v9, %v816_v10  ;;  %v854_v20 = vmul.f32 %v7936_v9, %v817_v12  ;;  %v855_v16 = vmul.f32 %v7936_v9, %v818_v52 }
  0x86   : > { %v824_v22 = vld [vmem:[%s7017_s30 + $0x16e] sm:$0xff]  ;;  %v825_v33 = vld [vmem:[%s7017_s30 + $0x176] sm:$0xff]  ;;  %v856_v42 = vmul.f32 %v7936_v9, %v819_v30  ;;  %v857_v27 = vmul.f32 %v7936_v9, %v820_v63  ;;  %v858_v43 = vmul.f32 %v7936_v9, %v821_v40  ;;  %v859_v57 = vmul.f32 %v7936_v9, %v822_v39 }
  0x87   : > { %v860_v62 = vmul.f32 %v7936_v9, %v823_v48  ;;  %v861_v23 = vmul.f32 %v7936_v9, %v824_v22  ;;  %v862_v54 = vmul.f32 %v7936_v9, %v825_v33  ;;  %v8047_v10 = vadd.f32 %v831_v45, %v7882_v56  ;;  %v5367_v45 = vld [vmem:[%s7017_s30 + $0x60] sm:$0xff]  ;;  %v13894_v30 = vld [vmem:[#allocation10_spill] sm:$0xff]  ;;  %v5374_v33 = vld [vmem:[%s7017_s30 + $0xb0] sm:$0xff] }
  0x88   : > { %v8050_v12 = vadd.f32 %v832_v31, %v7885_v58  ;;  %v8053_v63 = vadd.f32 %v833_v13, %v7888_v19  ;;  %v8056_v39 = vadd.f32 %v834_v61, %v7891_v46  ;;  %v8059_v22 = vadd.f32 %v835_v4, %v7894_v47  ;;  %v5368_v31 = vld [vmem:[%s7017_s30 + $0x68] sm:$0xff] }
  0x89   : > { %v8062_v9 = vadd.f32 %v836_v37, %v7897_v38  ;;  %v8065_v56 = vadd.f32 %v837_v24, %v7900_v29  ;;  %v8068_v58 = vadd.f32 %v838_v1, %v7903_v8  ;;  %v8071_v19 = vadd.f32 %v839_v6, %v7906_v5  ;;  %v5370_v37 = vld [vmem:[%s7017_s30 + $0x80] sm:$0xff]  ;;  %v5371_v24 = vld [vmem:[%s7017_s30 + $0x90] sm:$0xff]  ;;  %v13890_v1 = vld [vmem:[#allocation8_spill] sm:$0xff] }
  0x8a   : > { %v8074_v48 = vadd.f32 %v840_v34, %v7909_v28  ;;  %v8077_v46 = vadd.f32 %v841_v50, %v7912_v32  ;;  %v8080_v47 = vadd.f32 %v842_v35, %v7915_v25  ;;  %v8083_v38 = vadd.f32 %v843_v18, %v7918_v3  ;;  %v5361_v28 = vld [vmem:[%s7017_s30 + $0x18] sm:$0xff]  ;;  %v5362_v32 = vld [vmem:[%s7017_s30 + $0x20] sm:$0xff]  ;;  %v5363_v50 = vld [vmem:[%s7017_s30 + $0x30] sm:$0xff] }
  0x8b   : > { %v8086_v29 = vadd.f32 %v844_v41, %v7921_v51  ;;  %v8089_v8 = vadd.f32 %v845_v21, %v7924_v60  ;;  %v8092_v5 = vadd.f32 %v846_v53, %v7927_v15  ;;  %v5364_v25 = vld [vmem:[%s7017_s30 + $0x38] sm:$0xff]  ;;  %v8101_v3 = vld [vmem:[%s13780_s1 + $0x8] ss:$0 sm:$0xff]  ;;  %v8104_v51 = vadd.f32 %v847_v2, %v7939_v0  ;;  %v5366_v34 = vld [vmem:[%s7017_s30 + $0x50] sm:$0xff] }
  0x8c   : > { %v8107_v60 = vadd.f32 %v848_v7, %v7942_v49  ;;  %v8110_v15 = vadd.f32 %v849_v26, %v7945_v59  ;;  %v8113_v53 = vadd.f32 %v850_v36, %v7948_v44  ;;  %v5365_v21 = vld [vmem:[%s7017_s30 + $0x48] sm:$0xff]  ;;  %v8120_v13 = vadd.f32 %v851_v14, %v7955_v11  ;;  %v13884_v0 = vld [vmem:[#allocation5_spill] sm:$0xff]  ;;  %v13888_v59 = vld [vmem:[#allocation7_spill] sm:$0xff] }
  0x8d   : > { %v8123_v61 = vadd.f32 %v852_v17, %v13884_v0  ;;  %v13886_v49 = vld [vmem:[#allocation6_spill] sm:$0xff]  ;;  %v8129_v44 = vadd.f32 %v854_v20, %v13888_v59  ;;  %v5369_v36 = vld [vmem:[%s7017_s30 + $0x78] sm:$0xff]  ;;  %v8135_v11 = vadd.f32 %v855_v16, %v13890_v1  ;;  %v13892_v14 = vld [vmem:[#allocation9_spill] sm:$0xff]  ;;  %v8141_v6 = vadd.f32 %v857_v27, %v13894_v30 }
  0x8e   : > { %v8126_v4 = vadd.f32 %v853_v55, %v13886_v49  ;;  %v8138_v52 = vadd.f32 %v856_v42, %v13892_v14  ;;  %v13896_v35 = vld [vmem:[#allocation11_spill] sm:$0xff]  ;;  %v5372_v18 = vld [vmem:[%s7017_s30 + $0x98] sm:$0xff]  ;;  %v5373_v41 = vld [vmem:[%s7017_s30 + $0xa8] sm:$0xff]  ;;  %v936_v1 = vmul.f32 %v8101_v3, %v5361_v28  ;;  %v938_v14 = vmul.f32 %v8101_v3, %v5363_v50 }
  0x8f   : > { %13885 = vst [vmem:[#allocation5_spill] sm:$0xff] %v8123_v61  ;;  %13889 = vst [vmem:[#allocation7_spill] sm:$0xff] %v8129_v44  ;;  %v8144_v40 = vadd.f32 %v858_v43, %v13896_v35  ;;  %v13898_v2 = vld [vmem:[#allocation12_spill] sm:$0xff]  ;;  %v13900_v26 = vld [vmem:[#allocation13_spill] sm:$0xff]  ;;  %v943_v28 = vmul.f32 %v8101_v3, %v5368_v31  ;;  %v949_v31 = vmul.f32 %v8101_v3, %v5374_v33 }
  0x90   : > { %13887 = vst [vmem:[#allocation6_spill] sm:$0xff] %v8126_v4  ;;  %13891 = vst [vmem:[#allocation8_spill] sm:$0xff] %v8135_v11  ;;  %v8150_v7 = vadd.f32 %v859_v57, %v13898_v2  ;;  %v8153_v17 = vadd.f32 %v860_v62, %v13900_v26  ;;  %v13902_v42 = vld [vmem:[#allocation14_spill] sm:$0xff]  ;;  %v13904_v20 = vld [vmem:[#allocation15_spill] sm:$0xff]  ;;  %v937_v62 = vmul.f32 %v8101_v3, %v5362_v32 }
  0x91   : > { %13893 = vst [vmem:[#allocation9_spill] sm:$0xff] %v8138_v52  ;;  %13895 = vst [vmem:[#allocation10_spill] sm:$0xff] %v8141_v6  ;;  %v8156_v55 = vadd.f32 %v861_v23, %v13902_v42  ;;  %v8159_v16 = vadd.f32 %v862_v54, %v13904_v20  ;;  %v5375_v27 = vld [vmem:[%s7017_s30 + $0xc0] sm:$0xff]  ;;  %v5376_v43 = vld [vmem:[%s7017_s30 + $0xc8] sm:$0xff]  ;;  %v939_v23 = vmul.f32 %v8101_v3, %v5364_v25 }
  0x92   : > { %13897 = vst [vmem:[#allocation11_spill] sm:$0xff] %v8144_v40  ;;  %13899 = vst [vmem:[#allocation12_spill] sm:$0xff] %v8150_v7  ;;  %v5377_v0 = vld [vmem:[%s7017_s30 + $0xd8] sm:$0xff]  ;;  %v5378_v49 = vld [vmem:[%s7017_s30 + $0xe0] sm:$0xff]  ;;  %v940_v2 = vmul.f32 %v8101_v3, %v5365_v21  ;;  %v941_v26 = vmul.f32 %v8101_v3, %v5366_v34  ;;  %v942_v42 = vmul.f32 %v8101_v3, %v5367_v45 }
  0x93   : > { %13901 = vst [vmem:[#allocation13_spill] sm:$0xff] %v8153_v17  ;;  %13903 = vst [vmem:[#allocation14_spill] sm:$0xff] %v8156_v55  ;;  %v5379_v59 = vld [vmem:[%s7017_s30 + $0xf0] sm:$0xff]  ;;  %v5380_v57 = vld [vmem:[%s7017_s30 + $0xf8] sm:$0xff]  ;;  %v944_v25 = vmul.f32 %v8101_v3, %v5369_v36  ;;  %v946_v55 = vmul.f32 %v8101_v3, %v5371_v24  ;;  %v947_v21 = vmul.f32 %v8101_v3, %v5372_v18 }
  0x94   : > { %13905 = vst [vmem:[#allocation15_spill] sm:$0xff] %v8159_v16  ;;  %v5381_v54 = vld [vmem:[%s7017_s30 + $0x108] sm:$0xff]  ;;  %v5382_v30 = vld [vmem:[%s7017_s30 + $0x110] sm:$0xff]  ;;  %v5383_v35 = vld [vmem:[%s7017_s30 + $0x120] sm:$0xff]  ;;  %v945_v16 = vmul.f32 %v8101_v3, %v5370_v37  ;;  %v948_v45 = vmul.f32 %v8101_v3, %v5373_v41  ;;  %v950_v40 = vmul.f32 %v8101_v3, %v5375_v27  ;;  %v951_v6 = vmul.f32 %v8101_v3, %v5376_v43 }
  0x95   : > { %v5384_v32 = vld [vmem:[%s7017_s30 + $0x128] sm:$0xff]  ;;  %v5385_v50 = vld [vmem:[%s7017_s30 + $0x138] sm:$0xff]  ;;  %v5386_v20 = vld [vmem:[%s7017_s30 + $0x140] sm:$0xff]  ;;  %v952_v37 = vmul.f32 %v8101_v3, %v5377_v0  ;;  %v953_v24 = vmul.f32 %v8101_v3, %v5378_v49  ;;  %v954_v18 = vmul.f32 %v8101_v3, %v5379_v59  ;;  %v955_v44 = vmul.f32 %v8101_v3, %v5380_v57 }
  0x96   : > { %v5387_v17 = vld [vmem:[%s7017_s30 + $0x150] sm:$0xff]  ;;  %v5388_v34 = vld [vmem:[%s7017_s30 + $0x158] sm:$0xff]  ;;  %v5389_v7 = vld [vmem:[%s7017_s30 + $0x168] sm:$0xff]  ;;  %v956_v4 = vmul.f32 %v8101_v3, %v5381_v54  ;;  %v957_v41 = vmul.f32 %v8101_v3, %v5382_v30  ;;  %v958_v33 = vmul.f32 %v8101_v3, %v5383_v35  ;;  %v959_v27 = vmul.f32 %v8101_v3, %v5384_v32 }
  0x97   : > { %v5390_v52 = vld [vmem:[%s7017_s30 + $0x170] sm:$0xff]  ;;  %v5391_v11 = vld [vmem:[%s7017_s30 + $0x180] sm:$0xff]  ;;  %v5392_v36 = vld [vmem:[%s7017_s30 + $0x188] sm:$0xff]  ;;  %v960_v43 = vmul.f32 %v8101_v3, %v5385_v50  ;;  %v961_v61 = vmul.f32 %v8101_v3, %v5386_v20  ;;  %v962_v0 = vmul.f32 %v8101_v3, %v5387_v17  ;;  %v963_v49 = vmul.f32 %v8101_v3, %v5388_v34 }
  0x98   : > { %v964_v59 = vmul.f32 %v8101_v3, %v5389_v7  ;;  %v965_v57 = vmul.f32 %v8101_v3, %v5390_v52  ;;  %v966_v54 = vmul.f32 %v8101_v3, %v5391_v11  ;;  %v967_v30 = vmul.f32 %v8101_v3, %v5392_v36  ;;  %v13916_v20 = vld [vmem:[#allocation10_spill] sm:$0xff]  ;;  %v5408_v36 = vld [vmem:[%s7017_s30 + $0xb1] sm:$0xff] }
  0x99   : > { %v8212_v35 = vadd.f32 %v936_v1, %v8047_v10  ;;  %v8215_v32 = vadd.f32 %v937_v62, %v8050_v12  ;;  %v8218_v17 = vadd.f32 %v938_v14, %v8053_v63  ;;  %v8221_v7 = vadd.f32 %v939_v23, %v8056_v39  ;;  %v5401_v1 = vld [vmem:[%s7017_s30 + $0x61] sm:$0xff]  ;;  %v5402_v62 = vld [vmem:[%s7017_s30 + $0x69] sm:$0xff] }
  0x9a   : > { %v8224_v11 = vadd.f32 %v940_v2, %v8059_v22  ;;  %v8227_v3 = vadd.f32 %v941_v26, %v8062_v9  ;;  %v8230_v10 = vadd.f32 %v942_v42, %v8065_v56  ;;  %v8233_v12 = vadd.f32 %v943_v28, %v8068_v58  ;;  %v5404_v26 = vld [vmem:[%s7017_s30 + $0x81] sm:$0xff]  ;;  %v5405_v42 = vld [vmem:[%s7017_s30 + $0x91] sm:$0xff] }
  0x9b   : > { %v8236_v63 = vadd.f32 %v944_v25, %v8071_v19  ;;  %v8239_v52 = vadd.f32 %v945_v16, %v8074_v48  ;;  %v8242_v39 = vadd.f32 %v946_v55, %v8077_v46  ;;  %v8245_v22 = vadd.f32 %v947_v21, %v8080_v47  ;;  %v5395_v48 = vld [vmem:[%s7017_s30 + $0x19] sm:$0xff]  ;;  %v5396_v46 = vld [vmem:[%s7017_s30 + $0x21] sm:$0xff]  ;;  %v5397_v55 = vld [vmem:[%s7017_s30 + $0x31] sm:$0xff] }
  0x9c   : > { %v8248_v9 = vadd.f32 %v948_v45, %v8083_v38  ;;  %v8251_v56 = vadd.f32 %v949_v31, %v8086_v29  ;;  %v8254_v58 = vadd.f32 %v950_v40, %v8089_v8  ;;  %v8257_v19 = vadd.f32 %v951_v6, %v8092_v5  ;;  %v5398_v47 = vld [vmem:[%s7017_s30 + $0x39] sm:$0xff]  ;;  %v8266_v38 = vld [vmem:[%s13780_s1 + $0x9] ss:$0 sm:$0xff]  ;;  %v5400_v16 = vld [vmem:[%s7017_s30 + $0x51] sm:$0xff] }
  0x9d   : > { %v8269_v29 = vadd.f32 %v952_v37, %v8104_v51  ;;  %v8272_v8 = vadd.f32 %v953_v24, %v8107_v60  ;;  %v8275_v5 = vadd.f32 %v954_v18, %v8110_v15  ;;  %v8278_v6 = vadd.f32 %v955_v44, %v8113_v53  ;;  %v5399_v40 = vld [vmem:[%s7017_s30 + $0x49] sm:$0xff]  ;;  %v13906_v51 = vld [vmem:[#allocation5_spill] sm:$0xff]  ;;  %v13912_v28 = vld [vmem:[#allocation8_spill] sm:$0xff] }
  0x9e   : > { %v8285_v14 = vadd.f32 %v956_v4, %v8120_v13  ;;  %v8288_v23 = vadd.f32 %v957_v41, %v13906_v51  ;;  %v13908_v60 = vld [vmem:[#allocation6_spill] sm:$0xff]  ;;  %v13910_v15 = vld [vmem:[#allocation7_spill] sm:$0xff]  ;;  %v5403_v44 = vld [vmem:[%s7017_s30 + $0x79] sm:$0xff]  ;;  %v8300_v13 = vadd.f32 %v960_v43, %v13912_v28  ;;  %v8306_v25 = vadd.f32 %v962_v0, %v13916_v20 }
  0x9f   : > { %v8291_v2 = vadd.f32 %v958_v33, %v13908_v60  ;;  %v8294_v53 = vadd.f32 %v959_v27, %v13910_v15  ;;  %v13914_v4 = vld [vmem:[#allocation9_spill] sm:$0xff]  ;;  %v13918_v21 = vld [vmem:[#allocation11_spill] sm:$0xff]  ;;  %v13920_v37 = vld [vmem:[#allocation12_spill] sm:$0xff]  ;;  %v1037_v28 = vmul.f32 %v8266_v38, %v5395_v48  ;;  %v1044_v48 = vmul.f32 %v8266_v38, %v5402_v62 }
  0xa0   : > { %13907 = vst [vmem:[#allocation5_spill] sm:$0xff] %v8288_v23  ;;  %13913 = vst [vmem:[#allocation8_spill] sm:$0xff] %v8300_v13  ;;  %v8303_v50 = vadd.f32 %v961_v61, %v13914_v4  ;;  %v8309_v34 = vadd.f32 %v963_v49, %v13918_v21  ;;  %v5406_v45 = vld [vmem:[%s7017_s30 + $0x99] sm:$0xff]  ;;  %v5407_v31 = vld [vmem:[%s7017_s30 + $0xa9] sm:$0xff]  ;;  %v8315_v24 = vadd.f32 %v964_v59, %v13920_v37 }
  0xa1   : > { %13909 = vst [vmem:[#allocation6_spill] sm:$0xff] %v8291_v2  ;;  %13911 = vst [vmem:[#allocation7_spill] sm:$0xff] %v8294_v53  ;;  %v13922_v18 = vld [vmem:[#allocation13_spill] sm:$0xff]  ;;  %v13924_v61 = vld [vmem:[#allocation14_spill] sm:$0xff]  ;;  %v1039_v4 = vmul.f32 %v8266_v38, %v5397_v55  ;;  %v1041_v37 = vmul.f32 %v8266_v38, %v5399_v40  ;;  %v1048_v40 = vmul.f32 %v8266_v38, %v5406_v45 }
  0xa2   : > { %13915 = vst [vmem:[#allocation9_spill] sm:$0xff] %v8303_v50  ;;  %13917 = vst [vmem:[#allocation10_spill] sm:$0xff] %v8306_v25  ;;  %v8318_v41 = vadd.f32 %v965_v57, %v13922_v18  ;;  %v8321_v33 = vadd.f32 %v966_v54, %v13924_v61  ;;  %v13926_v27 = vld [vmem:[#allocation15_spill] sm:$0xff]  ;;  %v5409_v0 = vld [vmem:[%s7017_s30 + $0xc1] sm:$0xff]  ;;  %v1038_v57 = vmul.f32 %v8266_v38, %v5396_v46 }
  0xa3   : > { %13919 = vst [vmem:[#allocation11_spill] sm:$0xff] %v8309_v34  ;;  %13921 = vst [vmem:[#allocation12_spill] sm:$0xff] %v8315_v24  ;;  %v8324_v43 = vadd.f32 %v967_v30, %v13926_v27  ;;  %v5410_v49 = vld [vmem:[%s7017_s30 + $0xc9] sm:$0xff]  ;;  %v5411_v51 = vld [vmem:[%s7017_s30 + $0xd9] sm:$0xff]  ;;  %v1040_v54 = vmul.f32 %v8266_v38, %v5398_v47  ;;  %v1042_v18 = vmul.f32 %v8266_v38, %v5400_v16 }
  0xa4   : > { %13923 = vst [vmem:[#allocation13_spill] sm:$0xff] %v8318_v41  ;;  %13925 = vst [vmem:[#allocation14_spill] sm:$0xff] %v8321_v33  ;;  %v5412_v60 = vld [vmem:[%s7017_s30 + $0xe1] sm:$0xff]  ;;  %v5413_v15 = vld [vmem:[%s7017_s30 + $0xf1] sm:$0xff]  ;;  %v1043_v61 = vmul.f32 %v8266_v38, %v5401_v1  ;;  %v1045_v47 = vmul.f32 %v8266_v38, %v5403_v44  ;;  %v1047_v33 = vmul.f32 %v8266_v38, %v5405_v42 }
  0xa5   : > { %13927 = vst [vmem:[#allocation15_spill] sm:$0xff] %v8324_v43  ;;  %v5414_v59 = vld [vmem:[%s7017_s30 + $0xf9] sm:$0xff]  ;;  %v5415_v30 = vld [vmem:[%s7017_s30 + $0x109] sm:$0xff]  ;;  %v5416_v20 = vld [vmem:[%s7017_s30 + $0x111] sm:$0xff]  ;;  %v1046_v43 = vmul.f32 %v8266_v38, %v5404_v26  ;;  %v1049_v1 = vmul.f32 %v8266_v38, %v5407_v31  ;;  %v1050_v62 = vmul.f32 %v8266_v38, %v5408_v36  ;;  %v1051_v34 = vmul.f32 %v8266_v38, %v5409_v0 }
  0xa6   : > { %v5417_v21 = vld [vmem:[%s7017_s30 + $0x121] sm:$0xff]  ;;  %v5418_v46 = vld [vmem:[%s7017_s30 + $0x129] sm:$0xff]  ;;  %v5419_v55 = vld [vmem:[%s7017_s30 + $0x139] sm:$0xff]  ;;  %v1052_v25 = vmul.f32 %v8266_v38, %v5410_v49  ;;  %v1053_v26 = vmul.f32 %v8266_v38, %v5411_v51  ;;  %v1054_v42 = vmul.f32 %v8266_v38, %v5412_v60  ;;  %v1055_v45 = vmul.f32 %v8266_v38, %v5413_v15 }
  0xa7   : > { %v5420_v27 = vld [vmem:[%s7017_s30 + $0x141] sm:$0xff]  ;;  %v5421_v41 = vld [vmem:[%s7017_s30 + $0x151] sm:$0xff]  ;;  %v5422_v16 = vld [vmem:[%s7017_s30 + $0x159] sm:$0xff]  ;;  %v1056_v53 = vmul.f32 %v8266_v38, %v5414_v59  ;;  %v1057_v2 = vmul.f32 %v8266_v38, %v5415_v30  ;;  %v1058_v31 = vmul.f32 %v8266_v38, %v5416_v20  ;;  %v1059_v36 = vmul.f32 %v8266_v38, %v5417_v21 }
  0xa8   : > { %v5423_v24 = vld [vmem:[%s7017_s30 + $0x169] sm:$0xff]  ;;  %v5424_v50 = vld [vmem:[%s7017_s30 + $0x171] sm:$0xff]  ;;  %v5425_v13 = vld [vmem:[%s7017_s30 + $0x181] sm:$0xff]  ;;  %v1060_v0 = vmul.f32 %v8266_v38, %v5418_v46  ;;  %v1061_v49 = vmul.f32 %v8266_v38, %v5419_v55  ;;  %v1062_v23 = vmul.f32 %v8266_v38, %v5420_v27  ;;  %v1063_v51 = vmul.f32 %v8266_v38, %v5421_v41 }
  0xa9   : > { %v5426_v44 = vld [vmem:[%s7017_s30 + $0x189] sm:$0xff]  ;;  %v1064_v60 = vmul.f32 %v8266_v38, %v5422_v16  ;;  %v1065_v15 = vmul.f32 %v8266_v38, %v5423_v24  ;;  %v1066_v59 = vmul.f32 %v8266_v38, %v5424_v50  ;;  %v1067_v30 = vmul.f32 %v8266_v38, %v5425_v13  ;;  %v5429_v50 = vld [vmem:[%s7017_s30 + $0x1a] sm:$0xff] }
  0xaa   : > { %v1068_v20 = vmul.f32 %v8266_v38, %v5426_v44  ;;  %v8377_v21 = vadd.f32 %v1037_v28, %v8212_v35  ;;  %v8380_v46 = vadd.f32 %v1038_v57, %v8215_v32  ;;  %v8383_v41 = vadd.f32 %v1039_v4, %v8218_v17  ;;  %v5436_v28 = vld [vmem:[%s7017_s30 + $0x6a] sm:$0xff]  ;;  %v5442_v44 = vld [vmem:[%s7017_s30 + $0xb2] sm:$0xff] }
  0xab   : > { %v8386_v24 = vadd.f32 %v1040_v54, %v8221_v7  ;;  %v8389_v13 = vadd.f32 %v1041_v37, %v8224_v11  ;;  %v8392_v38 = vadd.f32 %v1042_v18, %v8227_v3  ;;  %v8395_v35 = vadd.f32 %v1043_v61, %v8230_v10  ;;  %v5439_v18 = vld [vmem:[%s7017_s30 + $0x92] sm:$0xff]  ;;  %v13945_v27 = vld [vmem:[#allocation10_spill] sm:$0xff] }
  0xac   : > { %v8398_v32 = vadd.f32 %v1044_v48, %v8233_v12  ;;  %v8401_v17 = vadd.f32 %v1045_v47, %v8236_v63  ;;  %v8404_v7 = vadd.f32 %v1046_v43, %v8239_v52  ;;  %v8407_v11 = vadd.f32 %v1047_v33, %v8242_v39  ;;  %v5430_v39 = vld [vmem:[%s7017_s30 + $0x22] sm:$0xff]  ;;  %v5431_v33 = vld [vmem:[%s7017_s30 + $0x32] sm:$0xff] }
  0xad   : > { %v8410_v3 = vadd.f32 %v1048_v40, %v8245_v22  ;;  %v8413_v10 = vadd.f32 %v1049_v1, %v8248_v9  ;;  %v8416_v12 = vadd.f32 %v1050_v62, %v8251_v56  ;;  %v8419_v63 = vadd.f32 %v1051_v34, %v8254_v58  ;;  %v5432_v22 = vld [vmem:[%s7017_s30 + $0x3a] sm:$0xff]  ;;  %v5435_v34 = vld [vmem:[%s7017_s30 + $0x62] sm:$0xff]  ;;  %v13947_v40 = vld [vmem:[#allocation11_spill] sm:$0xff] }
  0xae   : > { %v8422_v52 = vadd.f32 %v1052_v25, %v8257_v19  ;;  %v8429_v43 = vadd.f32 %v1053_v26, %v8269_v29  ;;  %v8432_v9 = vadd.f32 %v1054_v42, %v8272_v8  ;;  %v8435_v56 = vadd.f32 %v1055_v45, %v8275_v5  ;;  %v5433_v19 = vld [vmem:[%s7017_s30 + $0x4a] sm:$0xff]  ;;  %v5434_v25 = vld [vmem:[%s7017_s30 + $0x52] sm:$0xff]  ;;  %v13935_v29 = vld [vmem:[#allocation5_spill] sm:$0xff] }
  0xaf   : > { %13928 = vst [vmem:[#allocation16_spill] sm:$0xff] %v8419_v63  ;;  %v8438_v58 = vadd.f32 %v1056_v53, %v8278_v6  ;;  %v8445_v57 = vadd.f32 %v1057_v2, %v8285_v14  ;;  %v8448_v4 = vadd.f32 %v1058_v31, %v13935_v29  ;;  %v13937_v8 = vld [vmem:[#allocation6_spill] sm:$0xff]  ;;  %v13939_v5 = vld [vmem:[#allocation7_spill] sm:$0xff]  ;;  %v5437_v6 = vld [vmem:[%s7017_s30 + $0x7a] sm:$0xff]  ;;  %v8469_v47 = vadd.f32 %v1063_v51, %v13945_v27 }
  0xb0   : > { %13929 = vst [vmem:[#allocation17_spill] sm:$0xff] %v8422_v52  ;;  %13930 = vst [vmem:[#allocation18_spill] sm:$0xff] %v8429_v43  ;;  %v8451_v54 = vadd.f32 %v1059_v36, %v13937_v8  ;;  %v8454_v37 = vadd.f32 %v1060_v0, %v13939_v5  ;;  %v5438_v53 = vld [vmem:[%s7017_s30 + $0x82] sm:$0xff]  ;;  %v5462_v14 = vld [vmem:[%s13780_s1 + $0xa] ss:$0 sm:$0xff]  ;;  %v8472_v16 = vadd.f32 %v1064_v60, %v13947_v40 }
  0xb1   : > { %13931 = vst [vmem:[#allocation19_spill] sm:$0xff] %v8432_v9  ;;  %13932 = vst [vmem:[#allocation20_spill] sm:$0xff] %v8435_v56  ;;  %v13941_v2 = vld [vmem:[#allocation8_spill] sm:$0xff]  ;;  %v13943_v48 = vld [vmem:[#allocation9_spill] sm:$0xff]  ;;  %v1140_v27 = vmul.f32 %v5462_v14, %v5431_v33  ;;  %v1148_v33 = vmul.f32 %v5462_v14, %v5439_v18 }
  0xb2   : > { %13933 = vst [vmem:[#allocation21_spill] sm:$0xff] %v8438_v58  ;;  %13934 = vst [vmem:[#allocation22_spill] sm:$0xff] %v8445_v57  ;;  %v8463_v61 = vadd.f32 %v1061_v49, %v13941_v2  ;;  %v8466_v55 = vadd.f32 %v1062_v23, %v13943_v48  ;;  %v5440_v1 = vld [vmem:[%s7017_s30 + $0x9a] sm:$0xff]  ;;  %v5441_v62 = vld [vmem:[%s7017_s30 + $0xaa] sm:$0xff]  ;;  %v1138_v2 = vmul.f32 %v5462_v14, %v5429_v50 }
  0xb3   : > { %13936 = vst [vmem:[#allocation5_spill] sm:$0xff] %v8448_v4  ;;  %13938 = vst [vmem:[#allocation6_spill] sm:$0xff] %v8451_v54  ;;  %v13949_v26 = vld [vmem:[#allocation12_spill] sm:$0xff]  ;;  %v13951_v45 = vld [vmem:[#allocation13_spill] sm:$0xff]  ;;  %v1139_v48 = vmul.f32 %v5462_v14, %v5430_v39  ;;  %v1146_v50 = vmul.f32 %v5462_v14, %v5437_v6  ;;  %v1147_v39 = vmul.f32 %v5462_v14, %v5438_v53 }
  0xb4   : > { %13940 = vst [vmem:[#allocation7_spill] sm:$0xff] %v8454_v37  ;;  %13942 = vst [vmem:[#allocation8_spill] sm:$0xff] %v8463_v61  ;;  %v8478_v42 = vadd.f32 %v1065_v15, %v13949_v26  ;;  %v8481_v31 = vadd.f32 %v1066_v59, %v13951_v45  ;;  %v13953_v23 = vld [vmem:[#allocation14_spill] sm:$0xff]  ;;  %v13955_v0 = vld [vmem:[#allocation15_spill] sm:$0xff]  ;;  %v1141_v59 = vmul.f32 %v5462_v14, %v5432_v22 }
  0xb5   : > { %13944 = vst [vmem:[#allocation9_spill] sm:$0xff] %v8466_v55  ;;  %13946 = vst [vmem:[#allocation10_spill] sm:$0xff] %v8469_v47  ;;  %v8484_v36 = vadd.f32 %v1067_v30, %v13953_v23  ;;  %v8487_v49 = vadd.f32 %v1068_v20, %v13955_v0  ;;  %v5443_v51 = vld [vmem:[%s7017_s30 + $0xc2] sm:$0xff]  ;;  %v5444_v60 = vld [vmem:[%s7017_s30 + $0xca] sm:$0xff]  ;;  %v1142_v26 = vmul.f32 %v5462_v14, %v5433_v19 }
  0xb6   : > { %13948 = vst [vmem:[#allocation11_spill] sm:$0xff] %v8472_v16  ;;  %13950 = vst [vmem:[#allocation12_spill] sm:$0xff] %v8478_v42  ;;  %v5445_v29 = vld [vmem:[%s7017_s30 + $0xda] sm:$0xff]  ;;  %v5446_v8 = vld [vmem:[%s7017_s30 + $0xe2] sm:$0xff]  ;;  %v1143_v45 = vmul.f32 %v5462_v14, %v5434_v25  ;;  %v1144_v23 = vmul.f32 %v5462_v14, %v5435_v34  ;;  %v1145_v0 = vmul.f32 %v5462_v14, %v5436_v28 }
  0xb7   : > { %13952 = vst [vmem:[#allocation13_spill] sm:$0xff] %v8481_v31  ;;  %13954 = vst [vmem:[#allocation14_spill] sm:$0xff] %v8484_v36  ;;  %v5447_v5 = vld [vmem:[%s7017_s30 + $0xf2] sm:$0xff]  ;;  %v5448_v15 = vld [vmem:[%s7017_s30 + $0xfa] sm:$0xff]  ;;  %v1149_v42 = vmul.f32 %v5462_v14, %v5440_v1  ;;  %v1150_v55 = vmul.f32 %v5462_v14, %v5441_v62  ;;  %v1151_v61 = vmul.f32 %v5462_v14, %v5442_v44 }
  0xb8   : > { %13956 = vst [vmem:[#allocation15_spill] sm:$0xff] %v8487_v49  ;;  %v5449_v30 = vld [vmem:[%s7017_s30 + $0x10a] sm:$0xff]  ;;  %v5450_v40 = vld [vmem:[%s7017_s30 + $0x112] sm:$0xff]  ;;  %v5451_v20 = vld [vmem:[%s7017_s30 + $0x122] sm:$0xff]  ;;  %v1152_v37 = vmul.f32 %v5462_v14, %v5443_v51  ;;  %v1153_v19 = vmul.f32 %v5462_v14, %v5444_v60  ;;  %v1154_v28 = vmul.f32 %v5462_v14, %v5445_v29  ;;  %v1155_v4 = vmul.f32 %v5462_v14, %v5446_v8 }
  0xb9   : > { %v5452_v49 = vld [vmem:[%s7017_s30 + $0x12a] sm:$0xff]  ;;  %v5453_v36 = vld [vmem:[%s7017_s30 + $0x13a] sm:$0xff]  ;;  %v5454_v31 = vld [vmem:[%s7017_s30 + $0x142] sm:$0xff]  ;;  %v1156_v57 = vmul.f32 %v5462_v14, %v5447_v5  ;;  %v1157_v58 = vmul.f32 %v5462_v14, %v5448_v15  ;;  %v1158_v56 = vmul.f32 %v5462_v14, %v5449_v30  ;;  %v1159_v9 = vmul.f32 %v5462_v14, %v5450_v40 }
  0xba   : > { %v5455_v22 = vld [vmem:[%s7017_s30 + $0x152] sm:$0xff]  ;;  %v5456_v16 = vld [vmem:[%s7017_s30 + $0x15a] sm:$0xff]  ;;  %v5457_v47 = vld [vmem:[%s7017_s30 + $0x16a] sm:$0xff]  ;;  %v1160_v6 = vmul.f32 %v5462_v14, %v5451_v20  ;;  %v1161_v53 = vmul.f32 %v5462_v14, %v5452_v49  ;;  %v1162_v18 = vmul.f32 %v5462_v14, %v5453_v36  ;;  %v1163_v1 = vmul.f32 %v5462_v14, %v5454_v31 }
  0xbb   : > { %v5458_v25 = vld [vmem:[%s7017_s30 + $0x172] sm:$0xff]  ;;  %v5459_v34 = vld [vmem:[%s7017_s30 + $0x182] sm:$0xff]  ;;  %v5460_v54 = vld [vmem:[%s7017_s30 + $0x18a] sm:$0xff]  ;;  %v1164_v43 = vmul.f32 %v5462_v14, %v5455_v22  ;;  %v1165_v52 = vmul.f32 %v5462_v14, %v5456_v16  ;;  %v1166_v63 = vmul.f32 %v5462_v14, %v5457_v47  ;;  %v8508_v60 = vadd.f32 %v1138_v2, %v8377_v21 }
  0xbc   : > { %v1167_v62 = vmul.f32 %v5462_v14, %v5458_v25  ;;  %v1168_v44 = vmul.f32 %v5462_v14, %v5459_v34  ;;  %v1169_v51 = vmul.f32 %v5462_v14, %v5460_v54  ;;  %v8511_v29 = vadd.f32 %v1139_v48, %v8380_v46  ;;  %v5463_v36 = vld [vmem:[%s7017_s30 + $0x1b] sm:$0xff]  ;;  %v5465_v49 = vld [vmem:[%s7017_s30 + $0x33] sm:$0xff]  ;;  %v5467_v2 = vld [vmem:[%s7017_s30 + $0x4b] sm:$0xff] }
  0xbd   : > { %v8514_v8 = vadd.f32 %v1140_v27, %v8383_v41  ;;  %v8517_v31 = vadd.f32 %v1141_v59, %v8386_v24  ;;  %v8520_v47 = vadd.f32 %v1142_v26, %v8389_v13  ;;  %v8523_v54 = vadd.f32 %v1143_v45, %v8392_v38  ;;  %v5468_v48 = vld [vmem:[%s7017_s30 + $0x53] sm:$0xff]  ;;  %v5469_v27 = vld [vmem:[%s7017_s30 + $0x63] sm:$0xff]  ;;  %v5470_v59 = vld [vmem:[%s7017_s30 + $0x6b] sm:$0xff] }
  0xbe   : > { %v8526_v21 = vadd.f32 %v1144_v23, %v8395_v35  ;;  %v8529_v46 = vadd.f32 %v1145_v0, %v8398_v32  ;;  %v8532_v41 = vadd.f32 %v1146_v50, %v8401_v17  ;;  %v8535_v24 = vadd.f32 %v1147_v39, %v8404_v7  ;;  %v13957_v17 = vld [vmem:[#allocation16_spill] sm:$0xff]  ;;  %v13959_v7 = vld [vmem:[#allocation17_spill] sm:$0xff]  ;;  %v13969_v30 = vld [vmem:[#allocation22_spill] sm:$0xff] }
  0xbf   : > { %v8538_v13 = vadd.f32 %v1148_v33, %v8407_v11  ;;  %v8541_v38 = vadd.f32 %v1149_v42, %v8410_v3  ;;  %v8544_v35 = vadd.f32 %v1150_v55, %v8413_v10  ;;  %v8547_v32 = vadd.f32 %v1151_v61, %v8416_v12  ;;  %v5464_v11 = vld [vmem:[%s7017_s30 + $0x23] sm:$0xff]  ;;  %v5466_v3 = vld [vmem:[%s7017_s30 + $0x3b] sm:$0xff]  ;;  %v13963_v10 = vld [vmem:[#allocation19_spill] sm:$0xff] }
  0xc0   : > { %v8550_v14 = vadd.f32 %v1152_v37, %v13957_v17  ;;  %v8553_v16 = vadd.f32 %v1153_v19, %v13959_v7  ;;  %v13961_v42 = vld [vmem:[#allocation18_spill] sm:$0xff]  ;;  %v8563_v55 = vadd.f32 %v1155_v4, %v13963_v10  ;;  %v13965_v12 = vld [vmem:[#allocation20_spill] sm:$0xff]  ;;  %v13967_v37 = vld [vmem:[#allocation21_spill] sm:$0xff]  ;;  %v8576_v40 = vadd.f32 %v1158_v56, %v13969_v30 }
  0xc1   : > { %v8560_v5 = vadd.f32 %v1154_v28, %v13961_v42  ;;  %v8566_v61 = vadd.f32 %v1156_v57, %v13965_v12  ;;  %v8569_v15 = vadd.f32 %v1157_v58, %v13967_v37  ;;  %v13971_v20 = vld [vmem:[#allocation5_spill] sm:$0xff]  ;;  %v13973_v4 = vld [vmem:[#allocation6_spill] sm:$0xff]  ;;  %v13975_v57 = vld [vmem:[#allocation7_spill] sm:$0xff] }
  0xc2   : > { %13958 = vst [vmem:[#allocation16_spill] sm:$0xff] %v8550_v14  ;;  %13960 = vst [vmem:[#allocation17_spill] sm:$0xff] %v8553_v16  ;;  %v8579_v26 = vadd.f32 %v1159_v9, %v13971_v20  ;;  %v8582_v45 = vadd.f32 %v1160_v6, %v13973_v4  ;;  %v8585_v23 = vadd.f32 %v1161_v53, %v13975_v57  ;;  %v5471_v58 = vld [vmem:[%s7017_s30 + $0x7b] sm:$0xff]  ;;  %v5472_v0 = vld [vmem:[%s7017_s30 + $0x83] sm:$0xff] }
  0xc3   : > { %13962 = vst [vmem:[#allocation18_spill] sm:$0xff] %v8560_v5  ;;  %13964 = vst [vmem:[#allocation19_spill] sm:$0xff] %v8563_v55  ;;  %v5473_v50 = vld [vmem:[%s7017_s30 + $0x93] sm:$0xff]  ;;  %v5496_v56 = vld [vmem:[%s13780_s1 + $0xb] ss:$0 sm:$0xff] }
  0xc4   : > { %13966 = vst [vmem:[#allocation20_spill] sm:$0xff] %v8566_v61  ;;  %13968 = vst [vmem:[#allocation21_spill] sm:$0xff] %v8569_v15  ;;  %v13977_v39 = vld [vmem:[#allocation8_spill] sm:$0xff]  ;;  %v13979_v33 = vld [vmem:[#allocation9_spill] sm:$0xff] }
  0xc5   : > { %13970 = vst [vmem:[#allocation22_spill] sm:$0xff] %v8576_v40  ;;  %13972 = vst [vmem:[#allocation5_spill] sm:$0xff] %v8579_v26  ;;  %v8594_v9 = vadd.f32 %v1162_v18, %v13977_v39  ;;  %v8597_v22 = vadd.f32 %v1163_v1, %v13979_v33  ;;  %v13981_v19 = vld [vmem:[#allocation10_spill] sm:$0xff]  ;;  %v13983_v34 = vld [vmem:[#allocation11_spill] sm:$0xff]  ;;  %v1239_v39 = vmul.f32 %v5496_v56, %v5463_v36 }
  0xc6   : > { %13974 = vst [vmem:[#allocation6_spill] sm:$0xff] %v8582_v45  ;;  %13976 = vst [vmem:[#allocation7_spill] sm:$0xff] %v8585_v23  ;;  %v8600_v25 = vadd.f32 %v1164_v43, %v13981_v19  ;;  %v8603_v28 = vadd.f32 %v1165_v52, %v13983_v34  ;;  %v5474_v6 = vld [vmem:[%s7017_s30 + $0x9b] sm:$0xff]  ;;  %v5475_v53 = vld [vmem:[%s7017_s30 + $0xab] sm:$0xff]  ;;  %v1240_v33 = vmul.f32 %v5496_v56, %v5464_v11 }
  0xc7   : > { %13978 = vst [vmem:[#allocation8_spill] sm:$0xff] %v8594_v9  ;;  %13980 = vst [vmem:[#allocation9_spill] sm:$0xff] %v8597_v22  ;;  %v5476_v17 = vld [vmem:[%s7017_s30 + $0xb3] sm:$0xff]  ;;  %v13987_v18 = vld [vmem:[#allocation13_spill] sm:$0xff]  ;;  %v1241_v19 = vmul.f32 %v5496_v56, %v5465_v49  ;;  %v1247_v36 = vmul.f32 %v5496_v56, %v5471_v58  ;;  %v1248_v11 = vmul.f32 %v5496_v56, %v5472_v0 }
  0xc8   : > { %13982 = vst [vmem:[#allocation10_spill] sm:$0xff] %v8600_v25  ;;  %13984 = vst [vmem:[#allocation11_spill] sm:$0xff] %v8603_v28  ;;  %v13985_v7 = vld [vmem:[#allocation12_spill] sm:$0xff]  ;;  %v8612_v10 = vadd.f32 %v1167_v62, %v13987_v18  ;;  %v13989_v1 = vld [vmem:[#allocation14_spill] sm:$0xff]  ;;  %v1242_v62 = vmul.f32 %v5496_v56, %v5466_v3  ;;  %v1244_v18 = vmul.f32 %v5496_v56, %v5468_v48 }
  0xc9   : > { %v8609_v42 = vadd.f32 %v1166_v63, %v13985_v7  ;;  %v8615_v12 = vadd.f32 %v1168_v44, %v13989_v1  ;;  %v13991_v43 = vld [vmem:[#allocation15_spill] sm:$0xff]  ;;  %v5477_v52 = vld [vmem:[%s7017_s30 + $0xc3] sm:$0xff]  ;;  %v5479_v20 = vld [vmem:[%s7017_s30 + $0xdb] sm:$0xff]  ;;  %v1243_v7 = vmul.f32 %v5496_v56, %v5467_v2  ;;  %v1245_v1 = vmul.f32 %v5496_v56, %v5469_v27 }
  0xca   : > { %13988 = vst [vmem:[#allocation13_spill] sm:$0xff] %v8612_v10  ;;  %v8618_v37 = vadd.f32 %v1169_v51, %v13991_v43  ;;  %v5478_v30 = vld [vmem:[%s7017_s30 + $0xcb] sm:$0xff]  ;;  %v5480_v4 = vld [vmem:[%s7017_s30 + $0xe3] sm:$0xff]  ;;  %v5481_v57 = vld [vmem:[%s7017_s30 + $0xf3] sm:$0xff]  ;;  %v1246_v43 = vmul.f32 %v5496_v56, %v5470_v59  ;;  %v1249_v49 = vmul.f32 %v5496_v56, %v5473_v50  ;;  %v1251_v22 = vmul.f32 %v5496_v56, %v5475_v53 }
  0xcb   : > { %13986 = vst [vmem:[#allocation12_spill] sm:$0xff] %v8609_v42  ;;  %13990 = vst [vmem:[#allocation14_spill] sm:$0xff] %v8615_v12  ;;  %v5482_v63 = vld [vmem:[%s7017_s30 + $0xfb] sm:$0xff]  ;;  %v5483_v44 = vld [vmem:[%s7017_s30 + $0x10b] sm:$0xff]  ;;  %v1250_v42 = vmul.f32 %v5496_v56, %v5474_v6  ;;  %v1252_v9 = vmul.f32 %v5496_v56, %v5476_v17  ;;  %v1253_v23 = vmul.f32 %v5496_v56, %v5477_v52 }
  0xcc   : > { %13992 = vst [vmem:[#allocation15_spill] sm:$0xff] %v8618_v37  ;;  %v5484_v34 = vld [vmem:[%s7017_s30 + $0x113] sm:$0xff]  ;;  %v5485_v51 = vld [vmem:[%s7017_s30 + $0x123] sm:$0xff]  ;;  %v5486_v37 = vld [vmem:[%s7017_s30 + $0x12b] sm:$0xff]  ;;  %v1254_v2 = vmul.f32 %v5496_v56, %v5478_v30  ;;  %v1255_v59 = vmul.f32 %v5496_v56, %v5479_v20  ;;  %v1256_v26 = vmul.f32 %v5496_v56, %v5480_v4  ;;  %v1257_v40 = vmul.f32 %v5496_v56, %v5481_v57 }
  0xcd   : > { %v5487_v12 = vld [vmem:[%s7017_s30 + $0x13b] sm:$0xff]  ;;  %v5488_v10 = vld [vmem:[%s7017_s30 + $0x143] sm:$0xff]  ;;  %v5489_v3 = vld [vmem:[%s7017_s30 + $0x153] sm:$0xff]  ;;  %v1258_v15 = vmul.f32 %v5496_v56, %v5482_v63  ;;  %v1259_v61 = vmul.f32 %v5496_v56, %v5483_v44  ;;  %v1260_v55 = vmul.f32 %v5496_v56, %v5484_v34  ;;  %v1261_v58 = vmul.f32 %v5496_v56, %v5485_v51 }
  0xce   : > { %v5490_v28 = vld [vmem:[%s7017_s30 + $0x15b] sm:$0xff]  ;;  %v5491_v25 = vld [vmem:[%s7017_s30 + $0x16b] sm:$0xff]  ;;  %v5492_v48 = vld [vmem:[%s7017_s30 + $0x173] sm:$0xff]  ;;  %v1262_v0 = vmul.f32 %v5496_v56, %v5486_v37  ;;  %v1263_v50 = vmul.f32 %v5496_v56, %v5487_v12  ;;  %v1264_v6 = vmul.f32 %v5496_v56, %v5488_v10  ;;  %v1265_v5 = vmul.f32 %v5496_v56, %v5489_v3 }
  0xcf   : > { %v5493_v27 = vld [vmem:[%s7017_s30 + $0x183] sm:$0xff]  ;;  %v5494_v45 = vld [vmem:[%s7017_s30 + $0x18b] sm:$0xff]  ;;  %v1266_v16 = vmul.f32 %v5496_v56, %v5490_v28  ;;  %v1267_v14 = vmul.f32 %v5496_v56, %v5491_v25  ;;  %v1268_v53 = vmul.f32 %v5496_v56, %v5492_v48  ;;  %v8639_v30 = vadd.f32 %v1239_v39, %v8508_v60  ;;  %v5499_v37 = vld [vmem:[%s7017_s30 + $0x34] sm:$0xff] }
  0xd0   : > { %v1269_v17 = vmul.f32 %v5496_v56, %v5493_v27  ;;  %v1270_v52 = vmul.f32 %v5496_v56, %v5494_v45  ;;  %v8642_v20 = vadd.f32 %v1240_v33, %v8511_v29  ;;  %v8645_v4 = vadd.f32 %v1241_v19, %v8514_v8  ;;  %v5497_v12 = vld [vmem:[%s7017_s30 + $0x1c] sm:$0xff]  ;;  %v5501_v39 = vld [vmem:[%s7017_s30 + $0x4c] sm:$0xff]  ;;  %v5502_v33 = vld [vmem:[%s7017_s30 + $0x54] sm:$0xff] }
  0xd1   : > { %v8648_v10 = vadd.f32 %v1242_v62, %v8517_v31  ;;  %v8651_v25 = vadd.f32 %v1243_v7, %v8520_v47  ;;  %v8654_v45 = vadd.f32 %v1244_v18, %v8523_v54  ;;  %v8657_v60 = vadd.f32 %v1245_v1, %v8526_v21  ;;  %v5503_v19 = vld [vmem:[%s7017_s30 + $0x64] sm:$0xff]  ;;  %v5504_v62 = vld [vmem:[%s7017_s30 + $0x6c] sm:$0xff] }
  0xd2   : > { %v8660_v29 = vadd.f32 %v1246_v43, %v8529_v46  ;;  %v8663_v8 = vadd.f32 %v1247_v36, %v8532_v41  ;;  %v8666_v31 = vadd.f32 %v1248_v11, %v8535_v24  ;;  %v8669_v47 = vadd.f32 %v1249_v49, %v8538_v13  ;;  %v13993_v41 = vld [vmem:[#allocation16_spill] sm:$0xff]  ;;  %v13995_v24 = vld [vmem:[#allocation17_spill] sm:$0xff]  ;;  %v14005_v44 = vld [vmem:[#allocation22_spill] sm:$0xff] }
  0xd3   : > { %v8672_v54 = vadd.f32 %v1250_v42, %v8541_v38  ;;  %v8675_v21 = vadd.f32 %v1251_v22, %v8544_v35  ;;  %v8678_v46 = vadd.f32 %v1252_v9, %v8547_v32  ;;  %v8681_v56 = vadd.f32 %v1253_v23, %v13993_v41  ;;  %v5498_v13 = vld [vmem:[%s7017_s30 + $0x24] sm:$0xff]  ;;  %v5500_v38 = vld [vmem:[%s7017_s30 + $0x3c] sm:$0xff]  ;;  %v13999_v35 = vld [vmem:[#allocation19_spill] sm:$0xff] }
  0xd4   : > { %v8684_v28 = vadd.f32 %v1254_v2, %v13995_v24  ;;  %v13997_v42 = vld [vmem:[#allocation18_spill] sm:$0xff]  ;;  %v8694_v22 = vadd.f32 %v1256_v26, %v13999_v35  ;;  %v14001_v32 = vld [vmem:[#allocation20_spill] sm:$0xff]  ;;  %v14003_v23 = vld [vmem:[#allocation21_spill] sm:$0xff]  ;;  %v8707_v34 = vadd.f32 %v1259_v61, %v14005_v44 }
  0xd5   : > { %13994 = vst [vmem:[#allocation16_spill] sm:$0xff] %v8681_v56  ;;  %v8691_v57 = vadd.f32 %v1255_v59, %v13997_v42  ;;  %v8697_v9 = vadd.f32 %v1257_v40, %v14001_v32  ;;  %v8700_v63 = vadd.f32 %v1258_v15, %v14003_v23  ;;  %v14007_v51 = vld [vmem:[#allocation5_spill] sm:$0xff]  ;;  %v14009_v26 = vld [vmem:[#allocation6_spill] sm:$0xff]  ;;  %v14011_v40 = vld [vmem:[#allocation7_spill] sm:$0xff] }
  0xd6   : > { %13996 = vst [vmem:[#allocation17_spill] sm:$0xff] %v8684_v28  ;;  %14000 = vst [vmem:[#allocation19_spill] sm:$0xff] %v8694_v22  ;;  %v8710_v7 = vadd.f32 %v1260_v55, %v14007_v51  ;;  %v8713_v18 = vadd.f32 %v1261_v58, %v14009_v26  ;;  %v8716_v1 = vadd.f32 %v1262_v0, %v14011_v40  ;;  %v5505_v15 = vld [vmem:[%s7017_s30 + $0x7c] sm:$0xff]  ;;  %v5506_v43 = vld [vmem:[%s7017_s30 + $0x84] sm:$0xff] }
  0xd7   : > { %13998 = vst [vmem:[#allocation18_spill] sm:$0xff] %v8691_v57  ;;  %14002 = vst [vmem:[#allocation20_spill] sm:$0xff] %v8697_v9  ;;  %v5507_v36 = vld [vmem:[%s7017_s30 + $0x94] sm:$0xff]  ;;  %v5530_v61 = vld [vmem:[%s13780_s1 + $0xc] ss:$0 sm:$0xff] }
  0xd8   : > { %14004 = vst [vmem:[#allocation21_spill] sm:$0xff] %v8700_v63  ;;  %14006 = vst [vmem:[#allocation22_spill] sm:$0xff] %v8707_v34  ;;  %v14013_v11 = vld [vmem:[#allocation8_spill] sm:$0xff]  ;;  %v14015_v49 = vld [vmem:[#allocation9_spill] sm:$0xff] }
  0xd9   : > { %14008 = vst [vmem:[#allocation5_spill] sm:$0xff] %v8710_v7  ;;  %14010 = vst [vmem:[#allocation6_spill] sm:$0xff] %v8713_v18  ;;  %v8725_v55 = vadd.f32 %v1263_v50, %v14013_v11  ;;  %v8728_v3 = vadd.f32 %v1264_v6, %v14015_v49  ;;  %v14017_v2 = vld [vmem:[#allocation10_spill] sm:$0xff]  ;;  %v14019_v27 = vld [vmem:[#allocation11_spill] sm:$0xff]  ;;  %v1340_v11 = vmul.f32 %v5530_v61, %v5497_v12 }
  0xda   : > { %14012 = vst [vmem:[#allocation7_spill] sm:$0xff] %v8716_v1  ;;  %v8731_v48 = vadd.f32 %v1265_v5, %v14017_v2  ;;  %v8734_v59 = vadd.f32 %v1266_v16, %v14019_v27  ;;  %v5508_v58 = vld [vmem:[%s7017_s30 + $0x9c] sm:$0xff]  ;;  %v5509_v0 = vld [vmem:[%s7017_s30 + $0xac] sm:$0xff]  ;;  %v5510_v41 = vld [vmem:[%s7017_s30 + $0xb4] sm:$0xff]  ;;  %v1341_v49 = vmul.f32 %v5530_v61, %v5498_v13  ;;  %v1342_v2 = vmul.f32 %v5530_v61, %v5499_v37 }
  0xdb   : > { %14014 = vst [vmem:[#allocation8_spill] sm:$0xff] %v8725_v55  ;;  %14016 = vst [vmem:[#allocation9_spill] sm:$0xff] %v8728_v3  ;;  %v14021_v24 = vld [vmem:[#allocation12_spill] sm:$0xff]  ;;  %v14023_v50 = vld [vmem:[#allocation13_spill] sm:$0xff]  ;;  %v1348_v12 = vmul.f32 %v5530_v61, %v5505_v15  ;;  %v1349_v13 = vmul.f32 %v5530_v61, %v5506_v43  ;;  %v1350_v37 = vmul.f32 %v5530_v61, %v5507_v36 }
  0xdc   : > { %14018 = vst [vmem:[#allocation10_spill] sm:$0xff] %v8731_v48  ;;  %14020 = vst [vmem:[#allocation11_spill] sm:$0xff] %v8734_v59  ;;  %v8740_v42 = vadd.f32 %v1267_v14, %v14021_v24  ;;  %v8743_v35 = vadd.f32 %v1268_v53, %v14023_v50  ;;  %v14025_v6 = vld [vmem:[#allocation14_spill] sm:$0xff]  ;;  %v14027_v5 = vld [vmem:[#allocation15_spill] sm:$0xff]  ;;  %v1343_v53 = vmul.f32 %v5530_v61, %v5500_v38 }
  0xdd   : > { %v8746_v32 = vadd.f32 %v1269_v17, %v14025_v6  ;;  %v8749_v23 = vadd.f32 %v1270_v52, %v14027_v5  ;;  %v5511_v16 = vld [vmem:[%s7017_s30 + $0xc4] sm:$0xff]  ;;  %v5512_v44 = vld [vmem:[%s7017_s30 + $0xcc] sm:$0xff]  ;;  %v5513_v51 = vld [vmem:[%s7017_s30 + $0xdc] sm:$0xff]  ;;  %v1344_v24 = vmul.f32 %v5530_v61, %v5501_v39  ;;  %v1345_v50 = vmul.f32 %v5530_v61, %v5502_v33 }
  0xde   : > { %14022 = vst [vmem:[#allocation12_spill] sm:$0xff] %v8740_v42  ;;  %14024 = vst [vmem:[#allocation13_spill] sm:$0xff] %v8743_v35  ;;  %v5514_v26 = vld [vmem:[%s7017_s30 + $0xe4] sm:$0xff]  ;;  %v5515_v40 = vld [vmem:[%s7017_s30 + $0xf4] sm:$0xff]  ;;  %v1346_v6 = vmul.f32 %v5530_v61, %v5503_v19  ;;  %v1347_v5 = vmul.f32 %v5530_v61, %v5504_v62  ;;  %v1351_v42 = vmul.f32 %v5530_v61, %v5508_v58 }
  0xdf   : > { %14026 = vst [vmem:[#allocation14_spill] sm:$0xff] %v8746_v32  ;;  %14028 = vst [vmem:[#allocation15_spill] sm:$0xff] %v8749_v23  ;;  %v5516_v14 = vld [vmem:[%s7017_s30 + $0xfc] sm:$0xff]  ;;  %v5517_v17 = vld [vmem:[%s7017_s30 + $0x10c] sm:$0xff]  ;;  %v1352_v3 = vmul.f32 %v5530_v61, %v5509_v0  ;;  %v1353_v55 = vmul.f32 %v5530_v61, %v5510_v41  ;;  %v1354_v1 = vmul.f32 %v5530_v61, %v5511_v16 }
  0xe0   : > { %v5518_v27 = vld [vmem:[%s7017_s30 + $0x114] sm:$0xff]  ;;  %v5519_v52 = vld [vmem:[%s7017_s30 + $0x124] sm:$0xff]  ;;  %v5520_v23 = vld [vmem:[%s7017_s30 + $0x12c] sm:$0xff]  ;;  %v1355_v39 = vmul.f32 %v5530_v61, %v5512_v44  ;;  %v1356_v62 = vmul.f32 %v5530_v61, %v5513_v51  ;;  %v1357_v7 = vmul.f32 %v5530_v61, %v5514_v26  ;;  %v1358_v34 = vmul.f32 %v5530_v61, %v5515_v40 }
  0xe1   : > { %v5521_v32 = vld [vmem:[%s7017_s30 + $0x13c] sm:$0xff]  ;;  %v5522_v35 = vld [vmem:[%s7017_s30 + $0x144] sm:$0xff]  ;;  %v5523_v38 = vld [vmem:[%s7017_s30 + $0x154] sm:$0xff]  ;;  %v1359_v63 = vmul.f32 %v5530_v61, %v5516_v14  ;;  %v1360_v9 = vmul.f32 %v5530_v61, %v5517_v17  ;;  %v1361_v22 = vmul.f32 %v5530_v61, %v5518_v27  ;;  %v1362_v15 = vmul.f32 %v5530_v61, %v5519_v52 }
  0xe2   : > { %v5524_v59 = vld [vmem:[%s7017_s30 + $0x15c] sm:$0xff]  ;;  %v5525_v48 = vld [vmem:[%s7017_s30 + $0x16c] sm:$0xff]  ;;  %v5526_v33 = vld [vmem:[%s7017_s30 + $0x174] sm:$0xff]  ;;  %v1363_v43 = vmul.f32 %v5530_v61, %v5520_v23  ;;  %v1364_v36 = vmul.f32 %v5530_v61, %v5521_v32  ;;  %v1365_v58 = vmul.f32 %v5530_v61, %v5522_v35  ;;  %v1366_v57 = vmul.f32 %v5530_v61, %v5523_v38 }
  0xe3   : > { %v5527_v19 = vld [vmem:[%s7017_s30 + $0x184] sm:$0xff]  ;;  %v5528_v18 = vld [vmem:[%s7017_s30 + $0x18c] sm:$0xff]  ;;  %v1367_v28 = vmul.f32 %v5530_v61, %v5524_v59  ;;  %v1368_v56 = vmul.f32 %v5530_v61, %v5525_v48  ;;  %v1369_v0 = vmul.f32 %v5530_v61, %v5526_v33  ;;  %v8770_v44 = vadd.f32 %v1340_v11, %v8639_v30  ;;  %v5533_v23 = vld [vmem:[%s7017_s30 + $0x35] sm:$0xff] }
  0xe4   : > { %v1370_v41 = vmul.f32 %v5530_v61, %v5527_v19  ;;  %v1371_v16 = vmul.f32 %v5530_v61, %v5528_v18  ;;  %v8773_v51 = vadd.f32 %v1341_v49, %v8642_v20  ;;  %v8776_v26 = vadd.f32 %v1342_v2, %v8645_v4  ;;  %v5531_v32 = vld [vmem:[%s7017_s30 + $0x1d] sm:$0xff]  ;;  %v5535_v11 = vld [vmem:[%s7017_s30 + $0x4d] sm:$0xff]  ;;  %v5536_v49 = vld [vmem:[%s7017_s30 + $0x55] sm:$0xff] }
  0xe5   : > { %v8779_v35 = vadd.f32 %v1343_v53, %v8648_v10  ;;  %v8782_v48 = vadd.f32 %v1344_v24, %v8651_v25  ;;  %v8785_v18 = vadd.f32 %v1345_v50, %v8654_v45  ;;  %v8788_v30 = vadd.f32 %v1346_v6, %v8657_v60  ;;  %v5537_v2 = vld [vmem:[%s7017_s30 + $0x65] sm:$0xff]  ;;  %v5538_v53 = vld [vmem:[%s7017_s30 + $0x6d] sm:$0xff] }
  0xe6   : > { %v8791_v20 = vadd.f32 %v1347_v5, %v8660_v29  ;;  %v8794_v4 = vadd.f32 %v1348_v12, %v8663_v8  ;;  %v8797_v10 = vadd.f32 %v1349_v13, %v8666_v31  ;;  %v8800_v25 = vadd.f32 %v1350_v37, %v8669_v47  ;;  %v14029_v8 = vld [vmem:[#allocation16_spill] sm:$0xff]  ;;  %v14031_v31 = vld [vmem:[#allocation17_spill] sm:$0xff]  ;;  %v14041_v17 = vld [vmem:[#allocation22_spill] sm:$0xff] }
  0xe7   : > { %v8803_v45 = vadd.f32 %v1351_v42, %v8672_v54  ;;  %v8806_v60 = vadd.f32 %v1352_v3, %v8675_v21  ;;  %v8809_v29 = vadd.f32 %v1353_v55, %v8678_v46  ;;  %v8812_v61 = vadd.f32 %v1354_v1, %v14029_v8  ;;  %v5532_v47 = vld [vmem:[%s7017_s30 + $0x25] sm:$0xff]  ;;  %v5534_v54 = vld [vmem:[%s7017_s30 + $0x3d] sm:$0xff]  ;;  %v14035_v21 = vld [vmem:[#allocation19_spill] sm:$0xff] }
  0xe8   : > { %v8815_v59 = vadd.f32 %v1355_v39, %v14031_v31  ;;  %v14033_v42 = vld [vmem:[#allocation18_spill] sm:$0xff]  ;;  %v8825_v3 = vadd.f32 %v1357_v7, %v14035_v21  ;;  %v14037_v46 = vld [vmem:[#allocation20_spill] sm:$0xff]  ;;  %v14039_v1 = vld [vmem:[#allocation21_spill] sm:$0xff]  ;;  %v8838_v27 = vadd.f32 %v1360_v9, %v14041_v17 }
  0xe9   : > { %14030 = vst [vmem:[#allocation16_spill] sm:$0xff] %v8812_v61  ;;  %v8822_v40 = vadd.f32 %v1356_v62, %v14033_v42  ;;  %v8828_v55 = vadd.f32 %v1358_v34, %v14037_v46  ;;  %v8831_v14 = vadd.f32 %v1359_v63, %v14039_v1  ;;  %v14043_v52 = vld [vmem:[#allocation5_spill] sm:$0xff]  ;;  %v14045_v7 = vld [vmem:[#allocation6_spill] sm:$0xff]  ;;  %v14047_v34 = vld [vmem:[#allocation7_spill] sm:$0xff] }
  0xea   : > { %14032 = vst [vmem:[#allocation17_spill] sm:$0xff] %v8815_v59  ;;  %14036 = vst [vmem:[#allocation19_spill] sm:$0xff] %v8825_v3  ;;  %v8841_v24 = vadd.f32 %v1361_v22, %v14043_v52  ;;  %v8844_v50 = vadd.f32 %v1362_v15, %v14045_v7  ;;  %v8847_v6 = vadd.f32 %v1363_v43, %v14047_v34  ;;  %v5539_v63 = vld [vmem:[%s7017_s30 + $0x7d] sm:$0xff]  ;;  %v5540_v5 = vld [vmem:[%s7017_s30 + $0x85] sm:$0xff] }
  0xeb   : > { %14034 = vst [vmem:[#allocation18_spill] sm:$0xff] %v8822_v40  ;;  %14038 = vst [vmem:[#allocation20_spill] sm:$0xff] %v8828_v55  ;;  %v5541_v12 = vld [vmem:[%s7017_s30 + $0x95] sm:$0xff]  ;;  %v5564_v9 = vld [vmem:[%s13780_s1 + $0xd] ss:$0 sm:$0xff] }
  0xec   : > { %14040 = vst [vmem:[#allocation21_spill] sm:$0xff] %v8831_v14  ;;  %14042 = vst [vmem:[#allocation22_spill] sm:$0xff] %v8838_v27  ;;  %v14049_v13 = vld [vmem:[#allocation8_spill] sm:$0xff]  ;;  %v14051_v37 = vld [vmem:[#allocation9_spill] sm:$0xff] }
  0xed   : > { %14044 = vst [vmem:[#allocation5_spill] sm:$0xff] %v8841_v24  ;;  %14046 = vst [vmem:[#allocation6_spill] sm:$0xff] %v8844_v50  ;;  %v8856_v22 = vadd.f32 %v1364_v36, %v14049_v13  ;;  %v8859_v38 = vadd.f32 %v1365_v58, %v14051_v37  ;;  %v14053_v39 = vld [vmem:[#allocation10_spill] sm:$0xff]  ;;  %v14055_v19 = vld [vmem:[#allocation11_spill] sm:$0xff]  ;;  %v1441_v13 = vmul.f32 %v5564_v9, %v5531_v32 }
  0xee   : > { %14048 = vst [vmem:[#allocation7_spill] sm:$0xff] %v8847_v6  ;;  %v8862_v33 = vadd.f32 %v1366_v57, %v14053_v39  ;;  %v8865_v62 = vadd.f32 %v1367_v28, %v14055_v19  ;;  %v5542_v15 = vld [vmem:[%s7017_s30 + $0x9d] sm:$0xff]  ;;  %v5543_v43 = vld [vmem:[%s7017_s30 + $0xad] sm:$0xff]  ;;  %v5544_v8 = vld [vmem:[%s7017_s30 + $0xb5] sm:$0xff]  ;;  %v1442_v37 = vmul.f32 %v5564_v9, %v5532_v47  ;;  %v1443_v39 = vmul.f32 %v5564_v9, %v5533_v23 }
  0xef   : > { %14050 = vst [vmem:[#allocation8_spill] sm:$0xff] %v8856_v22  ;;  %14052 = vst [vmem:[#allocation9_spill] sm:$0xff] %v8859_v38  ;;  %v14057_v31 = vld [vmem:[#allocation12_spill] sm:$0xff]  ;;  %v14059_v36 = vld [vmem:[#allocation13_spill] sm:$0xff]  ;;  %v1449_v32 = vmul.f32 %v5564_v9, %v5539_v63  ;;  %v1450_v47 = vmul.f32 %v5564_v9, %v5540_v5  ;;  %v1451_v23 = vmul.f32 %v5564_v9, %v5541_v12 }
  0xf0   : > { %14054 = vst [vmem:[#allocation10_spill] sm:$0xff] %v8862_v33  ;;  %14056 = vst [vmem:[#allocation11_spill] sm:$0xff] %v8865_v62  ;;  %v8871_v42 = vadd.f32 %v1368_v56, %v14057_v31  ;;  %v8874_v21 = vadd.f32 %v1369_v0, %v14059_v36  ;;  %v14061_v58 = vld [vmem:[#allocation14_spill] sm:$0xff]  ;;  %v14063_v57 = vld [vmem:[#allocation15_spill] sm:$0xff]  ;;  %v1444_v0 = vmul.f32 %v5564_v9, %v5534_v54 }
  0xf1   : > { %v8877_v46 = vadd.f32 %v1370_v41, %v14061_v58  ;;  %v8880_v1 = vadd.f32 %v1371_v16, %v14063_v57  ;;  %v5545_v28 = vld [vmem:[%s7017_s30 + $0xc5] sm:$0xff]  ;;  %v5546_v17 = vld [vmem:[%s7017_s30 + $0xcd] sm:$0xff]  ;;  %v5547_v52 = vld [vmem:[%s7017_s30 + $0xdd] sm:$0xff]  ;;  %v1445_v31 = vmul.f32 %v5564_v9, %v5535_v11  ;;  %v1446_v36 = vmul.f32 %v5564_v9, %v5536_v49 }
  0xf2   : > { %14058 = vst [vmem:[#allocation12_spill] sm:$0xff] %v8871_v42  ;;  %14060 = vst [vmem:[#allocation13_spill] sm:$0xff] %v8874_v21  ;;  %v5548_v7 = vld [vmem:[%s7017_s30 + $0xe5] sm:$0xff]  ;;  %v5549_v34 = vld [vmem:[%s7017_s30 + $0xf5] sm:$0xff]  ;;  %v1447_v58 = vmul.f32 %v5564_v9, %v5537_v2  ;;  %v1448_v57 = vmul.f32 %v5564_v9, %v5538_v53  ;;  %v1452_v42 = vmul.f32 %v5564_v9, %v5542_v15 }
  0xf3   : > { %14062 = vst [vmem:[#allocation14_spill] sm:$0xff] %v8877_v46  ;;  %14064 = vst [vmem:[#allocation15_spill] sm:$0xff] %v8880_v1  ;;  %v5550_v56 = vld [vmem:[%s7017_s30 + $0xfd] sm:$0xff]  ;;  %v5551_v41 = vld [vmem:[%s7017_s30 + $0x10d] sm:$0xff]  ;;  %v1453_v38 = vmul.f32 %v5564_v9, %v5543_v43  ;;  %v1454_v22 = vmul.f32 %v5564_v9, %v5544_v8  ;;  %v1455_v6 = vmul.f32 %v5564_v9, %v5545_v28 }
  0xf4   : > { %v5552_v19 = vld [vmem:[%s7017_s30 + $0x115] sm:$0xff]  ;;  %v5553_v16 = vld [vmem:[%s7017_s30 + $0x125] sm:$0xff]  ;;  %v5554_v1 = vld [vmem:[%s7017_s30 + $0x12d] sm:$0xff]  ;;  %v1456_v11 = vmul.f32 %v5564_v9, %v5546_v17  ;;  %v1457_v53 = vmul.f32 %v5564_v9, %v5547_v52  ;;  %v1458_v24 = vmul.f32 %v5564_v9, %v5548_v7  ;;  %v1459_v27 = vmul.f32 %v5564_v9, %v5549_v34 }
  0xf5   : > { %v5555_v46 = vld [vmem:[%s7017_s30 + $0x13d] sm:$0xff]  ;;  %v5556_v21 = vld [vmem:[%s7017_s30 + $0x145] sm:$0xff]  ;;  %v5557_v54 = vld [vmem:[%s7017_s30 + $0x155] sm:$0xff]  ;;  %v1460_v14 = vmul.f32 %v5564_v9, %v5550_v56  ;;  %v1461_v55 = vmul.f32 %v5564_v9, %v5551_v41  ;;  %v1462_v3 = vmul.f32 %v5564_v9, %v5552_v19  ;;  %v1463_v63 = vmul.f32 %v5564_v9, %v5553_v16 }
  0xf6   : > { %v5558_v62 = vld [vmem:[%s7017_s30 + $0x15d] sm:$0xff]  ;;  %v5559_v33 = vld [vmem:[%s7017_s30 + $0x16d] sm:$0xff]  ;;  %v5560_v49 = vld [vmem:[%s7017_s30 + $0x175] sm:$0xff]  ;;  %v1464_v5 = vmul.f32 %v5564_v9, %v5554_v1  ;;  %v1465_v12 = vmul.f32 %v5564_v9, %v5555_v46  ;;  %v1466_v15 = vmul.f32 %v5564_v9, %v5556_v21  ;;  %v1467_v40 = vmul.f32 %v5564_v9, %v5557_v54 }
  0xf7   : > { %v5561_v2 = vld [vmem:[%s7017_s30 + $0x185] sm:$0xff]  ;;  %v5562_v50 = vld [vmem:[%s7017_s30 + $0x18d] sm:$0xff]  ;;  %v1468_v59 = vmul.f32 %v5564_v9, %v5558_v62  ;;  %v1469_v61 = vmul.f32 %v5564_v9, %v5559_v33  ;;  %v1470_v43 = vmul.f32 %v5564_v9, %v5560_v49  ;;  %v8901_v17 = vadd.f32 %v1441_v13, %v8770_v44  ;;  %v5567_v1 = vld [vmem:[%s7017_s30 + $0x36] sm:$0xff] }
  0xf8   : > { %v1471_v8 = vmul.f32 %v5564_v9, %v5561_v2  ;;  %v1472_v28 = vmul.f32 %v5564_v9, %v5562_v50  ;;  %v8904_v52 = vadd.f32 %v1442_v37, %v8773_v51  ;;  %v8907_v7 = vadd.f32 %v1443_v39, %v8776_v26  ;;  %v5565_v46 = vld [vmem:[%s7017_s30 + $0x1e] sm:$0xff]  ;;  %v5569_v13 = vld [vmem:[%s7017_s30 + $0x4e] sm:$0xff]  ;;  %v5570_v37 = vld [vmem:[%s7017_s30 + $0x56] sm:$0xff] }
  0xf9   : > { %v8910_v21 = vadd.f32 %v1444_v0, %v8779_v35  ;;  %v8913_v33 = vadd.f32 %v1445_v31, %v8782_v48  ;;  %v8916_v50 = vadd.f32 %v1446_v36, %v8785_v18  ;;  %v8919_v44 = vadd.f32 %v1447_v58, %v8788_v30  ;;  %v5571_v39 = vld [vmem:[%s7017_s30 + $0x66] sm:$0xff]  ;;  %v5572_v0 = vld [vmem:[%s7017_s30 + $0x6e] sm:$0xff] }
  0xfa   : > { %v8922_v51 = vadd.f32 %v1448_v57, %v8791_v20  ;;  %v8925_v26 = vadd.f32 %v1449_v32, %v8794_v4  ;;  %v8928_v35 = vadd.f32 %v1450_v47, %v8797_v10  ;;  %v8931_v48 = vadd.f32 %v1451_v23, %v8800_v25  ;;  %v14065_v4 = vld [vmem:[#allocation16_spill] sm:$0xff]  ;;  %v14067_v10 = vld [vmem:[#allocation17_spill] sm:$0xff]  ;;  %v14077_v41 = vld [vmem:[#allocation22_spill] sm:$0xff] }
  0xfb   : > { %v8934_v18 = vadd.f32 %v1452_v42, %v8803_v45  ;;  %v8937_v30 = vadd.f32 %v1453_v38, %v8806_v60  ;;  %v8940_v20 = vadd.f32 %v1454_v22, %v8809_v29  ;;  %v8943_v9 = vadd.f32 %v1455_v6, %v14065_v4  ;;  %v5566_v25 = vld [vmem:[%s7017_s30 + $0x26] sm:$0xff]  ;;  %v5568_v45 = vld [vmem:[%s7017_s30 + $0x3e] sm:$0xff]  ;;  %v14071_v60 = vld [vmem:[#allocation19_spill] sm:$0xff] }
  0xfc   : > { %v8946_v62 = vadd.f32 %v1456_v11, %v14067_v10  ;;  %v14069_v42 = vld [vmem:[#allocation18_spill] sm:$0xff]  ;;  %v8956_v38 = vadd.f32 %v1458_v24, %v14071_v60  ;;  %v14073_v29 = vld [vmem:[#allocation20_spill] sm:$0xff]  ;;  %v14075_v6 = vld [vmem:[#allocation21_spill] sm:$0xff]  ;;  %v8969_v19 = vadd.f32 %v1461_v55, %v14077_v41 }
  0xfd   : > { %14066 = vst [vmem:[#allocation16_spill] sm:$0xff] %v8943_v9  ;;  %v8953_v34 = vadd.f32 %v1457_v53, %v14069_v42  ;;  %v8959_v22 = vadd.f32 %v1459_v27, %v14073_v29  ;;  %v8962_v56 = vadd.f32 %v1460_v14, %v14075_v6  ;;  %v14079_v16 = vld [vmem:[#allocation5_spill] sm:$0xff]  ;;  %v14081_v24 = vld [vmem:[#allocation6_spill] sm:$0xff]  ;;  %v14083_v27 = vld [vmem:[#allocation7_spill] sm:$0xff] }
  0xfe   : > { %14068 = vst [vmem:[#allocation17_spill] sm:$0xff] %v8946_v62  ;;  %14072 = vst [vmem:[#allocation19_spill] sm:$0xff] %v8956_v38  ;;  %v8972_v31 = vadd.f32 %v1462_v3, %v14079_v16  ;;  %v8975_v36 = vadd.f32 %v1463_v63, %v14081_v24  ;;  %v8978_v58 = vadd.f32 %v1464_v5, %v14083_v27  ;;  %v5573_v14 = vld [vmem:[%s7017_s30 + $0x7e] sm:$0xff]  ;;  %v5574_v57 = vld [vmem:[%s7017_s30 + $0x86] sm:$0xff] }
  0xff   : > { %14070 = vst [vmem:[#allocation18_spill] sm:$0xff] %v8953_v34  ;;  %14074 = vst [vmem:[#allocation20_spill] sm:$0xff] %v8959_v22  ;;  %v5575_v32 = vld [vmem:[%s7017_s30 + $0x96] sm:$0xff]  ;;  %v5598_v55 = vld [vmem:[%s13780_s1 + $0xe] ss:$0 sm:$0xff] }
 0x100   : > { %14076 = vst [vmem:[#allocation21_spill] sm:$0xff] %v8962_v56  ;;  %14078 = vst [vmem:[#allocation22_spill] sm:$0xff] %v8969_v19  ;;  %v14085_v47 = vld [vmem:[#allocation8_spill] sm:$0xff]  ;;  %v14087_v23 = vld [vmem:[#allocation9_spill] sm:$0xff] }
 0x101   : > { %14080 = vst [vmem:[#allocation5_spill] sm:$0xff] %v8972_v31  ;;  %14082 = vst [vmem:[#allocation6_spill] sm:$0xff] %v8975_v36  ;;  %v8987_v3 = vadd.f32 %v1465_v12, %v14085_v47  ;;  %v8990_v54 = vadd.f32 %v1466_v15, %v14087_v23  ;;  %v14089_v11 = vld [vmem:[#allocation10_spill] sm:$0xff]  ;;  %v14091_v2 = vld [vmem:[#allocation11_spill] sm:$0xff]  ;;  %v1542_v47 = vmul.f32 %v5598_v55, %v5565_v46 }
 0x102   : > { %14084 = vst [vmem:[#allocation7_spill] sm:$0xff] %v8978_v58  ;;  %v8993_v49 = vadd.f32 %v1467_v40, %v14089_v11  ;;  %v8996_v53 = vadd.f32 %v1468_v59, %v14091_v2  ;;  %v5576_v63 = vld [vmem:[%s7017_s30 + $0x9e] sm:$0xff]  ;;  %v5577_v5 = vld [vmem:[%s7017_s30 + $0xae] sm:$0xff]  ;;  %v5578_v4 = vld [vmem:[%s7017_s30 + $0xb6] sm:$0xff]  ;;  %v1543_v23 = vmul.f32 %v5598_v55, %v5566_v25  ;;  %v1544_v11 = vmul.f32 %v5598_v55, %v5567_v1 }
 0x103   : > { %14086 = vst [vmem:[#allocation8_spill] sm:$0xff] %v8987_v3  ;;  %14088 = vst [vmem:[#allocation9_spill] sm:$0xff] %v8990_v54  ;;  %v14093_v10 = vld [vmem:[#allocation12_spill] sm:$0xff]  ;;  %v14095_v12 = vld [vmem:[#allocation13_spill] sm:$0xff]  ;;  %v1550_v46 = vmul.f32 %v5598_v55, %v5573_v14  ;;  %v1551_v25 = vmul.f32 %v5598_v55, %v5574_v57  ;;  %v1552_v1 = vmul.f32 %v5598_v55, %v5575_v32 }
 0x104   : > { %14090 = vst [vmem:[#allocation10_spill] sm:$0xff] %v8993_v49  ;;  %14092 = vst [vmem:[#allocation11_spill] sm:$0xff] %v8996_v53  ;;  %v9002_v42 = vadd.f32 %v1469_v61, %v14093_v10  ;;  %v9005_v60 = vadd.f32 %v1470_v43, %v14095_v12  ;;  %v14097_v15 = vld [vmem:[#allocation14_spill] sm:$0xff]  ;;  %v14099_v40 = vld [vmem:[#allocation15_spill] sm:$0xff]  ;;  %v1545_v43 = vmul.f32 %v5598_v55, %v5568_v45 }
 0x105   : > { %v9008_v29 = vadd.f32 %v1471_v8, %v14097_v15  ;;  %v9011_v6 = vadd.f32 %v1472_v28, %v14099_v40  ;;  %v5579_v59 = vld [vmem:[%s7017_s30 + $0xc6] sm:$0xff]  ;;  %v5580_v41 = vld [vmem:[%s7017_s30 + $0xce] sm:$0xff]  ;;  %v5581_v16 = vld [vmem:[%s7017_s30 + $0xde] sm:$0xff]  ;;  %v1546_v10 = vmul.f32 %v5598_v55, %v5569_v13  ;;  %v1547_v12 = vmul.f32 %v5598_v55, %v5570_v37 }
 0x106   : > { %14094 = vst [vmem:[#allocation12_spill] sm:$0xff] %v9002_v42  ;;  %14096 = vst [vmem:[#allocation13_spill] sm:$0xff] %v9005_v60  ;;  %v5582_v24 = vld [vmem:[%s7017_s30 + $0xe6] sm:$0xff]  ;;  %v5583_v27 = vld [vmem:[%s7017_s30 + $0xf6] sm:$0xff]  ;;  %v1548_v15 = vmul.f32 %v5598_v55, %v5571_v39  ;;  %v1549_v40 = vmul.f32 %v5598_v55, %v5572_v0  ;;  %v1553_v42 = vmul.f32 %v5598_v55, %v5576_v63 }
 0x107   : > { %14098 = vst [vmem:[#allocation14_spill] sm:$0xff] %v9008_v29  ;;  %14100 = vst [vmem:[#allocation15_spill] sm:$0xff] %v9011_v6  ;;  %v5584_v61 = vld [vmem:[%s7017_s30 + $0xfe] sm:$0xff]  ;;  %v5585_v8 = vld [vmem:[%s7017_s30 + $0x10e] sm:$0xff]  ;;  %v1554_v54 = vmul.f32 %v5598_v55, %v5577_v5  ;;  %v1555_v3 = vmul.f32 %v5598_v55, %v5578_v4  ;;  %v1556_v58 = vmul.f32 %v5598_v55, %v5579_v59 }
 0x108   : > { %v5586_v2 = vld [vmem:[%s7017_s30 + $0x116] sm:$0xff]  ;;  %v5587_v28 = vld [vmem:[%s7017_s30 + $0x126] sm:$0xff]  ;;  %v5588_v6 = vld [vmem:[%s7017_s30 + $0x12e] sm:$0xff]  ;;  %v1557_v13 = vmul.f32 %v5598_v55, %v5580_v41  ;;  %v1558_v0 = vmul.f32 %v5598_v55, %v5581_v16  ;;  %v1559_v31 = vmul.f32 %v5598_v55, %v5582_v24  ;;  %v1560_v19 = vmul.f32 %v5598_v55, %v5583_v27 }
 0x109   : > { %v5589_v29 = vld [vmem:[%s7017_s30 + $0x13e] sm:$0xff]  ;;  %v5590_v60 = vld [vmem:[%s7017_s30 + $0x146] sm:$0xff]  ;;  %v5591_v45 = vld [vmem:[%s7017_s30 + $0x156] sm:$0xff]  ;;  %v1561_v56 = vmul.f32 %v5598_v55, %v5584_v61  ;;  %v1562_v22 = vmul.f32 %v5598_v55, %v5585_v8  ;;  %v1563_v38 = vmul.f32 %v5598_v55, %v5586_v2  ;;  %v1564_v14 = vmul.f32 %v5598_v55, %v5587_v28 }
 0x10a   : > { %v5592_v53 = vld [vmem:[%s7017_s30 + $0x15e] sm:$0xff]  ;;  %v5593_v49 = vld [vmem:[%s7017_s30 + $0x16e] sm:$0xff]  ;;  %v5594_v37 = vld [vmem:[%s7017_s30 + $0x176] sm:$0xff]  ;;  %v1565_v57 = vmul.f32 %v5598_v55, %v5588_v6  ;;  %v1566_v32 = vmul.f32 %v5598_v55, %v5589_v29  ;;  %v1567_v63 = vmul.f32 %v5598_v55, %v5590_v60  ;;  %v1568_v34 = vmul.f32 %v5598_v55, %v5591_v45 }
 0x10b   : > { %v5595_v39 = vld [vmem:[%s7017_s30 + $0x186] sm:$0xff]  ;;  %v5596_v36 = vld [vmem:[%s7017_s30 + $0x18e] sm:$0xff]  ;;  %v1569_v62 = vmul.f32 %v5598_v55, %v5592_v53  ;;  %v1570_v9 = vmul.f32 %v5598_v55, %v5593_v49  ;;  %v1571_v5 = vmul.f32 %v5598_v55, %v5594_v37  ;;  %v9032_v41 = vadd.f32 %v1542_v47, %v8901_v17 }
 0x10c   : > { %v1572_v4 = vmul.f32 %v5598_v55, %v5595_v39  ;;  %v1573_v59 = vmul.f32 %v5598_v55, %v5596_v36  ;;  %v9035_v16 = vadd.f32 %v1543_v23, %v8904_v52  ;;  %v9038_v24 = vadd.f32 %v1544_v11, %v8907_v7  ;;  %v5599_v29 = vld [vmem:[%s7017_s30 + $0x30] sm:$0xff]  ;;  %v5601_v6 = vld [vmem:[%s7017_s30 + $0x48] sm:$0xff]  ;;  %v5603_v47 = vld [vmem:[%s7017_s30 + $0x60] sm:$0xff] }
 0x10d   : > { %v9041_v60 = vadd.f32 %v1545_v43, %v8910_v21  ;;  %v9044_v49 = vadd.f32 %v1546_v10, %v8913_v33  ;;  %v9047_v36 = vadd.f32 %v1547_v12, %v8916_v50  ;;  %v9050_v17 = vadd.f32 %v1548_v15, %v8919_v44  ;;  %v5604_v23 = vld [vmem:[%s7017_s30 + $0x68] sm:$0xff]  ;;  %v5605_v11 = vld [vmem:[%s7017_s30 + $0x78] sm:$0xff]  ;;  %v5606_v43 = vld [vmem:[%s7017_s30 + $0x80] sm:$0xff] }
 0x10e   : > { %v9053_v52 = vadd.f32 %v1549_v40, %v8922_v51  ;;  %v9056_v7 = vadd.f32 %v1550_v46, %v8925_v26  ;;  %v9059_v21 = vadd.f32 %v1551_v25, %v8928_v35  ;;  %v9062_v33 = vadd.f32 %v1552_v1, %v8931_v48  ;;  %v14101_v26 = vld [vmem:[#allocation16_spill] sm:$0xff]  ;;  %v14103_v35 = vld [vmem:[#allocation17_spill] sm:$0xff]  ;;  %v14113_v8 = vld [vmem:[#allocation22_spill] sm:$0xff] }
 0x10f   : > { %v9065_v50 = vadd.f32 %v1553_v42, %v8934_v18  ;;  %v9068_v44 = vadd.f32 %v1554_v54, %v8937_v30  ;;  %v9071_v51 = vadd.f32 %v1555_v3, %v8940_v20  ;;  %v9074_v55 = vadd.f32 %v1556_v58, %v14101_v26  ;;  %v5600_v48 = vld [vmem:[%s7017_s30 + $0x38] sm:$0xff]  ;;  %v5602_v18 = vld [vmem:[%s7017_s30 + $0x50] sm:$0xff]  ;;  %v14105_v42 = vld [vmem:[#allocation18_spill] sm:$0xff] }
 0x110   : > { %v9077_v53 = vadd.f32 %v1557_v13, %v14103_v35  ;;  %v9084_v27 = vadd.f32 %v1558_v0, %v14105_v42  ;;  %v14107_v30 = vld [vmem:[#allocation19_spill] sm:$0xff]  ;;  %v14109_v20 = vld [vmem:[#allocation20_spill] sm:$0xff]  ;;  %v14111_v58 = vld [vmem:[#allocation21_spill] sm:$0xff]  ;;  %v9100_v2 = vadd.f32 %v1562_v22, %v14113_v8 }
 0x111   : > { %14102 = vst [vmem:[#allocation16_spill] sm:$0xff] %v9074_v55  ;;  %v9087_v54 = vadd.f32 %v1559_v31, %v14107_v30  ;;  %v9090_v3 = vadd.f32 %v1560_v19, %v14109_v20  ;;  %v9093_v61 = vadd.f32 %v1561_v56, %v14111_v58  ;;  %v14115_v28 = vld [vmem:[#allocation5_spill] sm:$0xff]  ;;  %v14117_v31 = vld [vmem:[#allocation6_spill] sm:$0xff]  ;;  %v14119_v19 = vld [vmem:[#allocation7_spill] sm:$0xff] }
 0x112   : > { %14104 = vst [vmem:[#allocation17_spill] sm:$0xff] %v9077_v53  ;;  %14106 = vst [vmem:[#allocation18_spill] sm:$0xff] %v9084_v27  ;;  %v9103_v10 = vadd.f32 %v1563_v38, %v14115_v28  ;;  %v9106_v12 = vadd.f32 %v1564_v14, %v14117_v31  ;;  %v9109_v15 = vadd.f32 %v1565_v57, %v14119_v19  ;;  %v5607_v56 = vld [vmem:[%s7017_s30 + $0x90] sm:$0xff]  ;;  %v5608_v40 = vld [vmem:[%s7017_s30 + $0x98] sm:$0xff] }
 0x113   : > { %14108 = vst [vmem:[#allocation19_spill] sm:$0xff] %v9087_v54  ;;  %14110 = vst [vmem:[#allocation20_spill] sm:$0xff] %v9090_v3  ;;  %v5609_v46 = vld [vmem:[%s7017_s30 + $0xa8] sm:$0xff]  ;;  %v5632_v22 = vld [vmem:[%s13780_s1 + $0x10] ss:$0 sm:$0xff] }
 0x114   : > { %14112 = vst [vmem:[#allocation21_spill] sm:$0xff] %v9093_v61  ;;  %14114 = vst [vmem:[#allocation22_spill] sm:$0xff] %v9100_v2  ;;  %v14121_v25 = vld [vmem:[#allocation8_spill] sm:$0xff]  ;;  %v14123_v1 = vld [vmem:[#allocation9_spill] sm:$0xff] }
 0x115   : > { %14116 = vst [vmem:[#allocation5_spill] sm:$0xff] %v9103_v10  ;;  %14118 = vst [vmem:[#allocation6_spill] sm:$0xff] %v9106_v12  ;;  %v9118_v38 = vadd.f32 %v1566_v32, %v14121_v25  ;;  %v9121_v45 = vadd.f32 %v1567_v63, %v14123_v1  ;;  %v14125_v13 = vld [vmem:[#allocation10_spill] sm:$0xff]  ;;  %v14127_v39 = vld [vmem:[#allocation11_spill] sm:$0xff]  ;;  %v1647_v25 = vmul.f32 %v5632_v22, %v5599_v29 }
 0x116   : > { %14120 = vst [vmem:[#allocation7_spill] sm:$0xff] %v9109_v15  ;;  %v9124_v37 = vadd.f32 %v1568_v34, %v14125_v13  ;;  %v9127_v0 = vadd.f32 %v1569_v62, %v14127_v39  ;;  %v5610_v14 = vld [vmem:[%s7017_s30 + $0xb0] sm:$0xff]  ;;  %v5611_v57 = vld [vmem:[%s7017_s30 + $0xc0] sm:$0xff]  ;;  %v5612_v26 = vld [vmem:[%s7017_s30 + $0xc8] sm:$0xff]  ;;  %v1648_v1 = vmul.f32 %v5632_v22, %v5600_v48  ;;  %v1649_v13 = vmul.f32 %v5632_v22, %v5601_v6 }
 0x117   : > { %14122 = vst [vmem:[#allocation8_spill] sm:$0xff] %v9118_v38  ;;  %14124 = vst [vmem:[#allocation9_spill] sm:$0xff] %v9121_v45  ;;  %v14129_v35 = vld [vmem:[#allocation12_spill] sm:$0xff]  ;;  %v14131_v32 = vld [vmem:[#allocation13_spill] sm:$0xff]  ;;  %v1655_v29 = vmul.f32 %v5632_v22, %v5607_v56  ;;  %v1656_v48 = vmul.f32 %v5632_v22, %v5608_v40  ;;  %v1657_v6 = vmul.f32 %v5632_v22, %v5609_v46 }
 0x118   : > { %14126 = vst [vmem:[#allocation10_spill] sm:$0xff] %v9124_v37  ;;  %14128 = vst [vmem:[#allocation11_spill] sm:$0xff] %v9127_v0  ;;  %v9133_v42 = vadd.f32 %v1570_v9, %v14129_v35  ;;  %v9136_v30 = vadd.f32 %v1571_v5, %v14131_v32  ;;  %v14133_v63 = vld [vmem:[#allocation14_spill] sm:$0xff]  ;;  %v14135_v34 = vld [vmem:[#allocation15_spill] sm:$0xff]  ;;  %v1650_v5 = vmul.f32 %v5632_v22, %v5602_v18 }
 0x119   : > { %v9139_v20 = vadd.f32 %v1572_v4, %v14133_v63  ;;  %v9142_v58 = vadd.f32 %v1573_v59, %v14135_v34  ;;  %v5613_v62 = vld [vmem:[%s7017_s30 + $0xd8] sm:$0xff]  ;;  %v5614_v8 = vld [vmem:[%s7017_s30 + $0xe0] sm:$0xff]  ;;  %v5615_v28 = vld [vmem:[%s7017_s30 + $0xf0] sm:$0xff]  ;;  %v1651_v35 = vmul.f32 %v5632_v22, %v5603_v47  ;;  %v1652_v32 = vmul.f32 %v5632_v22, %v5604_v23 }
 0x11a   : > { %14130 = vst [vmem:[#allocation12_spill] sm:$0xff] %v9133_v42  ;;  %14132 = vst [vmem:[#allocation13_spill] sm:$0xff] %v9136_v30  ;;  %v5616_v31 = vld [vmem:[%s7017_s30 + $0xf8] sm:$0xff]  ;;  %v5617_v19 = vld [vmem:[%s7017_s30 + $0x108] sm:$0xff]  ;;  %v1653_v63 = vmul.f32 %v5632_v22, %v5605_v11  ;;  %v1654_v34 = vmul.f32 %v5632_v22, %v5606_v43  ;;  %v1658_v42 = vmul.f32 %v5632_v22, %v5610_v14 }
 0x11b   : > { %14134 = vst [vmem:[#allocation14_spill] sm:$0xff] %v9139_v20  ;;  %14136 = vst [vmem:[#allocation15_spill] sm:$0xff] %v9142_v58  ;;  %v5618_v9 = vld [vmem:[%s7017_s30 + $0x110] sm:$0xff]  ;;  %v5619_v4 = vld [vmem:[%s7017_s30 + $0x120] sm:$0xff]  ;;  %v1659_v45 = vmul.f32 %v5632_v22, %v5611_v57  ;;  %v1660_v38 = vmul.f32 %v5632_v22, %v5612_v26  ;;  %v1661_v15 = vmul.f32 %v5632_v22, %v5613_v62 }
 0x11c   : > { %v5620_v39 = vld [vmem:[%s7017_s30 + $0x128] sm:$0xff]  ;;  %v5621_v59 = vld [vmem:[%s7017_s30 + $0x138] sm:$0xff]  ;;  %v5622_v58 = vld [vmem:[%s7017_s30 + $0x140] sm:$0xff]  ;;  %v1662_v47 = vmul.f32 %v5632_v22, %v5614_v8  ;;  %v1663_v43 = vmul.f32 %v5632_v22, %v5615_v28  ;;  %v1664_v10 = vmul.f32 %v5632_v22, %v5616_v31  ;;  %v1665_v2 = vmul.f32 %v5632_v22, %v5617_v19 }
 0x11d   : > { %v5623_v20 = vld [vmem:[%s7017_s30 + $0x150] sm:$0xff]  ;;  %v5624_v30 = vld [vmem:[%s7017_s30 + $0x158] sm:$0xff]  ;;  %v5625_v18 = vld [vmem:[%s7017_s30 + $0x168] sm:$0xff]  ;;  %v1666_v61 = vmul.f32 %v5632_v22, %v5618_v9  ;;  %v1667_v3 = vmul.f32 %v5632_v22, %v5619_v4  ;;  %v1668_v54 = vmul.f32 %v5632_v22, %v5620_v39  ;;  %v1669_v56 = vmul.f32 %v5632_v22, %v5621_v59 }
 0x11e   : > { %v5626_v0 = vld [vmem:[%s7017_s30 + $0x170] sm:$0xff]  ;;  %v5627_v37 = vld [vmem:[%s7017_s30 + $0x180] sm:$0xff]  ;;  %v5628_v23 = vld [vmem:[%s7017_s30 + $0x188] sm:$0xff]  ;;  %v1670_v40 = vmul.f32 %v5632_v22, %v5622_v58  ;;  %v1671_v46 = vmul.f32 %v5632_v22, %v5623_v20  ;;  %v1672_v14 = vmul.f32 %v5632_v22, %v5624_v30  ;;  %v1673_v27 = vmul.f32 %v5632_v22, %v5625_v18 }
 0x11f   : > { %v5629_v11 = vld [vmem:[%s7017_s30 + $0x198] sm:$0xff]  ;;  %v5630_v12 = vld [vmem:[%s7017_s30 + $0x1a0] sm:$0xff]  ;;  %v1674_v53 = vmul.f32 %v5632_v22, %v5626_v0  ;;  %v1675_v55 = vmul.f32 %v5632_v22, %v5627_v37  ;;  %v1676_v57 = vmul.f32 %v5632_v22, %v5628_v23  ;;  %v9163_v8 = vadd.f32 %v1647_v25, %v9032_v41  ;;  %v5635_v58 = vld [vmem:[%s7017_s30 + $0x49] sm:$0xff] }
 0x120   : > { %v1677_v26 = vmul.f32 %v5632_v22, %v5629_v11  ;;  %v1678_v62 = vmul.f32 %v5632_v22, %v5630_v12  ;;  %v9166_v28 = vadd.f32 %v1648_v1, %v9035_v16  ;;  %v9169_v31 = vadd.f32 %v1649_v13, %v9038_v24  ;;  %v5633_v20 = vld [vmem:[%s7017_s30 + $0x31] sm:$0xff]  ;;  %v5637_v25 = vld [vmem:[%s7017_s30 + $0x61] sm:$0xff]  ;;  %v5638_v1 = vld [vmem:[%s7017_s30 + $0x69] sm:$0xff] }
 0x121   : > { %v9172_v30 = vadd.f32 %v1650_v5, %v9041_v60  ;;  %v9175_v37 = vadd.f32 %v1651_v35, %v9044_v49  ;;  %v9178_v12 = vadd.f32 %v1652_v32, %v9047_v36  ;;  %v9181_v41 = vadd.f32 %v1653_v63, %v9050_v17  ;;  %v5639_v13 = vld [vmem:[%s7017_s30 + $0x79] sm:$0xff]  ;;  %v5640_v5 = vld [vmem:[%s7017_s30 + $0x81] sm:$0xff]  ;;  %v14163_v11 = vld [vmem:[#allocation11_spill] sm:$0xff] }
 0x122   : > { %v9184_v16 = vadd.f32 %v1654_v34, %v9053_v52  ;;  %v9187_v24 = vadd.f32 %v1655_v29, %v9056_v7  ;;  %v9190_v60 = vadd.f32 %v1656_v48, %v9059_v21  ;;  %v9193_v49 = vadd.f32 %v1657_v6, %v9062_v33  ;;  %v14137_v7 = vld [vmem:[#allocation16_spill] sm:$0xff]  ;;  %v14139_v21 = vld [vmem:[#allocation17_spill] sm:$0xff]  ;;  %v14149_v4 = vld [vmem:[#allocation22_spill] sm:$0xff] }
 0x123   : > { %v9196_v36 = vadd.f32 %v1658_v42, %v9065_v50  ;;  %v9199_v17 = vadd.f32 %v1659_v45, %v9068_v44  ;;  %v9202_v52 = vadd.f32 %v1660_v38, %v9071_v51  ;;  %v9205_v22 = vadd.f32 %v1661_v15, %v14137_v7  ;;  %v5634_v33 = vld [vmem:[%s7017_s30 + $0x39] sm:$0xff]  ;;  %v5636_v50 = vld [vmem:[%s7017_s30 + $0x51] sm:$0xff]  ;;  %v14141_v42 = vld [vmem:[#allocation18_spill] sm:$0xff] }
 0x124   : > { %v9208_v0 = vadd.f32 %v1662_v47, %v14139_v21  ;;  %v9215_v19 = vadd.f32 %v1663_v43, %v14141_v42  ;;  %v14143_v44 = vld [vmem:[#allocation19_spill] sm:$0xff]  ;;  %v14145_v51 = vld [vmem:[#allocation20_spill] sm:$0xff]  ;;  %v14147_v15 = vld [vmem:[#allocation21_spill] sm:$0xff]  ;;  %v9231_v39 = vadd.f32 %v1667_v3, %v14149_v4  ;;  %v9258_v43 = vadd.f32 %v1674_v53, %v14163_v11 }
 0x125   : > { %14138 = vst [vmem:[#allocation16_spill] sm:$0xff] %v9205_v22  ;;  %v9218_v45 = vadd.f32 %v1664_v10, %v14143_v44  ;;  %v9221_v38 = vadd.f32 %v1665_v2, %v14145_v51  ;;  %v9224_v9 = vadd.f32 %v1666_v61, %v14147_v15  ;;  %v14151_v59 = vld [vmem:[#allocation5_spill] sm:$0xff]  ;;  %v14153_v10 = vld [vmem:[#allocation6_spill] sm:$0xff]  ;;  %v14155_v2 = vld [vmem:[#allocation7_spill] sm:$0xff] }
 0x126   : > { %14140 = vst [vmem:[#allocation17_spill] sm:$0xff] %v9208_v0  ;;  %14142 = vst [vmem:[#allocation18_spill] sm:$0xff] %v9215_v19  ;;  %v9234_v35 = vadd.f32 %v1668_v54, %v14151_v59  ;;  %v9237_v32 = vadd.f32 %v1669_v56, %v14153_v10  ;;  %v9240_v63 = vadd.f32 %v1670_v40, %v14155_v2  ;;  %v5641_v61 = vld [vmem:[%s7017_s30 + $0x91] sm:$0xff]  ;;  %v5642_v34 = vld [vmem:[%s7017_s30 + $0x99] sm:$0xff] }
 0x127   : > { %14144 = vst [vmem:[#allocation19_spill] sm:$0xff] %v9218_v45  ;;  %14146 = vst [vmem:[#allocation20_spill] sm:$0xff] %v9221_v38  ;;  %v5643_v29 = vld [vmem:[%s7017_s30 + $0xa9] sm:$0xff]  ;;  %v5666_v3 = vld [vmem:[%s13780_s1 + $0x11] ss:$0 sm:$0xff] }
 0x128   : > { %14148 = vst [vmem:[#allocation21_spill] sm:$0xff] %v9224_v9  ;;  %14150 = vst [vmem:[#allocation22_spill] sm:$0xff] %v9231_v39  ;;  %v14157_v48 = vld [vmem:[#allocation8_spill] sm:$0xff]  ;;  %v14159_v6 = vld [vmem:[#allocation9_spill] sm:$0xff] }
 0x129   : > { %14152 = vst [vmem:[#allocation5_spill] sm:$0xff] %v9234_v35  ;;  %14154 = vst [vmem:[#allocation6_spill] sm:$0xff] %v9237_v32  ;;  %v9249_v54 = vadd.f32 %v1671_v46, %v14157_v48  ;;  %v9252_v18 = vadd.f32 %v1672_v14, %v14159_v6  ;;  %v14161_v47 = vld [vmem:[#allocation10_spill] sm:$0xff]  ;;  %v5644_v56 = vld [vmem:[%s7017_s30 + $0xb1] sm:$0xff]  ;;  %v1748_v48 = vmul.f32 %v5666_v3, %v5633_v20 }
 0x12a   : > { %14156 = vst [vmem:[#allocation7_spill] sm:$0xff] %v9240_v63  ;;  %v9255_v23 = vadd.f32 %v1673_v27, %v14161_v47  ;;  %14164 = vst [vmem:[#allocation11_spill] sm:$0xff] %v9258_v43  ;;  %v5645_v40 = vld [vmem:[%s7017_s30 + $0xc1] sm:$0xff]  ;;  %v5646_v7 = vld [vmem:[%s7017_s30 + $0xc9] sm:$0xff]  ;;  %v1749_v6 = vmul.f32 %v5666_v3, %v5634_v33  ;;  %v1750_v47 = vmul.f32 %v5666_v3, %v5635_v58 }
 0x12b   : > { %14158 = vst [vmem:[#allocation8_spill] sm:$0xff] %v9249_v54  ;;  %14160 = vst [vmem:[#allocation9_spill] sm:$0xff] %v9252_v18  ;;  %v14165_v21 = vld [vmem:[#allocation12_spill] sm:$0xff]  ;;  %v14167_v46 = vld [vmem:[#allocation13_spill] sm:$0xff]  ;;  %v1756_v20 = vmul.f32 %v5666_v3, %v5641_v61  ;;  %v1757_v33 = vmul.f32 %v5666_v3, %v5642_v34  ;;  %v1758_v58 = vmul.f32 %v5666_v3, %v5643_v29 }
 0x12c   : > { %14162 = vst [vmem:[#allocation10_spill] sm:$0xff] %v9255_v23  ;;  %v9264_v42 = vadd.f32 %v1675_v55, %v14165_v21  ;;  %v9267_v44 = vadd.f32 %v1676_v57, %v14167_v46  ;;  %v14169_v14 = vld [vmem:[#allocation14_spill] sm:$0xff]  ;;  %v14171_v27 = vld [vmem:[#allocation15_spill] sm:$0xff]  ;;  %v5647_v53 = vld [vmem:[%s7017_s30 + $0xd9] sm:$0xff]  ;;  %v1751_v57 = vmul.f32 %v5666_v3, %v5636_v50  ;;  %v1752_v21 = vmul.f32 %v5666_v3, %v5637_v25 }
 0x12d   : > { %v9270_v51 = vadd.f32 %v1677_v26, %v14169_v14  ;;  %v9273_v15 = vadd.f32 %v1678_v62, %v14171_v27  ;;  %v5648_v4 = vld [vmem:[%s7017_s30 + $0xe1] sm:$0xff]  ;;  %v5649_v59 = vld [vmem:[%s7017_s30 + $0xf1] sm:$0xff]  ;;  %v5650_v10 = vld [vmem:[%s7017_s30 + $0xf9] sm:$0xff]  ;;  %v1753_v46 = vmul.f32 %v5666_v3, %v5638_v1  ;;  %v1754_v14 = vmul.f32 %v5666_v3, %v5639_v13 }
 0x12e   : > { %14166 = vst [vmem:[#allocation12_spill] sm:$0xff] %v9264_v42  ;;  %14168 = vst [vmem:[#allocation13_spill] sm:$0xff] %v9267_v44  ;;  %v5651_v2 = vld [vmem:[%s7017_s30 + $0x109] sm:$0xff]  ;;  %v5652_v55 = vld [vmem:[%s7017_s30 + $0x111] sm:$0xff]  ;;  %v1755_v27 = vmul.f32 %v5666_v3, %v5640_v5  ;;  %v1759_v42 = vmul.f32 %v5666_v3, %v5644_v56  ;;  %v1760_v18 = vmul.f32 %v5666_v3, %v5645_v40 }
 0x12f   : > { %14170 = vst [vmem:[#allocation14_spill] sm:$0xff] %v9270_v51  ;;  %14172 = vst [vmem:[#allocation15_spill] sm:$0xff] %v9273_v15  ;;  %v5653_v26 = vld [vmem:[%s7017_s30 + $0x121] sm:$0xff]  ;;  %v5654_v11 = vld [vmem:[%s7017_s30 + $0x129] sm:$0xff]  ;;  %v1761_v54 = vmul.f32 %v5666_v3, %v5646_v7  ;;  %v1762_v63 = vmul.f32 %v5666_v3, %v5647_v53  ;;  %v1763_v25 = vmul.f32 %v5666_v3, %v5648_v4 }
 0x130   : > { %v5655_v62 = vld [vmem:[%s7017_s30 + $0x139] sm:$0xff]  ;;  %v5656_v15 = vld [vmem:[%s7017_s30 + $0x141] sm:$0xff]  ;;  %v5657_v51 = vld [vmem:[%s7017_s30 + $0x151] sm:$0xff]  ;;  %v1764_v5 = vmul.f32 %v5666_v3, %v5649_v59  ;;  %v1765_v35 = vmul.f32 %v5666_v3, %v5650_v10  ;;  %v1766_v39 = vmul.f32 %v5666_v3, %v5651_v2  ;;  %v1767_v9 = vmul.f32 %v5666_v3, %v5652_v55 }
 0x131   : > { %v5658_v44 = vld [vmem:[%s7017_s30 + $0x159] sm:$0xff]  ;;  %v5659_v50 = vld [vmem:[%s7017_s30 + $0x169] sm:$0xff]  ;;  %v5660_v43 = vld [vmem:[%s7017_s30 + $0x171] sm:$0xff]  ;;  %v1768_v38 = vmul.f32 %v5666_v3, %v5653_v26  ;;  %v1769_v45 = vmul.f32 %v5666_v3, %v5654_v11  ;;  %v1770_v61 = vmul.f32 %v5666_v3, %v5655_v62  ;;  %v1771_v34 = vmul.f32 %v5666_v3, %v5656_v15 }
 0x132   : > { %v5661_v23 = vld [vmem:[%s7017_s30 + $0x181] sm:$0xff]  ;;  %v5662_v1 = vld [vmem:[%s7017_s30 + $0x189] sm:$0xff]  ;;  %v5663_v13 = vld [vmem:[%s7017_s30 + $0x199] sm:$0xff]  ;;  %v1772_v29 = vmul.f32 %v5666_v3, %v5657_v51  ;;  %v1773_v56 = vmul.f32 %v5666_v3, %v5658_v44  ;;  %v1774_v19 = vmul.f32 %v5666_v3, %v5659_v50  ;;  %v1775_v0 = vmul.f32 %v5666_v3, %v5660_v43 }
 0x133   : > { %v5664_v32 = vld [vmem:[%s7017_s30 + $0x1a1] sm:$0xff]  ;;  %v1776_v22 = vmul.f32 %v5666_v3, %v5661_v23  ;;  %v1777_v40 = vmul.f32 %v5666_v3, %v5662_v1  ;;  %v1778_v7 = vmul.f32 %v5666_v3, %v5663_v13  ;;  %v9294_v4 = vadd.f32 %v1748_v48, %v9163_v8  ;;  %v5667_v51 = vld [vmem:[%s7017_s30 + $0x32] sm:$0xff]  ;;  %v5669_v15 = vld [vmem:[%s7017_s30 + $0x4a] sm:$0xff] }
 0x134   : > { %v1779_v53 = vmul.f32 %v5666_v3, %v5664_v32  ;;  %v9297_v59 = vadd.f32 %v1749_v6, %v9166_v28  ;;  %v9300_v10 = vadd.f32 %v1750_v47, %v9169_v31  ;;  %v9303_v44 = vadd.f32 %v1751_v57, %v9172_v30  ;;  %v5671_v48 = vld [vmem:[%s7017_s30 + $0x62] sm:$0xff]  ;;  %v5672_v6 = vld [vmem:[%s7017_s30 + $0x6a] sm:$0xff]  ;;  %v5673_v47 = vld [vmem:[%s7017_s30 + $0x7a] sm:$0xff] }
 0x135   : > { %v9306_v23 = vadd.f32 %v1752_v21, %v9175_v37  ;;  %v9309_v32 = vadd.f32 %v1753_v46, %v9178_v12  ;;  %v9312_v8 = vadd.f32 %v1754_v14, %v9181_v41  ;;  %v9315_v28 = vadd.f32 %v1755_v27, %v9184_v16  ;;  %v5674_v57 = vld [vmem:[%s7017_s30 + $0x82] sm:$0xff]  ;;  %v5676_v27 = vld [vmem:[%s7017_s30 + $0x9a] sm:$0xff]  ;;  %v14199_v13 = vld [vmem:[#allocation11_spill] sm:$0xff] }
 0x136   : > { %v9318_v31 = vadd.f32 %v1756_v20, %v9187_v24  ;;  %v9321_v30 = vadd.f32 %v1757_v33, %v9190_v60  ;;  %v9324_v37 = vadd.f32 %v1758_v58, %v9193_v49  ;;  %v9327_v12 = vadd.f32 %v1759_v42, %v9196_v36  ;;  %v14173_v24 = vld [vmem:[#allocation16_spill] sm:$0xff]  ;;  %v14175_v60 = vld [vmem:[#allocation17_spill] sm:$0xff]  ;;  %v14177_v42 = vld [vmem:[#allocation18_spill] sm:$0xff] }
 0x137   : > { %v9330_v41 = vadd.f32 %v1760_v18, %v9199_v17  ;;  %v9333_v16 = vadd.f32 %v1761_v54, %v9202_v52  ;;  %v9336_v3 = vadd.f32 %v1762_v63, %v14173_v24  ;;  %v9339_v43 = vadd.f32 %v1763_v25, %v14175_v60  ;;  %v5668_v49 = vld [vmem:[%s7017_s30 + $0x3a] sm:$0xff]  ;;  %v5670_v36 = vld [vmem:[%s7017_s30 + $0x52] sm:$0xff]  ;;  %v14185_v26 = vld [vmem:[#allocation22_spill] sm:$0xff] }
 0x138   : > { %v9346_v2 = vadd.f32 %v1764_v5, %v14177_v42  ;;  %v14179_v17 = vld [vmem:[#allocation19_spill] sm:$0xff]  ;;  %v14181_v52 = vld [vmem:[#allocation20_spill] sm:$0xff]  ;;  %v14183_v63 = vld [vmem:[#allocation21_spill] sm:$0xff]  ;;  %v9362_v11 = vadd.f32 %v1768_v38, %v14185_v26  ;;  %v9389_v5 = vadd.f32 %v1775_v0, %v14199_v13 }
 0x139   : > { %14174 = vst [vmem:[#allocation16_spill] sm:$0xff] %v9336_v3  ;;  %14176 = vst [vmem:[#allocation17_spill] sm:$0xff] %v9339_v43  ;;  %v9349_v18 = vadd.f32 %v1765_v35, %v14179_v17  ;;  %v9352_v54 = vadd.f32 %v1766_v39, %v14181_v52  ;;  %v9355_v55 = vadd.f32 %v1767_v9, %v14183_v63  ;;  %v14187_v62 = vld [vmem:[#allocation5_spill] sm:$0xff]  ;;  %v14189_v35 = vld [vmem:[#allocation6_spill] sm:$0xff] }
 0x13a   : > { %14178 = vst [vmem:[#allocation18_spill] sm:$0xff] %v9346_v2  ;;  %14186 = vst [vmem:[#allocation22_spill] sm:$0xff] %v9362_v11  ;;  %v9365_v21 = vadd.f32 %v1769_v45, %v14187_v62  ;;  %v9368_v46 = vadd.f32 %v1770_v61, %v14189_v35  ;;  %v14191_v39 = vld [vmem:[#allocation7_spill] sm:$0xff]  ;;  %v14193_v33 = vld [vmem:[#allocation8_spill] sm:$0xff] }
 0x13b   : > { %14180 = vst [vmem:[#allocation19_spill] sm:$0xff] %v9349_v18  ;;  %14182 = vst [vmem:[#allocation20_spill] sm:$0xff] %v9352_v54  ;;  %v9371_v14 = vadd.f32 %v1771_v34, %v14191_v39  ;;  %v5675_v9 = vld [vmem:[%s7017_s30 + $0x92] sm:$0xff]  ;;  %v5677_v20 = vld [vmem:[%s7017_s30 + $0xaa] sm:$0xff]  ;;  %v9380_v45 = vadd.f32 %v1772_v29, %v14193_v33 }
 0x13c   : > { %14184 = vst [vmem:[#allocation21_spill] sm:$0xff] %v9355_v55  ;;  %14188 = vst [vmem:[#allocation5_spill] sm:$0xff] %v9365_v21  ;;  %v5700_v38 = vld [vmem:[%s13780_s1 + $0x12] ss:$0 sm:$0xff]  ;;  %v14195_v58 = vld [vmem:[#allocation9_spill] sm:$0xff] }
 0x13d   : > { %14190 = vst [vmem:[#allocation6_spill] sm:$0xff] %v9368_v46  ;;  %14192 = vst [vmem:[#allocation7_spill] sm:$0xff] %v9371_v14  ;;  %v9383_v50 = vadd.f32 %v1773_v56, %v14195_v58  ;;  %v14197_v25 = vld [vmem:[#allocation10_spill] sm:$0xff]  ;;  %v5678_v61 = vld [vmem:[%s7017_s30 + $0xb2] sm:$0xff]  ;;  %v1849_v33 = vmul.f32 %v5700_v38, %v5667_v51  ;;  %v1850_v58 = vmul.f32 %v5700_v38, %v5668_v49 }
 0x13e   : > { %14194 = vst [vmem:[#allocation8_spill] sm:$0xff] %v9380_v45  ;;  %v9386_v1 = vadd.f32 %v1774_v19, %v14197_v25  ;;  %14200 = vst [vmem:[#allocation11_spill] sm:$0xff] %v9389_v5  ;;  %v5679_v34 = vld [vmem:[%s7017_s30 + $0xc2] sm:$0xff]  ;;  %v5680_v24 = vld [vmem:[%s7017_s30 + $0xca] sm:$0xff]  ;;  %v1851_v25 = vmul.f32 %v5700_v38, %v5669_v15  ;;  %v1857_v51 = vmul.f32 %v5700_v38, %v5675_v9 }
 0x13f   : > { %14196 = vst [vmem:[#allocation9_spill] sm:$0xff] %v9383_v50  ;;  %v14201_v60 = vld [vmem:[#allocation12_spill] sm:$0xff]  ;;  %v14203_v29 = vld [vmem:[#allocation13_spill] sm:$0xff]  ;;  %v14205_v56 = vld [vmem:[#allocation14_spill] sm:$0xff]  ;;  %v1858_v49 = vmul.f32 %v5700_v38, %v5676_v27  ;;  %v1859_v15 = vmul.f32 %v5700_v38, %v5677_v20  ;;  %v1861_v50 = vmul.f32 %v5700_v38, %v5679_v34  ;;  %v1862_v45 = vmul.f32 %v5700_v38, %v5680_v24 }
 0x140   : > { %14198 = vst [vmem:[#allocation10_spill] sm:$0xff] %v9386_v1  ;;  %v9395_v42 = vadd.f32 %v1776_v22, %v14201_v60  ;;  %v9398_v17 = vadd.f32 %v1777_v40, %v14203_v29  ;;  %v9401_v52 = vadd.f32 %v1778_v7, %v14205_v56  ;;  %v14207_v19 = vld [vmem:[#allocation15_spill] sm:$0xff]  ;;  %v5681_v0 = vld [vmem:[%s7017_s30 + $0xda] sm:$0xff]  ;;  %v5682_v26 = vld [vmem:[%s7017_s30 + $0xe2] sm:$0xff]  ;;  %v1852_v40 = vmul.f32 %v5700_v38, %v5670_v36 }
 0x141   : > { %v9404_v63 = vadd.f32 %v1779_v53, %v14207_v19  ;;  %v5683_v62 = vld [vmem:[%s7017_s30 + $0xf2] sm:$0xff]  ;;  %v5684_v35 = vld [vmem:[%s7017_s30 + $0xfa] sm:$0xff]  ;;  %v5685_v39 = vld [vmem:[%s7017_s30 + $0x10a] sm:$0xff]  ;;  %v1853_v60 = vmul.f32 %v5700_v38, %v5671_v48  ;;  %v1854_v29 = vmul.f32 %v5700_v38, %v5672_v6  ;;  %v1855_v56 = vmul.f32 %v5700_v38, %v5673_v47 }
 0x142   : > { %14202 = vst [vmem:[#allocation12_spill] sm:$0xff] %v9395_v42  ;;  %14204 = vst [vmem:[#allocation13_spill] sm:$0xff] %v9398_v17  ;;  %v5686_v22 = vld [vmem:[%s7017_s30 + $0x112] sm:$0xff]  ;;  %v5687_v7 = vld [vmem:[%s7017_s30 + $0x122] sm:$0xff]  ;;  %v1856_v19 = vmul.f32 %v5700_v38, %v5674_v57  ;;  %v1860_v42 = vmul.f32 %v5700_v38, %v5678_v61  ;;  %v1863_v14 = vmul.f32 %v5700_v38, %v5681_v0 }
 0x143   : > { %14206 = vst [vmem:[#allocation14_spill] sm:$0xff] %v9401_v52  ;;  %14208 = vst [vmem:[#allocation15_spill] sm:$0xff] %v9404_v63  ;;  %v5688_v13 = vld [vmem:[%s7017_s30 + $0x12a] sm:$0xff]  ;;  %v5689_v53 = vld [vmem:[%s7017_s30 + $0x13a] sm:$0xff]  ;;  %v1864_v48 = vmul.f32 %v5700_v38, %v5682_v26  ;;  %v1865_v57 = vmul.f32 %v5700_v38, %v5683_v62  ;;  %v1866_v21 = vmul.f32 %v5700_v38, %v5684_v35 }
 0x144   : > { %v5690_v63 = vld [vmem:[%s7017_s30 + $0x142] sm:$0xff]  ;;  %v5691_v52 = vld [vmem:[%s7017_s30 + $0x152] sm:$0xff]  ;;  %v5692_v17 = vld [vmem:[%s7017_s30 + $0x15a] sm:$0xff]  ;;  %v1867_v11 = vmul.f32 %v5700_v38, %v5685_v39  ;;  %v1868_v55 = vmul.f32 %v5700_v38, %v5686_v22  ;;  %v1869_v54 = vmul.f32 %v5700_v38, %v5687_v7  ;;  %v1870_v18 = vmul.f32 %v5700_v38, %v5688_v13 }
 0x145   : > { %v5693_v36 = vld [vmem:[%s7017_s30 + $0x16a] sm:$0xff]  ;;  %v5694_v5 = vld [vmem:[%s7017_s30 + $0x172] sm:$0xff]  ;;  %v5695_v1 = vld [vmem:[%s7017_s30 + $0x182] sm:$0xff]  ;;  %v1871_v9 = vmul.f32 %v5700_v38, %v5689_v53  ;;  %v1872_v27 = vmul.f32 %v5700_v38, %v5690_v63  ;;  %v1873_v20 = vmul.f32 %v5700_v38, %v5691_v52  ;;  %v1874_v61 = vmul.f32 %v5700_v38, %v5692_v17 }
 0x146   : > { %v5696_v6 = vld [vmem:[%s7017_s30 + $0x18a] sm:$0xff]  ;;  %v5697_v47 = vld [vmem:[%s7017_s30 + $0x19a] sm:$0xff]  ;;  %v5698_v46 = vld [vmem:[%s7017_s30 + $0x1a2] sm:$0xff]  ;;  %v1875_v2 = vmul.f32 %v5700_v38, %v5693_v36  ;;  %v1876_v43 = vmul.f32 %v5700_v38, %v5694_v5  ;;  %v1877_v3 = vmul.f32 %v5700_v38, %v5695_v1  ;;  %v9425_v26 = vadd.f32 %v1849_v33, %v9294_v4 }
 0x147   : > { %v1878_v34 = vmul.f32 %v5700_v38, %v5696_v6  ;;  %v1879_v24 = vmul.f32 %v5700_v38, %v5697_v47  ;;  %v1880_v0 = vmul.f32 %v5700_v38, %v5698_v46  ;;  %v9428_v62 = vadd.f32 %v1850_v58, %v9297_v59  ;;  %v5701_v52 = vld [vmem:[%s7017_s30 + $0x33] sm:$0xff]  ;;  %v5703_v63 = vld [vmem:[%s7017_s30 + $0x4b] sm:$0xff]  ;;  %v5705_v33 = vld [vmem:[%s7017_s30 + $0x63] sm:$0xff] }
 0x148   : > { %v9431_v35 = vadd.f32 %v1851_v25, %v9300_v10  ;;  %v9434_v17 = vadd.f32 %v1852_v40, %v9303_v44  ;;  %v9437_v1 = vadd.f32 %v1853_v60, %v9306_v23  ;;  %v9440_v46 = vadd.f32 %v1854_v29, %v9309_v32  ;;  %v5706_v58 = vld [vmem:[%s7017_s30 + $0x6b] sm:$0xff]  ;;  %v5707_v25 = vld [vmem:[%s7017_s30 + $0x7b] sm:$0xff]  ;;  %v5708_v40 = vld [vmem:[%s7017_s30 + $0x83] sm:$0xff] }
 0x149   : > { %v9443_v4 = vadd.f32 %v1855_v56, %v9312_v8  ;;  %v9446_v59 = vadd.f32 %v1856_v19, %v9315_v28  ;;  %v9449_v10 = vadd.f32 %v1857_v51, %v9318_v31  ;;  %v9452_v44 = vadd.f32 %v1858_v49, %v9321_v30  ;;  %v14209_v31 = vld [vmem:[#allocation16_spill] sm:$0xff]  ;;  %v14211_v30 = vld [vmem:[#allocation17_spill] sm:$0xff]  ;;  %v14221_v7 = vld [vmem:[#allocation22_spill] sm:$0xff] }
 0x14a   : > { %v9455_v23 = vadd.f32 %v1859_v15, %v9324_v37  ;;  %v9458_v32 = vadd.f32 %v1860_v42, %v9327_v12  ;;  %v9461_v8 = vadd.f32 %v1861_v50, %v9330_v41  ;;  %v9464_v28 = vadd.f32 %v1862_v45, %v9333_v16  ;;  %v5702_v37 = vld [vmem:[%s7017_s30 + $0x3b] sm:$0xff]  ;;  %v5704_v12 = vld [vmem:[%s7017_s30 + $0x53] sm:$0xff]  ;;  %v14213_v42 = vld [vmem:[#allocation18_spill] sm:$0xff] }
 0x14b   : > { %v9467_v38 = vadd.f32 %v1863_v14, %v14209_v31  ;;  %v9470_v5 = vadd.f32 %v1864_v48, %v14211_v30  ;;  %v9477_v39 = vadd.f32 %v1865_v57, %v14213_v42  ;;  %v14215_v41 = vld [vmem:[#allocation19_spill] sm:$0xff]  ;;  %v14217_v16 = vld [vmem:[#allocation20_spill] sm:$0xff]  ;;  %v14219_v14 = vld [vmem:[#allocation21_spill] sm:$0xff]  ;;  %v9493_v13 = vadd.f32 %v1869_v54, %v14221_v7 }
 0x14c   : > { %v9480_v50 = vadd.f32 %v1866_v21, %v14215_v41  ;;  %v9483_v45 = vadd.f32 %v1867_v11, %v14217_v16  ;;  %v9486_v22 = vadd.f32 %v1868_v55, %v14219_v14  ;;  %v14223_v53 = vld [vmem:[#allocation5_spill] sm:$0xff]  ;;  %v14225_v21 = vld [vmem:[#allocation6_spill] sm:$0xff]  ;;  %v14227_v11 = vld [vmem:[#allocation7_spill] sm:$0xff] }
 0x14d   : > { %14210 = vst [vmem:[#allocation16_spill] sm:$0xff] %v9467_v38  ;;  %14212 = vst [vmem:[#allocation17_spill] sm:$0xff] %v9470_v5  ;;  %v9496_v60 = vadd.f32 %v1870_v18, %v14223_v53  ;;  %v9499_v29 = vadd.f32 %v1871_v9, %v14225_v21  ;;  %v9502_v56 = vadd.f32 %v1872_v27, %v14227_v11  ;;  %v5709_v55 = vld [vmem:[%s7017_s30 + $0x93] sm:$0xff]  ;;  %v5710_v19 = vld [vmem:[%s7017_s30 + $0x9b] sm:$0xff] }
 0x14e   : > { %14214 = vst [vmem:[#allocation18_spill] sm:$0xff] %v9477_v39  ;;  %14216 = vst [vmem:[#allocation19_spill] sm:$0xff] %v9480_v50  ;;  %v5711_v51 = vld [vmem:[%s7017_s30 + $0xab] sm:$0xff]  ;;  %v5734_v54 = vld [vmem:[%s13780_s1 + $0x13] ss:$0 sm:$0xff] }
 0x14f   : > { %14218 = vst [vmem:[#allocation20_spill] sm:$0xff] %v9483_v45  ;;  %14220 = vst [vmem:[#allocation21_spill] sm:$0xff] %v9486_v22  ;;  %v14229_v49 = vld [vmem:[#allocation8_spill] sm:$0xff]  ;;  %v14231_v15 = vld [vmem:[#allocation9_spill] sm:$0xff] }
 0x150   : > { %14222 = vst [vmem:[#allocation22_spill] sm:$0xff] %v9493_v13  ;;  %14224 = vst [vmem:[#allocation5_spill] sm:$0xff] %v9496_v60  ;;  %v9511_v18 = vadd.f32 %v1873_v20, %v14229_v49  ;;  %v9514_v36 = vadd.f32 %v1874_v61, %v14231_v15  ;;  %v14233_v48 = vld [vmem:[#allocation10_spill] sm:$0xff]  ;;  %v14235_v47 = vld [vmem:[#allocation11_spill] sm:$0xff]  ;;  %v1950_v49 = vmul.f32 %v5734_v54, %v5701_v52 }
 0x151   : > { %14226 = vst [vmem:[#allocation6_spill] sm:$0xff] %v9499_v29  ;;  %14228 = vst [vmem:[#allocation7_spill] sm:$0xff] %v9502_v56  ;;  %v9517_v6 = vadd.f32 %v1875_v2, %v14233_v48  ;;  %v9520_v57 = vadd.f32 %v1876_v43, %v14235_v47  ;;  %v5712_v9 = vld [vmem:[%s7017_s30 + $0xb3] sm:$0xff]  ;;  %v5713_v27 = vld [vmem:[%s7017_s30 + $0xc3] sm:$0xff]  ;;  %v1951_v15 = vmul.f32 %v5734_v54, %v5702_v37 }
 0x152   : > { %14230 = vst [vmem:[#allocation8_spill] sm:$0xff] %v9511_v18  ;;  %14232 = vst [vmem:[#allocation9_spill] sm:$0xff] %v9514_v36  ;;  %v5714_v31 = vld [vmem:[%s7017_s30 + $0xcb] sm:$0xff]  ;;  %v14237_v30 = vld [vmem:[#allocation12_spill] sm:$0xff]  ;;  %v1952_v48 = vmul.f32 %v5734_v54, %v5703_v63  ;;  %v1958_v52 = vmul.f32 %v5734_v54, %v5709_v55  ;;  %v1959_v37 = vmul.f32 %v5734_v54, %v5710_v19 }
 0x153   : > { %14234 = vst [vmem:[#allocation10_spill] sm:$0xff] %v9517_v6  ;;  %14236 = vst [vmem:[#allocation11_spill] sm:$0xff] %v9520_v57  ;;  %v9526_v42 = vadd.f32 %v1877_v3, %v14237_v30  ;;  %v14239_v20 = vld [vmem:[#allocation13_spill] sm:$0xff]  ;;  %v14241_v61 = vld [vmem:[#allocation14_spill] sm:$0xff]  ;;  %v1954_v30 = vmul.f32 %v5734_v54, %v5705_v33  ;;  %v1960_v63 = vmul.f32 %v5734_v54, %v5711_v51 }
 0x154   : > { %v9529_v41 = vadd.f32 %v1878_v34, %v14239_v20  ;;  %v9532_v16 = vadd.f32 %v1879_v24, %v14241_v61  ;;  %v14243_v2 = vld [vmem:[#allocation15_spill] sm:$0xff]  ;;  %v5715_v43 = vld [vmem:[%s7017_s30 + $0xdb] sm:$0xff]  ;;  %v5716_v7 = vld [vmem:[%s7017_s30 + $0xe3] sm:$0xff]  ;;  %v1953_v34 = vmul.f32 %v5734_v54, %v5704_v12  ;;  %v1955_v20 = vmul.f32 %v5734_v54, %v5706_v58 }
 0x155   : > { %14238 = vst [vmem:[#allocation12_spill] sm:$0xff] %v9526_v42  ;;  %v9535_v14 = vadd.f32 %v1880_v0, %v14243_v2  ;;  %v5717_v53 = vld [vmem:[%s7017_s30 + $0xf3] sm:$0xff]  ;;  %v5718_v21 = vld [vmem:[%s7017_s30 + $0xfb] sm:$0xff]  ;;  %v5719_v11 = vld [vmem:[%s7017_s30 + $0x10b] sm:$0xff]  ;;  %v1956_v61 = vmul.f32 %v5734_v54, %v5707_v25  ;;  %v1957_v2 = vmul.f32 %v5734_v54, %v5708_v40  ;;  %v1961_v42 = vmul.f32 %v5734_v54, %v5712_v9 }
 0x156   : > { %14240 = vst [vmem:[#allocation13_spill] sm:$0xff] %v9529_v41  ;;  %14242 = vst [vmem:[#allocation14_spill] sm:$0xff] %v9532_v16  ;;  %v5720_v3 = vld [vmem:[%s7017_s30 + $0x113] sm:$0xff]  ;;  %v5721_v24 = vld [vmem:[%s7017_s30 + $0x123] sm:$0xff]  ;;  %v1962_v36 = vmul.f32 %v5734_v54, %v5713_v27  ;;  %v1963_v18 = vmul.f32 %v5734_v54, %v5714_v31  ;;  %v1964_v56 = vmul.f32 %v5734_v54, %v5715_v43 }
 0x157   : > { %14244 = vst [vmem:[#allocation15_spill] sm:$0xff] %v9535_v14  ;;  %v5722_v47 = vld [vmem:[%s7017_s30 + $0x12b] sm:$0xff]  ;;  %v5723_v0 = vld [vmem:[%s7017_s30 + $0x13b] sm:$0xff]  ;;  %v5724_v14 = vld [vmem:[%s7017_s30 + $0x143] sm:$0xff]  ;;  %v1965_v33 = vmul.f32 %v5734_v54, %v5716_v7  ;;  %v1966_v40 = vmul.f32 %v5734_v54, %v5717_v53  ;;  %v1967_v60 = vmul.f32 %v5734_v54, %v5718_v21  ;;  %v1968_v13 = vmul.f32 %v5734_v54, %v5719_v11 }
 0x158   : > { %v5725_v16 = vld [vmem:[%s7017_s30 + $0x153] sm:$0xff]  ;;  %v5726_v41 = vld [vmem:[%s7017_s30 + $0x15b] sm:$0xff]  ;;  %v5727_v12 = vld [vmem:[%s7017_s30 + $0x16b] sm:$0xff]  ;;  %v1969_v22 = vmul.f32 %v5734_v54, %v5720_v3  ;;  %v1970_v45 = vmul.f32 %v5734_v54, %v5721_v24  ;;  %v1971_v50 = vmul.f32 %v5734_v54, %v5722_v47  ;;  %v1972_v55 = vmul.f32 %v5734_v54, %v5723_v0 }
 0x159   : > { %v5728_v57 = vld [vmem:[%s7017_s30 + $0x173] sm:$0xff]  ;;  %v5729_v6 = vld [vmem:[%s7017_s30 + $0x183] sm:$0xff]  ;;  %v5730_v58 = vld [vmem:[%s7017_s30 + $0x18b] sm:$0xff]  ;;  %v1973_v19 = vmul.f32 %v5734_v54, %v5724_v14  ;;  %v1974_v51 = vmul.f32 %v5734_v54, %v5725_v16  ;;  %v1975_v9 = vmul.f32 %v5734_v54, %v5726_v41  ;;  %v1976_v39 = vmul.f32 %v5734_v54, %v5727_v12 }
 0x15a   : > { %v5731_v25 = vld [vmem:[%s7017_s30 + $0x19b] sm:$0xff]  ;;  %v5732_v29 = vld [vmem:[%s7017_s30 + $0x1a3] sm:$0xff]  ;;  %v1977_v5 = vmul.f32 %v5734_v54, %v5728_v57  ;;  %v1978_v38 = vmul.f32 %v5734_v54, %v5729_v6  ;;  %v1979_v27 = vmul.f32 %v5734_v54, %v5730_v58  ;;  %v9556_v7 = vadd.f32 %v1950_v49, %v9425_v26  ;;  %v5737_v14 = vld [vmem:[%s7017_s30 + $0x4c] sm:$0xff] }
 0x15b   : > { %v1980_v31 = vmul.f32 %v5734_v54, %v5731_v25  ;;  %v1981_v43 = vmul.f32 %v5734_v54, %v5732_v29  ;;  %v9559_v53 = vadd.f32 %v1951_v15, %v9428_v62  ;;  %v9562_v21 = vadd.f32 %v1952_v48, %v9431_v35  ;;  %v5735_v16 = vld [vmem:[%s7017_s30 + $0x34] sm:$0xff]  ;;  %v5739_v49 = vld [vmem:[%s7017_s30 + $0x64] sm:$0xff]  ;;  %v5740_v15 = vld [vmem:[%s7017_s30 + $0x6c] sm:$0xff] }
 0x15c   : > { %v9565_v41 = vadd.f32 %v1953_v34, %v9434_v17  ;;  %v9568_v6 = vadd.f32 %v1954_v30, %v9437_v1  ;;  %v9571_v29 = vadd.f32 %v1955_v20, %v9440_v46  ;;  %v9574_v26 = vadd.f32 %v1956_v61, %v9443_v4  ;;  %v5741_v48 = vld [vmem:[%s7017_s30 + $0x7c] sm:$0xff]  ;;  %v5742_v34 = vld [vmem:[%s7017_s30 + $0x84] sm:$0xff]  ;;  %v14271_v25 = vld [vmem:[#allocation11_spill] sm:$0xff] }
 0x15d   : > { %v9577_v62 = vadd.f32 %v1957_v2, %v9446_v59  ;;  %v9580_v35 = vadd.f32 %v1958_v52, %v9449_v10  ;;  %v9583_v17 = vadd.f32 %v1959_v37, %v9452_v44  ;;  %v9586_v1 = vadd.f32 %v1960_v63, %v9455_v23  ;;  %v14245_v10 = vld [vmem:[#allocation16_spill] sm:$0xff]  ;;  %v14247_v44 = vld [vmem:[#allocation17_spill] sm:$0xff]  ;;  %v14257_v24 = vld [vmem:[#allocation22_spill] sm:$0xff] }
 0x15e   : > { %v9589_v46 = vadd.f32 %v1961_v42, %v9458_v32  ;;  %v9592_v4 = vadd.f32 %v1962_v36, %v9461_v8  ;;  %v9595_v59 = vadd.f32 %v1963_v18, %v9464_v28  ;;  %v9598_v54 = vadd.f32 %v1964_v56, %v14245_v10  ;;  %v5736_v23 = vld [vmem:[%s7017_s30 + $0x3c] sm:$0xff]  ;;  %v5738_v32 = vld [vmem:[%s7017_s30 + $0x54] sm:$0xff]  ;;  %v14249_v42 = vld [vmem:[#allocation18_spill] sm:$0xff] }
 0x15f   : > { %v9601_v57 = vadd.f32 %v1965_v33, %v14247_v44  ;;  %v9608_v11 = vadd.f32 %v1966_v40, %v14249_v42  ;;  %v14251_v8 = vld [vmem:[#allocation19_spill] sm:$0xff]  ;;  %v14253_v28 = vld [vmem:[#allocation20_spill] sm:$0xff]  ;;  %v14255_v56 = vld [vmem:[#allocation21_spill] sm:$0xff]  ;;  %v9624_v47 = vadd.f32 %v1970_v45, %v14257_v24  ;;  %v9651_v40 = vadd.f32 %v1977_v5, %v14271_v25 }
 0x160   : > { %14246 = vst [vmem:[#allocation16_spill] sm:$0xff] %v9598_v54  ;;  %v9611_v36 = vadd.f32 %v1967_v60, %v14251_v8  ;;  %v9614_v18 = vadd.f32 %v1968_v13, %v14253_v28  ;;  %v9617_v3 = vadd.f32 %v1969_v22, %v14255_v56  ;;  %v14259_v0 = vld [vmem:[#allocation5_spill] sm:$0xff]  ;;  %v14261_v60 = vld [vmem:[#allocation6_spill] sm:$0xff]  ;;  %v14263_v13 = vld [vmem:[#allocation7_spill] sm:$0xff] }
 0x161   : > { %14248 = vst [vmem:[#allocation17_spill] sm:$0xff] %v9601_v57  ;;  %14250 = vst [vmem:[#allocation18_spill] sm:$0xff] %v9608_v11  ;;  %v9627_v30 = vadd.f32 %v1971_v50, %v14259_v0  ;;  %v9630_v20 = vadd.f32 %v1972_v55, %v14261_v60  ;;  %v9633_v61 = vadd.f32 %v1973_v19, %v14263_v13  ;;  %v5743_v22 = vld [vmem:[%s7017_s30 + $0x94] sm:$0xff]  ;;  %v5744_v2 = vld [vmem:[%s7017_s30 + $0x9c] sm:$0xff] }
 0x162   : > { %14252 = vst [vmem:[#allocation19_spill] sm:$0xff] %v9611_v36  ;;  %14254 = vst [vmem:[#allocation20_spill] sm:$0xff] %v9614_v18  ;;  %v5745_v52 = vld [vmem:[%s7017_s30 + $0xac] sm:$0xff]  ;;  %v5768_v45 = vld [vmem:[%s13780_s1 + $0x14] ss:$0 sm:$0xff] }
 0x163   : > { %14256 = vst [vmem:[#allocation21_spill] sm:$0xff] %v9617_v3  ;;  %14258 = vst [vmem:[#allocation22_spill] sm:$0xff] %v9624_v47  ;;  %v14265_v37 = vld [vmem:[#allocation8_spill] sm:$0xff]  ;;  %v14267_v63 = vld [vmem:[#allocation9_spill] sm:$0xff] }
 0x164   : > { %14260 = vst [vmem:[#allocation5_spill] sm:$0xff] %v9627_v30  ;;  %14262 = vst [vmem:[#allocation6_spill] sm:$0xff] %v9630_v20  ;;  %v9642_v50 = vadd.f32 %v1974_v51, %v14265_v37  ;;  %v9645_v12 = vadd.f32 %v1975_v9, %v14267_v63  ;;  %v14269_v33 = vld [vmem:[#allocation10_spill] sm:$0xff]  ;;  %v5746_v55 = vld [vmem:[%s7017_s30 + $0xb4] sm:$0xff]  ;;  %v2051_v37 = vmul.f32 %v5768_v45, %v5735_v16 }
 0x165   : > { %14264 = vst [vmem:[#allocation7_spill] sm:$0xff] %v9633_v61  ;;  %v9648_v58 = vadd.f32 %v1976_v39, %v14269_v33  ;;  %14272 = vst [vmem:[#allocation11_spill] sm:$0xff] %v9651_v40  ;;  %v5747_v19 = vld [vmem:[%s7017_s30 + $0xc4] sm:$0xff]  ;;  %v5748_v10 = vld [vmem:[%s7017_s30 + $0xcc] sm:$0xff]  ;;  %v2052_v63 = vmul.f32 %v5768_v45, %v5736_v23  ;;  %v2053_v33 = vmul.f32 %v5768_v45, %v5737_v14 }
 0x166   : > { %14266 = vst [vmem:[#allocation8_spill] sm:$0xff] %v9642_v50  ;;  %14268 = vst [vmem:[#allocation9_spill] sm:$0xff] %v9645_v12  ;;  %v14273_v44 = vld [vmem:[#allocation12_spill] sm:$0xff]  ;;  %v14275_v51 = vld [vmem:[#allocation13_spill] sm:$0xff]  ;;  %v2059_v16 = vmul.f32 %v5768_v45, %v5743_v22  ;;  %v2060_v23 = vmul.f32 %v5768_v45, %v5744_v2  ;;  %v2061_v14 = vmul.f32 %v5768_v45, %v5745_v52 }
 0x167   : > { %14270 = vst [vmem:[#allocation10_spill] sm:$0xff] %v9648_v58  ;;  %v9657_v42 = vadd.f32 %v1978_v38, %v14273_v44  ;;  %v9660_v8 = vadd.f32 %v1979_v27, %v14275_v51  ;;  %v14277_v9 = vld [vmem:[#allocation14_spill] sm:$0xff]  ;;  %v14279_v39 = vld [vmem:[#allocation15_spill] sm:$0xff]  ;;  %v5749_v5 = vld [vmem:[%s7017_s30 + $0xdc] sm:$0xff]  ;;  %v2054_v27 = vmul.f32 %v5768_v45, %v5738_v32  ;;  %v2055_v44 = vmul.f32 %v5768_v45, %v5739_v49 }
 0x168   : > { %v9663_v28 = vadd.f32 %v1980_v31, %v14277_v9  ;;  %v9666_v56 = vadd.f32 %v1981_v43, %v14279_v39  ;;  %v5750_v24 = vld [vmem:[%s7017_s30 + $0xe4] sm:$0xff]  ;;  %v5751_v0 = vld [vmem:[%s7017_s30 + $0xf4] sm:$0xff]  ;;  %v5752_v60 = vld [vmem:[%s7017_s30 + $0xfc] sm:$0xff]  ;;  %v2056_v51 = vmul.f32 %v5768_v45, %v5740_v15  ;;  %v2057_v9 = vmul.f32 %v5768_v45, %v5741_v48 }
 0x169   : > { %14274 = vst [vmem:[#allocation12_spill] sm:$0xff] %v9657_v42  ;;  %14276 = vst [vmem:[#allocation13_spill] sm:$0xff] %v9660_v8  ;;  %v5753_v13 = vld [vmem:[%s7017_s30 + $0x10c] sm:$0xff]  ;;  %v5754_v38 = vld [vmem:[%s7017_s30 + $0x114] sm:$0xff]  ;;  %v2058_v39 = vmul.f32 %v5768_v45, %v5742_v34  ;;  %v2062_v42 = vmul.f32 %v5768_v45, %v5746_v55  ;;  %v2063_v12 = vmul.f32 %v5768_v45, %v5747_v19 }
 0x16a   : > { %14278 = vst [vmem:[#allocation14_spill] sm:$0xff] %v9663_v28  ;;  %14280 = vst [vmem:[#allocation15_spill] sm:$0xff] %v9666_v56  ;;  %v5755_v31 = vld [vmem:[%s7017_s30 + $0x124] sm:$0xff]  ;;  %v5756_v25 = vld [vmem:[%s7017_s30 + $0x12c] sm:$0xff]  ;;  %v2064_v50 = vmul.f32 %v5768_v45, %v5748_v10  ;;  %v2065_v61 = vmul.f32 %v5768_v45, %v5749_v5  ;;  %v2066_v49 = vmul.f32 %v5768_v45, %v5750_v24 }
 0x16b   : > { %v5757_v43 = vld [vmem:[%s7017_s30 + $0x13c] sm:$0xff]  ;;  %v5758_v56 = vld [vmem:[%s7017_s30 + $0x144] sm:$0xff]  ;;  %v5759_v28 = vld [vmem:[%s7017_s30 + $0x154] sm:$0xff]  ;;  %v2067_v34 = vmul.f32 %v5768_v45, %v5751_v0  ;;  %v2068_v30 = vmul.f32 %v5768_v45, %v5752_v60  ;;  %v2069_v47 = vmul.f32 %v5768_v45, %v5753_v13  ;;  %v2070_v3 = vmul.f32 %v5768_v45, %v5754_v38 }
 0x16c   : > { %v5760_v8 = vld [vmem:[%s7017_s30 + $0x15c] sm:$0xff]  ;;  %v5761_v32 = vld [vmem:[%s7017_s30 + $0x16c] sm:$0xff]  ;;  %v5762_v40 = vld [vmem:[%s7017_s30 + $0x174] sm:$0xff]  ;;  %v2071_v18 = vmul.f32 %v5768_v45, %v5755_v31  ;;  %v2072_v36 = vmul.f32 %v5768_v45, %v5756_v25  ;;  %v2073_v22 = vmul.f32 %v5768_v45, %v5757_v43  ;;  %v2074_v2 = vmul.f32 %v5768_v45, %v5758_v56 }
 0x16d   : > { %v5763_v58 = vld [vmem:[%s7017_s30 + $0x184] sm:$0xff]  ;;  %v5764_v15 = vld [vmem:[%s7017_s30 + $0x18c] sm:$0xff]  ;;  %v5765_v48 = vld [vmem:[%s7017_s30 + $0x19c] sm:$0xff]  ;;  %v2075_v52 = vmul.f32 %v5768_v45, %v5759_v28  ;;  %v2076_v55 = vmul.f32 %v5768_v45, %v5760_v8  ;;  %v2077_v11 = vmul.f32 %v5768_v45, %v5761_v32  ;;  %v2078_v57 = vmul.f32 %v5768_v45, %v5762_v40 }
 0x16e   : > { %v5766_v20 = vld [vmem:[%s7017_s30 + $0x1a4] sm:$0xff]  ;;  %v2079_v54 = vmul.f32 %v5768_v45, %v5763_v58  ;;  %v2080_v19 = vmul.f32 %v5768_v45, %v5764_v15  ;;  %v2081_v10 = vmul.f32 %v5768_v45, %v5765_v48  ;;  %v9687_v24 = vadd.f32 %v2051_v37, %v9556_v7  ;;  %v5769_v28 = vld [vmem:[%s7017_s30 + $0x35] sm:$0xff]  ;;  %v5771_v56 = vld [vmem:[%s7017_s30 + $0x4d] sm:$0xff] }
 0x16f   : > { %v2082_v5 = vmul.f32 %v5768_v45, %v5766_v20  ;;  %v9690_v0 = vadd.f32 %v2052_v63, %v9559_v53  ;;  %v9693_v60 = vadd.f32 %v2053_v33, %v9562_v21  ;;  %v9696_v8 = vadd.f32 %v2054_v27, %v9565_v41  ;;  %v5773_v37 = vld [vmem:[%s7017_s30 + $0x65] sm:$0xff]  ;;  %v5774_v63 = vld [vmem:[%s7017_s30 + $0x6d] sm:$0xff]  ;;  %v5775_v33 = vld [vmem:[%s7017_s30 + $0x7d] sm:$0xff] }
 0x170   : > { %v9699_v58 = vadd.f32 %v2055_v44, %v9568_v6  ;;  %v9702_v20 = vadd.f32 %v2056_v51, %v9571_v29  ;;  %v9705_v7 = vadd.f32 %v2057_v9, %v9574_v26  ;;  %v9708_v53 = vadd.f32 %v2058_v39, %v9577_v62  ;;  %v5776_v27 = vld [vmem:[%s7017_s30 + $0x85] sm:$0xff]  ;;  %v5778_v39 = vld [vmem:[%s7017_s30 + $0x9d] sm:$0xff]  ;;  %v14307_v48 = vld [vmem:[#allocation11_spill] sm:$0xff] }
 0x171   : > { %v9711_v21 = vadd.f32 %v2059_v16, %v9580_v35  ;;  %v9714_v41 = vadd.f32 %v2060_v23, %v9583_v17  ;;  %v9717_v6 = vadd.f32 %v2061_v14, %v9586_v1  ;;  %v9720_v29 = vadd.f32 %v2062_v42, %v9589_v46  ;;  %v14281_v35 = vld [vmem:[#allocation16_spill] sm:$0xff]  ;;  %v14283_v17 = vld [vmem:[#allocation17_spill] sm:$0xff]  ;;  %v14285_v42 = vld [vmem:[#allocation18_spill] sm:$0xff] }
 0x172   : > { %v9723_v26 = vadd.f32 %v2063_v12, %v9592_v4  ;;  %v9726_v62 = vadd.f32 %v2064_v50, %v9595_v59  ;;  %v9729_v45 = vadd.f32 %v2065_v61, %v14281_v35  ;;  %v9732_v40 = vadd.f32 %v2066_v49, %v14283_v17  ;;  %v5770_v1 = vld [vmem:[%s7017_s30 + $0x3d] sm:$0xff]  ;;  %v5772_v46 = vld [vmem:[%s7017_s30 + $0x55] sm:$0xff]  ;;  %v14293_v31 = vld [vmem:[#allocation22_spill] sm:$0xff] }
 0x173   : > { %v9739_v13 = vadd.f32 %v2067_v34, %v14285_v42  ;;  %v14287_v4 = vld [vmem:[#allocation19_spill] sm:$0xff]  ;;  %v14289_v59 = vld [vmem:[#allocation20_spill] sm:$0xff]  ;;  %v14291_v61 = vld [vmem:[#allocation21_spill] sm:$0xff]  ;;  %v9755_v25 = vadd.f32 %v2071_v18, %v14293_v31  ;;  %v9782_v34 = vadd.f32 %v2078_v57, %v14307_v48 }
 0x174   : > { %14282 = vst [vmem:[#allocation16_spill] sm:$0xff] %v9729_v45  ;;  %14284 = vst [vmem:[#allocation17_spill] sm:$0xff] %v9732_v40  ;;  %v9742_v12 = vadd.f32 %v2068_v30, %v14287_v4  ;;  %v9745_v50 = vadd.f32 %v2069_v47, %v14289_v59  ;;  %v9748_v38 = vadd.f32 %v2070_v3, %v14291_v61  ;;  %v14295_v43 = vld [vmem:[#allocation5_spill] sm:$0xff]  ;;  %v14297_v30 = vld [vmem:[#allocation6_spill] sm:$0xff] }
 0x175   : > { %14286 = vst [vmem:[#allocation18_spill] sm:$0xff] %v9739_v13  ;;  %14294 = vst [vmem:[#allocation22_spill] sm:$0xff] %v9755_v25  ;;  %v9758_v44 = vadd.f32 %v2072_v36, %v14295_v43  ;;  %v9761_v51 = vadd.f32 %v2073_v22, %v14297_v30  ;;  %v14299_v47 = vld [vmem:[#allocation7_spill] sm:$0xff]  ;;  %v14301_v23 = vld [vmem:[#allocation8_spill] sm:$0xff] }
 0x176   : > { %14288 = vst [vmem:[#allocation19_spill] sm:$0xff] %v9742_v12  ;;  %14290 = vst [vmem:[#allocation20_spill] sm:$0xff] %v9745_v50  ;;  %v9764_v9 = vadd.f32 %v2074_v2, %v14299_v47  ;;  %v5777_v3 = vld [vmem:[%s7017_s30 + $0x95] sm:$0xff]  ;;  %v5779_v16 = vld [vmem:[%s7017_s30 + $0xad] sm:$0xff]  ;;  %v9773_v36 = vadd.f32 %v2075_v52, %v14301_v23 }
 0x177   : > { %14292 = vst [vmem:[#allocation21_spill] sm:$0xff] %v9748_v38  ;;  %14296 = vst [vmem:[#allocation5_spill] sm:$0xff] %v9758_v44  ;;  %v5802_v18 = vld [vmem:[%s13780_s1 + $0x15] ss:$0 sm:$0xff]  ;;  %v14303_v14 = vld [vmem:[#allocation9_spill] sm:$0xff] }
 0x178   : > { %14298 = vst [vmem:[#allocation6_spill] sm:$0xff] %v9761_v51  ;;  %14300 = vst [vmem:[#allocation7_spill] sm:$0xff] %v9764_v9  ;;  %v9776_v32 = vadd.f32 %v2076_v55, %v14303_v14  ;;  %v14305_v49 = vld [vmem:[#allocation10_spill] sm:$0xff]  ;;  %v5780_v22 = vld [vmem:[%s7017_s30 + $0xb5] sm:$0xff]  ;;  %v2152_v23 = vmul.f32 %v5802_v18, %v5769_v28  ;;  %v2153_v14 = vmul.f32 %v5802_v18, %v5770_v1 }
 0x179   : > { %14302 = vst [vmem:[#allocation8_spill] sm:$0xff] %v9773_v36  ;;  %v9779_v15 = vadd.f32 %v2077_v11, %v14305_v49  ;;  %14308 = vst [vmem:[#allocation11_spill] sm:$0xff] %v9782_v34  ;;  %v5781_v2 = vld [vmem:[%s7017_s30 + $0xc5] sm:$0xff]  ;;  %v5782_v35 = vld [vmem:[%s7017_s30 + $0xcd] sm:$0xff]  ;;  %v2154_v49 = vmul.f32 %v5802_v18, %v5771_v56  ;;  %v2160_v28 = vmul.f32 %v5802_v18, %v5777_v3 }
 0x17a   : > { %14304 = vst [vmem:[#allocation9_spill] sm:$0xff] %v9776_v32  ;;  %v14309_v17 = vld [vmem:[#allocation12_spill] sm:$0xff]  ;;  %v14311_v52 = vld [vmem:[#allocation13_spill] sm:$0xff]  ;;  %v14313_v55 = vld [vmem:[#allocation14_spill] sm:$0xff]  ;;  %v2161_v1 = vmul.f32 %v5802_v18, %v5778_v39  ;;  %v2162_v56 = vmul.f32 %v5802_v18, %v5779_v16  ;;  %v2164_v32 = vmul.f32 %v5802_v18, %v5781_v2  ;;  %v2165_v36 = vmul.f32 %v5802_v18, %v5782_v35 }
 0x17b   : > { %14306 = vst [vmem:[#allocation10_spill] sm:$0xff] %v9779_v15  ;;  %v9788_v42 = vadd.f32 %v2079_v54, %v14309_v17  ;;  %v9791_v4 = vadd.f32 %v2080_v19, %v14311_v52  ;;  %v9794_v59 = vadd.f32 %v2081_v10, %v14313_v55  ;;  %v14315_v11 = vld [vmem:[#allocation15_spill] sm:$0xff]  ;;  %v5783_v57 = vld [vmem:[%s7017_s30 + $0xdd] sm:$0xff]  ;;  %v5784_v31 = vld [vmem:[%s7017_s30 + $0xe5] sm:$0xff]  ;;  %v2155_v19 = vmul.f32 %v5802_v18, %v5772_v46 }
 0x17c   : > { %v9797_v61 = vadd.f32 %v2082_v5, %v14315_v11  ;;  %v5785_v43 = vld [vmem:[%s7017_s30 + $0xf5] sm:$0xff]  ;;  %v5786_v30 = vld [vmem:[%s7017_s30 + $0xfd] sm:$0xff]  ;;  %v5787_v47 = vld [vmem:[%s7017_s30 + $0x10d] sm:$0xff]  ;;  %v2156_v17 = vmul.f32 %v5802_v18, %v5773_v37  ;;  %v2157_v52 = vmul.f32 %v5802_v18, %v5774_v63  ;;  %v2158_v55 = vmul.f32 %v5802_v18, %v5775_v33 }
 0x17d   : > { %14310 = vst [vmem:[#allocation12_spill] sm:$0xff] %v9788_v42  ;;  %14312 = vst [vmem:[#allocation13_spill] sm:$0xff] %v9791_v4  ;;  %v5788_v54 = vld [vmem:[%s7017_s30 + $0x115] sm:$0xff]  ;;  %v5789_v10 = vld [vmem:[%s7017_s30 + $0x125] sm:$0xff]  ;;  %v2159_v11 = vmul.f32 %v5802_v18, %v5776_v27  ;;  %v2163_v42 = vmul.f32 %v5802_v18, %v5780_v22  ;;  %v2166_v9 = vmul.f32 %v5802_v18, %v5783_v57 }
 0x17e   : > { %14314 = vst [vmem:[#allocation14_spill] sm:$0xff] %v9794_v59  ;;  %14316 = vst [vmem:[#allocation15_spill] sm:$0xff] %v9797_v61  ;;  %v5790_v48 = vld [vmem:[%s7017_s30 + $0x12d] sm:$0xff]  ;;  %v5791_v5 = vld [vmem:[%s7017_s30 + $0x13d] sm:$0xff]  ;;  %v2167_v37 = vmul.f32 %v5802_v18, %v5784_v31  ;;  %v2168_v27 = vmul.f32 %v5802_v18, %v5785_v43  ;;  %v2169_v44 = vmul.f32 %v5802_v18, %v5786_v30 }
 0x17f   : > { %v5792_v61 = vld [vmem:[%s7017_s30 + $0x145] sm:$0xff]  ;;  %v5793_v59 = vld [vmem:[%s7017_s30 + $0x155] sm:$0xff]  ;;  %v5794_v4 = vld [vmem:[%s7017_s30 + $0x15d] sm:$0xff]  ;;  %v2170_v25 = vmul.f32 %v5802_v18, %v5787_v47  ;;  %v2171_v38 = vmul.f32 %v5802_v18, %v5788_v54  ;;  %v2172_v50 = vmul.f32 %v5802_v18, %v5789_v10  ;;  %v2173_v12 = vmul.f32 %v5802_v18, %v5790_v48 }
 0x180   : > { %v5795_v46 = vld [vmem:[%s7017_s30 + $0x16d] sm:$0xff]  ;;  %v5796_v34 = vld [vmem:[%s7017_s30 + $0x175] sm:$0xff]  ;;  %v5797_v15 = vld [vmem:[%s7017_s30 + $0x185] sm:$0xff]  ;;  %v2174_v3 = vmul.f32 %v5802_v18, %v5791_v5  ;;  %v2175_v39 = vmul.f32 %v5802_v18, %v5792_v61  ;;  %v2176_v16 = vmul.f32 %v5802_v18, %v5793_v59  ;;  %v2177_v22 = vmul.f32 %v5802_v18, %v5794_v4 }
 0x181   : > { %v5798_v63 = vld [vmem:[%s7017_s30 + $0x18d] sm:$0xff]  ;;  %v5799_v33 = vld [vmem:[%s7017_s30 + $0x19d] sm:$0xff]  ;;  %v5800_v51 = vld [vmem:[%s7017_s30 + $0x1a5] sm:$0xff]  ;;  %v2178_v13 = vmul.f32 %v5802_v18, %v5795_v46  ;;  %v2179_v40 = vmul.f32 %v5802_v18, %v5796_v34  ;;  %v2180_v45 = vmul.f32 %v5802_v18, %v5797_v15  ;;  %v9818_v31 = vadd.f32 %v2152_v23, %v9687_v24 }
 0x182   : > { %v2181_v2 = vmul.f32 %v5802_v18, %v5798_v63  ;;  %v2182_v35 = vmul.f32 %v5802_v18, %v5799_v33  ;;  %v2183_v57 = vmul.f32 %v5802_v18, %v5800_v51  ;;  %v9821_v43 = vadd.f32 %v2153_v14, %v9690_v0  ;;  %v5803_v59 = vld [vmem:[%s7017_s30 + $0x36] sm:$0xff]  ;;  %v5805_v61 = vld [vmem:[%s7017_s30 + $0x4e] sm:$0xff]  ;;  %v5807_v23 = vld [vmem:[%s7017_s30 + $0x66] sm:$0xff] }
 0x183   : > { %v9824_v30 = vadd.f32 %v2154_v49, %v9693_v60  ;;  %v9827_v4 = vadd.f32 %v2155_v19, %v9696_v8  ;;  %v9830_v15 = vadd.f32 %v2156_v17, %v9699_v58  ;;  %v9833_v51 = vadd.f32 %v2157_v52, %v9702_v20  ;;  %v5808_v14 = vld [vmem:[%s7017_s30 + $0x6e] sm:$0xff]  ;;  %v5809_v49 = vld [vmem:[%s7017_s30 + $0x7e] sm:$0xff]  ;;  %v5810_v19 = vld [vmem:[%s7017_s30 + $0x86] sm:$0xff] }
 0x184   : > { %v9836_v24 = vadd.f32 %v2158_v55, %v9705_v7  ;;  %v9839_v0 = vadd.f32 %v2159_v11, %v9708_v53  ;;  %v9842_v60 = vadd.f32 %v2160_v28, %v9711_v21  ;;  %v9845_v8 = vadd.f32 %v2161_v1, %v9714_v41  ;;  %v14317_v21 = vld [vmem:[#allocation16_spill] sm:$0xff]  ;;  %v14319_v41 = vld [vmem:[#allocation17_spill] sm:$0xff]  ;;  %v14329_v10 = vld [vmem:[#allocation22_spill] sm:$0xff] }
 0x185   : > { %v9848_v58 = vadd.f32 %v2162_v56, %v9717_v6  ;;  %v9851_v20 = vadd.f32 %v2163_v42, %v9720_v29  ;;  %v9854_v7 = vadd.f32 %v2164_v32, %v9723_v26  ;;  %v9857_v53 = vadd.f32 %v2165_v36, %v9726_v62  ;;  %v5804_v6 = vld [vmem:[%s7017_s30 + $0x3e] sm:$0xff]  ;;  %v5806_v29 = vld [vmem:[%s7017_s30 + $0x56] sm:$0xff]  ;;  %v14321_v42 = vld [vmem:[#allocation18_spill] sm:$0xff] }
 0x186   : > { %v9860_v18 = vadd.f32 %v2166_v9, %v14317_v21  ;;  %v9863_v34 = vadd.f32 %v2167_v37, %v14319_v41  ;;  %v9870_v47 = vadd.f32 %v2168_v27, %v14321_v42  ;;  %v14323_v26 = vld [vmem:[#allocation19_spill] sm:$0xff]  ;;  %v14325_v62 = vld [vmem:[#allocation20_spill] sm:$0xff]  ;;  %v14327_v9 = vld [vmem:[#allocation21_spill] sm:$0xff]  ;;  %v9886_v48 = vadd.f32 %v2172_v50, %v14329_v10 }
 0x187   : > { %v9873_v32 = vadd.f32 %v2169_v44, %v14323_v26  ;;  %v9876_v36 = vadd.f32 %v2170_v25, %v14325_v62  ;;  %v9879_v54 = vadd.f32 %v2171_v38, %v14327_v9  ;;  %v14331_v5 = vld [vmem:[#allocation5_spill] sm:$0xff]  ;;  %v14333_v44 = vld [vmem:[#allocation6_spill] sm:$0xff]  ;;  %v14335_v25 = vld [vmem:[#allocation7_spill] sm:$0xff] }
 0x188   : > { %14318 = vst [vmem:[#allocation16_spill] sm:$0xff] %v9860_v18  ;;  %14320 = vst [vmem:[#allocation17_spill] sm:$0xff] %v9863_v34  ;;  %v9889_v17 = vadd.f32 %v2173_v12, %v14331_v5  ;;  %v9892_v52 = vadd.f32 %v2174_v3, %v14333_v44  ;;  %v9895_v55 = vadd.f32 %v2175_v39, %v14335_v25  ;;  %v5811_v38 = vld [vmem:[%s7017_s30 + $0x96] sm:$0xff]  ;;  %v5812_v11 = vld [vmem:[%s7017_s30 + $0x9e] sm:$0xff] }
 0x189   : > { %14322 = vst [vmem:[#allocation18_spill] sm:$0xff] %v9870_v47  ;;  %14324 = vst [vmem:[#allocation19_spill] sm:$0xff] %v9873_v32  ;;  %v5813_v28 = vld [vmem:[%s7017_s30 + $0xae] sm:$0xff]  ;;  %v5836_v50 = vld [vmem:[%s13780_s1 + $0x16] ss:$0 sm:$0xff] }
 0x18a   : > { %14326 = vst [vmem:[#allocation20_spill] sm:$0xff] %v9876_v36  ;;  %14328 = vst [vmem:[#allocation21_spill] sm:$0xff] %v9879_v54  ;;  %v14337_v1 = vld [vmem:[#allocation8_spill] sm:$0xff]  ;;  %v14339_v56 = vld [vmem:[#allocation9_spill] sm:$0xff] }
 0x18b   : > { %14330 = vst [vmem:[#allocation22_spill] sm:$0xff] %v9886_v48  ;;  %14332 = vst [vmem:[#allocation5_spill] sm:$0xff] %v9889_v17  ;;  %v9904_v12 = vadd.f32 %v2176_v16, %v14337_v1  ;;  %v9907_v46 = vadd.f32 %v2177_v22, %v14339_v56  ;;  %v14341_v37 = vld [vmem:[#allocation10_spill] sm:$0xff]  ;;  %v14343_v33 = vld [vmem:[#allocation11_spill] sm:$0xff]  ;;  %v2253_v1 = vmul.f32 %v5836_v50, %v5803_v59 }
 0x18c   : > { %14334 = vst [vmem:[#allocation6_spill] sm:$0xff] %v9892_v52  ;;  %14336 = vst [vmem:[#allocation7_spill] sm:$0xff] %v9895_v55  ;;  %v9910_v63 = vadd.f32 %v2178_v13, %v14341_v37  ;;  %v9913_v27 = vadd.f32 %v2179_v40, %v14343_v33  ;;  %v5814_v3 = vld [vmem:[%s7017_s30 + $0xb6] sm:$0xff]  ;;  %v5815_v39 = vld [vmem:[%s7017_s30 + $0xc6] sm:$0xff]  ;;  %v2254_v56 = vmul.f32 %v5836_v50, %v5804_v6 }
 0x18d   : > { %14338 = vst [vmem:[#allocation8_spill] sm:$0xff] %v9904_v12  ;;  %14340 = vst [vmem:[#allocation9_spill] sm:$0xff] %v9907_v46  ;;  %v5816_v21 = vld [vmem:[%s7017_s30 + $0xce] sm:$0xff]  ;;  %v14345_v41 = vld [vmem:[#allocation12_spill] sm:$0xff]  ;;  %v2255_v37 = vmul.f32 %v5836_v50, %v5805_v61  ;;  %v2261_v59 = vmul.f32 %v5836_v50, %v5811_v38  ;;  %v2262_v6 = vmul.f32 %v5836_v50, %v5812_v11 }
 0x18e   : > { %14342 = vst [vmem:[#allocation10_spill] sm:$0xff] %v9910_v63  ;;  %14344 = vst [vmem:[#allocation11_spill] sm:$0xff] %v9913_v27  ;;  %v9919_v42 = vadd.f32 %v2180_v45, %v14345_v41  ;;  %v14347_v16 = vld [vmem:[#allocation13_spill] sm:$0xff]  ;;  %v14349_v22 = vld [vmem:[#allocation14_spill] sm:$0xff]  ;;  %v2257_v41 = vmul.f32 %v5836_v50, %v5807_v23  ;;  %v2263_v61 = vmul.f32 %v5836_v50, %v5813_v28 }
 0x18f   : > { %v9922_v26 = vadd.f32 %v2181_v2, %v14347_v16  ;;  %v9925_v62 = vadd.f32 %v2182_v35, %v14349_v22  ;;  %v14351_v13 = vld [vmem:[#allocation15_spill] sm:$0xff]  ;;  %v5817_v40 = vld [vmem:[%s7017_s30 + $0xde] sm:$0xff]  ;;  %v5818_v10 = vld [vmem:[%s7017_s30 + $0xe6] sm:$0xff]  ;;  %v2256_v2 = vmul.f32 %v5836_v50, %v5806_v29  ;;  %v2258_v16 = vmul.f32 %v5836_v50, %v5808_v14 }
 0x190   : > { %14346 = vst [vmem:[#allocation12_spill] sm:$0xff] %v9919_v42  ;;  %v9928_v9 = vadd.f32 %v2183_v57, %v14351_v13  ;;  %v5819_v5 = vld [vmem:[%s7017_s30 + $0xf6] sm:$0xff]  ;;  %v5820_v44 = vld [vmem:[%s7017_s30 + $0xfe] sm:$0xff]  ;;  %v5821_v25 = vld [vmem:[%s7017_s30 + $0x10e] sm:$0xff]  ;;  %v2259_v22 = vmul.f32 %v5836_v50, %v5809_v49  ;;  %v2260_v13 = vmul.f32 %v5836_v50, %v5810_v19  ;;  %v2264_v42 = vmul.f32 %v5836_v50, %v5814_v3 }
 0x191   : > { %14348 = vst [vmem:[#allocation13_spill] sm:$0xff] %v9922_v26  ;;  %14350 = vst [vmem:[#allocation14_spill] sm:$0xff] %v9925_v62  ;;  %v5822_v45 = vld [vmem:[%s7017_s30 + $0x116] sm:$0xff]  ;;  %v5823_v35 = vld [vmem:[%s7017_s30 + $0x126] sm:$0xff]  ;;  %v2265_v46 = vmul.f32 %v5836_v50, %v5815_v39  ;;  %v2266_v12 = vmul.f32 %v5836_v50, %v5816_v21  ;;  %v2267_v55 = vmul.f32 %v5836_v50, %v5817_v40 }
 0x192   : > { %14352 = vst [vmem:[#allocation15_spill] sm:$0xff] %v9928_v9  ;;  %v5824_v33 = vld [vmem:[%s7017_s30 + $0x12e] sm:$0xff]  ;;  %v5825_v57 = vld [vmem:[%s7017_s30 + $0x13e] sm:$0xff]  ;;  %v5826_v9 = vld [vmem:[%s7017_s30 + $0x146] sm:$0xff]  ;;  %v2268_v23 = vmul.f32 %v5836_v50, %v5818_v10  ;;  %v2269_v19 = vmul.f32 %v5836_v50, %v5819_v5  ;;  %v2270_v17 = vmul.f32 %v5836_v50, %v5820_v44  ;;  %v2271_v48 = vmul.f32 %v5836_v50, %v5821_v25 }
 0x193   : > { %v5827_v62 = vld [vmem:[%s7017_s30 + $0x156] sm:$0xff]  ;;  %v5828_v26 = vld [vmem:[%s7017_s30 + $0x15e] sm:$0xff]  ;;  %v5829_v29 = vld [vmem:[%s7017_s30 + $0x16e] sm:$0xff]  ;;  %v2272_v54 = vmul.f32 %v5836_v50, %v5822_v45  ;;  %v2273_v36 = vmul.f32 %v5836_v50, %v5823_v35  ;;  %v2274_v32 = vmul.f32 %v5836_v50, %v5824_v33  ;;  %v2275_v38 = vmul.f32 %v5836_v50, %v5825_v57 }
 0x194   : > { %v5830_v27 = vld [vmem:[%s7017_s30 + $0x176] sm:$0xff]  ;;  %v5831_v63 = vld [vmem:[%s7017_s30 + $0x186] sm:$0xff]  ;;  %v5832_v14 = vld [vmem:[%s7017_s30 + $0x18e] sm:$0xff]  ;;  %v2276_v11 = vmul.f32 %v5836_v50, %v5826_v9  ;;  %v2277_v28 = vmul.f32 %v5836_v50, %v5827_v62  ;;  %v2278_v3 = vmul.f32 %v5836_v50, %v5828_v26  ;;  %v2279_v47 = vmul.f32 %v5836_v50, %v5829_v29 }
 0x195   : > { %v5833_v49 = vld [vmem:[%s7017_s30 + $0x19e] sm:$0xff]  ;;  %v5834_v52 = vld [vmem:[%s7017_s30 + $0x1a6] sm:$0xff]  ;;  %v2280_v34 = vmul.f32 %v5836_v50, %v5830_v27  ;;  %v2281_v18 = vmul.f32 %v5836_v50, %v5831_v63  ;;  %v2282_v39 = vmul.f32 %v5836_v50, %v5832_v14  ;;  %v9949_v10 = vadd.f32 %v2253_v1, %v9818_v31 }
 0x196   : > { %v2283_v21 = vmul.f32 %v5836_v50, %v5833_v49  ;;  %v2284_v40 = vmul.f32 %v5836_v50, %v5834_v52  ;;  %v9952_v5 = vadd.f32 %v2254_v56, %v9821_v43  ;;  %v9955_v44 = vadd.f32 %v2255_v37, %v9824_v30  ;;  %v5837_v62 = vld [vmem:[%s7017_s30 + $0x48] sm:$0xff]  ;;  %v5839_v9 = vld [vmem:[%s7017_s30 + $0x60] sm:$0xff]  ;;  %v5841_v1 = vld [vmem:[%s7017_s30 + $0x78] sm:$0xff] }
 0x197   : > { %v9958_v26 = vadd.f32 %v2256_v2, %v9827_v4  ;;  %v9961_v63 = vadd.f32 %v2257_v41, %v9830_v15  ;;  %v9964_v52 = vadd.f32 %v2258_v16, %v9833_v51  ;;  %v9967_v31 = vadd.f32 %v2259_v22, %v9836_v24  ;;  %v5842_v56 = vld [vmem:[%s7017_s30 + $0x80] sm:$0xff]  ;;  %v5843_v37 = vld [vmem:[%s7017_s30 + $0x90] sm:$0xff]  ;;  %v5844_v2 = vld [vmem:[%s7017_s30 + $0x98] sm:$0xff] }
 0x198   : > { %v9970_v43 = vadd.f32 %v2260_v13, %v9839_v0  ;;  %v9973_v30 = vadd.f32 %v2261_v59, %v9842_v60  ;;  %v9976_v4 = vadd.f32 %v2262_v6, %v9845_v8  ;;  %v9979_v15 = vadd.f32 %v2263_v61, %v9848_v58  ;;  %v14353_v60 = vld [vmem:[#allocation16_spill] sm:$0xff]  ;;  %v14355_v8 = vld [vmem:[#allocation17_spill] sm:$0xff]  ;;  %v5838_v58 = vld [vmem:[%s7017_s30 + $0x50] sm:$0xff] }
 0x199   : > { %v9982_v51 = vadd.f32 %v2264_v42, %v9851_v20  ;;  %v9985_v24 = vadd.f32 %v2265_v46, %v9854_v7  ;;  %v9988_v0 = vadd.f32 %v2266_v12, %v9857_v53  ;;  %v9991_v50 = vadd.f32 %v2267_v55, %v14353_v60  ;;  %v5840_v20 = vld [vmem:[%s7017_s30 + $0x68] sm:$0xff]  ;;  %v14359_v7 = vld [vmem:[#allocation19_spill] sm:$0xff]  ;;  %v14361_v53 = vld [vmem:[#allocation20_spill] sm:$0xff] }
 0x19a   : > { %v9994_v27 = vadd.f32 %v2268_v23, %v14355_v8  ;;  %v14357_v42 = vld [vmem:[#allocation18_spill] sm:$0xff]  ;;  %v10004_v46 = vadd.f32 %v2270_v17, %v14359_v7  ;;  %v10007_v12 = vadd.f32 %v2271_v48, %v14361_v53  ;;  %v14363_v55 = vld [vmem:[#allocation21_spill] sm:$0xff]  ;;  %v14371_v48 = vld [vmem:[#allocation7_spill] sm:$0xff] }
 0x19b   : > { %14354 = vst [vmem:[#allocation16_spill] sm:$0xff] %v9991_v50  ;;  %v10001_v25 = vadd.f32 %v2269_v19, %v14357_v42  ;;  %v10010_v45 = vadd.f32 %v2272_v54, %v14363_v55  ;;  %v14365_v35 = vld [vmem:[#allocation22_spill] sm:$0xff]  ;;  %v14367_v57 = vld [vmem:[#allocation5_spill] sm:$0xff]  ;;  %v10026_v22 = vadd.f32 %v2276_v11, %v14371_v48  ;;  %v5846_v13 = vld [vmem:[%s7017_s30 + $0xb0] sm:$0xff] }
 0x19c   : > { %14356 = vst [vmem:[#allocation17_spill] sm:$0xff] %v9994_v27  ;;  %14360 = vst [vmem:[#allocation19_spill] sm:$0xff] %v10004_v46  ;;  %v10017_v33 = vadd.f32 %v2273_v36, %v14365_v35  ;;  %v10020_v41 = vadd.f32 %v2274_v32, %v14367_v57  ;;  %v14369_v17 = vld [vmem:[#allocation6_spill] sm:$0xff]  ;;  %v5847_v59 = vld [vmem:[%s7017_s30 + $0xc0] sm:$0xff] }
 0x19d   : > { %14358 = vst [vmem:[#allocation18_spill] sm:$0xff] %v10001_v25  ;;  %14362 = vst [vmem:[#allocation20_spill] sm:$0xff] %v10007_v12  ;;  %v10023_v16 = vadd.f32 %v2275_v38, %v14369_v17  ;;  %v5845_v54 = vld [vmem:[%s7017_s30 + $0xa8] sm:$0xff]  ;;  %v5870_v36 = vld [vmem:[%s13780_s1 + $0x18] ss:$0 sm:$0xff] }
 0x19e   : > { %14364 = vst [vmem:[#allocation21_spill] sm:$0xff] %v10010_v45  ;;  %14366 = vst [vmem:[#allocation22_spill] sm:$0xff] %v10017_v33  ;;  %v14373_v6 = vld [vmem:[#allocation8_spill] sm:$0xff]  ;;  %v14375_v61 = vld [vmem:[#allocation9_spill] sm:$0xff] }
 0x19f   : > { %14368 = vst [vmem:[#allocation5_spill] sm:$0xff] %v10020_v41  ;;  %14370 = vst [vmem:[#allocation6_spill] sm:$0xff] %v10023_v16  ;;  %v10035_v32 = vadd.f32 %v2277_v28, %v14373_v6  ;;  %v10038_v29 = vadd.f32 %v2278_v3, %v14375_v61  ;;  %v14377_v23 = vld [vmem:[#allocation10_spill] sm:$0xff]  ;;  %v14379_v49 = vld [vmem:[#allocation11_spill] sm:$0xff]  ;;  %v2358_v6 = vmul.f32 %v5870_v36, %v5837_v62 }
 0x1a0   : > { %14372 = vst [vmem:[#allocation7_spill] sm:$0xff] %v10026_v22  ;;  %v10041_v14 = vadd.f32 %v2279_v47, %v14377_v23  ;;  %v10044_v19 = vadd.f32 %v2280_v34, %v14379_v49  ;;  %v5848_v38 = vld [vmem:[%s7017_s30 + $0xc8] sm:$0xff]  ;;  %v5849_v11 = vld [vmem:[%s7017_s30 + $0xd8] sm:$0xff]  ;;  %v5850_v60 = vld [vmem:[%s7017_s30 + $0xe0] sm:$0xff]  ;;  %v2359_v61 = vmul.f32 %v5870_v36, %v5838_v58  ;;  %v2360_v23 = vmul.f32 %v5870_v36, %v5839_v9 }
 0x1a1   : > { %14374 = vst [vmem:[#allocation8_spill] sm:$0xff] %v10035_v32  ;;  %14376 = vst [vmem:[#allocation9_spill] sm:$0xff] %v10038_v29  ;;  %v14381_v8 = vld [vmem:[#allocation12_spill] sm:$0xff]  ;;  %v14383_v28 = vld [vmem:[#allocation13_spill] sm:$0xff]  ;;  %v2366_v62 = vmul.f32 %v5870_v36, %v5845_v54  ;;  %v2367_v58 = vmul.f32 %v5870_v36, %v5846_v13  ;;  %v2368_v9 = vmul.f32 %v5870_v36, %v5847_v59 }
 0x1a2   : > { %14378 = vst [vmem:[#allocation10_spill] sm:$0xff] %v10041_v14  ;;  %14380 = vst [vmem:[#allocation11_spill] sm:$0xff] %v10044_v19  ;;  %v10050_v42 = vadd.f32 %v2281_v18, %v14381_v8  ;;  %v10053_v7 = vadd.f32 %v2282_v39, %v14383_v28  ;;  %v14385_v3 = vld [vmem:[#allocation14_spill] sm:$0xff]  ;;  %v14387_v47 = vld [vmem:[#allocation15_spill] sm:$0xff]  ;;  %v2361_v39 = vmul.f32 %v5870_v36, %v5840_v20 }
 0x1a3   : > { %v10056_v53 = vadd.f32 %v2283_v21, %v14385_v3  ;;  %v10059_v55 = vadd.f32 %v2284_v40, %v14387_v47  ;;  %v5851_v34 = vld [vmem:[%s7017_s30 + $0xf0] sm:$0xff]  ;;  %v5852_v35 = vld [vmem:[%s7017_s30 + $0xf8] sm:$0xff]  ;;  %v5853_v57 = vld [vmem:[%s7017_s30 + $0x108] sm:$0xff]  ;;  %v2362_v8 = vmul.f32 %v5870_v36, %v5841_v1  ;;  %v2363_v28 = vmul.f32 %v5870_v36, %v5842_v56 }
 0x1a4   : > { %14382 = vst [vmem:[#allocation12_spill] sm:$0xff] %v10050_v42  ;;  %14384 = vst [vmem:[#allocation13_spill] sm:$0xff] %v10053_v7  ;;  %v5854_v17 = vld [vmem:[%s7017_s30 + $0x110] sm:$0xff]  ;;  %v5855_v48 = vld [vmem:[%s7017_s30 + $0x120] sm:$0xff]  ;;  %v2364_v3 = vmul.f32 %v5870_v36, %v5843_v37  ;;  %v2365_v47 = vmul.f32 %v5870_v36, %v5844_v2  ;;  %v2369_v42 = vmul.f32 %v5870_v36, %v5848_v38 }
 0x1a5   : > { %14386 = vst [vmem:[#allocation14_spill] sm:$0xff] %v10056_v53  ;;  %14388 = vst [vmem:[#allocation15_spill] sm:$0xff] %v10059_v55  ;;  %v5856_v18 = vld [vmem:[%s7017_s30 + $0x128] sm:$0xff]  ;;  %v5857_v21 = vld [vmem:[%s7017_s30 + $0x138] sm:$0xff]  ;;  %v2370_v29 = vmul.f32 %v5870_v36, %v5849_v11  ;;  %v2371_v32 = vmul.f32 %v5870_v36, %v5850_v60  ;;  %v2372_v22 = vmul.f32 %v5870_v36, %v5851_v34 }
 0x1a6   : > { %v5858_v49 = vld [vmem:[%s7017_s30 + $0x140] sm:$0xff]  ;;  %v5859_v40 = vld [vmem:[%s7017_s30 + $0x150] sm:$0xff]  ;;  %v5860_v55 = vld [vmem:[%s7017_s30 + $0x158] sm:$0xff]  ;;  %v2373_v1 = vmul.f32 %v5870_v36, %v5852_v35  ;;  %v2374_v2 = vmul.f32 %v5870_v36, %v5853_v57  ;;  %v2375_v41 = vmul.f32 %v5870_v36, %v5854_v17  ;;  %v2376_v33 = vmul.f32 %v5870_v36, %v5855_v48 }
 0x1a7   : > { %v5861_v53 = vld [vmem:[%s7017_s30 + $0x168] sm:$0xff]  ;;  %v5862_v7 = vld [vmem:[%s7017_s30 + $0x170] sm:$0xff]  ;;  %v5863_v20 = vld [vmem:[%s7017_s30 + $0x180] sm:$0xff]  ;;  %v2377_v45 = vmul.f32 %v5870_v36, %v5856_v18  ;;  %v2378_v12 = vmul.f32 %v5870_v36, %v5857_v21  ;;  %v2379_v46 = vmul.f32 %v5870_v36, %v5858_v49  ;;  %v2380_v54 = vmul.f32 %v5870_v36, %v5859_v40 }
 0x1a8   : > { %v5864_v19 = vld [vmem:[%s7017_s30 + $0x188] sm:$0xff]  ;;  %v5865_v14 = vld [vmem:[%s7017_s30 + $0x198] sm:$0xff]  ;;  %v5866_v56 = vld [vmem:[%s7017_s30 + $0x1a0] sm:$0xff]  ;;  %v2381_v13 = vmul.f32 %v5870_v36, %v5860_v55  ;;  %v2382_v59 = vmul.f32 %v5870_v36, %v5861_v53  ;;  %v2383_v38 = vmul.f32 %v5870_v36, %v5862_v7  ;;  %v2384_v25 = vmul.f32 %v5870_v36, %v5863_v20 }
 0x1a9   : > { %v5867_v37 = vld [vmem:[%s7017_s30 + $0x1b0] sm:$0xff]  ;;  %v5868_v16 = vld [vmem:[%s7017_s30 + $0x1b8] sm:$0xff]  ;;  %v2385_v27 = vmul.f32 %v5870_v36, %v5864_v19  ;;  %v2386_v50 = vmul.f32 %v5870_v36, %v5865_v14  ;;  %v2387_v11 = vmul.f32 %v5870_v36, %v5866_v56  ;;  %v10080_v35 = vadd.f32 %v2358_v6, %v9949_v10  ;;  %v5873_v55 = vld [vmem:[%s7017_s30 + $0x61] sm:$0xff] }
 0x1aa   : > { %v2388_v60 = vmul.f32 %v5870_v36, %v5867_v37  ;;  %v2389_v34 = vmul.f32 %v5870_v36, %v5868_v16  ;;  %v10083_v57 = vadd.f32 %v2359_v61, %v9952_v5  ;;  %v10086_v17 = vadd.f32 %v2360_v23, %v9955_v44  ;;  %v5871_v53 = vld [vmem:[%s7017_s30 + $0x49] sm:$0xff]  ;;  %v5875_v6 = vld [vmem:[%s7017_s30 + $0x79] sm:$0xff]  ;;  %v5876_v61 = vld [vmem:[%s7017_s30 + $0x81] sm:$0xff] }
 0x1ab   : > { %v10089_v7 = vadd.f32 %v2361_v39, %v9958_v26  ;;  %v10092_v14 = vadd.f32 %v2362_v8, %v9961_v63  ;;  %v10095_v16 = vadd.f32 %v2363_v28, %v9964_v52  ;;  %v10098_v10 = vadd.f32 %v2364_v3, %v9967_v31  ;;  %v5877_v23 = vld [vmem:[%s7017_s30 + $0x91] sm:$0xff]  ;;  %v5878_v39 = vld [vmem:[%s7017_s30 + $0x99] sm:$0xff]  ;;  %v14401_v21 = vld [vmem:[#allocation22_spill] sm:$0xff] }
 0x1ac   : > { %v10101_v5 = vadd.f32 %v2365_v47, %v9970_v43  ;;  %v10104_v44 = vadd.f32 %v2366_v62, %v9973_v30  ;;  %v10107_v26 = vadd.f32 %v2367_v58, %v9976_v4  ;;  %v10110_v63 = vadd.f32 %v2368_v9, %v9979_v15  ;;  %v14389_v30 = vld [vmem:[#allocation16_spill] sm:$0xff]  ;;  %v14391_v4 = vld [vmem:[#allocation17_spill] sm:$0xff]  ;;  %v14415_v37 = vld [vmem:[#allocation11_spill] sm:$0xff] }
 0x1ad   : > { %v10113_v52 = vadd.f32 %v2369_v42, %v9982_v51  ;;  %v10116_v31 = vadd.f32 %v2370_v29, %v9985_v24  ;;  %v10119_v43 = vadd.f32 %v2371_v32, %v9988_v0  ;;  %v10122_v36 = vadd.f32 %v2372_v22, %v14389_v30  ;;  %v5872_v15 = vld [vmem:[%s7017_s30 + $0x51] sm:$0xff]  ;;  %v5874_v51 = vld [vmem:[%s7017_s30 + $0x69] sm:$0xff]  ;;  %v14399_v22 = vld [vmem:[#allocation21_spill] sm:$0xff] }
 0x1ae   : > { %v10125_v19 = vadd.f32 %v2373_v1, %v14391_v4  ;;  %v14393_v42 = vld [vmem:[#allocation18_spill] sm:$0xff]  ;;  %v14395_v24 = vld [vmem:[#allocation19_spill] sm:$0xff]  ;;  %v14397_v0 = vld [vmem:[#allocation20_spill] sm:$0xff]  ;;  %v10141_v18 = vadd.f32 %v2377_v45, %v14399_v22  ;;  %v10148_v49 = vadd.f32 %v2378_v12, %v14401_v21 }
 0x1af   : > { %14390 = vst [vmem:[#allocation16_spill] sm:$0xff] %v10122_v36  ;;  %v10132_v48 = vadd.f32 %v2374_v2, %v14393_v42  ;;  %v10135_v29 = vadd.f32 %v2375_v41, %v14395_v24  ;;  %v10138_v32 = vadd.f32 %v2376_v33, %v14397_v0  ;;  %v14403_v40 = vld [vmem:[#allocation5_spill] sm:$0xff]  ;;  %v14405_v41 = vld [vmem:[#allocation6_spill] sm:$0xff]  ;;  %v14407_v33 = vld [vmem:[#allocation7_spill] sm:$0xff]  ;;  %v10175_v2 = vadd.f32 %v2385_v27, %v14415_v37 }
 0x1b0   : > { %14392 = vst [vmem:[#allocation17_spill] sm:$0xff] %v10125_v19  ;;  %14400 = vst [vmem:[#allocation21_spill] sm:$0xff] %v10141_v18  ;;  %v10151_v8 = vadd.f32 %v2379_v46, %v14403_v40  ;;  %v10154_v28 = vadd.f32 %v2380_v54, %v14405_v41  ;;  %v10157_v3 = vadd.f32 %v2381_v13, %v14407_v33  ;;  %v5879_v45 = vld [vmem:[%s7017_s30 + $0xa9] sm:$0xff]  ;;  %v5880_v47 = vld [vmem:[%s7017_s30 + $0xb1] sm:$0xff] }
 0x1b1   : > { %14394 = vst [vmem:[#allocation18_spill] sm:$0xff] %v10132_v48  ;;  %14396 = vst [vmem:[#allocation19_spill] sm:$0xff] %v10135_v29  ;;  %v5881_v62 = vld [vmem:[%s7017_s30 + $0xc1] sm:$0xff]  ;;  %v5904_v12 = vld [vmem:[%s13780_s1 + $0x19] ss:$0 sm:$0xff] }
 0x1b2   : > { %14398 = vst [vmem:[#allocation20_spill] sm:$0xff] %v10138_v32  ;;  %14402 = vst [vmem:[#allocation22_spill] sm:$0xff] %v10148_v49  ;;  %v14409_v58 = vld [vmem:[#allocation8_spill] sm:$0xff]  ;;  %v14411_v9 = vld [vmem:[#allocation9_spill] sm:$0xff] }
 0x1b3   : > { %14404 = vst [vmem:[#allocation5_spill] sm:$0xff] %v10151_v8  ;;  %14406 = vst [vmem:[#allocation6_spill] sm:$0xff] %v10154_v28  ;;  %v10166_v46 = vadd.f32 %v2382_v59, %v14409_v58  ;;  %v10169_v20 = vadd.f32 %v2383_v38, %v14411_v9  ;;  %v14413_v1 = vld [vmem:[#allocation10_spill] sm:$0xff]  ;;  %v5883_v13 = vld [vmem:[%s7017_s30 + $0xd9] sm:$0xff]  ;;  %v2459_v58 = vmul.f32 %v5904_v12, %v5871_v53 }
 0x1b4   : > { %14408 = vst [vmem:[#allocation7_spill] sm:$0xff] %v10157_v3  ;;  %v10172_v56 = vadd.f32 %v2384_v25, %v14413_v1  ;;  %14416 = vst [vmem:[#allocation11_spill] sm:$0xff] %v10175_v2  ;;  %v5882_v54 = vld [vmem:[%s7017_s30 + $0xc9] sm:$0xff]  ;;  %v5884_v30 = vld [vmem:[%s7017_s30 + $0xe1] sm:$0xff]  ;;  %v2460_v9 = vmul.f32 %v5904_v12, %v5872_v15  ;;  %v2461_v1 = vmul.f32 %v5904_v12, %v5873_v55 }
 0x1b5   : > { %14410 = vst [vmem:[#allocation8_spill] sm:$0xff] %v10166_v46  ;;  %14412 = vst [vmem:[#allocation9_spill] sm:$0xff] %v10169_v20  ;;  %v14417_v4 = vld [vmem:[#allocation12_spill] sm:$0xff]  ;;  %v14419_v59 = vld [vmem:[#allocation13_spill] sm:$0xff]  ;;  %v2467_v53 = vmul.f32 %v5904_v12, %v5879_v45  ;;  %v2468_v15 = vmul.f32 %v5904_v12, %v5880_v47  ;;  %v2469_v55 = vmul.f32 %v5904_v12, %v5881_v62 }
 0x1b6   : > { %14414 = vst [vmem:[#allocation10_spill] sm:$0xff] %v10172_v56  ;;  %v10181_v42 = vadd.f32 %v2386_v50, %v14417_v4  ;;  %v10184_v24 = vadd.f32 %v2387_v11, %v14419_v59  ;;  %v14421_v38 = vld [vmem:[#allocation14_spill] sm:$0xff]  ;;  %v14423_v25 = vld [vmem:[#allocation15_spill] sm:$0xff]  ;;  %v5886_v21 = vld [vmem:[%s7017_s30 + $0xf9] sm:$0xff]  ;;  %v2462_v11 = vmul.f32 %v5904_v12, %v5874_v51  ;;  %v2463_v4 = vmul.f32 %v5904_v12, %v5875_v6 }
 0x1b7   : > { %v10187_v0 = vadd.f32 %v2388_v60, %v14421_v38  ;;  %v10190_v22 = vadd.f32 %v2389_v34, %v14423_v25  ;;  %v5885_v27 = vld [vmem:[%s7017_s30 + $0xf1] sm:$0xff]  ;;  %v5887_v40 = vld [vmem:[%s7017_s30 + $0x109] sm:$0xff]  ;;  %v5889_v33 = vld [vmem:[%s7017_s30 + $0x121] sm:$0xff]  ;;  %v2464_v59 = vmul.f32 %v5904_v12, %v5876_v61  ;;  %v2465_v38 = vmul.f32 %v5904_v12, %v5877_v23 }
 0x1b8   : > { %14418 = vst [vmem:[#allocation12_spill] sm:$0xff] %v10181_v42  ;;  %14420 = vst [vmem:[#allocation13_spill] sm:$0xff] %v10184_v24  ;;  %v5888_v41 = vld [vmem:[%s7017_s30 + $0x111] sm:$0xff]  ;;  %v5890_v50 = vld [vmem:[%s7017_s30 + $0x129] sm:$0xff]  ;;  %v2466_v25 = vmul.f32 %v5904_v12, %v5878_v39  ;;  %v2470_v42 = vmul.f32 %v5904_v12, %v5882_v54  ;;  %v2471_v20 = vmul.f32 %v5904_v12, %v5883_v13 }
 0x1b9   : > { %14422 = vst [vmem:[#allocation14_spill] sm:$0xff] %v10187_v0  ;;  %14424 = vst [vmem:[#allocation15_spill] sm:$0xff] %v10190_v22  ;;  %v5891_v60 = vld [vmem:[%s7017_s30 + $0x139] sm:$0xff]  ;;  %v5892_v37 = vld [vmem:[%s7017_s30 + $0x141] sm:$0xff]  ;;  %v2472_v46 = vmul.f32 %v5904_v12, %v5884_v30  ;;  %v2473_v3 = vmul.f32 %v5904_v12, %v5885_v27  ;;  %v2474_v6 = vmul.f32 %v5904_v12, %v5886_v21 }
 0x1ba   : > { %v5893_v34 = vld [vmem:[%s7017_s30 + $0x151] sm:$0xff]  ;;  %v5894_v22 = vld [vmem:[%s7017_s30 + $0x159] sm:$0xff]  ;;  %v5895_v0 = vld [vmem:[%s7017_s30 + $0x169] sm:$0xff]  ;;  %v2475_v39 = vmul.f32 %v5904_v12, %v5887_v40  ;;  %v2476_v8 = vmul.f32 %v5904_v12, %v5888_v41  ;;  %v2477_v49 = vmul.f32 %v5904_v12, %v5889_v33  ;;  %v2478_v18 = vmul.f32 %v5904_v12, %v5890_v50 }
 0x1bb   : > { %v5896_v24 = vld [vmem:[%s7017_s30 + $0x171] sm:$0xff]  ;;  %v5897_v51 = vld [vmem:[%s7017_s30 + $0x181] sm:$0xff]  ;;  %v5898_v2 = vld [vmem:[%s7017_s30 + $0x189] sm:$0xff]  ;;  %v2479_v32 = vmul.f32 %v5904_v12, %v5891_v60  ;;  %v2480_v29 = vmul.f32 %v5904_v12, %v5892_v37  ;;  %v2481_v45 = vmul.f32 %v5904_v12, %v5893_v34  ;;  %v2482_v47 = vmul.f32 %v5904_v12, %v5894_v22 }
 0x1bc   : > { %v5899_v56 = vld [vmem:[%s7017_s30 + $0x199] sm:$0xff]  ;;  %v5900_v61 = vld [vmem:[%s7017_s30 + $0x1a1] sm:$0xff]  ;;  %v5901_v23 = vld [vmem:[%s7017_s30 + $0x1b1] sm:$0xff]  ;;  %v2483_v62 = vmul.f32 %v5904_v12, %v5895_v0  ;;  %v2484_v54 = vmul.f32 %v5904_v12, %v5896_v24  ;;  %v2485_v48 = vmul.f32 %v5904_v12, %v5897_v51  ;;  %v2486_v19 = vmul.f32 %v5904_v12, %v5898_v2 }
 0x1bd   : > { %v5902_v28 = vld [vmem:[%s7017_s30 + $0x1b9] sm:$0xff]  ;;  %v2487_v36 = vmul.f32 %v5904_v12, %v5899_v56  ;;  %v2488_v13 = vmul.f32 %v5904_v12, %v5900_v61  ;;  %v2489_v30 = vmul.f32 %v5904_v12, %v5901_v23  ;;  %v10211_v21 = vadd.f32 %v2459_v58, %v10080_v35  ;;  %v5905_v0 = vld [vmem:[%s7017_s30 + $0x4a] sm:$0xff]  ;;  %v5907_v22 = vld [vmem:[%s7017_s30 + $0x62] sm:$0xff] }
 0x1be   : > { %v2490_v27 = vmul.f32 %v5904_v12, %v5902_v28  ;;  %v10214_v40 = vadd.f32 %v2460_v9, %v10083_v57  ;;  %v10217_v41 = vadd.f32 %v2461_v1, %v10086_v17  ;;  %v10220_v24 = vadd.f32 %v2462_v11, %v10089_v7  ;;  %v5909_v58 = vld [vmem:[%s7017_s30 + $0x7a] sm:$0xff]  ;;  %v5910_v9 = vld [vmem:[%s7017_s30 + $0x82] sm:$0xff]  ;;  %v5911_v1 = vld [vmem:[%s7017_s30 + $0x92] sm:$0xff] }
 0x1bf   : > { %v10223_v56 = vadd.f32 %v2463_v4, %v10092_v14  ;;  %v10226_v28 = vadd.f32 %v2464_v59, %v10095_v16  ;;  %v10229_v35 = vadd.f32 %v2465_v38, %v10098_v10  ;;  %v10232_v57 = vadd.f32 %v2466_v25, %v10101_v5  ;;  %v5912_v11 = vld [vmem:[%s7017_s30 + $0x9a] sm:$0xff]  ;;  %v14437_v60 = vld [vmem:[#allocation22_spill] sm:$0xff]  ;;  %v5914_v25 = vld [vmem:[%s7017_s30 + $0xb2] sm:$0xff] }
 0x1c0   : > { %v10235_v17 = vadd.f32 %v2467_v53, %v10104_v44  ;;  %v10238_v7 = vadd.f32 %v2468_v15, %v10107_v26  ;;  %v10241_v14 = vadd.f32 %v2469_v55, %v10110_v63  ;;  %v10244_v16 = vadd.f32 %v2470_v42, %v10113_v52  ;;  %v14425_v44 = vld [vmem:[#allocation16_spill] sm:$0xff]  ;;  %v14427_v26 = vld [vmem:[#allocation17_spill] sm:$0xff]  ;;  %v5908_v52 = vld [vmem:[%s7017_s30 + $0x6a] sm:$0xff] }
 0x1c1   : > { %v10247_v10 = vadd.f32 %v2471_v20, %v10116_v31  ;;  %v10250_v5 = vadd.f32 %v2472_v46, %v10119_v43  ;;  %v10253_v12 = vadd.f32 %v2473_v3, %v14425_v44  ;;  %v10256_v2 = vadd.f32 %v2474_v6, %v14427_v26  ;;  %v5906_v63 = vld [vmem:[%s7017_s30 + $0x52] sm:$0xff]  ;;  %v14429_v42 = vld [vmem:[#allocation18_spill] sm:$0xff]  ;;  %v14435_v3 = vld [vmem:[#allocation21_spill] sm:$0xff] }
 0x1c2   : > { %v10263_v33 = vadd.f32 %v2475_v39, %v14429_v42  ;;  %v14431_v31 = vld [vmem:[#allocation19_spill] sm:$0xff]  ;;  %v14433_v43 = vld [vmem:[#allocation20_spill] sm:$0xff]  ;;  %v10272_v50 = vadd.f32 %v2478_v18, %v14435_v3  ;;  %v10279_v37 = vadd.f32 %v2479_v32, %v14437_v60  ;;  %v14439_v34 = vld [vmem:[#allocation5_spill] sm:$0xff] }
 0x1c3   : > { %14426 = vst [vmem:[#allocation16_spill] sm:$0xff] %v10253_v12  ;;  %14428 = vst [vmem:[#allocation17_spill] sm:$0xff] %v10256_v2  ;;  %v10266_v20 = vadd.f32 %v2476_v8, %v14431_v31  ;;  %v10269_v46 = vadd.f32 %v2477_v49, %v14433_v43  ;;  %v10282_v4 = vadd.f32 %v2480_v29, %v14439_v34  ;;  %v14441_v8 = vld [vmem:[#allocation6_spill] sm:$0xff]  ;;  %v14443_v49 = vld [vmem:[#allocation7_spill] sm:$0xff] }
 0x1c4   : > { %14430 = vst [vmem:[#allocation18_spill] sm:$0xff] %v10263_v33  ;;  %14436 = vst [vmem:[#allocation21_spill] sm:$0xff] %v10272_v50  ;;  %v10285_v59 = vadd.f32 %v2481_v45, %v14441_v8  ;;  %v10288_v38 = vadd.f32 %v2482_v47, %v14443_v49  ;;  %v5913_v18 = vld [vmem:[%s7017_s30 + $0xaa] sm:$0xff]  ;;  %v5915_v53 = vld [vmem:[%s7017_s30 + $0xc2] sm:$0xff] }
 0x1c5   : > { %14432 = vst [vmem:[#allocation19_spill] sm:$0xff] %v10266_v20  ;;  %14434 = vst [vmem:[#allocation20_spill] sm:$0xff] %v10269_v46  ;;  %v5938_v32 = vld [vmem:[%s13780_s1 + $0x1a] ss:$0 sm:$0xff]  ;;  %v14447_v55 = vld [vmem:[#allocation9_spill] sm:$0xff] }
 0x1c6   : > { %14438 = vst [vmem:[#allocation22_spill] sm:$0xff] %v10279_v37  ;;  %14440 = vst [vmem:[#allocation5_spill] sm:$0xff] %v10282_v4  ;;  %v14445_v15 = vld [vmem:[#allocation8_spill] sm:$0xff]  ;;  %v10300_v51 = vadd.f32 %v2484_v54, %v14447_v55  ;;  %v14449_v6 = vld [vmem:[#allocation10_spill] sm:$0xff]  ;;  %v2561_v55 = vmul.f32 %v5938_v32, %v5906_v63  ;;  %v2569_v63 = vmul.f32 %v5938_v32, %v5914_v25 }
 0x1c7   : > { %14442 = vst [vmem:[#allocation6_spill] sm:$0xff] %v10285_v59  ;;  %14444 = vst [vmem:[#allocation7_spill] sm:$0xff] %v10288_v38  ;;  %v10297_v29 = vadd.f32 %v2483_v62, %v14445_v15  ;;  %v10303_v61 = vadd.f32 %v2485_v48, %v14449_v6  ;;  %v14451_v23 = vld [vmem:[#allocation11_spill] sm:$0xff]  ;;  %v5917_v47 = vld [vmem:[%s7017_s30 + $0xda] sm:$0xff]  ;;  %v2560_v15 = vmul.f32 %v5938_v32, %v5905_v0 }
 0x1c8   : > { %14448 = vst [vmem:[#allocation9_spill] sm:$0xff] %v10300_v51  ;;  %v10306_v39 = vadd.f32 %v2486_v19, %v14451_v23  ;;  %v5916_v45 = vld [vmem:[%s7017_s30 + $0xca] sm:$0xff]  ;;  %v5918_v44 = vld [vmem:[%s7017_s30 + $0xe2] sm:$0xff]  ;;  %v14453_v26 = vld [vmem:[#allocation12_spill] sm:$0xff]  ;;  %v2562_v6 = vmul.f32 %v5938_v32, %v5907_v22  ;;  %v2568_v0 = vmul.f32 %v5938_v32, %v5913_v18  ;;  %v2570_v22 = vmul.f32 %v5938_v32, %v5915_v53 }
 0x1c9   : > { %14446 = vst [vmem:[#allocation8_spill] sm:$0xff] %v10297_v29  ;;  %14450 = vst [vmem:[#allocation10_spill] sm:$0xff] %v10303_v61  ;;  %v10312_v42 = vadd.f32 %v2487_v36, %v14453_v26  ;;  %v14455_v62 = vld [vmem:[#allocation13_spill] sm:$0xff]  ;;  %v14457_v54 = vld [vmem:[#allocation14_spill] sm:$0xff]  ;;  %v2564_v26 = vmul.f32 %v5938_v32, %v5909_v58  ;;  %v2572_v51 = vmul.f32 %v5938_v32, %v5917_v47 }
 0x1ca   : > { %14452 = vst [vmem:[#allocation11_spill] sm:$0xff] %v10306_v39  ;;  %v10315_v31 = vadd.f32 %v2488_v13, %v14455_v62  ;;  %v10318_v43 = vadd.f32 %v2489_v30, %v14457_v54  ;;  %v14459_v48 = vld [vmem:[#allocation15_spill] sm:$0xff]  ;;  %v5920_v60 = vld [vmem:[%s7017_s30 + $0xfa] sm:$0xff]  ;;  %v5923_v49 = vld [vmem:[%s7017_s30 + $0x122] sm:$0xff]  ;;  %v2563_v13 = vmul.f32 %v5938_v32, %v5908_v52  ;;  %v2565_v62 = vmul.f32 %v5938_v32, %v5910_v9 }
 0x1cb   : > { %14454 = vst [vmem:[#allocation12_spill] sm:$0xff] %v10312_v42  ;;  %v10321_v3 = vadd.f32 %v2490_v27, %v14459_v48  ;;  %v5919_v19 = vld [vmem:[%s7017_s30 + $0xf2] sm:$0xff]  ;;  %v5921_v34 = vld [vmem:[%s7017_s30 + $0x10a] sm:$0xff]  ;;  %v5925_v30 = vld [vmem:[%s7017_s30 + $0x13a] sm:$0xff]  ;;  %v2566_v54 = vmul.f32 %v5938_v32, %v5911_v1  ;;  %v2567_v48 = vmul.f32 %v5938_v32, %v5912_v11  ;;  %v2571_v42 = vmul.f32 %v5938_v32, %v5916_v45 }
 0x1cc   : > { %14456 = vst [vmem:[#allocation13_spill] sm:$0xff] %v10315_v31  ;;  %14458 = vst [vmem:[#allocation14_spill] sm:$0xff] %v10318_v43  ;;  %v5922_v8 = vld [vmem:[%s7017_s30 + $0x112] sm:$0xff]  ;;  %v5924_v36 = vld [vmem:[%s7017_s30 + $0x12a] sm:$0xff]  ;;  %v2573_v29 = vmul.f32 %v5938_v32, %v5918_v44  ;;  %v2574_v38 = vmul.f32 %v5938_v32, %v5919_v19  ;;  %v2575_v58 = vmul.f32 %v5938_v32, %v5920_v60 }
 0x1cd   : > { %14460 = vst [vmem:[#allocation15_spill] sm:$0xff] %v10321_v3  ;;  %v5926_v23 = vld [vmem:[%s7017_s30 + $0x142] sm:$0xff]  ;;  %v5927_v27 = vld [vmem:[%s7017_s30 + $0x152] sm:$0xff]  ;;  %v5928_v3 = vld [vmem:[%s7017_s30 + $0x15a] sm:$0xff]  ;;  %v2576_v11 = vmul.f32 %v5938_v32, %v5921_v34  ;;  %v2577_v4 = vmul.f32 %v5938_v32, %v5922_v8  ;;  %v2578_v37 = vmul.f32 %v5938_v32, %v5923_v49  ;;  %v2579_v50 = vmul.f32 %v5938_v32, %v5924_v36 }
 0x1ce   : > { %v5929_v43 = vld [vmem:[%s7017_s30 + $0x16a] sm:$0xff]  ;;  %v5930_v31 = vld [vmem:[%s7017_s30 + $0x172] sm:$0xff]  ;;  %v5931_v52 = vld [vmem:[%s7017_s30 + $0x182] sm:$0xff]  ;;  %v2580_v46 = vmul.f32 %v5938_v32, %v5925_v30  ;;  %v2581_v20 = vmul.f32 %v5938_v32, %v5926_v23  ;;  %v2582_v18 = vmul.f32 %v5938_v32, %v5927_v27  ;;  %v2583_v25 = vmul.f32 %v5938_v32, %v5928_v3 }
 0x1cf   : > { %v5932_v39 = vld [vmem:[%s7017_s30 + $0x18a] sm:$0xff]  ;;  %v5933_v61 = vld [vmem:[%s7017_s30 + $0x19a] sm:$0xff]  ;;  %v5934_v9 = vld [vmem:[%s7017_s30 + $0x1a2] sm:$0xff]  ;;  %v2584_v53 = vmul.f32 %v5938_v32, %v5929_v43  ;;  %v2585_v45 = vmul.f32 %v5938_v32, %v5930_v31  ;;  %v2586_v33 = vmul.f32 %v5938_v32, %v5931_v52  ;;  %v10342_v60 = vadd.f32 %v2560_v15, %v10211_v21 }
 0x1d0   : > { %v5935_v1 = vld [vmem:[%s7017_s30 + $0x1b2] sm:$0xff]  ;;  %v5936_v59 = vld [vmem:[%s7017_s30 + $0x1ba] sm:$0xff]  ;;  %v2587_v2 = vmul.f32 %v5938_v32, %v5932_v39  ;;  %v2588_v12 = vmul.f32 %v5938_v32, %v5933_v61  ;;  %v2589_v47 = vmul.f32 %v5938_v32, %v5934_v9  ;;  %v10345_v34 = vadd.f32 %v2561_v55, %v10214_v40  ;;  %v5941_v3 = vld [vmem:[%s7017_s30 + $0x63] sm:$0xff] }
 0x1d1   : > { %v2590_v44 = vmul.f32 %v5938_v32, %v5935_v1  ;;  %v2591_v19 = vmul.f32 %v5938_v32, %v5936_v59  ;;  %v10348_v8 = vadd.f32 %v2562_v6, %v10217_v41  ;;  %v10351_v31 = vadd.f32 %v2563_v13, %v10220_v24  ;;  %v5939_v43 = vld [vmem:[%s7017_s30 + $0x4b] sm:$0xff]  ;;  %v5943_v15 = vld [vmem:[%s7017_s30 + $0x7b] sm:$0xff]  ;;  %v5944_v55 = vld [vmem:[%s7017_s30 + $0x83] sm:$0xff] }
 0x1d2   : > { %v10354_v61 = vadd.f32 %v2564_v26, %v10223_v56  ;;  %v10357_v59 = vadd.f32 %v2565_v62, %v10226_v28  ;;  %v10360_v21 = vadd.f32 %v2566_v54, %v10229_v35  ;;  %v10363_v40 = vadd.f32 %v2567_v48, %v10232_v57  ;;  %v5945_v6 = vld [vmem:[%s7017_s30 + $0x93] sm:$0xff]  ;;  %v5946_v13 = vld [vmem:[%s7017_s30 + $0x9b] sm:$0xff]  ;;  %v14473_v30 = vld [vmem:[#allocation22_spill] sm:$0xff] }
 0x1d3   : > { %v10366_v41 = vadd.f32 %v2568_v0, %v10235_v17  ;;  %v10369_v24 = vadd.f32 %v2569_v63, %v10238_v7  ;;  %v10372_v56 = vadd.f32 %v2570_v22, %v10241_v14  ;;  %v10375_v28 = vadd.f32 %v2571_v42, %v10244_v16  ;;  %v14461_v17 = vld [vmem:[#allocation16_spill] sm:$0xff]  ;;  %v14463_v7 = vld [vmem:[#allocation17_spill] sm:$0xff]  ;;  %v5942_v16 = vld [vmem:[%s7017_s30 + $0x6b] sm:$0xff] }
 0x1d4   : > { %v10378_v35 = vadd.f32 %v2572_v51, %v10247_v10  ;;  %v10381_v57 = vadd.f32 %v2573_v29, %v10250_v5  ;;  %v10384_v32 = vadd.f32 %v2574_v38, %v14461_v17  ;;  %v10387_v39 = vadd.f32 %v2575_v58, %v14463_v7  ;;  %v5940_v14 = vld [vmem:[%s7017_s30 + $0x53] sm:$0xff]  ;;  %v14465_v42 = vld [vmem:[#allocation18_spill] sm:$0xff]  ;;  %v14471_v38 = vld [vmem:[#allocation21_spill] sm:$0xff] }
 0x1d5   : > { %v10394_v49 = vadd.f32 %v2576_v11, %v14465_v42  ;;  %v14467_v10 = vld [vmem:[#allocation19_spill] sm:$0xff]  ;;  %v14469_v5 = vld [vmem:[#allocation20_spill] sm:$0xff]  ;;  %v10403_v36 = vadd.f32 %v2579_v50, %v14471_v38  ;;  %v10410_v23 = vadd.f32 %v2580_v46, %v14473_v30  ;;  %v14475_v27 = vld [vmem:[#allocation5_spill] sm:$0xff] }
 0x1d6   : > { %14462 = vst [vmem:[#allocation16_spill] sm:$0xff] %v10384_v32  ;;  %14464 = vst [vmem:[#allocation17_spill] sm:$0xff] %v10387_v39  ;;  %v10397_v51 = vadd.f32 %v2577_v4, %v14467_v10  ;;  %v10400_v29 = vadd.f32 %v2578_v37, %v14469_v5  ;;  %v10413_v26 = vadd.f32 %v2581_v20, %v14475_v27  ;;  %v14477_v4 = vld [vmem:[#allocation6_spill] sm:$0xff]  ;;  %v14479_v37 = vld [vmem:[#allocation7_spill] sm:$0xff] }
 0x1d7   : > { %14466 = vst [vmem:[#allocation18_spill] sm:$0xff] %v10394_v49  ;;  %14472 = vst [vmem:[#allocation21_spill] sm:$0xff] %v10403_v36  ;;  %v10416_v62 = vadd.f32 %v2582_v18, %v14477_v4  ;;  %v10419_v54 = vadd.f32 %v2583_v25, %v14479_v37  ;;  %v5947_v50 = vld [vmem:[%s7017_s30 + $0xab] sm:$0xff]  ;;  %v5948_v48 = vld [vmem:[%s7017_s30 + $0xb3] sm:$0xff] }
 0x1d8   : > { %14468 = vst [vmem:[#allocation19_spill] sm:$0xff] %v10397_v51  ;;  %14470 = vst [vmem:[#allocation20_spill] sm:$0xff] %v10400_v29  ;;  %v5949_v0 = vld [vmem:[%s7017_s30 + $0xc3] sm:$0xff]  ;;  %v5972_v46 = vld [vmem:[%s13780_s1 + $0x1b] ss:$0 sm:$0xff] }
 0x1d9   : > { %14474 = vst [vmem:[#allocation22_spill] sm:$0xff] %v10410_v23  ;;  %14476 = vst [vmem:[#allocation5_spill] sm:$0xff] %v10413_v26  ;;  %v14481_v63 = vld [vmem:[#allocation8_spill] sm:$0xff]  ;;  %v14483_v22 = vld [vmem:[#allocation9_spill] sm:$0xff] }
 0x1da   : > { %14478 = vst [vmem:[#allocation6_spill] sm:$0xff] %v10416_v62  ;;  %14480 = vst [vmem:[#allocation7_spill] sm:$0xff] %v10419_v54  ;;  %v10428_v20 = vadd.f32 %v2584_v53, %v14481_v63  ;;  %v10431_v52 = vadd.f32 %v2585_v45, %v14483_v22  ;;  %v14485_v58 = vld [vmem:[#allocation10_spill] sm:$0xff]  ;;  %v14487_v1 = vld [vmem:[#allocation11_spill] sm:$0xff]  ;;  %v2661_v63 = vmul.f32 %v5972_v46, %v5939_v43 }
 0x1db   : > { %v10434_v9 = vadd.f32 %v2586_v33, %v14485_v58  ;;  %v10437_v11 = vadd.f32 %v2587_v2, %v14487_v1  ;;  %v5950_v18 = vld [vmem:[%s7017_s30 + $0xcb] sm:$0xff]  ;;  %v5951_v25 = vld [vmem:[%s7017_s30 + $0xdb] sm:$0xff]  ;;  %v5952_v17 = vld [vmem:[%s7017_s30 + $0xe3] sm:$0xff]  ;;  %v2662_v22 = vmul.f32 %v5972_v46, %v5940_v14  ;;  %v2663_v58 = vmul.f32 %v5972_v46, %v5941_v3 }
 0x1dc   : > { %14482 = vst [vmem:[#allocation8_spill] sm:$0xff] %v10428_v20  ;;  %14484 = vst [vmem:[#allocation9_spill] sm:$0xff] %v10431_v52  ;;  %v14489_v7 = vld [vmem:[#allocation12_spill] sm:$0xff]  ;;  %v14491_v53 = vld [vmem:[#allocation13_spill] sm:$0xff]  ;;  %v2669_v43 = vmul.f32 %v5972_v46, %v5947_v50  ;;  %v2670_v14 = vmul.f32 %v5972_v46, %v5948_v48  ;;  %v2671_v3 = vmul.f32 %v5972_v46, %v5949_v0 }
 0x1dd   : > { %14486 = vst [vmem:[#allocation10_spill] sm:$0xff] %v10434_v9  ;;  %14488 = vst [vmem:[#allocation11_spill] sm:$0xff] %v10437_v11  ;;  %v10443_v42 = vadd.f32 %v2588_v12, %v14489_v7  ;;  %v10446_v10 = vadd.f32 %v2589_v47, %v14491_v53  ;;  %v14493_v45 = vld [vmem:[#allocation14_spill] sm:$0xff]  ;;  %v14495_v33 = vld [vmem:[#allocation15_spill] sm:$0xff]  ;;  %v2664_v47 = vmul.f32 %v5972_v46, %v5942_v16 }
 0x1de   : > { %v10449_v5 = vadd.f32 %v2590_v44, %v14493_v45  ;;  %v10452_v38 = vadd.f32 %v2591_v19, %v14495_v33  ;;  %v5953_v2 = vld [vmem:[%s7017_s30 + $0xf3] sm:$0xff]  ;;  %v5954_v30 = vld [vmem:[%s7017_s30 + $0xfb] sm:$0xff]  ;;  %v5955_v27 = vld [vmem:[%s7017_s30 + $0x10b] sm:$0xff]  ;;  %v2665_v7 = vmul.f32 %v5972_v46, %v5943_v15  ;;  %v2666_v53 = vmul.f32 %v5972_v46, %v5944_v55 }
 0x1df   : > { %14490 = vst [vmem:[#allocation12_spill] sm:$0xff] %v10443_v42  ;;  %14492 = vst [vmem:[#allocation13_spill] sm:$0xff] %v10446_v10  ;;  %v5956_v4 = vld [vmem:[%s7017_s30 + $0x113] sm:$0xff]  ;;  %v5957_v37 = vld [vmem:[%s7017_s30 + $0x123] sm:$0xff]  ;;  %v2667_v45 = vmul.f32 %v5972_v46, %v5945_v6  ;;  %v2668_v33 = vmul.f32 %v5972_v46, %v5946_v13  ;;  %v2672_v42 = vmul.f32 %v5972_v46, %v5950_v18 }
 0x1e0   : > { %14494 = vst [vmem:[#allocation14_spill] sm:$0xff] %v10449_v5  ;;  %14496 = vst [vmem:[#allocation15_spill] sm:$0xff] %v10452_v38  ;;  %v5958_v12 = vld [vmem:[%s7017_s30 + $0x12b] sm:$0xff]  ;;  %v5959_v44 = vld [vmem:[%s7017_s30 + $0x13b] sm:$0xff]  ;;  %v2673_v52 = vmul.f32 %v5972_v46, %v5951_v25  ;;  %v2674_v20 = vmul.f32 %v5972_v46, %v5952_v17  ;;  %v2675_v54 = vmul.f32 %v5972_v46, %v5953_v2 }
 0x1e1   : > { %v5960_v1 = vld [vmem:[%s7017_s30 + $0x143] sm:$0xff]  ;;  %v5961_v19 = vld [vmem:[%s7017_s30 + $0x153] sm:$0xff]  ;;  %v5962_v38 = vld [vmem:[%s7017_s30 + $0x15b] sm:$0xff]  ;;  %v2676_v15 = vmul.f32 %v5972_v46, %v5954_v30  ;;  %v2677_v13 = vmul.f32 %v5972_v46, %v5955_v27  ;;  %v2678_v26 = vmul.f32 %v5972_v46, %v5956_v4  ;;  %v2679_v23 = vmul.f32 %v5972_v46, %v5957_v37 }
 0x1e2   : > { %v5963_v5 = vld [vmem:[%s7017_s30 + $0x16b] sm:$0xff]  ;;  %v5964_v10 = vld [vmem:[%s7017_s30 + $0x173] sm:$0xff]  ;;  %v5965_v16 = vld [vmem:[%s7017_s30 + $0x183] sm:$0xff]  ;;  %v2680_v36 = vmul.f32 %v5972_v46, %v5958_v12  ;;  %v2681_v29 = vmul.f32 %v5972_v46, %v5959_v44  ;;  %v2682_v51 = vmul.f32 %v5972_v46, %v5960_v1  ;;  %v2683_v50 = vmul.f32 %v5972_v46, %v5961_v19 }
 0x1e3   : > { %v5966_v11 = vld [vmem:[%s7017_s30 + $0x18b] sm:$0xff]  ;;  %v5967_v9 = vld [vmem:[%s7017_s30 + $0x19b] sm:$0xff]  ;;  %v5968_v55 = vld [vmem:[%s7017_s30 + $0x1a3] sm:$0xff]  ;;  %v2684_v48 = vmul.f32 %v5972_v46, %v5962_v38  ;;  %v2685_v0 = vmul.f32 %v5972_v46, %v5963_v5  ;;  %v2686_v18 = vmul.f32 %v5972_v46, %v5964_v10  ;;  %v2687_v49 = vmul.f32 %v5972_v46, %v5965_v16 }
 0x1e4   : > { %v5969_v6 = vld [vmem:[%s7017_s30 + $0x1b3] sm:$0xff]  ;;  %v5970_v62 = vld [vmem:[%s7017_s30 + $0x1bb] sm:$0xff]  ;;  %v2688_v39 = vmul.f32 %v5972_v46, %v5966_v11  ;;  %v2689_v32 = vmul.f32 %v5972_v46, %v5967_v9  ;;  %v2690_v25 = vmul.f32 %v5972_v46, %v5968_v55  ;;  %v10473_v30 = vadd.f32 %v2661_v63, %v10342_v60  ;;  %v5975_v38 = vld [vmem:[%s7017_s30 + $0x64] sm:$0xff] }
 0x1e5   : > { %v2691_v17 = vmul.f32 %v5972_v46, %v5969_v6  ;;  %v2692_v2 = vmul.f32 %v5972_v46, %v5970_v62  ;;  %v10476_v27 = vadd.f32 %v2662_v22, %v10345_v34  ;;  %v10479_v4 = vadd.f32 %v2663_v58, %v10348_v8  ;;  %v5973_v5 = vld [vmem:[%s7017_s30 + $0x4c] sm:$0xff]  ;;  %v5977_v63 = vld [vmem:[%s7017_s30 + $0x7c] sm:$0xff]  ;;  %v5978_v22 = vld [vmem:[%s7017_s30 + $0x84] sm:$0xff] }
 0x1e6   : > { %v10482_v10 = vadd.f32 %v2664_v47, %v10351_v31  ;;  %v10485_v9 = vadd.f32 %v2665_v7, %v10354_v61  ;;  %v10488_v62 = vadd.f32 %v2666_v53, %v10357_v59  ;;  %v10491_v60 = vadd.f32 %v2667_v45, %v10360_v21  ;;  %v5979_v58 = vld [vmem:[%s7017_s30 + $0x94] sm:$0xff]  ;;  %v5980_v47 = vld [vmem:[%s7017_s30 + $0x9c] sm:$0xff]  ;;  %v14509_v44 = vld [vmem:[#allocation22_spill] sm:$0xff] }
 0x1e7   : > { %v10494_v34 = vadd.f32 %v2668_v33, %v10363_v40  ;;  %v10497_v8 = vadd.f32 %v2669_v43, %v10366_v41  ;;  %v10500_v31 = vadd.f32 %v2670_v14, %v10369_v24  ;;  %v10503_v61 = vadd.f32 %v2671_v3, %v10372_v56  ;;  %v14497_v41 = vld [vmem:[#allocation16_spill] sm:$0xff]  ;;  %v14499_v24 = vld [vmem:[#allocation17_spill] sm:$0xff]  ;;  %v14523_v6 = vld [vmem:[#allocation11_spill] sm:$0xff] }
 0x1e8   : > { %v10506_v59 = vadd.f32 %v2672_v42, %v10375_v28  ;;  %v10509_v21 = vadd.f32 %v2673_v52, %v10378_v35  ;;  %v10512_v40 = vadd.f32 %v2674_v20, %v10381_v57  ;;  %v10515_v46 = vadd.f32 %v2675_v54, %v14497_v41  ;;  %v5974_v56 = vld [vmem:[%s7017_s30 + $0x54] sm:$0xff]  ;;  %v5976_v28 = vld [vmem:[%s7017_s30 + $0x6c] sm:$0xff]  ;;  %v14507_v54 = vld [vmem:[#allocation21_spill] sm:$0xff] }
 0x1e9   : > { %v10518_v11 = vadd.f32 %v2676_v15, %v14499_v24  ;;  %v14501_v42 = vld [vmem:[#allocation18_spill] sm:$0xff]  ;;  %v14503_v35 = vld [vmem:[#allocation19_spill] sm:$0xff]  ;;  %v14505_v57 = vld [vmem:[#allocation20_spill] sm:$0xff]  ;;  %v10534_v12 = vadd.f32 %v2680_v36, %v14507_v54  ;;  %v10541_v1 = vadd.f32 %v2681_v29, %v14509_v44 }
 0x1ea   : > { %14498 = vst [vmem:[#allocation16_spill] sm:$0xff] %v10515_v46  ;;  %v10525_v37 = vadd.f32 %v2677_v13, %v14501_v42  ;;  %v10528_v52 = vadd.f32 %v2678_v26, %v14503_v35  ;;  %v10531_v20 = vadd.f32 %v2679_v23, %v14505_v57  ;;  %v14511_v19 = vld [vmem:[#allocation5_spill] sm:$0xff]  ;;  %v14513_v26 = vld [vmem:[#allocation6_spill] sm:$0xff]  ;;  %v14515_v23 = vld [vmem:[#allocation7_spill] sm:$0xff]  ;;  %v10568_v13 = vadd.f32 %v2688_v39, %v14523_v6 }
 0x1eb   : > { %14500 = vst [vmem:[#allocation17_spill] sm:$0xff] %v10518_v11  ;;  %14508 = vst [vmem:[#allocation21_spill] sm:$0xff] %v10534_v12  ;;  %v10544_v7 = vadd.f32 %v2682_v51, %v14511_v19  ;;  %v10547_v53 = vadd.f32 %v2683_v50, %v14513_v26  ;;  %v10550_v45 = vadd.f32 %v2684_v48, %v14515_v23  ;;  %v5981_v36 = vld [vmem:[%s7017_s30 + $0xac] sm:$0xff]  ;;  %v5982_v33 = vld [vmem:[%s7017_s30 + $0xb4] sm:$0xff] }
 0x1ec   : > { %14502 = vst [vmem:[#allocation18_spill] sm:$0xff] %v10525_v37  ;;  %14504 = vst [vmem:[#allocation19_spill] sm:$0xff] %v10528_v52  ;;  %v5983_v43 = vld [vmem:[%s7017_s30 + $0xc4] sm:$0xff]  ;;  %v6006_v29 = vld [vmem:[%s13780_s1 + $0x1c] ss:$0 sm:$0xff] }
 0x1ed   : > { %14506 = vst [vmem:[#allocation20_spill] sm:$0xff] %v10531_v20  ;;  %14510 = vst [vmem:[#allocation22_spill] sm:$0xff] %v10541_v1  ;;  %v14517_v14 = vld [vmem:[#allocation8_spill] sm:$0xff]  ;;  %v14519_v3 = vld [vmem:[#allocation9_spill] sm:$0xff] }
 0x1ee   : > { %14512 = vst [vmem:[#allocation5_spill] sm:$0xff] %v10544_v7  ;;  %14514 = vst [vmem:[#allocation6_spill] sm:$0xff] %v10547_v53  ;;  %v10559_v51 = vadd.f32 %v2685_v0, %v14517_v14  ;;  %v10562_v16 = vadd.f32 %v2686_v18, %v14519_v3  ;;  %v14521_v15 = vld [vmem:[#allocation10_spill] sm:$0xff]  ;;  %v5985_v48 = vld [vmem:[%s7017_s30 + $0xdc] sm:$0xff]  ;;  %v2762_v14 = vmul.f32 %v6006_v29, %v5973_v5 }
 0x1ef   : > { %14516 = vst [vmem:[#allocation7_spill] sm:$0xff] %v10550_v45  ;;  %v10565_v55 = vadd.f32 %v2687_v49, %v14521_v15  ;;  %14524 = vst [vmem:[#allocation11_spill] sm:$0xff] %v10568_v13  ;;  %v5984_v50 = vld [vmem:[%s7017_s30 + $0xcc] sm:$0xff]  ;;  %v5986_v41 = vld [vmem:[%s7017_s30 + $0xe4] sm:$0xff]  ;;  %v2763_v3 = vmul.f32 %v6006_v29, %v5974_v56  ;;  %v2764_v15 = vmul.f32 %v6006_v29, %v5975_v38 }
 0x1f0   : > { %14518 = vst [vmem:[#allocation8_spill] sm:$0xff] %v10559_v51  ;;  %14520 = vst [vmem:[#allocation9_spill] sm:$0xff] %v10562_v16  ;;  %v14525_v24 = vld [vmem:[#allocation12_spill] sm:$0xff]  ;;  %v14527_v0 = vld [vmem:[#allocation13_spill] sm:$0xff]  ;;  %v2770_v5 = vmul.f32 %v6006_v29, %v5981_v36  ;;  %v2771_v56 = vmul.f32 %v6006_v29, %v5982_v33  ;;  %v2772_v38 = vmul.f32 %v6006_v29, %v5983_v43 }
 0x1f1   : > { %14522 = vst [vmem:[#allocation10_spill] sm:$0xff] %v10565_v55  ;;  %v10574_v42 = vadd.f32 %v2689_v32, %v14525_v24  ;;  %v10577_v35 = vadd.f32 %v2690_v25, %v14527_v0  ;;  %v14529_v18 = vld [vmem:[#allocation14_spill] sm:$0xff]  ;;  %v14531_v49 = vld [vmem:[#allocation15_spill] sm:$0xff]  ;;  %v5988_v44 = vld [vmem:[%s7017_s30 + $0xfc] sm:$0xff]  ;;  %v2765_v25 = vmul.f32 %v6006_v29, %v5976_v28  ;;  %v2766_v24 = vmul.f32 %v6006_v29, %v5977_v63 }
 0x1f2   : > { %v10580_v57 = vadd.f32 %v2691_v17, %v14529_v18  ;;  %v10583_v54 = vadd.f32 %v2692_v2, %v14531_v49  ;;  %v5987_v39 = vld [vmem:[%s7017_s30 + $0xf4] sm:$0xff]  ;;  %v5989_v19 = vld [vmem:[%s7017_s30 + $0x10c] sm:$0xff]  ;;  %v5991_v23 = vld [vmem:[%s7017_s30 + $0x124] sm:$0xff]  ;;  %v2767_v0 = vmul.f32 %v6006_v29, %v5978_v22  ;;  %v2768_v18 = vmul.f32 %v6006_v29, %v5979_v58 }
 0x1f3   : > { %14526 = vst [vmem:[#allocation12_spill] sm:$0xff] %v10574_v42  ;;  %14528 = vst [vmem:[#allocation13_spill] sm:$0xff] %v10577_v35  ;;  %v5990_v26 = vld [vmem:[%s7017_s30 + $0x114] sm:$0xff]  ;;  %v5992_v32 = vld [vmem:[%s7017_s30 + $0x12c] sm:$0xff]  ;;  %v2769_v49 = vmul.f32 %v6006_v29, %v5980_v47  ;;  %v2773_v42 = vmul.f32 %v6006_v29, %v5984_v50  ;;  %v2774_v16 = vmul.f32 %v6006_v29, %v5985_v48 }
 0x1f4   : > { %14530 = vst [vmem:[#allocation14_spill] sm:$0xff] %v10580_v57  ;;  %14532 = vst [vmem:[#allocation15_spill] sm:$0xff] %v10583_v54  ;;  %v5993_v17 = vld [vmem:[%s7017_s30 + $0x13c] sm:$0xff]  ;;  %v5994_v6 = vld [vmem:[%s7017_s30 + $0x144] sm:$0xff]  ;;  %v2775_v51 = vmul.f32 %v6006_v29, %v5986_v41  ;;  %v2776_v45 = vmul.f32 %v6006_v29, %v5987_v39  ;;  %v2777_v63 = vmul.f32 %v6006_v29, %v5988_v44 }
 0x1f5   : > { %v5995_v2 = vld [vmem:[%s7017_s30 + $0x154] sm:$0xff]  ;;  %v5996_v54 = vld [vmem:[%s7017_s30 + $0x15c] sm:$0xff]  ;;  %v5997_v57 = vld [vmem:[%s7017_s30 + $0x16c] sm:$0xff]  ;;  %v2778_v47 = vmul.f32 %v6006_v29, %v5989_v19  ;;  %v2779_v7 = vmul.f32 %v6006_v29, %v5990_v26  ;;  %v2780_v1 = vmul.f32 %v6006_v29, %v5991_v23  ;;  %v2781_v12 = vmul.f32 %v6006_v29, %v5992_v32 }
 0x1f6   : > { %v5998_v35 = vld [vmem:[%s7017_s30 + $0x174] sm:$0xff]  ;;  %v5999_v28 = vld [vmem:[%s7017_s30 + $0x184] sm:$0xff]  ;;  %v6000_v13 = vld [vmem:[%s7017_s30 + $0x18c] sm:$0xff]  ;;  %v2782_v20 = vmul.f32 %v6006_v29, %v5993_v17  ;;  %v2783_v52 = vmul.f32 %v6006_v29, %v5994_v6  ;;  %v2784_v36 = vmul.f32 %v6006_v29, %v5995_v2  ;;  %v2785_v33 = vmul.f32 %v6006_v29, %v5996_v54 }
 0x1f7   : > { %v6001_v55 = vld [vmem:[%s7017_s30 + $0x19c] sm:$0xff]  ;;  %v6002_v22 = vld [vmem:[%s7017_s30 + $0x1a4] sm:$0xff]  ;;  %v6003_v58 = vld [vmem:[%s7017_s30 + $0x1b4] sm:$0xff]  ;;  %v2786_v43 = vmul.f32 %v6006_v29, %v5997_v57  ;;  %v2787_v50 = vmul.f32 %v6006_v29, %v5998_v35  ;;  %v2788_v37 = vmul.f32 %v6006_v29, %v5999_v28  ;;  %v2789_v11 = vmul.f32 %v6006_v29, %v6000_v13 }
 0x1f8   : > { %v6004_v53 = vld [vmem:[%s7017_s30 + $0x1bc] sm:$0xff]  ;;  %v2790_v46 = vmul.f32 %v6006_v29, %v6001_v55  ;;  %v2791_v48 = vmul.f32 %v6006_v29, %v6002_v22  ;;  %v2792_v41 = vmul.f32 %v6006_v29, %v6003_v58  ;;  %v10604_v44 = vadd.f32 %v2762_v14, %v10473_v30  ;;  %v6007_v57 = vld [vmem:[%s7017_s30 + $0x4d] sm:$0xff]  ;;  %v6009_v54 = vld [vmem:[%s7017_s30 + $0x65] sm:$0xff] }
 0x1f9   : > { %v2793_v39 = vmul.f32 %v6006_v29, %v6004_v53  ;;  %v10607_v19 = vadd.f32 %v2763_v3, %v10476_v27  ;;  %v10610_v26 = vadd.f32 %v2764_v15, %v10479_v4  ;;  %v10613_v35 = vadd.f32 %v2765_v25, %v10482_v10  ;;  %v6011_v14 = vld [vmem:[%s7017_s30 + $0x7d] sm:$0xff]  ;;  %v6012_v3 = vld [vmem:[%s7017_s30 + $0x85] sm:$0xff]  ;;  %v6013_v15 = vld [vmem:[%s7017_s30 + $0x95] sm:$0xff] }
 0x1fa   : > { %v10616_v55 = vadd.f32 %v2766_v24, %v10485_v9  ;;  %v10619_v53 = vadd.f32 %v2767_v0, %v10488_v62  ;;  %v10622_v30 = vadd.f32 %v2768_v18, %v10491_v60  ;;  %v10625_v27 = vadd.f32 %v2769_v49, %v10494_v34  ;;  %v6014_v25 = vld [vmem:[%s7017_s30 + $0x9d] sm:$0xff]  ;;  %v14545_v17 = vld [vmem:[#allocation22_spill] sm:$0xff]  ;;  %v6016_v49 = vld [vmem:[%s7017_s30 + $0xb5] sm:$0xff] }
 0x1fb   : > { %v10628_v4 = vadd.f32 %v2770_v5, %v10497_v8  ;;  %v10631_v10 = vadd.f32 %v2771_v56, %v10500_v31  ;;  %v10634_v9 = vadd.f32 %v2772_v38, %v10503_v61  ;;  %v10637_v62 = vadd.f32 %v2773_v42, %v10506_v59  ;;  %v14533_v8 = vld [vmem:[#allocation16_spill] sm:$0xff]  ;;  %v14535_v31 = vld [vmem:[#allocation17_spill] sm:$0xff]  ;;  %v6010_v59 = vld [vmem:[%s7017_s30 + $0x6d] sm:$0xff] }
 0x1fc   : > { %v10640_v60 = vadd.f32 %v2774_v16, %v10509_v21  ;;  %v10643_v34 = vadd.f32 %v2775_v51, %v10512_v40  ;;  %v10646_v29 = vadd.f32 %v2776_v45, %v14533_v8  ;;  %v10649_v13 = vadd.f32 %v2777_v63, %v14535_v31  ;;  %v6008_v61 = vld [vmem:[%s7017_s30 + $0x55] sm:$0xff]  ;;  %v14537_v42 = vld [vmem:[#allocation18_spill] sm:$0xff]  ;;  %v14543_v45 = vld [vmem:[#allocation21_spill] sm:$0xff] }
 0x1fd   : > { %v10656_v23 = vadd.f32 %v2778_v47, %v14537_v42  ;;  %v14539_v21 = vld [vmem:[#allocation19_spill] sm:$0xff]  ;;  %v14541_v40 = vld [vmem:[#allocation20_spill] sm:$0xff]  ;;  %v10665_v32 = vadd.f32 %v2781_v12, %v14543_v45  ;;  %v10672_v6 = vadd.f32 %v2782_v20, %v14545_v17  ;;  %v14547_v2 = vld [vmem:[#allocation5_spill] sm:$0xff] }
 0x1fe   : > { %14534 = vst [vmem:[#allocation16_spill] sm:$0xff] %v10646_v29  ;;  %14536 = vst [vmem:[#allocation17_spill] sm:$0xff] %v10649_v13  ;;  %v10659_v16 = vadd.f32 %v2779_v7, %v14539_v21  ;;  %v10662_v51 = vadd.f32 %v2780_v1, %v14541_v40  ;;  %v10675_v24 = vadd.f32 %v2783_v52, %v14547_v2  ;;  %v14549_v7 = vld [vmem:[#allocation6_spill] sm:$0xff]  ;;  %v14551_v1 = vld [vmem:[#allocation7_spill] sm:$0xff] }
 0x1ff   : > { %14538 = vst [vmem:[#allocation18_spill] sm:$0xff] %v10656_v23  ;;  %14544 = vst [vmem:[#allocation21_spill] sm:$0xff] %v10665_v32  ;;  %v10678_v0 = vadd.f32 %v2784_v36, %v14549_v7  ;;  %v10681_v18 = vadd.f32 %v2785_v33, %v14551_v1  ;;  %v6015_v12 = vld [vmem:[%s7017_s30 + $0xad] sm:$0xff]  ;;  %v6017_v5 = vld [vmem:[%s7017_s30 + $0xc5] sm:$0xff] }
 0x200   : > { %14540 = vst [vmem:[#allocation19_spill] sm:$0xff] %v10659_v16  ;;  %14542 = vst [vmem:[#allocation20_spill] sm:$0xff] %v10662_v51  ;;  %v6040_v20 = vld [vmem:[%s13780_s1 + $0x1d] ss:$0 sm:$0xff]  ;;  %v14555_v38 = vld [vmem:[#allocation9_spill] sm:$0xff] }
 0x201   : > { %14546 = vst [vmem:[#allocation22_spill] sm:$0xff] %v10672_v6  ;;  %14548 = vst [vmem:[#allocation5_spill] sm:$0xff] %v10675_v24  ;;  %v14553_v56 = vld [vmem:[#allocation8_spill] sm:$0xff]  ;;  %v10693_v28 = vadd.f32 %v2787_v50, %v14555_v38  ;;  %v14557_v63 = vld [vmem:[#allocation10_spill] sm:$0xff]  ;;  %v2864_v38 = vmul.f32 %v6040_v20, %v6008_v61  ;;  %v2872_v61 = vmul.f32 %v6040_v20, %v6016_v49 }
 0x202   : > { %14550 = vst [vmem:[#allocation6_spill] sm:$0xff] %v10678_v0  ;;  %14552 = vst [vmem:[#allocation7_spill] sm:$0xff] %v10681_v18  ;;  %v10690_v52 = vadd.f32 %v2786_v43, %v14553_v56  ;;  %v10696_v22 = vadd.f32 %v2788_v37, %v14557_v63  ;;  %v14559_v58 = vld [vmem:[#allocation11_spill] sm:$0xff]  ;;  %v6019_v33 = vld [vmem:[%s7017_s30 + $0xdd] sm:$0xff]  ;;  %v2863_v56 = vmul.f32 %v6040_v20, %v6007_v57 }
 0x203   : > { %14556 = vst [vmem:[#allocation9_spill] sm:$0xff] %v10693_v28  ;;  %v10699_v47 = vadd.f32 %v2789_v11, %v14559_v58  ;;  %v6018_v36 = vld [vmem:[%s7017_s30 + $0xcd] sm:$0xff]  ;;  %v6020_v8 = vld [vmem:[%s7017_s30 + $0xe5] sm:$0xff]  ;;  %v14561_v31 = vld [vmem:[#allocation12_spill] sm:$0xff]  ;;  %v2865_v63 = vmul.f32 %v6040_v20, %v6009_v54  ;;  %v2871_v57 = vmul.f32 %v6040_v20, %v6015_v12  ;;  %v2873_v54 = vmul.f32 %v6040_v20, %v6017_v5 }
 0x204   : > { %14554 = vst [vmem:[#allocation8_spill] sm:$0xff] %v10690_v52  ;;  %14558 = vst [vmem:[#allocation10_spill] sm:$0xff] %v10696_v22  ;;  %v10705_v42 = vadd.f32 %v2790_v46, %v14561_v31  ;;  %v14563_v43 = vld [vmem:[#allocation13_spill] sm:$0xff]  ;;  %v14565_v50 = vld [vmem:[#allocation14_spill] sm:$0xff]  ;;  %v2867_v31 = vmul.f32 %v6040_v20, %v6011_v14  ;;  %v2875_v28 = vmul.f32 %v6040_v20, %v6019_v33 }
 0x205   : > { %14560 = vst [vmem:[#allocation11_spill] sm:$0xff] %v10699_v47  ;;  %v10708_v21 = vadd.f32 %v2791_v48, %v14563_v43  ;;  %v10711_v40 = vadd.f32 %v2792_v41, %v14565_v50  ;;  %v14567_v37 = vld [vmem:[#allocation15_spill] sm:$0xff]  ;;  %v6022_v17 = vld [vmem:[%s7017_s30 + $0xfd] sm:$0xff]  ;;  %v6025_v1 = vld [vmem:[%s7017_s30 + $0x125] sm:$0xff]  ;;  %v2866_v48 = vmul.f32 %v6040_v20, %v6010_v59  ;;  %v2868_v43 = vmul.f32 %v6040_v20, %v6012_v3 }
 0x206   : > { %14562 = vst [vmem:[#allocation12_spill] sm:$0xff] %v10705_v42  ;;  %v10714_v45 = vadd.f32 %v2793_v39, %v14567_v37  ;;  %v6021_v11 = vld [vmem:[%s7017_s30 + $0xf5] sm:$0xff]  ;;  %v6023_v2 = vld [vmem:[%s7017_s30 + $0x10d] sm:$0xff]  ;;  %v6027_v41 = vld [vmem:[%s7017_s30 + $0x13d] sm:$0xff]  ;;  %v2869_v50 = vmul.f32 %v6040_v20, %v6013_v15  ;;  %v2870_v37 = vmul.f32 %v6040_v20, %v6014_v25  ;;  %v2874_v42 = vmul.f32 %v6040_v20, %v6018_v36 }
 0x207   : > { %14564 = vst [vmem:[#allocation13_spill] sm:$0xff] %v10708_v21  ;;  %14566 = vst [vmem:[#allocation14_spill] sm:$0xff] %v10711_v40  ;;  %v6024_v7 = vld [vmem:[%s7017_s30 + $0x115] sm:$0xff]  ;;  %v6026_v46 = vld [vmem:[%s7017_s30 + $0x12d] sm:$0xff]  ;;  %v2876_v52 = vmul.f32 %v6040_v20, %v6020_v8  ;;  %v2877_v18 = vmul.f32 %v6040_v20, %v6021_v11  ;;  %v2878_v14 = vmul.f32 %v6040_v20, %v6022_v17 }
 0x208   : > { %14568 = vst [vmem:[#allocation15_spill] sm:$0xff] %v10714_v45  ;;  %v6028_v58 = vld [vmem:[%s7017_s30 + $0x145] sm:$0xff]  ;;  %v6029_v39 = vld [vmem:[%s7017_s30 + $0x155] sm:$0xff]  ;;  %v6030_v45 = vld [vmem:[%s7017_s30 + $0x15d] sm:$0xff]  ;;  %v2879_v25 = vmul.f32 %v6040_v20, %v6023_v2  ;;  %v2880_v24 = vmul.f32 %v6040_v20, %v6024_v7  ;;  %v2881_v6 = vmul.f32 %v6040_v20, %v6025_v1  ;;  %v2882_v32 = vmul.f32 %v6040_v20, %v6026_v46 }
 0x209   : > { %v6031_v40 = vld [vmem:[%s7017_s30 + $0x16d] sm:$0xff]  ;;  %v6032_v21 = vld [vmem:[%s7017_s30 + $0x175] sm:$0xff]  ;;  %v6033_v59 = vld [vmem:[%s7017_s30 + $0x185] sm:$0xff]  ;;  %v2883_v51 = vmul.f32 %v6040_v20, %v6027_v41  ;;  %v2884_v16 = vmul.f32 %v6040_v20, %v6028_v58  ;;  %v2885_v12 = vmul.f32 %v6040_v20, %v6029_v39  ;;  %v2886_v49 = vmul.f32 %v6040_v20, %v6030_v45 }
 0x20a   : > { %v6034_v47 = vld [vmem:[%s7017_s30 + $0x18d] sm:$0xff]  ;;  %v6035_v22 = vld [vmem:[%s7017_s30 + $0x19d] sm:$0xff]  ;;  %v6036_v3 = vld [vmem:[%s7017_s30 + $0x1a5] sm:$0xff]  ;;  %v2887_v5 = vmul.f32 %v6040_v20, %v6031_v40  ;;  %v2888_v36 = vmul.f32 %v6040_v20, %v6032_v21  ;;  %v2889_v23 = vmul.f32 %v6040_v20, %v6033_v59  ;;  %v10735_v17 = vadd.f32 %v2863_v56, %v10604_v44 }
 0x20b   : > { %v6037_v15 = vld [vmem:[%s7017_s30 + $0x1b5] sm:$0xff]  ;;  %v6038_v0 = vld [vmem:[%s7017_s30 + $0x1bd] sm:$0xff]  ;;  %v2890_v13 = vmul.f32 %v6040_v20, %v6034_v47  ;;  %v2891_v29 = vmul.f32 %v6040_v20, %v6035_v22  ;;  %v2892_v33 = vmul.f32 %v6040_v20, %v6036_v3  ;;  %v10738_v2 = vadd.f32 %v2864_v38, %v10607_v19  ;;  %v6043_v45 = vld [vmem:[%s7017_s30 + $0x66] sm:$0xff] }
 0x20c   : > { %v2893_v8 = vmul.f32 %v6040_v20, %v6037_v15  ;;  %v2894_v11 = vmul.f32 %v6040_v20, %v6038_v0  ;;  %v10741_v7 = vadd.f32 %v2865_v63, %v10610_v26  ;;  %v10744_v21 = vadd.f32 %v2866_v48, %v10613_v35  ;;  %v6041_v40 = vld [vmem:[%s7017_s30 + $0x4e] sm:$0xff]  ;;  %v6045_v56 = vld [vmem:[%s7017_s30 + $0x7e] sm:$0xff]  ;;  %v6046_v38 = vld [vmem:[%s7017_s30 + $0x86] sm:$0xff] }
 0x20d   : > { %v10747_v22 = vadd.f32 %v2867_v31, %v10616_v55  ;;  %v10750_v0 = vadd.f32 %v2868_v43, %v10619_v53  ;;  %v10753_v44 = vadd.f32 %v2869_v50, %v10622_v30  ;;  %v10756_v19 = vadd.f32 %v2870_v37, %v10625_v27  ;;  %v6047_v63 = vld [vmem:[%s7017_s30 + $0x96] sm:$0xff]  ;;  %v6048_v48 = vld [vmem:[%s7017_s30 + $0x9e] sm:$0xff]  ;;  %v14581_v41 = vld [vmem:[#allocation22_spill] sm:$0xff] }
 0x20e   : > { %v10759_v26 = vadd.f32 %v2871_v57, %v10628_v4  ;;  %v10762_v35 = vadd.f32 %v2872_v61, %v10631_v10  ;;  %v10765_v55 = vadd.f32 %v2873_v54, %v10634_v9  ;;  %v10768_v53 = vadd.f32 %v2874_v42, %v10637_v62  ;;  %v14569_v4 = vld [vmem:[#allocation16_spill] sm:$0xff]  ;;  %v14571_v10 = vld [vmem:[#allocation17_spill] sm:$0xff]  ;;  %v6044_v62 = vld [vmem:[%s7017_s30 + $0x6e] sm:$0xff] }
 0x20f   : > { %v10771_v30 = vadd.f32 %v2875_v28, %v10640_v60  ;;  %v10774_v27 = vadd.f32 %v2876_v52, %v10643_v34  ;;  %v10777_v20 = vadd.f32 %v2877_v18, %v14569_v4  ;;  %v10780_v47 = vadd.f32 %v2878_v14, %v14571_v10  ;;  %v6042_v9 = vld [vmem:[%s7017_s30 + $0x56] sm:$0xff]  ;;  %v14573_v42 = vld [vmem:[#allocation18_spill] sm:$0xff]  ;;  %v14579_v18 = vld [vmem:[#allocation21_spill] sm:$0xff] }
 0x210   : > { %v10787_v1 = vadd.f32 %v2879_v25, %v14573_v42  ;;  %v14575_v60 = vld [vmem:[#allocation19_spill] sm:$0xff]  ;;  %v14577_v34 = vld [vmem:[#allocation20_spill] sm:$0xff]  ;;  %v10796_v46 = vadd.f32 %v2882_v32, %v14579_v18  ;;  %v10803_v58 = vadd.f32 %v2883_v51, %v14581_v41  ;;  %v14583_v39 = vld [vmem:[#allocation5_spill] sm:$0xff] }
 0x211   : > { %14570 = vst [vmem:[#allocation16_spill] sm:$0xff] %v10777_v20  ;;  %14572 = vst [vmem:[#allocation17_spill] sm:$0xff] %v10780_v47  ;;  %v10790_v28 = vadd.f32 %v2880_v24, %v14575_v60  ;;  %v10793_v52 = vadd.f32 %v2881_v6, %v14577_v34  ;;  %v10806_v31 = vadd.f32 %v2884_v16, %v14583_v39  ;;  %v14585_v24 = vld [vmem:[#allocation6_spill] sm:$0xff]  ;;  %v14587_v6 = vld [vmem:[#allocation7_spill] sm:$0xff] }
 0x212   : > { %14574 = vst [vmem:[#allocation18_spill] sm:$0xff] %v10787_v1  ;;  %14580 = vst [vmem:[#allocation21_spill] sm:$0xff] %v10796_v46  ;;  %v10809_v43 = vadd.f32 %v2885_v12, %v14585_v24  ;;  %v10812_v50 = vadd.f32 %v2886_v49, %v14587_v6  ;;  %v6049_v32 = vld [vmem:[%s7017_s30 + $0xae] sm:$0xff]  ;;  %v6050_v37 = vld [vmem:[%s7017_s30 + $0xb6] sm:$0xff] }
 0x213   : > { %14576 = vst [vmem:[#allocation19_spill] sm:$0xff] %v10790_v28  ;;  %14578 = vst [vmem:[#allocation20_spill] sm:$0xff] %v10793_v52  ;;  %v6051_v57 = vld [vmem:[%s7017_s30 + $0xc6] sm:$0xff]  ;;  %v6074_v51 = vld [vmem:[%s13780_s1 + $0x1e] ss:$0 sm:$0xff] }
 0x214   : > { %14582 = vst [vmem:[#allocation22_spill] sm:$0xff] %v10803_v58  ;;  %14584 = vst [vmem:[#allocation5_spill] sm:$0xff] %v10806_v31  ;;  %v14589_v61 = vld [vmem:[#allocation8_spill] sm:$0xff]  ;;  %v14591_v54 = vld [vmem:[#allocation9_spill] sm:$0xff] }
 0x215   : > { %14586 = vst [vmem:[#allocation6_spill] sm:$0xff] %v10809_v43  ;;  %14588 = vst [vmem:[#allocation7_spill] sm:$0xff] %v10812_v50  ;;  %v10821_v16 = vadd.f32 %v2887_v5, %v14589_v61  ;;  %v10824_v59 = vadd.f32 %v2888_v36, %v14591_v54  ;;  %v14593_v14 = vld [vmem:[#allocation10_spill] sm:$0xff]  ;;  %v14595_v15 = vld [vmem:[#allocation11_spill] sm:$0xff]  ;;  %v2964_v61 = vmul.f32 %v6074_v51, %v6041_v40 }
 0x216   : > { %v10827_v3 = vadd.f32 %v2889_v23, %v14593_v14  ;;  %v10830_v25 = vadd.f32 %v2890_v13, %v14595_v15  ;;  %v6052_v12 = vld [vmem:[%s7017_s30 + $0xce] sm:$0xff]  ;;  %v6053_v49 = vld [vmem:[%s7017_s30 + $0xde] sm:$0xff]  ;;  %v6054_v4 = vld [vmem:[%s7017_s30 + $0xe6] sm:$0xff]  ;;  %v2965_v54 = vmul.f32 %v6074_v51, %v6042_v9  ;;  %v2966_v14 = vmul.f32 %v6074_v51, %v6043_v45 }
 0x217   : > { %14590 = vst [vmem:[#allocation8_spill] sm:$0xff] %v10821_v16  ;;  %14592 = vst [vmem:[#allocation9_spill] sm:$0xff] %v10824_v59  ;;  %v14597_v10 = vld [vmem:[#allocation12_spill] sm:$0xff]  ;;  %v14599_v5 = vld [vmem:[#allocation13_spill] sm:$0xff]  ;;  %v2972_v40 = vmul.f32 %v6074_v51, %v6049_v32  ;;  %v2973_v9 = vmul.f32 %v6074_v51, %v6050_v37  ;;  %v2974_v45 = vmul.f32 %v6074_v51, %v6051_v57 }
 0x218   : > { %14594 = vst [vmem:[#allocation10_spill] sm:$0xff] %v10827_v3  ;;  %14596 = vst [vmem:[#allocation11_spill] sm:$0xff] %v10830_v25  ;;  %v10836_v42 = vadd.f32 %v2891_v29, %v14597_v10  ;;  %v10839_v60 = vadd.f32 %v2892_v33, %v14599_v5  ;;  %v14601_v36 = vld [vmem:[#allocation14_spill] sm:$0xff]  ;;  %v14603_v23 = vld [vmem:[#allocation15_spill] sm:$0xff]  ;;  %v2967_v33 = vmul.f32 %v6074_v51, %v6044_v62 }
 0x219   : > { %v10842_v34 = vadd.f32 %v2893_v8, %v14601_v36  ;;  %v10845_v18 = vadd.f32 %v2894_v11, %v14603_v23  ;;  %v6055_v13 = vld [vmem:[%s7017_s30 + $0xf6] sm:$0xff]  ;;  %v6056_v41 = vld [vmem:[%s7017_s30 + $0xfe] sm:$0xff]  ;;  %v6057_v39 = vld [vmem:[%s7017_s30 + $0x10e] sm:$0xff]  ;;  %v2968_v10 = vmul.f32 %v6074_v51, %v6045_v56  ;;  %v2969_v5 = vmul.f32 %v6074_v51, %v6046_v38 }
 0x21a   : > { %14598 = vst [vmem:[#allocation12_spill] sm:$0xff] %v10836_v42  ;;  %14600 = vst [vmem:[#allocation13_spill] sm:$0xff] %v10839_v60  ;;  %v6058_v24 = vld [vmem:[%s7017_s30 + $0x116] sm:$0xff]  ;;  %v6059_v6 = vld [vmem:[%s7017_s30 + $0x126] sm:$0xff]  ;;  %v2970_v36 = vmul.f32 %v6074_v51, %v6047_v63  ;;  %v2971_v23 = vmul.f32 %v6074_v51, %v6048_v48  ;;  %v2975_v42 = vmul.f32 %v6074_v51, %v6052_v12 }
 0x21b   : > { %14602 = vst [vmem:[#allocation14_spill] sm:$0xff] %v10842_v34  ;;  %14604 = vst [vmem:[#allocation15_spill] sm:$0xff] %v10845_v18  ;;  %v6060_v29 = vld [vmem:[%s7017_s30 + $0x12e] sm:$0xff]  ;;  %v6061_v8 = vld [vmem:[%s7017_s30 + $0x13e] sm:$0xff]  ;;  %v2976_v59 = vmul.f32 %v6074_v51, %v6053_v49  ;;  %v2977_v16 = vmul.f32 %v6074_v51, %v6054_v4  ;;  %v2978_v50 = vmul.f32 %v6074_v51, %v6055_v13 }
 0x21c   : > { %v6062_v15 = vld [vmem:[%s7017_s30 + $0x146] sm:$0xff]  ;;  %v6063_v11 = vld [vmem:[%s7017_s30 + $0x156] sm:$0xff]  ;;  %v6064_v18 = vld [vmem:[%s7017_s30 + $0x15e] sm:$0xff]  ;;  %v2979_v56 = vmul.f32 %v6074_v51, %v6056_v41  ;;  %v2980_v48 = vmul.f32 %v6074_v51, %v6057_v39  ;;  %v2981_v31 = vmul.f32 %v6074_v51, %v6058_v24  ;;  %v2982_v58 = vmul.f32 %v6074_v51, %v6059_v6 }
 0x21d   : > { %v6065_v34 = vld [vmem:[%s7017_s30 + $0x16e] sm:$0xff]  ;;  %v6066_v60 = vld [vmem:[%s7017_s30 + $0x176] sm:$0xff]  ;;  %v6067_v62 = vld [vmem:[%s7017_s30 + $0x186] sm:$0xff]  ;;  %v2983_v46 = vmul.f32 %v6074_v51, %v6060_v29  ;;  %v2984_v52 = vmul.f32 %v6074_v51, %v6061_v8  ;;  %v2985_v28 = vmul.f32 %v6074_v51, %v6062_v15  ;;  %v2986_v32 = vmul.f32 %v6074_v51, %v6063_v11 }
 0x21e   : > { %v6068_v25 = vld [vmem:[%s7017_s30 + $0x18e] sm:$0xff]  ;;  %v6069_v3 = vld [vmem:[%s7017_s30 + $0x19e] sm:$0xff]  ;;  %v6070_v38 = vld [vmem:[%s7017_s30 + $0x1a6] sm:$0xff]  ;;  %v2987_v37 = vmul.f32 %v6074_v51, %v6064_v18  ;;  %v2988_v57 = vmul.f32 %v6074_v51, %v6065_v34  ;;  %v2989_v12 = vmul.f32 %v6074_v51, %v6066_v60  ;;  %v2990_v1 = vmul.f32 %v6074_v51, %v6067_v62 }
 0x21f   : > { %v6071_v63 = vld [vmem:[%s7017_s30 + $0x1b6] sm:$0xff]  ;;  %v6072_v43 = vld [vmem:[%s7017_s30 + $0x1be] sm:$0xff]  ;;  %v2991_v47 = vmul.f32 %v6074_v51, %v6068_v25  ;;  %v2992_v20 = vmul.f32 %v6074_v51, %v6069_v3  ;;  %v2993_v49 = vmul.f32 %v6074_v51, %v6070_v38  ;;  %v10866_v41 = vadd.f32 %v2964_v61, %v10735_v17  ;;  %v14617_v8 = vld [vmem:[#allocation22_spill] sm:$0xff] }
 0x220   : > { %v2994_v4 = vmul.f32 %v6074_v51, %v6071_v63  ;;  %v2995_v13 = vmul.f32 %v6074_v51, %v6072_v43  ;;  %v10869_v39 = vadd.f32 %v2965_v54, %v10738_v2  ;;  %v10872_v24 = vadd.f32 %v2966_v14, %v10741_v7  ;;  %v6075_v34 = vld [vmem:[%s7017_s30 + $0x60] sm:$0xff]  ;;  %v6077_v18 = vld [vmem:[%s7017_s30 + $0x78] sm:$0xff]  ;;  %v6079_v61 = vld [vmem:[%s7017_s30 + $0x90] sm:$0xff] }
 0x221   : > { %v10875_v60 = vadd.f32 %v2967_v33, %v10744_v21  ;;  %v10878_v3 = vadd.f32 %v2968_v10, %v10747_v22  ;;  %v10881_v43 = vadd.f32 %v2969_v5, %v10750_v0  ;;  %v10884_v17 = vadd.f32 %v2970_v36, %v10753_v44  ;;  %v6080_v54 = vld [vmem:[%s7017_s30 + $0x98] sm:$0xff]  ;;  %v6081_v14 = vld [vmem:[%s7017_s30 + $0xa8] sm:$0xff]  ;;  %v6082_v33 = vld [vmem:[%s7017_s30 + $0xb0] sm:$0xff] }
 0x222   : > { %v10887_v2 = vadd.f32 %v2971_v23, %v10756_v19  ;;  %v10890_v7 = vadd.f32 %v2972_v40, %v10759_v26  ;;  %v10893_v21 = vadd.f32 %v2973_v9, %v10762_v35  ;;  %v10896_v22 = vadd.f32 %v2974_v45, %v10765_v55  ;;  %v14605_v26 = vld [vmem:[#allocation16_spill] sm:$0xff]  ;;  %v14607_v35 = vld [vmem:[#allocation17_spill] sm:$0xff]  ;;  %v6076_v55 = vld [vmem:[%s7017_s30 + $0x68] sm:$0xff] }
 0x223   : > { %v10899_v0 = vadd.f32 %v2975_v42, %v10768_v53  ;;  %v10902_v44 = vadd.f32 %v2976_v59, %v10771_v30  ;;  %v10905_v19 = vadd.f32 %v2977_v16, %v10774_v27  ;;  %v10908_v51 = vadd.f32 %v2978_v50, %v14605_v26  ;;  %v6078_v53 = vld [vmem:[%s7017_s30 + $0x80] sm:$0xff]  ;;  %v14609_v42 = vld [vmem:[#allocation18_spill] sm:$0xff]  ;;  %v14611_v30 = vld [vmem:[#allocation19_spill] sm:$0xff] }
 0x224   : > { %v10911_v25 = vadd.f32 %v2979_v56, %v14607_v35  ;;  %v10918_v6 = vadd.f32 %v2980_v48, %v14609_v42  ;;  %v10921_v59 = vadd.f32 %v2981_v31, %v14611_v30  ;;  %v14613_v27 = vld [vmem:[#allocation20_spill] sm:$0xff]  ;;  %v14615_v50 = vld [vmem:[#allocation21_spill] sm:$0xff]  ;;  %v10934_v15 = vadd.f32 %v2984_v52, %v14617_v8  ;;  %v14621_v31 = vld [vmem:[#allocation6_spill] sm:$0xff] }
 0x225   : > { %14606 = vst [vmem:[#allocation16_spill] sm:$0xff] %v10908_v51  ;;  %v10924_v16 = vadd.f32 %v2982_v58, %v14613_v27  ;;  %v10927_v29 = vadd.f32 %v2983_v46, %v14615_v50  ;;  %v14619_v11 = vld [vmem:[#allocation5_spill] sm:$0xff]  ;;  %v10940_v5 = vadd.f32 %v2986_v32, %v14621_v31  ;;  %v14623_v58 = vld [vmem:[#allocation7_spill] sm:$0xff]  ;;  %v6084_v23 = vld [vmem:[%s7017_s30 + $0xc8] sm:$0xff] }
 0x226   : > { %14608 = vst [vmem:[#allocation17_spill] sm:$0xff] %v10911_v25  ;;  %14610 = vst [vmem:[#allocation18_spill] sm:$0xff] %v10918_v6  ;;  %v10937_v10 = vadd.f32 %v2985_v28, %v14619_v11  ;;  %v10943_v36 = vadd.f32 %v2987_v37, %v14623_v58  ;;  %v6083_v46 = vld [vmem:[%s7017_s30 + $0xc0] sm:$0xff]  ;;  %v6085_v40 = vld [vmem:[%s7017_s30 + $0xd8] sm:$0xff] }
 0x227   : > { %14612 = vst [vmem:[#allocation19_spill] sm:$0xff] %v10921_v59  ;;  %14614 = vst [vmem:[#allocation20_spill] sm:$0xff] %v10924_v16  ;;  %v6108_v52 = vld [vmem:[%s13780_s1 + $0x20] ss:$0 sm:$0xff]  ;;  %v14625_v9 = vld [vmem:[#allocation8_spill] sm:$0xff] }
 0x228   : > { %14616 = vst [vmem:[#allocation21_spill] sm:$0xff] %v10927_v29  ;;  %14618 = vst [vmem:[#allocation22_spill] sm:$0xff] %v10934_v15  ;;  %v10952_v28 = vadd.f32 %v2988_v57, %v14625_v9  ;;  %v14627_v45 = vld [vmem:[#allocation9_spill] sm:$0xff]  ;;  %v14629_v56 = vld [vmem:[#allocation10_spill] sm:$0xff]  ;;  %v3069_v9 = vmul.f32 %v6108_v52, %v6075_v34  ;;  %v3077_v34 = vmul.f32 %v6108_v52, %v6083_v46 }
 0x229   : > { %14620 = vst [vmem:[#allocation5_spill] sm:$0xff] %v10937_v10  ;;  %14622 = vst [vmem:[#allocation6_spill] sm:$0xff] %v10940_v5  ;;  %v10955_v62 = vadd.f32 %v2989_v12, %v14627_v45  ;;  %v10958_v38 = vadd.f32 %v2990_v1, %v14629_v56  ;;  %v14631_v63 = vld [vmem:[#allocation11_spill] sm:$0xff]  ;;  %v6086_v32 = vld [vmem:[%s7017_s30 + $0xe0] sm:$0xff]  ;;  %v3070_v45 = vmul.f32 %v6108_v52, %v6076_v55 }
 0x22a   : > { %14624 = vst [vmem:[#allocation7_spill] sm:$0xff] %v10943_v36  ;;  %14626 = vst [vmem:[#allocation8_spill] sm:$0xff] %v10952_v28  ;;  %v10961_v48 = vadd.f32 %v2991_v47, %v14631_v63  ;;  %v6087_v37 = vld [vmem:[%s7017_s30 + $0xf0] sm:$0xff]  ;;  %v6088_v26 = vld [vmem:[%s7017_s30 + $0xf8] sm:$0xff]  ;;  %v3071_v56 = vmul.f32 %v6108_v52, %v6077_v18  ;;  %v3078_v55 = vmul.f32 %v6108_v52, %v6084_v23 }
 0x22b   : > { %14628 = vst [vmem:[#allocation9_spill] sm:$0xff] %v10955_v62  ;;  %14630 = vst [vmem:[#allocation10_spill] sm:$0xff] %v10958_v38  ;;  %v14633_v35 = vld [vmem:[#allocation12_spill] sm:$0xff]  ;;  %v14635_v57 = vld [vmem:[#allocation13_spill] sm:$0xff]  ;;  %v3079_v18 = vmul.f32 %v6108_v52, %v6085_v40  ;;  %v3081_v62 = vmul.f32 %v6108_v52, %v6087_v37  ;;  %v3082_v28 = vmul.f32 %v6108_v52, %v6088_v26 }
 0x22c   : > { %14632 = vst [vmem:[#allocation11_spill] sm:$0xff] %v10961_v48  ;;  %v10967_v42 = vadd.f32 %v2992_v20, %v14633_v35  ;;  %v10970_v30 = vadd.f32 %v2993_v49, %v14635_v57  ;;  %v14637_v12 = vld [vmem:[#allocation14_spill] sm:$0xff]  ;;  %v14639_v1 = vld [vmem:[#allocation15_spill] sm:$0xff]  ;;  %v6091_v11 = vld [vmem:[%s7017_s30 + $0x120] sm:$0xff]  ;;  %v3072_v49 = vmul.f32 %v6108_v52, %v6078_v53  ;;  %v3073_v35 = vmul.f32 %v6108_v52, %v6079_v61 }
 0x22d   : > { %v10973_v27 = vadd.f32 %v2994_v4, %v14637_v12  ;;  %v10976_v50 = vadd.f32 %v2995_v13, %v14639_v1  ;;  %v6089_v47 = vld [vmem:[%s7017_s30 + $0x108] sm:$0xff]  ;;  %v6090_v8 = vld [vmem:[%s7017_s30 + $0x110] sm:$0xff]  ;;  %v6093_v58 = vld [vmem:[%s7017_s30 + $0x138] sm:$0xff]  ;;  %v3074_v57 = vmul.f32 %v6108_v52, %v6080_v54  ;;  %v3075_v12 = vmul.f32 %v6108_v52, %v6081_v14 }
 0x22e   : > { %14634 = vst [vmem:[#allocation12_spill] sm:$0xff] %v10967_v42  ;;  %14636 = vst [vmem:[#allocation13_spill] sm:$0xff] %v10970_v30  ;;  %v6092_v31 = vld [vmem:[%s7017_s30 + $0x128] sm:$0xff]  ;;  %v6094_v20 = vld [vmem:[%s7017_s30 + $0x140] sm:$0xff]  ;;  %v3076_v1 = vmul.f32 %v6108_v52, %v6082_v33  ;;  %v3080_v42 = vmul.f32 %v6108_v52, %v6086_v32  ;;  %v3083_v36 = vmul.f32 %v6108_v52, %v6089_v47 }
 0x22f   : > { %14638 = vst [vmem:[#allocation14_spill] sm:$0xff] %v10973_v27  ;;  %14640 = vst [vmem:[#allocation15_spill] sm:$0xff] %v10976_v50  ;;  %v6095_v4 = vld [vmem:[%s7017_s30 + $0x150] sm:$0xff]  ;;  %v6096_v63 = vld [vmem:[%s7017_s30 + $0x158] sm:$0xff]  ;;  %v3084_v61 = vmul.f32 %v6108_v52, %v6090_v8  ;;  %v3085_v33 = vmul.f32 %v6108_v52, %v6091_v11  ;;  %v3086_v10 = vmul.f32 %v6108_v52, %v6092_v31 }
 0x230   : > { %v6097_v13 = vld [vmem:[%s7017_s30 + $0x168] sm:$0xff]  ;;  %v6098_v50 = vld [vmem:[%s7017_s30 + $0x170] sm:$0xff]  ;;  %v6099_v27 = vld [vmem:[%s7017_s30 + $0x180] sm:$0xff]  ;;  %v3087_v15 = vmul.f32 %v6108_v52, %v6093_v58  ;;  %v3088_v29 = vmul.f32 %v6108_v52, %v6094_v20  ;;  %v3089_v16 = vmul.f32 %v6108_v52, %v6095_v4  ;;  %v3090_v59 = vmul.f32 %v6108_v52, %v6096_v63 }
 0x231   : > { %v6100_v30 = vld [vmem:[%s7017_s30 + $0x188] sm:$0xff]  ;;  %v6101_v53 = vld [vmem:[%s7017_s30 + $0x198] sm:$0xff]  ;;  %v6102_v48 = vld [vmem:[%s7017_s30 + $0x1a0] sm:$0xff]  ;;  %v3091_v46 = vmul.f32 %v6108_v52, %v6097_v13  ;;  %v3092_v23 = vmul.f32 %v6108_v52, %v6098_v50  ;;  %v3093_v40 = vmul.f32 %v6108_v52, %v6099_v27  ;;  %v10997_v8 = vadd.f32 %v3069_v9, %v10866_v41 }
 0x232   : > { %v6103_v38 = vld [vmem:[%s7017_s30 + $0x1b0] sm:$0xff]  ;;  %v6104_v54 = vld [vmem:[%s7017_s30 + $0x1b8] sm:$0xff]  ;;  %v6105_v14 = vld [vmem:[%s7017_s30 + $0x1c8] sm:$0xff]  ;;  %v3094_v32 = vmul.f32 %v6108_v52, %v6100_v30  ;;  %v3095_v6 = vmul.f32 %v6108_v52, %v6101_v53  ;;  %v3096_v25 = vmul.f32 %v6108_v52, %v6102_v48  ;;  %v11000_v11 = vadd.f32 %v3070_v45, %v10869_v39 }
 0x233   : > { %v6106_v5 = vld [vmem:[%s7017_s30 + $0x1d0] sm:$0xff]  ;;  %v3097_v51 = vmul.f32 %v6108_v52, %v6103_v38  ;;  %v3098_v37 = vmul.f32 %v6108_v52, %v6104_v54  ;;  %v3099_v26 = vmul.f32 %v6108_v52, %v6105_v14  ;;  %v11003_v31 = vadd.f32 %v3071_v56, %v10872_v24  ;;  %v6109_v27 = vld [vmem:[%s7017_s30 + $0x61] sm:$0xff]  ;;  %v6111_v50 = vld [vmem:[%s7017_s30 + $0x79] sm:$0xff] }
 0x234   : > { %v3100_v47 = vmul.f32 %v6108_v52, %v6106_v5  ;;  %v11006_v30 = vadd.f32 %v3072_v49, %v10875_v60  ;;  %v11009_v38 = vadd.f32 %v3073_v35, %v10878_v3  ;;  %v11012_v5 = vadd.f32 %v3074_v57, %v10881_v43  ;;  %v6113_v9 = vld [vmem:[%s7017_s30 + $0x91] sm:$0xff]  ;;  %v6114_v45 = vld [vmem:[%s7017_s30 + $0x99] sm:$0xff]  ;;  %v6115_v56 = vld [vmem:[%s7017_s30 + $0xa9] sm:$0xff] }
 0x235   : > { %v11015_v41 = vadd.f32 %v3075_v12, %v10884_v17  ;;  %v11018_v39 = vadd.f32 %v3076_v1, %v10887_v2  ;;  %v11021_v24 = vadd.f32 %v3077_v34, %v10890_v7  ;;  %v11024_v60 = vadd.f32 %v3078_v55, %v10893_v21  ;;  %v14641_v7 = vld [vmem:[#allocation16_spill] sm:$0xff]  ;;  %v14643_v21 = vld [vmem:[#allocation17_spill] sm:$0xff]  ;;  %v14653_v4 = vld [vmem:[#allocation22_spill] sm:$0xff] }
 0x236   : > { %v11027_v3 = vadd.f32 %v3079_v18, %v10896_v22  ;;  %v11030_v43 = vadd.f32 %v3080_v42, %v10899_v0  ;;  %v11033_v17 = vadd.f32 %v3081_v62, %v10902_v44  ;;  %v11036_v2 = vadd.f32 %v3082_v28, %v10905_v19  ;;  %v6110_v22 = vld [vmem:[%s7017_s30 + $0x69] sm:$0xff]  ;;  %v6112_v0 = vld [vmem:[%s7017_s30 + $0x81] sm:$0xff]  ;;  %v14649_v19 = vld [vmem:[#allocation20_spill] sm:$0xff] }
 0x237   : > { %v11039_v52 = vadd.f32 %v3083_v36, %v14641_v7  ;;  %v11042_v48 = vadd.f32 %v3084_v61, %v14643_v21  ;;  %v14645_v42 = vld [vmem:[#allocation18_spill] sm:$0xff]  ;;  %v14647_v44 = vld [vmem:[#allocation19_spill] sm:$0xff]  ;;  %v11055_v28 = vadd.f32 %v3087_v15, %v14649_v19  ;;  %v14651_v36 = vld [vmem:[#allocation21_spill] sm:$0xff]  ;;  %v11065_v63 = vadd.f32 %v3089_v16, %v14653_v4 }
 0x238   : > { %v11049_v58 = vadd.f32 %v3085_v33, %v14645_v42  ;;  %v11052_v62 = vadd.f32 %v3086_v10, %v14647_v44  ;;  %v11058_v20 = vadd.f32 %v3088_v29, %v14651_v36  ;;  %v6116_v49 = vld [vmem:[%s7017_s30 + $0xb1] sm:$0xff]  ;;  %v14655_v13 = vld [vmem:[#allocation5_spill] sm:$0xff]  ;;  %v14657_v10 = vld [vmem:[#allocation6_spill] sm:$0xff] }
 0x239   : > { %14642 = vst [vmem:[#allocation16_spill] sm:$0xff] %v11039_v52  ;;  %14644 = vst [vmem:[#allocation17_spill] sm:$0xff] %v11042_v48  ;;  %v11068_v35 = vadd.f32 %v3090_v59, %v14655_v13  ;;  %v11071_v57 = vadd.f32 %v3091_v46, %v14657_v10  ;;  %v14659_v15 = vld [vmem:[#allocation7_spill] sm:$0xff]  ;;  %v6117_v29 = vld [vmem:[%s7017_s30 + $0xc1] sm:$0xff] }
 0x23a   : > { %14646 = vst [vmem:[#allocation18_spill] sm:$0xff] %v11049_v58  ;;  %14648 = vst [vmem:[#allocation19_spill] sm:$0xff] %v11052_v62  ;;  %v11074_v12 = vadd.f32 %v3092_v23, %v14659_v15  ;;  %v6118_v1 = vld [vmem:[%s7017_s30 + $0xc9] sm:$0xff]  ;;  %v6119_v34 = vld [vmem:[%s7017_s30 + $0xd9] sm:$0xff] }
 0x23b   : > { %14650 = vst [vmem:[#allocation20_spill] sm:$0xff] %v11055_v28  ;;  %14652 = vst [vmem:[#allocation21_spill] sm:$0xff] %v11058_v20  ;;  %v6142_v16 = vld [vmem:[%s13780_s1 + $0x21] ss:$0 sm:$0xff]  ;;  %v14661_v55 = vld [vmem:[#allocation8_spill] sm:$0xff] }
 0x23c   : > { %14654 = vst [vmem:[#allocation22_spill] sm:$0xff] %v11065_v63  ;;  %14656 = vst [vmem:[#allocation5_spill] sm:$0xff] %v11068_v35  ;;  %v11083_v59 = vadd.f32 %v3093_v40, %v14661_v55  ;;  %v14663_v18 = vld [vmem:[#allocation9_spill] sm:$0xff]  ;;  %v14665_v61 = vld [vmem:[#allocation10_spill] sm:$0xff]  ;;  %v3170_v55 = vmul.f32 %v6142_v16, %v6109_v27  ;;  %v3178_v27 = vmul.f32 %v6142_v16, %v6117_v29 }
 0x23d   : > { %14658 = vst [vmem:[#allocation6_spill] sm:$0xff] %v11071_v57  ;;  %14660 = vst [vmem:[#allocation7_spill] sm:$0xff] %v11074_v12  ;;  %v11086_v53 = vadd.f32 %v3094_v32, %v14663_v18  ;;  %v11089_v54 = vadd.f32 %v3095_v6, %v14665_v61  ;;  %v14667_v14 = vld [vmem:[#allocation11_spill] sm:$0xff]  ;;  %v6120_v46 = vld [vmem:[%s7017_s30 + $0xe1] sm:$0xff]  ;;  %v3171_v18 = vmul.f32 %v6142_v16, %v6110_v22 }
 0x23e   : > { %14662 = vst [vmem:[#allocation8_spill] sm:$0xff] %v11083_v59  ;;  %v11092_v33 = vadd.f32 %v3096_v25, %v14667_v14  ;;  %v6121_v23 = vld [vmem:[%s7017_s30 + $0xf1] sm:$0xff]  ;;  %v6122_v7 = vld [vmem:[%s7017_s30 + $0xf9] sm:$0xff]  ;;  %v14673_v32 = vld [vmem:[#allocation14_spill] sm:$0xff]  ;;  %v3172_v61 = vmul.f32 %v6142_v16, %v6111_v50  ;;  %v3179_v22 = vmul.f32 %v6142_v16, %v6118_v1  ;;  %v3180_v50 = vmul.f32 %v6142_v16, %v6119_v34 }
 0x23f   : > { %14664 = vst [vmem:[#allocation9_spill] sm:$0xff] %v11086_v53  ;;  %14666 = vst [vmem:[#allocation10_spill] sm:$0xff] %v11089_v54  ;;  %v14669_v21 = vld [vmem:[#allocation12_spill] sm:$0xff]  ;;  %v14671_v40 = vld [vmem:[#allocation13_spill] sm:$0xff]  ;;  %v11104_v19 = vadd.f32 %v3099_v26, %v14673_v32  ;;  %v3176_v32 = vmul.f32 %v6142_v16, %v6115_v56  ;;  %v3182_v53 = vmul.f32 %v6142_v16, %v6121_v23 }
 0x240   : > { %14668 = vst [vmem:[#allocation11_spill] sm:$0xff] %v11092_v33  ;;  %v11098_v42 = vadd.f32 %v3097_v51, %v14669_v21  ;;  %v11101_v44 = vadd.f32 %v3098_v37, %v14671_v40  ;;  %v14675_v6 = vld [vmem:[#allocation15_spill] sm:$0xff]  ;;  %v6125_v13 = vld [vmem:[%s7017_s30 + $0x121] sm:$0xff]  ;;  %v6127_v15 = vld [vmem:[%s7017_s30 + $0x139] sm:$0xff]  ;;  %v3173_v37 = vmul.f32 %v6142_v16, %v6112_v0  ;;  %v3174_v21 = vmul.f32 %v6142_v16, %v6113_v9 }
 0x241   : > { %14674 = vst [vmem:[#allocation14_spill] sm:$0xff] %v11104_v19  ;;  %v11107_v36 = vadd.f32 %v3100_v47, %v14675_v6  ;;  %v6123_v25 = vld [vmem:[%s7017_s30 + $0x109] sm:$0xff]  ;;  %v6124_v4 = vld [vmem:[%s7017_s30 + $0x111] sm:$0xff]  ;;  %v6128_v51 = vld [vmem:[%s7017_s30 + $0x141] sm:$0xff]  ;;  %v3175_v40 = vmul.f32 %v6142_v16, %v6114_v45  ;;  %v3177_v6 = vmul.f32 %v6142_v16, %v6116_v49  ;;  %v3183_v59 = vmul.f32 %v6142_v16, %v6122_v7 }
 0x242   : > { %14670 = vst [vmem:[#allocation12_spill] sm:$0xff] %v11098_v42  ;;  %14672 = vst [vmem:[#allocation13_spill] sm:$0xff] %v11101_v44  ;;  %v6126_v10 = vld [vmem:[%s7017_s30 + $0x129] sm:$0xff]  ;;  %v6129_v26 = vld [vmem:[%s7017_s30 + $0x151] sm:$0xff]  ;;  %v3181_v42 = vmul.f32 %v6142_v16, %v6120_v46  ;;  %v3184_v12 = vmul.f32 %v6142_v16, %v6123_v25  ;;  %v3185_v9 = vmul.f32 %v6142_v16, %v6124_v4 }
 0x243   : > { %14676 = vst [vmem:[#allocation15_spill] sm:$0xff] %v11107_v36  ;;  %v6130_v14 = vld [vmem:[%s7017_s30 + $0x159] sm:$0xff]  ;;  %v6131_v47 = vld [vmem:[%s7017_s30 + $0x169] sm:$0xff]  ;;  %v6132_v36 = vld [vmem:[%s7017_s30 + $0x171] sm:$0xff]  ;;  %v3186_v49 = vmul.f32 %v6142_v16, %v6125_v13  ;;  %v3187_v35 = vmul.f32 %v6142_v16, %v6126_v10  ;;  %v3188_v63 = vmul.f32 %v6142_v16, %v6127_v15  ;;  %v3189_v20 = vmul.f32 %v6142_v16, %v6128_v51 }
 0x244   : > { %v6133_v19 = vld [vmem:[%s7017_s30 + $0x181] sm:$0xff]  ;;  %v6134_v44 = vld [vmem:[%s7017_s30 + $0x189] sm:$0xff]  ;;  %v6135_v0 = vld [vmem:[%s7017_s30 + $0x199] sm:$0xff]  ;;  %v3190_v28 = vmul.f32 %v6142_v16, %v6129_v26  ;;  %v3191_v62 = vmul.f32 %v6142_v16, %v6130_v14  ;;  %v3192_v29 = vmul.f32 %v6142_v16, %v6131_v47  ;;  %v3193_v1 = vmul.f32 %v6142_v16, %v6132_v36 }
 0x245   : > { %v6136_v33 = vld [vmem:[%s7017_s30 + $0x1a1] sm:$0xff]  ;;  %v6137_v54 = vld [vmem:[%s7017_s30 + $0x1b1] sm:$0xff]  ;;  %v6138_v45 = vld [vmem:[%s7017_s30 + $0x1b9] sm:$0xff]  ;;  %v3194_v34 = vmul.f32 %v6142_v16, %v6133_v19  ;;  %v3195_v46 = vmul.f32 %v6142_v16, %v6134_v44  ;;  %v3196_v58 = vmul.f32 %v6142_v16, %v6135_v0  ;;  %v11128_v4 = vadd.f32 %v3170_v55, %v10997_v8 }
 0x246   : > { %v6139_v56 = vld [vmem:[%s7017_s30 + $0x1c9] sm:$0xff]  ;;  %v6140_v57 = vld [vmem:[%s7017_s30 + $0x1d1] sm:$0xff]  ;;  %v3197_v48 = vmul.f32 %v6142_v16, %v6136_v33  ;;  %v3198_v52 = vmul.f32 %v6142_v16, %v6137_v54  ;;  %v3199_v23 = vmul.f32 %v6142_v16, %v6138_v45  ;;  %v11131_v13 = vadd.f32 %v3171_v18, %v11000_v11  ;;  %v6145_v36 = vld [vmem:[%s7017_s30 + $0x7a] sm:$0xff] }
 0x247   : > { %v3200_v7 = vmul.f32 %v6142_v16, %v6139_v56  ;;  %v3201_v25 = vmul.f32 %v6142_v16, %v6140_v57  ;;  %v11134_v10 = vadd.f32 %v3172_v61, %v11003_v31  ;;  %v11137_v44 = vadd.f32 %v3173_v37, %v11006_v30  ;;  %v6143_v19 = vld [vmem:[%s7017_s30 + $0x62] sm:$0xff]  ;;  %v6147_v55 = vld [vmem:[%s7017_s30 + $0x92] sm:$0xff]  ;;  %v6148_v18 = vld [vmem:[%s7017_s30 + $0x9a] sm:$0xff] }
 0x248   : > { %v11140_v54 = vadd.f32 %v3174_v21, %v11009_v38  ;;  %v11143_v57 = vadd.f32 %v3175_v40, %v11012_v5  ;;  %v11146_v8 = vadd.f32 %v3176_v32, %v11015_v41  ;;  %v11149_v11 = vadd.f32 %v3177_v6, %v11018_v39  ;;  %v6149_v61 = vld [vmem:[%s7017_s30 + $0xaa] sm:$0xff]  ;;  %v6150_v37 = vld [vmem:[%s7017_s30 + $0xb2] sm:$0xff]  ;;  %v14691_v47 = vld [vmem:[#allocation5_spill] sm:$0xff] }
 0x249   : > { %v11152_v31 = vadd.f32 %v3178_v27, %v11021_v24  ;;  %v11155_v30 = vadd.f32 %v3179_v22, %v11024_v60  ;;  %v11158_v38 = vadd.f32 %v3180_v50, %v11027_v3  ;;  %v11161_v5 = vadd.f32 %v3181_v42, %v11030_v43  ;;  %v14677_v24 = vld [vmem:[#allocation16_spill] sm:$0xff]  ;;  %v14679_v60 = vld [vmem:[#allocation17_spill] sm:$0xff]  ;;  %v6144_v3 = vld [vmem:[%s7017_s30 + $0x6a] sm:$0xff] }
 0x24a   : > { %v11164_v41 = vadd.f32 %v3182_v53, %v11033_v17  ;;  %v11167_v39 = vadd.f32 %v3183_v59, %v11036_v2  ;;  %v11170_v16 = vadd.f32 %v3184_v12, %v14677_v24  ;;  %v11173_v33 = vadd.f32 %v3185_v9, %v14679_v60  ;;  %v6146_v43 = vld [vmem:[%s7017_s30 + $0x82] sm:$0xff]  ;;  %v14683_v17 = vld [vmem:[#allocation19_spill] sm:$0xff]  ;;  %v14685_v2 = vld [vmem:[#allocation20_spill] sm:$0xff] }
 0x24b   : > { %v14681_v42 = vld [vmem:[#allocation18_spill] sm:$0xff]  ;;  %v11183_v53 = vadd.f32 %v3187_v35, %v14683_v17  ;;  %v11186_v59 = vadd.f32 %v3188_v63, %v14685_v2  ;;  %v14687_v12 = vld [vmem:[#allocation21_spill] sm:$0xff]  ;;  %v11199_v21 = vadd.f32 %v3191_v62, %v14691_v47  ;;  %v14695_v63 = vld [vmem:[#allocation7_spill] sm:$0xff] }
 0x24c   : > { %14678 = vst [vmem:[#allocation16_spill] sm:$0xff] %v11170_v16  ;;  %14680 = vst [vmem:[#allocation17_spill] sm:$0xff] %v11173_v33  ;;  %v11180_v15 = vadd.f32 %v3186_v49, %v14681_v42  ;;  %v11189_v51 = vadd.f32 %v3189_v20, %v14687_v12  ;;  %v14689_v26 = vld [vmem:[#allocation22_spill] sm:$0xff]  ;;  %v11205_v32 = vadd.f32 %v3193_v1, %v14695_v63  ;;  %v6153_v27 = vld [vmem:[%s7017_s30 + $0xda] sm:$0xff] }
 0x24d   : > { %14684 = vst [vmem:[#allocation19_spill] sm:$0xff] %v11183_v53  ;;  %14686 = vst [vmem:[#allocation20_spill] sm:$0xff] %v11186_v59  ;;  %v11196_v14 = vadd.f32 %v3190_v28, %v14689_v26  ;;  %v14693_v35 = vld [vmem:[#allocation6_spill] sm:$0xff]  ;;  %v6176_v28 = vld [vmem:[%s13780_s1 + $0x22] ss:$0 sm:$0xff] }
 0x24e   : > { %14682 = vst [vmem:[#allocation18_spill] sm:$0xff] %v11180_v15  ;;  %14688 = vst [vmem:[#allocation21_spill] sm:$0xff] %v11189_v51  ;;  %v11202_v40 = vadd.f32 %v3192_v29, %v14693_v35  ;;  %v6151_v20 = vld [vmem:[%s7017_s30 + $0xc2] sm:$0xff]  ;;  %v6152_v6 = vld [vmem:[%s7017_s30 + $0xca] sm:$0xff] }
 0x24f   : > { %14690 = vst [vmem:[#allocation22_spill] sm:$0xff] %v11196_v14  ;;  %14692 = vst [vmem:[#allocation5_spill] sm:$0xff] %v11199_v21  ;;  %v14697_v22 = vld [vmem:[#allocation8_spill] sm:$0xff]  ;;  %v14699_v50 = vld [vmem:[#allocation9_spill] sm:$0xff] }
 0x250   : > { %14694 = vst [vmem:[#allocation6_spill] sm:$0xff] %v11202_v40  ;;  %14696 = vst [vmem:[#allocation7_spill] sm:$0xff] %v11205_v32  ;;  %v11214_v62 = vadd.f32 %v3194_v34, %v14697_v22  ;;  %v11217_v0 = vadd.f32 %v3195_v46, %v14699_v50  ;;  %v14701_v9 = vld [vmem:[#allocation10_spill] sm:$0xff]  ;;  %v14703_v56 = vld [vmem:[#allocation11_spill] sm:$0xff]  ;;  %v3271_v22 = vmul.f32 %v6176_v28, %v6143_v19 }
 0x251   : > { %v11220_v45 = vadd.f32 %v3196_v58, %v14701_v9  ;;  %v11223_v49 = vadd.f32 %v3197_v48, %v14703_v56  ;;  %v6154_v29 = vld [vmem:[%s7017_s30 + $0xe2] sm:$0xff]  ;;  %v6155_v1 = vld [vmem:[%s7017_s30 + $0xf2] sm:$0xff]  ;;  %v6156_v24 = vld [vmem:[%s7017_s30 + $0xfa] sm:$0xff]  ;;  %v3272_v50 = vmul.f32 %v6176_v28, %v6144_v3  ;;  %v3273_v9 = vmul.f32 %v6176_v28, %v6145_v36 }
 0x252   : > { %14698 = vst [vmem:[#allocation8_spill] sm:$0xff] %v11214_v62  ;;  %14700 = vst [vmem:[#allocation9_spill] sm:$0xff] %v11217_v0  ;;  %v14705_v60 = vld [vmem:[#allocation12_spill] sm:$0xff]  ;;  %v14707_v34 = vld [vmem:[#allocation13_spill] sm:$0xff]  ;;  %v3279_v19 = vmul.f32 %v6176_v28, %v6151_v20  ;;  %v3280_v3 = vmul.f32 %v6176_v28, %v6152_v6  ;;  %v3281_v36 = vmul.f32 %v6176_v28, %v6153_v27 }
 0x253   : > { %14702 = vst [vmem:[#allocation10_spill] sm:$0xff] %v11220_v45  ;;  %14704 = vst [vmem:[#allocation11_spill] sm:$0xff] %v11223_v49  ;;  %v11229_v42 = vadd.f32 %v3198_v52, %v14705_v60  ;;  %v11232_v17 = vadd.f32 %v3199_v23, %v14707_v34  ;;  %v14709_v46 = vld [vmem:[#allocation14_spill] sm:$0xff]  ;;  %v14711_v58 = vld [vmem:[#allocation15_spill] sm:$0xff]  ;;  %v3274_v23 = vmul.f32 %v6176_v28, %v6146_v43 }
 0x254   : > { %v11235_v2 = vadd.f32 %v3200_v7, %v14709_v46  ;;  %v11238_v12 = vadd.f32 %v3201_v25, %v14711_v58  ;;  %v6157_v48 = vld [vmem:[%s7017_s30 + $0x10a] sm:$0xff]  ;;  %v6158_v26 = vld [vmem:[%s7017_s30 + $0x112] sm:$0xff]  ;;  %v6159_v47 = vld [vmem:[%s7017_s30 + $0x122] sm:$0xff]  ;;  %v3275_v60 = vmul.f32 %v6176_v28, %v6147_v55  ;;  %v3276_v34 = vmul.f32 %v6176_v28, %v6148_v18 }
 0x255   : > { %14706 = vst [vmem:[#allocation12_spill] sm:$0xff] %v11229_v42  ;;  %14708 = vst [vmem:[#allocation13_spill] sm:$0xff] %v11232_v17  ;;  %v6160_v35 = vld [vmem:[%s7017_s30 + $0x12a] sm:$0xff]  ;;  %v6161_v63 = vld [vmem:[%s7017_s30 + $0x13a] sm:$0xff]  ;;  %v3277_v46 = vmul.f32 %v6176_v28, %v6149_v61  ;;  %v3278_v58 = vmul.f32 %v6176_v28, %v6150_v37  ;;  %v3282_v42 = vmul.f32 %v6176_v28, %v6154_v29 }
 0x256   : > { %14710 = vst [vmem:[#allocation14_spill] sm:$0xff] %v11235_v2  ;;  %14712 = vst [vmem:[#allocation15_spill] sm:$0xff] %v11238_v12  ;;  %v6162_v52 = vld [vmem:[%s7017_s30 + $0x142] sm:$0xff]  ;;  %v6163_v7 = vld [vmem:[%s7017_s30 + $0x152] sm:$0xff]  ;;  %v3283_v0 = vmul.f32 %v6176_v28, %v6155_v1  ;;  %v3284_v62 = vmul.f32 %v6176_v28, %v6156_v24  ;;  %v3285_v32 = vmul.f32 %v6176_v28, %v6157_v48 }
 0x257   : > { %v6164_v56 = vld [vmem:[%s7017_s30 + $0x15a] sm:$0xff]  ;;  %v6165_v25 = vld [vmem:[%s7017_s30 + $0x16a] sm:$0xff]  ;;  %v6166_v12 = vld [vmem:[%s7017_s30 + $0x172] sm:$0xff]  ;;  %v3286_v55 = vmul.f32 %v6176_v28, %v6158_v26  ;;  %v3287_v37 = vmul.f32 %v6176_v28, %v6159_v47  ;;  %v3288_v21 = vmul.f32 %v6176_v28, %v6160_v35  ;;  %v3289_v14 = vmul.f32 %v6176_v28, %v6161_v63 }
 0x258   : > { %v6167_v2 = vld [vmem:[%s7017_s30 + $0x182] sm:$0xff]  ;;  %v6168_v17 = vld [vmem:[%s7017_s30 + $0x18a] sm:$0xff]  ;;  %v6169_v43 = vld [vmem:[%s7017_s30 + $0x19a] sm:$0xff]  ;;  %v3290_v51 = vmul.f32 %v6176_v28, %v6162_v52  ;;  %v3291_v59 = vmul.f32 %v6176_v28, %v6163_v7  ;;  %v3292_v53 = vmul.f32 %v6176_v28, %v6164_v56  ;;  %v3293_v20 = vmul.f32 %v6176_v28, %v6165_v25 }
 0x259   : > { %v6170_v49 = vld [vmem:[%s7017_s30 + $0x1a2] sm:$0xff]  ;;  %v6171_v45 = vld [vmem:[%s7017_s30 + $0x1b2] sm:$0xff]  ;;  %v6172_v18 = vld [vmem:[%s7017_s30 + $0x1ba] sm:$0xff]  ;;  %v3294_v6 = vmul.f32 %v6176_v28, %v6166_v12  ;;  %v3295_v27 = vmul.f32 %v6176_v28, %v6167_v2  ;;  %v3296_v29 = vmul.f32 %v6176_v28, %v6168_v17  ;;  %v3297_v15 = vmul.f32 %v6176_v28, %v6169_v43 }
 0x25a   : > { %v6173_v61 = vld [vmem:[%s7017_s30 + $0x1ca] sm:$0xff]  ;;  %v6174_v40 = vld [vmem:[%s7017_s30 + $0x1d2] sm:$0xff]  ;;  %v3298_v33 = vmul.f32 %v6176_v28, %v6170_v49  ;;  %v3299_v16 = vmul.f32 %v6176_v28, %v6171_v45  ;;  %v3300_v1 = vmul.f32 %v6176_v28, %v6172_v18  ;;  %v11259_v26 = vadd.f32 %v3271_v22, %v11128_v4  ;;  %v6179_v12 = vld [vmem:[%s7017_s30 + $0x7b] sm:$0xff] }
 0x25b   : > { %v3301_v24 = vmul.f32 %v6176_v28, %v6173_v61  ;;  %v3302_v48 = vmul.f32 %v6176_v28, %v6174_v40  ;;  %v11262_v47 = vadd.f32 %v3272_v50, %v11131_v13  ;;  %v11265_v35 = vadd.f32 %v3273_v9, %v11134_v10  ;;  %v6177_v2 = vld [vmem:[%s7017_s30 + $0x63] sm:$0xff]  ;;  %v6181_v22 = vld [vmem:[%s7017_s30 + $0x93] sm:$0xff]  ;;  %v6182_v50 = vld [vmem:[%s7017_s30 + $0x9b] sm:$0xff] }
 0x25c   : > { %v11268_v17 = vadd.f32 %v3274_v23, %v11137_v44  ;;  %v11271_v45 = vadd.f32 %v3275_v60, %v11140_v54  ;;  %v11274_v40 = vadd.f32 %v3276_v34, %v11143_v57  ;;  %v11277_v4 = vadd.f32 %v3277_v46, %v11146_v8  ;;  %v6183_v9 = vld [vmem:[%s7017_s30 + $0xab] sm:$0xff]  ;;  %v6184_v23 = vld [vmem:[%s7017_s30 + $0xb3] sm:$0xff]  ;;  %v14727_v25 = vld [vmem:[#allocation5_spill] sm:$0xff] }
 0x25d   : > { %v11280_v13 = vadd.f32 %v3278_v58, %v11149_v11  ;;  %v11283_v10 = vadd.f32 %v3279_v19, %v11152_v31  ;;  %v11286_v44 = vadd.f32 %v3280_v3, %v11155_v30  ;;  %v11289_v54 = vadd.f32 %v3281_v36, %v11158_v38  ;;  %v14713_v31 = vld [vmem:[#allocation16_spill] sm:$0xff]  ;;  %v14715_v30 = vld [vmem:[#allocation17_spill] sm:$0xff]  ;;  %v6178_v38 = vld [vmem:[%s7017_s30 + $0x6b] sm:$0xff] }
 0x25e   : > { %v11292_v57 = vadd.f32 %v3282_v42, %v11161_v5  ;;  %v11295_v8 = vadd.f32 %v3283_v0, %v11164_v41  ;;  %v11298_v11 = vadd.f32 %v3284_v62, %v11167_v39  ;;  %v11301_v28 = vadd.f32 %v3285_v32, %v14713_v31  ;;  %v6180_v5 = vld [vmem:[%s7017_s30 + $0x83] sm:$0xff]  ;;  %v14719_v41 = vld [vmem:[#allocation19_spill] sm:$0xff]  ;;  %v14721_v39 = vld [vmem:[#allocation20_spill] sm:$0xff] }
 0x25f   : > { %v11304_v49 = vadd.f32 %v3286_v55, %v14715_v30  ;;  %v14717_v42 = vld [vmem:[#allocation18_spill] sm:$0xff]  ;;  %v11314_v0 = vadd.f32 %v3288_v21, %v14719_v41  ;;  %v11317_v62 = vadd.f32 %v3289_v14, %v14721_v39  ;;  %v14723_v32 = vld [vmem:[#allocation21_spill] sm:$0xff]  ;;  %v11330_v60 = vadd.f32 %v3292_v53, %v14727_v25  ;;  %v14731_v14 = vld [vmem:[#allocation7_spill] sm:$0xff] }
 0x260   : > { %14714 = vst [vmem:[#allocation16_spill] sm:$0xff] %v11301_v28  ;;  %v11311_v63 = vadd.f32 %v3287_v37, %v14717_v42  ;;  %v11320_v52 = vadd.f32 %v3290_v51, %v14723_v32  ;;  %v14725_v7 = vld [vmem:[#allocation22_spill] sm:$0xff]  ;;  %v11336_v46 = vadd.f32 %v3294_v6, %v14731_v14  ;;  %v6187_v19 = vld [vmem:[%s7017_s30 + $0xdb] sm:$0xff]  ;;  %v14739_v61 = vld [vmem:[#allocation11_spill] sm:$0xff] }
 0x261   : > { %14716 = vst [vmem:[#allocation17_spill] sm:$0xff] %v11304_v49  ;;  %14720 = vst [vmem:[#allocation19_spill] sm:$0xff] %v11314_v0  ;;  %v11327_v56 = vadd.f32 %v3291_v59, %v14725_v7  ;;  %v14729_v21 = vld [vmem:[#allocation6_spill] sm:$0xff]  ;;  %v6210_v59 = vld [vmem:[%s13780_s1 + $0x23] ss:$0 sm:$0xff]  ;;  %v11354_v37 = vadd.f32 %v3298_v33, %v14739_v61 }
 0x262   : > { %14718 = vst [vmem:[#allocation18_spill] sm:$0xff] %v11311_v63  ;;  %14722 = vst [vmem:[#allocation20_spill] sm:$0xff] %v11317_v62  ;;  %v11333_v34 = vadd.f32 %v3293_v20, %v14729_v21  ;;  %v6185_v51 = vld [vmem:[%s7017_s30 + $0xc3] sm:$0xff]  ;;  %v6186_v58 = vld [vmem:[%s7017_s30 + $0xcb] sm:$0xff] }
 0x263   : > { %14724 = vst [vmem:[#allocation21_spill] sm:$0xff] %v11320_v52  ;;  %14726 = vst [vmem:[#allocation22_spill] sm:$0xff] %v11327_v56  ;;  %v14733_v3 = vld [vmem:[#allocation8_spill] sm:$0xff]  ;;  %v14735_v36 = vld [vmem:[#allocation9_spill] sm:$0xff] }
 0x264   : > { %14728 = vst [vmem:[#allocation5_spill] sm:$0xff] %v11330_v60  ;;  %14730 = vst [vmem:[#allocation6_spill] sm:$0xff] %v11333_v34  ;;  %v11345_v53 = vadd.f32 %v3295_v27, %v14733_v3  ;;  %v11348_v43 = vadd.f32 %v3296_v29, %v14735_v36  ;;  %v14737_v55 = vld [vmem:[#allocation10_spill] sm:$0xff]  ;;  %v6189_v6 = vld [vmem:[%s7017_s30 + $0xf3] sm:$0xff]  ;;  %v3372_v3 = vmul.f32 %v6210_v59, %v6177_v2 }
 0x265   : > { %14732 = vst [vmem:[#allocation7_spill] sm:$0xff] %v11336_v46  ;;  %v11351_v18 = vadd.f32 %v3297_v15, %v14737_v55  ;;  %14740 = vst [vmem:[#allocation11_spill] sm:$0xff] %v11354_v37  ;;  %v6188_v20 = vld [vmem:[%s7017_s30 + $0xe3] sm:$0xff]  ;;  %v6190_v31 = vld [vmem:[%s7017_s30 + $0xfb] sm:$0xff]  ;;  %v3373_v36 = vmul.f32 %v6210_v59, %v6178_v38  ;;  %v3374_v55 = vmul.f32 %v6210_v59, %v6179_v12 }
 0x266   : > { %14734 = vst [vmem:[#allocation8_spill] sm:$0xff] %v11345_v53  ;;  %14736 = vst [vmem:[#allocation9_spill] sm:$0xff] %v11348_v43  ;;  %v14741_v30 = vld [vmem:[#allocation12_spill] sm:$0xff]  ;;  %v14743_v27 = vld [vmem:[#allocation13_spill] sm:$0xff]  ;;  %v3380_v2 = vmul.f32 %v6210_v59, %v6185_v51  ;;  %v3381_v38 = vmul.f32 %v6210_v59, %v6186_v58  ;;  %v3382_v12 = vmul.f32 %v6210_v59, %v6187_v19 }
 0x267   : > { %14738 = vst [vmem:[#allocation10_spill] sm:$0xff] %v11351_v18  ;;  %v11360_v42 = vadd.f32 %v3299_v16, %v14741_v30  ;;  %v11363_v41 = vadd.f32 %v3300_v1, %v14743_v27  ;;  %v14745_v29 = vld [vmem:[#allocation14_spill] sm:$0xff]  ;;  %v14747_v15 = vld [vmem:[#allocation15_spill] sm:$0xff]  ;;  %v6195_v14 = vld [vmem:[%s7017_s30 + $0x13b] sm:$0xff]  ;;  %v3375_v1 = vmul.f32 %v6210_v59, %v6180_v5  ;;  %v3376_v30 = vmul.f32 %v6210_v59, %v6181_v22 }
 0x268   : > { %v11366_v39 = vadd.f32 %v3301_v24, %v14745_v29  ;;  %v11369_v32 = vadd.f32 %v3302_v48, %v14747_v15  ;;  %v6191_v33 = vld [vmem:[%s7017_s30 + $0x10b] sm:$0xff]  ;;  %v6192_v7 = vld [vmem:[%s7017_s30 + $0x113] sm:$0xff]  ;;  %v6193_v25 = vld [vmem:[%s7017_s30 + $0x123] sm:$0xff]  ;;  %v3377_v27 = vmul.f32 %v6210_v59, %v6182_v50  ;;  %v3378_v29 = vmul.f32 %v6210_v59, %v6183_v9 }
 0x269   : > { %14742 = vst [vmem:[#allocation12_spill] sm:$0xff] %v11360_v42  ;;  %14744 = vst [vmem:[#allocation13_spill] sm:$0xff] %v11363_v41  ;;  %v6194_v21 = vld [vmem:[%s7017_s30 + $0x12b] sm:$0xff]  ;;  %v6196_v16 = vld [vmem:[%s7017_s30 + $0x143] sm:$0xff]  ;;  %v3379_v15 = vmul.f32 %v6210_v59, %v6184_v23  ;;  %v3383_v42 = vmul.f32 %v6210_v59, %v6188_v20  ;;  %v3384_v43 = vmul.f32 %v6210_v59, %v6189_v6 }
 0x26a   : > { %14746 = vst [vmem:[#allocation14_spill] sm:$0xff] %v11366_v39  ;;  %14748 = vst [vmem:[#allocation15_spill] sm:$0xff] %v11369_v32  ;;  %v6197_v24 = vld [vmem:[%s7017_s30 + $0x153] sm:$0xff]  ;;  %v6198_v61 = vld [vmem:[%s7017_s30 + $0x15b] sm:$0xff]  ;;  %v3385_v53 = vmul.f32 %v6210_v59, %v6190_v31  ;;  %v3386_v46 = vmul.f32 %v6210_v59, %v6191_v33  ;;  %v3387_v22 = vmul.f32 %v6210_v59, %v6192_v7 }
 0x26b   : > { %v6199_v48 = vld [vmem:[%s7017_s30 + $0x16b] sm:$0xff]  ;;  %v6200_v32 = vld [vmem:[%s7017_s30 + $0x173] sm:$0xff]  ;;  %v6201_v39 = vld [vmem:[%s7017_s30 + $0x183] sm:$0xff]  ;;  %v3388_v23 = vmul.f32 %v6210_v59, %v6193_v25  ;;  %v3389_v60 = vmul.f32 %v6210_v59, %v6194_v21  ;;  %v3390_v56 = vmul.f32 %v6210_v59, %v6195_v14  ;;  %v3391_v52 = vmul.f32 %v6210_v59, %v6196_v16 }
 0x26c   : > { %v6202_v41 = vld [vmem:[%s7017_s30 + $0x18b] sm:$0xff]  ;;  %v6203_v5 = vld [vmem:[%s7017_s30 + $0x19b] sm:$0xff]  ;;  %v6204_v37 = vld [vmem:[%s7017_s30 + $0x1a3] sm:$0xff]  ;;  %v3392_v62 = vmul.f32 %v6210_v59, %v6197_v24  ;;  %v3393_v0 = vmul.f32 %v6210_v59, %v6198_v61  ;;  %v3394_v51 = vmul.f32 %v6210_v59, %v6199_v48  ;;  %v3395_v58 = vmul.f32 %v6210_v59, %v6200_v32 }
 0x26d   : > { %v6205_v18 = vld [vmem:[%s7017_s30 + $0x1b3] sm:$0xff]  ;;  %v6206_v50 = vld [vmem:[%s7017_s30 + $0x1bb] sm:$0xff]  ;;  %v6207_v9 = vld [vmem:[%s7017_s30 + $0x1cb] sm:$0xff]  ;;  %v3396_v19 = vmul.f32 %v6210_v59, %v6201_v39  ;;  %v3397_v20 = vmul.f32 %v6210_v59, %v6202_v41  ;;  %v3398_v63 = vmul.f32 %v6210_v59, %v6203_v5  ;;  %v3399_v49 = vmul.f32 %v6210_v59, %v6204_v37 }
 0x26e   : > { %v6208_v34 = vld [vmem:[%s7017_s30 + $0x1d3] sm:$0xff]  ;;  %v3400_v28 = vmul.f32 %v6210_v59, %v6205_v18  ;;  %v3401_v6 = vmul.f32 %v6210_v59, %v6206_v50  ;;  %v3402_v31 = vmul.f32 %v6210_v59, %v6207_v9  ;;  %v11390_v7 = vadd.f32 %v3372_v3, %v11259_v26  ;;  %v6211_v39 = vld [vmem:[%s7017_s30 + $0x64] sm:$0xff]  ;;  %v6213_v32 = vld [vmem:[%s7017_s30 + $0x7c] sm:$0xff] }
 0x26f   : > { %v3403_v33 = vmul.f32 %v6210_v59, %v6208_v34  ;;  %v11393_v25 = vadd.f32 %v3373_v36, %v11262_v47  ;;  %v11396_v21 = vadd.f32 %v3374_v55, %v11265_v35  ;;  %v11399_v41 = vadd.f32 %v3375_v1, %v11268_v17  ;;  %v6215_v3 = vld [vmem:[%s7017_s30 + $0x94] sm:$0xff]  ;;  %v6216_v36 = vld [vmem:[%s7017_s30 + $0x9c] sm:$0xff]  ;;  %v6217_v55 = vld [vmem:[%s7017_s30 + $0xac] sm:$0xff] }
 0x270   : > { %v11402_v18 = vadd.f32 %v3376_v30, %v11271_v45  ;;  %v11405_v34 = vadd.f32 %v3377_v27, %v11274_v40  ;;  %v11408_v26 = vadd.f32 %v3378_v29, %v11277_v4  ;;  %v11411_v47 = vadd.f32 %v3379_v15, %v11280_v13  ;;  %v6218_v1 = vld [vmem:[%s7017_s30 + $0xb4] sm:$0xff]  ;;  %v14761_v24 = vld [vmem:[#allocation22_spill] sm:$0xff]  ;;  %v14763_v48 = vld [vmem:[#allocation5_spill] sm:$0xff] }
 0x271   : > { %v11414_v35 = vadd.f32 %v3380_v2, %v11283_v10  ;;  %v11417_v17 = vadd.f32 %v3381_v38, %v11286_v44  ;;  %v11420_v45 = vadd.f32 %v3382_v12, %v11289_v54  ;;  %v11423_v40 = vadd.f32 %v3383_v42, %v11292_v57  ;;  %v14749_v10 = vld [vmem:[#allocation16_spill] sm:$0xff]  ;;  %v14751_v44 = vld [vmem:[#allocation17_spill] sm:$0xff]  ;;  %v6212_v54 = vld [vmem:[%s7017_s30 + $0x6c] sm:$0xff] }
 0x272   : > { %v11426_v4 = vadd.f32 %v3384_v43, %v11295_v8  ;;  %v11429_v13 = vadd.f32 %v3385_v53, %v11298_v11  ;;  %v11432_v59 = vadd.f32 %v3386_v46, %v14749_v10  ;;  %v11435_v37 = vadd.f32 %v3387_v22, %v14751_v44  ;;  %v6214_v57 = vld [vmem:[%s7017_s30 + $0x84] sm:$0xff]  ;;  %v14755_v8 = vld [vmem:[#allocation19_spill] sm:$0xff]  ;;  %v14757_v11 = vld [vmem:[#allocation20_spill] sm:$0xff] }
 0x273   : > { %v14753_v42 = vld [vmem:[#allocation18_spill] sm:$0xff]  ;;  %v11445_v43 = vadd.f32 %v3389_v60, %v14755_v8  ;;  %v11448_v53 = vadd.f32 %v3390_v56, %v14757_v11  ;;  %v14759_v46 = vld [vmem:[#allocation21_spill] sm:$0xff]  ;;  %v11458_v61 = vadd.f32 %v3392_v62, %v14761_v24  ;;  %v11461_v30 = vadd.f32 %v3393_v0, %v14763_v48  ;;  %v14767_v56 = vld [vmem:[#allocation7_spill] sm:$0xff] }
 0x274   : > { %14750 = vst [vmem:[#allocation16_spill] sm:$0xff] %v11432_v59  ;;  %14752 = vst [vmem:[#allocation17_spill] sm:$0xff] %v11435_v37  ;;  %v11442_v14 = vadd.f32 %v3388_v23, %v14753_v42  ;;  %v11451_v16 = vadd.f32 %v3391_v52, %v14759_v46  ;;  %v14765_v60 = vld [vmem:[#allocation6_spill] sm:$0xff]  ;;  %v11467_v29 = vadd.f32 %v3395_v58, %v14767_v56  ;;  %v6221_v2 = vld [vmem:[%s7017_s30 + $0xdc] sm:$0xff] }
 0x275   : > { %14756 = vst [vmem:[#allocation19_spill] sm:$0xff] %v11445_v43  ;;  %14758 = vst [vmem:[#allocation20_spill] sm:$0xff] %v11448_v53  ;;  %v11464_v27 = vadd.f32 %v3394_v51, %v14765_v60  ;;  %v6219_v52 = vld [vmem:[%s7017_s30 + $0xc4] sm:$0xff]  ;;  %v6220_v15 = vld [vmem:[%s7017_s30 + $0xcc] sm:$0xff] }
 0x276   : > { %14754 = vst [vmem:[#allocation18_spill] sm:$0xff] %v11442_v14  ;;  %14760 = vst [vmem:[#allocation21_spill] sm:$0xff] %v11451_v16  ;;  %v6244_v62 = vld [vmem:[%s13780_s1 + $0x24] ss:$0 sm:$0xff]  ;;  %v14769_v38 = vld [vmem:[#allocation8_spill] sm:$0xff] }
 0x277   : > { %14762 = vst [vmem:[#allocation22_spill] sm:$0xff] %v11458_v61  ;;  %14764 = vst [vmem:[#allocation5_spill] sm:$0xff] %v11461_v30  ;;  %v11476_v0 = vadd.f32 %v3396_v19, %v14769_v38  ;;  %v14771_v12 = vld [vmem:[#allocation9_spill] sm:$0xff]  ;;  %v14773_v22 = vld [vmem:[#allocation10_spill] sm:$0xff]  ;;  %v3473_v38 = vmul.f32 %v6244_v62, %v6211_v39  ;;  %v3481_v39 = vmul.f32 %v6244_v62, %v6219_v52 }
 0x278   : > { %14766 = vst [vmem:[#allocation6_spill] sm:$0xff] %v11464_v27  ;;  %14768 = vst [vmem:[#allocation7_spill] sm:$0xff] %v11467_v29  ;;  %v11479_v5 = vadd.f32 %v3397_v20, %v14771_v12  ;;  %v11482_v50 = vadd.f32 %v3398_v63, %v14773_v22  ;;  %v14775_v9 = vld [vmem:[#allocation11_spill] sm:$0xff]  ;;  %v6222_v51 = vld [vmem:[%s7017_s30 + $0xe4] sm:$0xff]  ;;  %v3474_v12 = vmul.f32 %v6244_v62, %v6212_v54 }
 0x279   : > { %14770 = vst [vmem:[#allocation8_spill] sm:$0xff] %v11476_v0  ;;  %v11485_v23 = vadd.f32 %v3399_v49, %v14775_v9  ;;  %v6223_v58 = vld [vmem:[%s7017_s30 + $0xf4] sm:$0xff]  ;;  %v6224_v10 = vld [vmem:[%s7017_s30 + $0xfc] sm:$0xff]  ;;  %v14781_v20 = vld [vmem:[#allocation14_spill] sm:$0xff]  ;;  %v3475_v22 = vmul.f32 %v6244_v62, %v6213_v32  ;;  %v3482_v54 = vmul.f32 %v6244_v62, %v6220_v15  ;;  %v3483_v32 = vmul.f32 %v6244_v62, %v6221_v2 }
 0x27a   : > { %14772 = vst [vmem:[#allocation9_spill] sm:$0xff] %v11479_v5  ;;  %14774 = vst [vmem:[#allocation10_spill] sm:$0xff] %v11482_v50  ;;  %v14777_v44 = vld [vmem:[#allocation12_spill] sm:$0xff]  ;;  %v14779_v19 = vld [vmem:[#allocation13_spill] sm:$0xff]  ;;  %v11497_v11 = vadd.f32 %v3402_v31, %v14781_v20  ;;  %v3479_v20 = vmul.f32 %v6244_v62, %v6217_v55  ;;  %v3485_v5 = vmul.f32 %v6244_v62, %v6223_v58 }
 0x27b   : > { %14776 = vst [vmem:[#allocation11_spill] sm:$0xff] %v11485_v23  ;;  %v11491_v42 = vadd.f32 %v3400_v28, %v14777_v44  ;;  %v11494_v8 = vadd.f32 %v3401_v6, %v14779_v19  ;;  %v14783_v63 = vld [vmem:[#allocation15_spill] sm:$0xff]  ;;  %v6227_v48 = vld [vmem:[%s7017_s30 + $0x124] sm:$0xff]  ;;  %v6229_v56 = vld [vmem:[%s7017_s30 + $0x13c] sm:$0xff]  ;;  %v3476_v6 = vmul.f32 %v6244_v62, %v6214_v57  ;;  %v3477_v44 = vmul.f32 %v6244_v62, %v6215_v3 }
 0x27c   : > { %14782 = vst [vmem:[#allocation14_spill] sm:$0xff] %v11497_v11  ;;  %v11500_v46 = vadd.f32 %v3403_v33, %v14783_v63  ;;  %v6225_v49 = vld [vmem:[%s7017_s30 + $0x10c] sm:$0xff]  ;;  %v6226_v24 = vld [vmem:[%s7017_s30 + $0x114] sm:$0xff]  ;;  %v6230_v28 = vld [vmem:[%s7017_s30 + $0x144] sm:$0xff]  ;;  %v3478_v19 = vmul.f32 %v6244_v62, %v6216_v36  ;;  %v3480_v63 = vmul.f32 %v6244_v62, %v6218_v1  ;;  %v3486_v0 = vmul.f32 %v6244_v62, %v6224_v10 }
 0x27d   : > { %14778 = vst [vmem:[#allocation12_spill] sm:$0xff] %v11491_v42  ;;  %14780 = vst [vmem:[#allocation13_spill] sm:$0xff] %v11494_v8  ;;  %v6228_v60 = vld [vmem:[%s7017_s30 + $0x12c] sm:$0xff]  ;;  %v6231_v31 = vld [vmem:[%s7017_s30 + $0x154] sm:$0xff]  ;;  %v3484_v42 = vmul.f32 %v6244_v62, %v6222_v51  ;;  %v3487_v29 = vmul.f32 %v6244_v62, %v6225_v49  ;;  %v3488_v3 = vmul.f32 %v6244_v62, %v6226_v24 }
 0x27e   : > { %14784 = vst [vmem:[#allocation15_spill] sm:$0xff] %v11500_v46  ;;  %v6232_v9 = vld [vmem:[%s7017_s30 + $0x15c] sm:$0xff]  ;;  %v6233_v33 = vld [vmem:[%s7017_s30 + $0x16c] sm:$0xff]  ;;  %v6234_v46 = vld [vmem:[%s7017_s30 + $0x174] sm:$0xff]  ;;  %v3489_v1 = vmul.f32 %v6244_v62, %v6227_v48  ;;  %v3490_v30 = vmul.f32 %v6244_v62, %v6228_v60  ;;  %v3491_v61 = vmul.f32 %v6244_v62, %v6229_v56  ;;  %v3492_v16 = vmul.f32 %v6244_v62, %v6230_v28 }
 0x27f   : > { %v6235_v11 = vld [vmem:[%s7017_s30 + $0x184] sm:$0xff]  ;;  %v6236_v8 = vld [vmem:[%s7017_s30 + $0x18c] sm:$0xff]  ;;  %v6237_v57 = vld [vmem:[%s7017_s30 + $0x19c] sm:$0xff]  ;;  %v3493_v53 = vmul.f32 %v6244_v62, %v6231_v31  ;;  %v3494_v43 = vmul.f32 %v6244_v62, %v6232_v9  ;;  %v3495_v52 = vmul.f32 %v6244_v62, %v6233_v33  ;;  %v3496_v15 = vmul.f32 %v6244_v62, %v6234_v46 }
 0x280   : > { %v6238_v23 = vld [vmem:[%s7017_s30 + $0x1a4] sm:$0xff]  ;;  %v6239_v50 = vld [vmem:[%s7017_s30 + $0x1b4] sm:$0xff]  ;;  %v6240_v36 = vld [vmem:[%s7017_s30 + $0x1bc] sm:$0xff]  ;;  %v3497_v2 = vmul.f32 %v6244_v62, %v6235_v11  ;;  %v3498_v51 = vmul.f32 %v6244_v62, %v6236_v8  ;;  %v3499_v14 = vmul.f32 %v6244_v62, %v6237_v57  ;;  %v11521_v24 = vadd.f32 %v3473_v38, %v11390_v7 }
 0x281   : > { %v6241_v55 = vld [vmem:[%s7017_s30 + $0x1cc] sm:$0xff]  ;;  %v6242_v27 = vld [vmem:[%s7017_s30 + $0x1d4] sm:$0xff]  ;;  %v3500_v37 = vmul.f32 %v6244_v62, %v6238_v23  ;;  %v3501_v59 = vmul.f32 %v6244_v62, %v6239_v50  ;;  %v3502_v58 = vmul.f32 %v6244_v62, %v6240_v36  ;;  %v11524_v48 = vadd.f32 %v3474_v12, %v11393_v25  ;;  %v6247_v46 = vld [vmem:[%s7017_s30 + $0x7d] sm:$0xff] }
 0x282   : > { %v3503_v10 = vmul.f32 %v6244_v62, %v6241_v55  ;;  %v3504_v49 = vmul.f32 %v6244_v62, %v6242_v27  ;;  %v11527_v60 = vadd.f32 %v3475_v22, %v11396_v21  ;;  %v11530_v8 = vadd.f32 %v3476_v6, %v11399_v41  ;;  %v6245_v11 = vld [vmem:[%s7017_s30 + $0x65] sm:$0xff]  ;;  %v6249_v38 = vld [vmem:[%s7017_s30 + $0x95] sm:$0xff]  ;;  %v6250_v12 = vld [vmem:[%s7017_s30 + $0x9d] sm:$0xff] }
 0x283   : > { %v11533_v50 = vadd.f32 %v3477_v44, %v11402_v18  ;;  %v11536_v27 = vadd.f32 %v3478_v19, %v11405_v34  ;;  %v11539_v7 = vadd.f32 %v3479_v20, %v11408_v26  ;;  %v11542_v25 = vadd.f32 %v3480_v63, %v11411_v47  ;;  %v6251_v22 = vld [vmem:[%s7017_s30 + $0xad] sm:$0xff]  ;;  %v6252_v6 = vld [vmem:[%s7017_s30 + $0xb5] sm:$0xff]  ;;  %v14799_v33 = vld [vmem:[#allocation5_spill] sm:$0xff] }
 0x284   : > { %v11545_v21 = vadd.f32 %v3481_v39, %v11414_v35  ;;  %v11548_v41 = vadd.f32 %v3482_v54, %v11417_v17  ;;  %v11551_v18 = vadd.f32 %v3483_v32, %v11420_v45  ;;  %v11554_v34 = vadd.f32 %v3484_v42, %v11423_v40  ;;  %v14785_v35 = vld [vmem:[#allocation16_spill] sm:$0xff]  ;;  %v14787_v17 = vld [vmem:[#allocation17_spill] sm:$0xff]  ;;  %v6246_v45 = vld [vmem:[%s7017_s30 + $0x6d] sm:$0xff] }
 0x285   : > { %v11557_v26 = vadd.f32 %v3485_v5, %v11426_v4  ;;  %v11560_v47 = vadd.f32 %v3486_v0, %v11429_v13  ;;  %v11563_v62 = vadd.f32 %v3487_v29, %v14785_v35  ;;  %v11566_v23 = vadd.f32 %v3488_v3, %v14787_v17  ;;  %v6248_v40 = vld [vmem:[%s7017_s30 + $0x85] sm:$0xff]  ;;  %v14791_v4 = vld [vmem:[#allocation19_spill] sm:$0xff]  ;;  %v14793_v13 = vld [vmem:[#allocation20_spill] sm:$0xff] }
 0x286   : > { %v14789_v42 = vld [vmem:[#allocation18_spill] sm:$0xff]  ;;  %v11576_v5 = vadd.f32 %v3490_v30, %v14791_v4  ;;  %v11579_v0 = vadd.f32 %v3491_v61, %v14793_v13  ;;  %v14795_v29 = vld [vmem:[#allocation21_spill] sm:$0xff]  ;;  %v11592_v44 = vadd.f32 %v3494_v43, %v14799_v33  ;;  %v14803_v61 = vld [vmem:[#allocation7_spill] sm:$0xff] }
 0x287   : > { %14786 = vst [vmem:[#allocation16_spill] sm:$0xff] %v11563_v62  ;;  %14788 = vst [vmem:[#allocation17_spill] sm:$0xff] %v11566_v23  ;;  %v11573_v56 = vadd.f32 %v3489_v1, %v14789_v42  ;;  %v11582_v28 = vadd.f32 %v3492_v16, %v14795_v29  ;;  %v14797_v31 = vld [vmem:[#allocation22_spill] sm:$0xff]  ;;  %v11598_v20 = vadd.f32 %v3496_v15, %v14803_v61  ;;  %v6255_v39 = vld [vmem:[%s7017_s30 + $0xdd] sm:$0xff] }
 0x288   : > { %14792 = vst [vmem:[#allocation19_spill] sm:$0xff] %v11576_v5  ;;  %14794 = vst [vmem:[#allocation20_spill] sm:$0xff] %v11579_v0  ;;  %v11589_v9 = vadd.f32 %v3493_v53, %v14797_v31  ;;  %v14801_v30 = vld [vmem:[#allocation6_spill] sm:$0xff]  ;;  %v6278_v53 = vld [vmem:[%s13780_s1 + $0x25] ss:$0 sm:$0xff] }
 0x289   : > { %14790 = vst [vmem:[#allocation18_spill] sm:$0xff] %v11573_v56  ;;  %14796 = vst [vmem:[#allocation21_spill] sm:$0xff] %v11582_v28  ;;  %v11595_v19 = vadd.f32 %v3495_v52, %v14801_v30  ;;  %v6253_v16 = vld [vmem:[%s7017_s30 + $0xc5] sm:$0xff]  ;;  %v6254_v63 = vld [vmem:[%s7017_s30 + $0xcd] sm:$0xff] }
 0x28a   : > { %14798 = vst [vmem:[#allocation22_spill] sm:$0xff] %v11589_v9  ;;  %14800 = vst [vmem:[#allocation5_spill] sm:$0xff] %v11592_v44  ;;  %v14805_v54 = vld [vmem:[#allocation8_spill] sm:$0xff]  ;;  %v14807_v32 = vld [vmem:[#allocation9_spill] sm:$0xff] }
 0x28b   : > { %14802 = vst [vmem:[#allocation6_spill] sm:$0xff] %v11595_v19  ;;  %14804 = vst [vmem:[#allocation7_spill] sm:$0xff] %v11598_v20  ;;  %v11607_v43 = vadd.f32 %v3497_v2, %v14805_v54  ;;  %v11610_v57 = vadd.f32 %v3498_v51, %v14807_v32  ;;  %v14809_v3 = vld [vmem:[#allocation10_spill] sm:$0xff]  ;;  %v14811_v55 = vld [vmem:[#allocation11_spill] sm:$0xff]  ;;  %v3574_v54 = vmul.f32 %v6278_v53, %v6245_v11 }
 0x28c   : > { %v11613_v36 = vadd.f32 %v3499_v14, %v14809_v3  ;;  %v11616_v1 = vadd.f32 %v3500_v37, %v14811_v55  ;;  %v6256_v52 = vld [vmem:[%s7017_s30 + $0xe5] sm:$0xff]  ;;  %v6257_v15 = vld [vmem:[%s7017_s30 + $0xf5] sm:$0xff]  ;;  %v6258_v35 = vld [vmem:[%s7017_s30 + $0xfd] sm:$0xff]  ;;  %v3575_v32 = vmul.f32 %v6278_v53, %v6246_v45  ;;  %v3576_v3 = vmul.f32 %v6278_v53, %v6247_v46 }
 0x28d   : > { %14806 = vst [vmem:[#allocation8_spill] sm:$0xff] %v11607_v43  ;;  %14808 = vst [vmem:[#allocation9_spill] sm:$0xff] %v11610_v57  ;;  %v14813_v17 = vld [vmem:[#allocation12_spill] sm:$0xff]  ;;  %v14815_v2 = vld [vmem:[#allocation13_spill] sm:$0xff]  ;;  %v3582_v11 = vmul.f32 %v6278_v53, %v6253_v16  ;;  %v3583_v45 = vmul.f32 %v6278_v53, %v6254_v63  ;;  %v3584_v46 = vmul.f32 %v6278_v53, %v6255_v39 }
 0x28e   : > { %14810 = vst [vmem:[#allocation10_spill] sm:$0xff] %v11613_v36  ;;  %14812 = vst [vmem:[#allocation11_spill] sm:$0xff] %v11616_v1  ;;  %v11622_v42 = vadd.f32 %v3501_v59, %v14813_v17  ;;  %v11625_v4 = vadd.f32 %v3502_v58, %v14815_v2  ;;  %v14817_v51 = vld [vmem:[#allocation14_spill] sm:$0xff]  ;;  %v14819_v14 = vld [vmem:[#allocation15_spill] sm:$0xff]  ;;  %v3577_v58 = vmul.f32 %v6278_v53, %v6248_v40 }
 0x28f   : > { %v11628_v13 = vadd.f32 %v3503_v10, %v14817_v51  ;;  %v11631_v29 = vadd.f32 %v3504_v49, %v14819_v14  ;;  %v6259_v37 = vld [vmem:[%s7017_s30 + $0x10d] sm:$0xff]  ;;  %v6260_v31 = vld [vmem:[%s7017_s30 + $0x115] sm:$0xff]  ;;  %v6261_v33 = vld [vmem:[%s7017_s30 + $0x125] sm:$0xff]  ;;  %v3578_v17 = vmul.f32 %v6278_v53, %v6249_v38  ;;  %v3579_v2 = vmul.f32 %v6278_v53, %v6250_v12 }
 0x290   : > { %14814 = vst [vmem:[#allocation12_spill] sm:$0xff] %v11622_v42  ;;  %14816 = vst [vmem:[#allocation13_spill] sm:$0xff] %v11625_v4  ;;  %v6262_v30 = vld [vmem:[%s7017_s30 + $0x12d] sm:$0xff]  ;;  %v6263_v61 = vld [vmem:[%s7017_s30 + $0x13d] sm:$0xff]  ;;  %v3580_v51 = vmul.f32 %v6278_v53, %v6251_v22  ;;  %v3581_v14 = vmul.f32 %v6278_v53, %v6252_v6  ;;  %v3585_v42 = vmul.f32 %v6278_v53, %v6256_v52 }
 0x291   : > { %14818 = vst [vmem:[#allocation14_spill] sm:$0xff] %v11628_v13  ;;  %14820 = vst [vmem:[#allocation15_spill] sm:$0xff] %v11631_v29  ;;  %v6264_v59 = vld [vmem:[%s7017_s30 + $0x145] sm:$0xff]  ;;  %v6265_v10 = vld [vmem:[%s7017_s30 + $0x155] sm:$0xff]  ;;  %v3586_v57 = vmul.f32 %v6278_v53, %v6257_v15  ;;  %v3587_v43 = vmul.f32 %v6278_v53, %v6258_v35  ;;  %v3588_v20 = vmul.f32 %v6278_v53, %v6259_v37 }
 0x292   : > { %v6266_v55 = vld [vmem:[%s7017_s30 + $0x15d] sm:$0xff]  ;;  %v6267_v49 = vld [vmem:[%s7017_s30 + $0x16d] sm:$0xff]  ;;  %v6268_v29 = vld [vmem:[%s7017_s30 + $0x175] sm:$0xff]  ;;  %v3589_v38 = vmul.f32 %v6278_v53, %v6260_v31  ;;  %v3590_v6 = vmul.f32 %v6278_v53, %v6261_v33  ;;  %v3591_v44 = vmul.f32 %v6278_v53, %v6262_v30  ;;  %v3592_v9 = vmul.f32 %v6278_v53, %v6263_v61 }
 0x293   : > { %v6269_v13 = vld [vmem:[%s7017_s30 + $0x185] sm:$0xff]  ;;  %v6270_v4 = vld [vmem:[%s7017_s30 + $0x18d] sm:$0xff]  ;;  %v6271_v40 = vld [vmem:[%s7017_s30 + $0x19d] sm:$0xff]  ;;  %v3593_v28 = vmul.f32 %v6278_v53, %v6264_v59  ;;  %v3594_v0 = vmul.f32 %v6278_v53, %v6265_v10  ;;  %v3595_v5 = vmul.f32 %v6278_v53, %v6266_v55  ;;  %v3596_v16 = vmul.f32 %v6278_v53, %v6267_v49 }
 0x294   : > { %v6272_v1 = vld [vmem:[%s7017_s30 + $0x1a5] sm:$0xff]  ;;  %v6273_v36 = vld [vmem:[%s7017_s30 + $0x1b5] sm:$0xff]  ;;  %v6274_v12 = vld [vmem:[%s7017_s30 + $0x1bd] sm:$0xff]  ;;  %v3597_v63 = vmul.f32 %v6278_v53, %v6268_v29  ;;  %v3598_v39 = vmul.f32 %v6278_v53, %v6269_v13  ;;  %v3599_v52 = vmul.f32 %v6278_v53, %v6270_v4  ;;  %v3600_v56 = vmul.f32 %v6278_v53, %v6271_v40 }
 0x295   : > { %v6275_v22 = vld [vmem:[%s7017_s30 + $0x1cd] sm:$0xff]  ;;  %v6276_v19 = vld [vmem:[%s7017_s30 + $0x1d5] sm:$0xff]  ;;  %v3601_v23 = vmul.f32 %v6278_v53, %v6272_v1  ;;  %v3602_v62 = vmul.f32 %v6278_v53, %v6273_v36  ;;  %v3603_v15 = vmul.f32 %v6278_v53, %v6274_v12  ;;  %v11652_v31 = vadd.f32 %v3574_v54, %v11521_v24  ;;  %v6281_v29 = vld [vmem:[%s7017_s30 + $0x7e] sm:$0xff] }
 0x296   : > { %v3604_v35 = vmul.f32 %v6278_v53, %v6275_v22  ;;  %v3605_v37 = vmul.f32 %v6278_v53, %v6276_v19  ;;  %v11655_v33 = vadd.f32 %v3575_v32, %v11524_v48  ;;  %v11658_v30 = vadd.f32 %v3576_v3, %v11527_v60  ;;  %v6279_v13 = vld [vmem:[%s7017_s30 + $0x66] sm:$0xff]  ;;  %v6283_v54 = vld [vmem:[%s7017_s30 + $0x96] sm:$0xff]  ;;  %v6284_v32 = vld [vmem:[%s7017_s30 + $0x9e] sm:$0xff] }
 0x297   : > { %v11661_v4 = vadd.f32 %v3577_v58, %v11530_v8  ;;  %v11664_v36 = vadd.f32 %v3578_v17, %v11533_v50  ;;  %v11667_v19 = vadd.f32 %v3579_v2, %v11536_v27  ;;  %v11670_v24 = vadd.f32 %v3580_v51, %v11539_v7  ;;  %v6285_v3 = vld [vmem:[%s7017_s30 + $0xae] sm:$0xff]  ;;  %v6286_v58 = vld [vmem:[%s7017_s30 + $0xb6] sm:$0xff]  ;;  %v14835_v49 = vld [vmem:[#allocation5_spill] sm:$0xff] }
 0x298   : > { %v11673_v48 = vadd.f32 %v3581_v14, %v11542_v25  ;;  %v11676_v60 = vadd.f32 %v3582_v11, %v11545_v21  ;;  %v11679_v8 = vadd.f32 %v3583_v45, %v11548_v41  ;;  %v11682_v50 = vadd.f32 %v3584_v46, %v11551_v18  ;;  %v14821_v21 = vld [vmem:[#allocation16_spill] sm:$0xff]  ;;  %v14823_v41 = vld [vmem:[#allocation17_spill] sm:$0xff]  ;;  %v6280_v18 = vld [vmem:[%s7017_s30 + $0x6e] sm:$0xff] }
 0x299   : > { %v11685_v27 = vadd.f32 %v3585_v42, %v11554_v34  ;;  %v11688_v7 = vadd.f32 %v3586_v57, %v11557_v26  ;;  %v11691_v25 = vadd.f32 %v3587_v43, %v11560_v47  ;;  %v11694_v53 = vadd.f32 %v3588_v20, %v14821_v21  ;;  %v6282_v34 = vld [vmem:[%s7017_s30 + $0x86] sm:$0xff]  ;;  %v14827_v26 = vld [vmem:[#allocation19_spill] sm:$0xff]  ;;  %v14829_v47 = vld [vmem:[#allocation20_spill] sm:$0xff] }
 0x29a   : > { %v11697_v1 = vadd.f32 %v3589_v38, %v14823_v41  ;;  %v14825_v42 = vld [vmem:[#allocation18_spill] sm:$0xff]  ;;  %v11707_v57 = vadd.f32 %v3591_v44, %v14827_v26  ;;  %v11710_v43 = vadd.f32 %v3592_v9, %v14829_v47  ;;  %v14831_v20 = vld [vmem:[#allocation21_spill] sm:$0xff]  ;;  %v11723_v17 = vadd.f32 %v3595_v5, %v14835_v49  ;;  %v14839_v9 = vld [vmem:[#allocation7_spill] sm:$0xff] }
 0x29b   : > { %14822 = vst [vmem:[#allocation16_spill] sm:$0xff] %v11694_v53  ;;  %v11704_v61 = vadd.f32 %v3590_v6, %v14825_v42  ;;  %v11713_v59 = vadd.f32 %v3593_v28, %v14831_v20  ;;  %v14833_v10 = vld [vmem:[#allocation22_spill] sm:$0xff]  ;;  %v11729_v51 = vadd.f32 %v3597_v63, %v14839_v9  ;;  %v6289_v11 = vld [vmem:[%s7017_s30 + $0xde] sm:$0xff]  ;;  %v14847_v22 = vld [vmem:[#allocation11_spill] sm:$0xff] }
 0x29c   : > { %14824 = vst [vmem:[#allocation17_spill] sm:$0xff] %v11697_v1  ;;  %14828 = vst [vmem:[#allocation19_spill] sm:$0xff] %v11707_v57  ;;  %v11720_v55 = vadd.f32 %v3594_v0, %v14833_v10  ;;  %v14837_v44 = vld [vmem:[#allocation6_spill] sm:$0xff]  ;;  %v6312_v0 = vld [vmem:[%s13780_s1 + $0x26] ss:$0 sm:$0xff]  ;;  %v11747_v6 = vadd.f32 %v3601_v23, %v14847_v22 }
 0x29d   : > { %14826 = vst [vmem:[#allocation18_spill] sm:$0xff] %v11704_v61  ;;  %14830 = vst [vmem:[#allocation20_spill] sm:$0xff] %v11710_v43  ;;  %v11726_v2 = vadd.f32 %v3596_v16, %v14837_v44  ;;  %v6287_v28 = vld [vmem:[%s7017_s30 + $0xc6] sm:$0xff]  ;;  %v6288_v14 = vld [vmem:[%s7017_s30 + $0xce] sm:$0xff] }
 0x29e   : > { %14832 = vst [vmem:[#allocation21_spill] sm:$0xff] %v11713_v59  ;;  %14834 = vst [vmem:[#allocation22_spill] sm:$0xff] %v11720_v55  ;;  %v14841_v45 = vld [vmem:[#allocation8_spill] sm:$0xff]  ;;  %v14843_v46 = vld [vmem:[#allocation9_spill] sm:$0xff] }
 0x29f   : > { %14836 = vst [vmem:[#allocation5_spill] sm:$0xff] %v11723_v17  ;;  %14838 = vst [vmem:[#allocation6_spill] sm:$0xff] %v11726_v2  ;;  %v11738_v5 = vadd.f32 %v3598_v39, %v14841_v45  ;;  %v11741_v40 = vadd.f32 %v3599_v52, %v14843_v46  ;;  %v14845_v38 = vld [vmem:[#allocation10_spill] sm:$0xff]  ;;  %v6291_v63 = vld [vmem:[%s7017_s30 + $0xf6] sm:$0xff]  ;;  %v3675_v45 = vmul.f32 %v6312_v0, %v6279_v13 }
 0x2a0   : > { %14840 = vst [vmem:[#allocation7_spill] sm:$0xff] %v11729_v51  ;;  %v11744_v12 = vadd.f32 %v3600_v56, %v14845_v38  ;;  %14848 = vst [vmem:[#allocation11_spill] sm:$0xff] %v11747_v6  ;;  %v6290_v16 = vld [vmem:[%s7017_s30 + $0xe6] sm:$0xff]  ;;  %v6292_v21 = vld [vmem:[%s7017_s30 + $0xfe] sm:$0xff]  ;;  %v3676_v46 = vmul.f32 %v6312_v0, %v6280_v18  ;;  %v3677_v38 = vmul.f32 %v6312_v0, %v6281_v29 }
 0x2a1   : > { %14842 = vst [vmem:[#allocation8_spill] sm:$0xff] %v11738_v5  ;;  %14844 = vst [vmem:[#allocation9_spill] sm:$0xff] %v11741_v40  ;;  %v14849_v41 = vld [vmem:[#allocation12_spill] sm:$0xff]  ;;  %v14851_v39 = vld [vmem:[#allocation13_spill] sm:$0xff]  ;;  %v3683_v13 = vmul.f32 %v6312_v0, %v6287_v28  ;;  %v3684_v18 = vmul.f32 %v6312_v0, %v6288_v14  ;;  %v3685_v29 = vmul.f32 %v6312_v0, %v6289_v11 }
 0x2a2   : > { %14846 = vst [vmem:[#allocation10_spill] sm:$0xff] %v11744_v12  ;;  %v11753_v42 = vadd.f32 %v3602_v62, %v14849_v41  ;;  %v11756_v26 = vadd.f32 %v3603_v15, %v14851_v39  ;;  %v14853_v52 = vld [vmem:[#allocation14_spill] sm:$0xff]  ;;  %v14855_v56 = vld [vmem:[#allocation15_spill] sm:$0xff]  ;;  %v6297_v9 = vld [vmem:[%s7017_s30 + $0x13e] sm:$0xff]  ;;  %v3678_v15 = vmul.f32 %v6312_v0, %v6282_v34  ;;  %v3679_v41 = vmul.f32 %v6312_v0, %v6283_v54 }
 0x2a3   : > { %v11759_v47 = vadd.f32 %v3604_v35, %v14853_v52  ;;  %v11762_v20 = vadd.f32 %v3605_v37, %v14855_v56  ;;  %v6293_v23 = vld [vmem:[%s7017_s30 + $0x10e] sm:$0xff]  ;;  %v6294_v10 = vld [vmem:[%s7017_s30 + $0x116] sm:$0xff]  ;;  %v6295_v49 = vld [vmem:[%s7017_s30 + $0x126] sm:$0xff]  ;;  %v3680_v39 = vmul.f32 %v6312_v0, %v6284_v32  ;;  %v3681_v52 = vmul.f32 %v6312_v0, %v6285_v3 }
 0x2a4   : > { %14850 = vst [vmem:[#allocation12_spill] sm:$0xff] %v11753_v42  ;;  %14852 = vst [vmem:[#allocation13_spill] sm:$0xff] %v11756_v26  ;;  %v6296_v44 = vld [vmem:[%s7017_s30 + $0x12e] sm:$0xff]  ;;  %v6298_v62 = vld [vmem:[%s7017_s30 + $0x146] sm:$0xff]  ;;  %v3682_v56 = vmul.f32 %v6312_v0, %v6286_v58  ;;  %v3686_v42 = vmul.f32 %v6312_v0, %v6290_v16  ;;  %v3687_v40 = vmul.f32 %v6312_v0, %v6291_v63 }
 0x2a5   : > { %14854 = vst [vmem:[#allocation14_spill] sm:$0xff] %v11759_v47  ;;  %14856 = vst [vmem:[#allocation15_spill] sm:$0xff] %v11762_v20  ;;  %v6299_v35 = vld [vmem:[%s7017_s30 + $0x156] sm:$0xff]  ;;  %v6300_v22 = vld [vmem:[%s7017_s30 + $0x15e] sm:$0xff]  ;;  %v3688_v5 = vmul.f32 %v6312_v0, %v6292_v21  ;;  %v3689_v51 = vmul.f32 %v6312_v0, %v6293_v23  ;;  %v3690_v54 = vmul.f32 %v6312_v0, %v6294_v10 }
 0x2a6   : > { %v6301_v37 = vld [vmem:[%s7017_s30 + $0x16e] sm:$0xff]  ;;  %v6302_v20 = vld [vmem:[%s7017_s30 + $0x176] sm:$0xff]  ;;  %v6303_v47 = vld [vmem:[%s7017_s30 + $0x186] sm:$0xff]  ;;  %v3691_v58 = vmul.f32 %v6312_v0, %v6295_v49  ;;  %v3692_v17 = vmul.f32 %v6312_v0, %v6296_v44  ;;  %v3693_v55 = vmul.f32 %v6312_v0, %v6297_v9  ;;  %v3694_v59 = vmul.f32 %v6312_v0, %v6298_v62 }
 0x2a7   : > { %v6304_v26 = vld [vmem:[%s7017_s30 + $0x18e] sm:$0xff]  ;;  %v6305_v34 = vld [vmem:[%s7017_s30 + $0x19e] sm:$0xff]  ;;  %v6306_v6 = vld [vmem:[%s7017_s30 + $0x1a6] sm:$0xff]  ;;  %v3695_v43 = vmul.f32 %v6312_v0, %v6299_v35  ;;  %v3696_v57 = vmul.f32 %v6312_v0, %v6300_v22  ;;  %v3697_v28 = vmul.f32 %v6312_v0, %v6301_v37  ;;  %v3698_v14 = vmul.f32 %v6312_v0, %v6302_v20 }
 0x2a8   : > { %v6307_v12 = vld [vmem:[%s7017_s30 + $0x1b6] sm:$0xff]  ;;  %v6308_v32 = vld [vmem:[%s7017_s30 + $0x1be] sm:$0xff]  ;;  %v6309_v3 = vld [vmem:[%s7017_s30 + $0x1ce] sm:$0xff]  ;;  %v3699_v11 = vmul.f32 %v6312_v0, %v6303_v47  ;;  %v3700_v16 = vmul.f32 %v6312_v0, %v6304_v26  ;;  %v3701_v61 = vmul.f32 %v6312_v0, %v6305_v34  ;;  %v3702_v1 = vmul.f32 %v6312_v0, %v6306_v6 }
 0x2a9   : > { %v6310_v2 = vld [vmem:[%s7017_s30 + $0x1d6] sm:$0xff]  ;;  %v3703_v53 = vmul.f32 %v6312_v0, %v6307_v12  ;;  %v3704_v63 = vmul.f32 %v6312_v0, %v6308_v32  ;;  %v3705_v21 = vmul.f32 %v6312_v0, %v6309_v3  ;;  %v11783_v10 = vadd.f32 %v3675_v45, %v11652_v31  ;;  %v6317_v45 = vld [vmem:[%s7017_s30 + $0xa8] sm:$0xff]  ;;  %v14871_v37 = vld [vmem:[#allocation5_spill] sm:$0xff] }
 0x2aa   : > { %v3706_v23 = vmul.f32 %v6312_v0, %v6310_v2  ;;  %v11786_v49 = vadd.f32 %v3676_v46, %v11655_v33  ;;  %v11789_v44 = vadd.f32 %v3677_v38, %v11658_v30  ;;  %v11792_v26 = vadd.f32 %v3678_v15, %v11661_v4  ;;  %v6313_v47 = vld [vmem:[%s7017_s30 + $0x78] sm:$0xff]  ;;  %v6315_v20 = vld [vmem:[%s7017_s30 + $0x90] sm:$0xff]  ;;  %v6319_v38 = vld [vmem:[%s7017_s30 + $0xc0] sm:$0xff] }
 0x2ab   : > { %v11795_v12 = vadd.f32 %v3679_v41, %v11664_v36  ;;  %v11798_v2 = vadd.f32 %v3680_v39, %v11667_v19  ;;  %v11801_v31 = vadd.f32 %v3681_v52, %v11670_v24  ;;  %v11804_v33 = vadd.f32 %v3682_v56, %v11673_v48  ;;  %v6318_v46 = vld [vmem:[%s7017_s30 + $0xb0] sm:$0xff]  ;;  %v6320_v15 = vld [vmem:[%s7017_s30 + $0xc8] sm:$0xff]  ;;  %v6322_v56 = vld [vmem:[%s7017_s30 + $0xe0] sm:$0xff] }
 0x2ac   : > { %v11807_v30 = vadd.f32 %v3683_v13, %v11676_v60  ;;  %v11810_v4 = vadd.f32 %v3684_v18, %v11679_v8  ;;  %v11813_v36 = vadd.f32 %v3685_v29, %v11682_v50  ;;  %v11816_v19 = vadd.f32 %v3686_v42, %v11685_v27  ;;  %v14857_v60 = vld [vmem:[#allocation16_spill] sm:$0xff]  ;;  %v14859_v8 = vld [vmem:[#allocation17_spill] sm:$0xff]  ;;  %v14861_v42 = vld [vmem:[#allocation18_spill] sm:$0xff] }
 0x2ad   : > { %v11819_v24 = vadd.f32 %v3687_v40, %v11688_v7  ;;  %v11822_v48 = vadd.f32 %v3688_v5, %v11691_v25  ;;  %v11825_v0 = vadd.f32 %v3689_v51, %v14857_v60  ;;  %v11828_v6 = vadd.f32 %v3690_v54, %v14859_v8  ;;  %v6314_v50 = vld [vmem:[%s7017_s30 + $0x80] sm:$0xff]  ;;  %v6316_v27 = vld [vmem:[%s7017_s30 + $0x98] sm:$0xff]  ;;  %v14863_v7 = vld [vmem:[#allocation19_spill] sm:$0xff] }
 0x2ae   : > { %v11835_v9 = vadd.f32 %v3691_v58, %v14861_v42  ;;  %v11838_v40 = vadd.f32 %v3692_v17, %v14863_v7  ;;  %v14865_v25 = vld [vmem:[#allocation20_spill] sm:$0xff]  ;;  %v14867_v51 = vld [vmem:[#allocation21_spill] sm:$0xff]  ;;  %v14869_v35 = vld [vmem:[#allocation22_spill] sm:$0xff]  ;;  %v11854_v41 = vadd.f32 %v3696_v57, %v14871_v37 }
 0x2af   : > { %14858 = vst [vmem:[#allocation16_spill] sm:$0xff] %v11825_v0  ;;  %14860 = vst [vmem:[#allocation17_spill] sm:$0xff] %v11828_v6  ;;  %v11841_v5 = vadd.f32 %v3693_v55, %v14865_v25  ;;  %v11844_v62 = vadd.f32 %v3694_v59, %v14867_v51  ;;  %v11851_v22 = vadd.f32 %v3695_v43, %v14869_v35  ;;  %v14873_v17 = vld [vmem:[#allocation6_spill] sm:$0xff]  ;;  %v14875_v55 = vld [vmem:[#allocation7_spill] sm:$0xff] }
 0x2b0   : > { %14862 = vst [vmem:[#allocation18_spill] sm:$0xff] %v11835_v9  ;;  %14864 = vst [vmem:[#allocation19_spill] sm:$0xff] %v11838_v40  ;;  %v11857_v39 = vadd.f32 %v3697_v28, %v14873_v17  ;;  %v11860_v52 = vadd.f32 %v3698_v14, %v14875_v55  ;;  %v6321_v59 = vld [vmem:[%s7017_s30 + $0xd8] sm:$0xff]  ;;  %v6323_v13 = vld [vmem:[%s7017_s30 + $0xf0] sm:$0xff] }
 0x2b1   : > { %14866 = vst [vmem:[#allocation20_spill] sm:$0xff] %v11841_v5  ;;  %14868 = vst [vmem:[#allocation21_spill] sm:$0xff] %v11844_v62  ;;  %v6346_v43 = vld [vmem:[%s13780_s1 + $0x28] ss:$0 sm:$0xff]  ;;  %v14877_v18 = vld [vmem:[#allocation8_spill] sm:$0xff] }
 0x2b2   : > { %14870 = vst [vmem:[#allocation22_spill] sm:$0xff] %v11851_v22  ;;  %14872 = vst [vmem:[#allocation5_spill] sm:$0xff] %v11854_v41  ;;  %v11869_v57 = vadd.f32 %v3699_v11, %v14877_v18  ;;  %v14879_v29 = vld [vmem:[#allocation9_spill] sm:$0xff]  ;;  %v14881_v54 = vld [vmem:[#allocation10_spill] sm:$0xff]  ;;  %v3780_v18 = vmul.f32 %v6346_v43, %v6313_v47  ;;  %v3788_v47 = vmul.f32 %v6346_v43, %v6321_v59 }
 0x2b3   : > { %14874 = vst [vmem:[#allocation6_spill] sm:$0xff] %v11857_v39  ;;  %14876 = vst [vmem:[#allocation7_spill] sm:$0xff] %v11860_v52  ;;  %v11872_v34 = vadd.f32 %v3700_v16, %v14879_v29  ;;  %v11875_v32 = vadd.f32 %v3701_v61, %v14881_v54  ;;  %v14883_v3 = vld [vmem:[#allocation11_spill] sm:$0xff]  ;;  %v6324_v28 = vld [vmem:[%s7017_s30 + $0xf8] sm:$0xff]  ;;  %v3781_v29 = vmul.f32 %v6346_v43, %v6314_v50 }
 0x2b4   : > { %14878 = vst [vmem:[#allocation8_spill] sm:$0xff] %v11869_v57  ;;  %v11878_v58 = vadd.f32 %v3702_v1, %v14883_v3  ;;  %v6325_v14 = vld [vmem:[%s7017_s30 + $0x108] sm:$0xff]  ;;  %v6326_v60 = vld [vmem:[%s7017_s30 + $0x110] sm:$0xff]  ;;  %v14885_v8 = vld [vmem:[#allocation12_spill] sm:$0xff]  ;;  %v3782_v54 = vmul.f32 %v6346_v43, %v6315_v20  ;;  %v3789_v50 = vmul.f32 %v6346_v43, %v6322_v56  ;;  %v3790_v20 = vmul.f32 %v6346_v43, %v6323_v13 }
 0x2b5   : > { %14880 = vst [vmem:[#allocation9_spill] sm:$0xff] %v11872_v34  ;;  %14882 = vst [vmem:[#allocation10_spill] sm:$0xff] %v11875_v32  ;;  %v11884_v42 = vadd.f32 %v3703_v53, %v14885_v8  ;;  %v14887_v11 = vld [vmem:[#allocation13_spill] sm:$0xff]  ;;  %v14889_v16 = vld [vmem:[#allocation14_spill] sm:$0xff]  ;;  %v3784_v8 = vmul.f32 %v6346_v43, %v6317_v45  ;;  %v3792_v34 = vmul.f32 %v6346_v43, %v6325_v14 }
 0x2b6   : > { %14884 = vst [vmem:[#allocation11_spill] sm:$0xff] %v11878_v58  ;;  %v11887_v7 = vadd.f32 %v3704_v63, %v14887_v11  ;;  %v11890_v25 = vadd.f32 %v3705_v21, %v14889_v16  ;;  %v14891_v61 = vld [vmem:[#allocation15_spill] sm:$0xff]  ;;  %v6327_v1 = vld [vmem:[%s7017_s30 + $0x120] sm:$0xff]  ;;  %v6328_v35 = vld [vmem:[%s7017_s30 + $0x128] sm:$0xff]  ;;  %v3783_v63 = vmul.f32 %v6346_v43, %v6316_v27  ;;  %v3785_v11 = vmul.f32 %v6346_v43, %v6318_v46 }
 0x2b7   : > { %14886 = vst [vmem:[#allocation12_spill] sm:$0xff] %v11884_v42  ;;  %v11893_v51 = vadd.f32 %v3706_v23, %v14891_v61  ;;  %v6329_v37 = vld [vmem:[%s7017_s30 + $0x138] sm:$0xff]  ;;  %v6330_v17 = vld [vmem:[%s7017_s30 + $0x140] sm:$0xff]  ;;  %v6331_v55 = vld [vmem:[%s7017_s30 + $0x150] sm:$0xff]  ;;  %v3786_v16 = vmul.f32 %v6346_v43, %v6319_v38  ;;  %v3787_v61 = vmul.f32 %v6346_v43, %v6320_v15  ;;  %v3791_v42 = vmul.f32 %v6346_v43, %v6324_v28 }
 0x2b8   : > { %14888 = vst [vmem:[#allocation13_spill] sm:$0xff] %v11887_v7  ;;  %14890 = vst [vmem:[#allocation14_spill] sm:$0xff] %v11890_v25  ;;  %v6332_v53 = vld [vmem:[%s7017_s30 + $0x158] sm:$0xff]  ;;  %v6333_v21 = vld [vmem:[%s7017_s30 + $0x168] sm:$0xff]  ;;  %v3793_v57 = vmul.f32 %v6346_v43, %v6326_v60  ;;  %v3794_v52 = vmul.f32 %v6346_v43, %v6327_v1  ;;  %v3795_v45 = vmul.f32 %v6346_v43, %v6328_v35 }
 0x2b9   : > { %14892 = vst [vmem:[#allocation15_spill] sm:$0xff] %v11893_v51  ;;  %v6334_v3 = vld [vmem:[%s7017_s30 + $0x170] sm:$0xff]  ;;  %v6335_v23 = vld [vmem:[%s7017_s30 + $0x180] sm:$0xff]  ;;  %v6336_v51 = vld [vmem:[%s7017_s30 + $0x188] sm:$0xff]  ;;  %v3796_v15 = vmul.f32 %v6346_v43, %v6329_v37  ;;  %v3797_v41 = vmul.f32 %v6346_v43, %v6330_v17  ;;  %v3798_v22 = vmul.f32 %v6346_v43, %v6331_v55  ;;  %v3799_v62 = vmul.f32 %v6346_v43, %v6332_v53 }
 0x2ba   : > { %v6337_v25 = vld [vmem:[%s7017_s30 + $0x198] sm:$0xff]  ;;  %v6338_v7 = vld [vmem:[%s7017_s30 + $0x1a0] sm:$0xff]  ;;  %v6339_v27 = vld [vmem:[%s7017_s30 + $0x1b0] sm:$0xff]  ;;  %v3800_v5 = vmul.f32 %v6346_v43, %v6333_v21  ;;  %v3801_v40 = vmul.f32 %v6346_v43, %v6334_v3  ;;  %v3802_v59 = vmul.f32 %v6346_v43, %v6335_v23  ;;  %v3803_v56 = vmul.f32 %v6346_v43, %v6336_v51 }
 0x2bb   : > { %v6340_v58 = vld [vmem:[%s7017_s30 + $0x1b8] sm:$0xff]  ;;  %v6341_v32 = vld [vmem:[%s7017_s30 + $0x1c8] sm:$0xff]  ;;  %v6342_v46 = vld [vmem:[%s7017_s30 + $0x1d0] sm:$0xff]  ;;  %v3804_v13 = vmul.f32 %v6346_v43, %v6337_v25  ;;  %v3805_v28 = vmul.f32 %v6346_v43, %v6338_v7  ;;  %v3806_v9 = vmul.f32 %v6346_v43, %v6339_v27  ;;  %v11914_v35 = vadd.f32 %v3780_v18, %v11783_v10 }
 0x2bc   : > { %v6343_v38 = vld [vmem:[%s7017_s30 + $0x1e0] sm:$0xff]  ;;  %v6344_v39 = vld [vmem:[%s7017_s30 + $0x1e8] sm:$0xff]  ;;  %v3807_v6 = vmul.f32 %v6346_v43, %v6340_v58  ;;  %v3808_v0 = vmul.f32 %v6346_v43, %v6341_v32  ;;  %v3809_v14 = vmul.f32 %v6346_v43, %v6342_v46  ;;  %v11917_v37 = vadd.f32 %v3781_v29, %v11786_v49  ;;  %v6349_v51 = vld [vmem:[%s7017_s30 + $0x91] sm:$0xff] }
 0x2bd   : > { %v3810_v60 = vmul.f32 %v6346_v43, %v6343_v38  ;;  %v3811_v1 = vmul.f32 %v6346_v43, %v6344_v39  ;;  %v11920_v17 = vadd.f32 %v3782_v54, %v11789_v44  ;;  %v11923_v7 = vadd.f32 %v3783_v63, %v11792_v26  ;;  %v6347_v25 = vld [vmem:[%s7017_s30 + $0x79] sm:$0xff]  ;;  %v6351_v18 = vld [vmem:[%s7017_s30 + $0xa9] sm:$0xff]  ;;  %v6352_v29 = vld [vmem:[%s7017_s30 + $0xb1] sm:$0xff] }
 0x2be   : > { %v11926_v32 = vadd.f32 %v3784_v8, %v11795_v12  ;;  %v11929_v39 = vadd.f32 %v3785_v11, %v11798_v2  ;;  %v11932_v10 = vadd.f32 %v3786_v16, %v11801_v31  ;;  %v11935_v49 = vadd.f32 %v3787_v61, %v11804_v33  ;;  %v6353_v54 = vld [vmem:[%s7017_s30 + $0xc1] sm:$0xff]  ;;  %v6354_v63 = vld [vmem:[%s7017_s30 + $0xc9] sm:$0xff] }
 0x2bf   : > { %v11938_v44 = vadd.f32 %v3788_v47, %v11807_v30  ;;  %v11941_v26 = vadd.f32 %v3789_v50, %v11810_v4  ;;  %v11944_v12 = vadd.f32 %v3790_v20, %v11813_v36  ;;  %v11947_v2 = vadd.f32 %v3791_v42, %v11816_v19  ;;  %v14893_v30 = vld [vmem:[#allocation16_spill] sm:$0xff]  ;;  %v14895_v4 = vld [vmem:[#allocation17_spill] sm:$0xff]  ;;  %v14897_v42 = vld [vmem:[#allocation18_spill] sm:$0xff] }
 0x2c0   : > { %v11950_v31 = vadd.f32 %v3792_v34, %v11819_v24  ;;  %v11953_v33 = vadd.f32 %v3793_v57, %v11822_v48  ;;  %v11956_v43 = vadd.f32 %v3794_v52, %v14893_v30  ;;  %v11959_v58 = vadd.f32 %v3795_v45, %v14895_v4  ;;  %v6348_v36 = vld [vmem:[%s7017_s30 + $0x81] sm:$0xff]  ;;  %v6350_v19 = vld [vmem:[%s7017_s30 + $0x99] sm:$0xff]  ;;  %v14899_v24 = vld [vmem:[#allocation19_spill] sm:$0xff] }
 0x2c1   : > { %v11966_v55 = vadd.f32 %v3796_v15, %v14897_v42  ;;  %v11969_v34 = vadd.f32 %v3797_v41, %v14899_v24  ;;  %v14901_v48 = vld [vmem:[#allocation20_spill] sm:$0xff]  ;;  %v14903_v52 = vld [vmem:[#allocation21_spill] sm:$0xff]  ;;  %v14905_v21 = vld [vmem:[#allocation22_spill] sm:$0xff] }
 0x2c2   : > { %14894 = vst [vmem:[#allocation16_spill] sm:$0xff] %v11956_v43  ;;  %14896 = vst [vmem:[#allocation17_spill] sm:$0xff] %v11959_v58  ;;  %v11972_v57 = vadd.f32 %v3798_v22, %v14901_v48  ;;  %v11975_v53 = vadd.f32 %v3799_v62, %v14903_v52  ;;  %v11982_v3 = vadd.f32 %v3800_v5, %v14905_v21  ;;  %v14907_v23 = vld [vmem:[#allocation5_spill] sm:$0xff]  ;;  %v14909_v41 = vld [vmem:[#allocation6_spill] sm:$0xff] }
 0x2c3   : > { %14898 = vst [vmem:[#allocation18_spill] sm:$0xff] %v11966_v55  ;;  %14900 = vst [vmem:[#allocation19_spill] sm:$0xff] %v11969_v34  ;;  %v11985_v8 = vadd.f32 %v3801_v40, %v14907_v23  ;;  %v11988_v11 = vadd.f32 %v3802_v59, %v14909_v41  ;;  %v14911_v22 = vld [vmem:[#allocation7_spill] sm:$0xff]  ;;  %v6355_v62 = vld [vmem:[%s7017_s30 + $0xd9] sm:$0xff] }
 0x2c4   : > { %14902 = vst [vmem:[#allocation20_spill] sm:$0xff] %v11972_v57  ;;  %14904 = vst [vmem:[#allocation21_spill] sm:$0xff] %v11975_v53  ;;  %v11991_v16 = vadd.f32 %v3803_v56, %v14911_v22  ;;  %v6356_v61 = vld [vmem:[%s7017_s30 + $0xe1] sm:$0xff]  ;;  %v6357_v47 = vld [vmem:[%s7017_s30 + $0xf1] sm:$0xff] }
 0x2c5   : > { %14906 = vst [vmem:[#allocation22_spill] sm:$0xff] %v11982_v3  ;;  %14908 = vst [vmem:[#allocation5_spill] sm:$0xff] %v11985_v8  ;;  %v6380_v5 = vld [vmem:[%s13780_s1 + $0x29] ss:$0 sm:$0xff]  ;;  %v14913_v50 = vld [vmem:[#allocation8_spill] sm:$0xff] }
 0x2c6   : > { %14910 = vst [vmem:[#allocation6_spill] sm:$0xff] %v11988_v11  ;;  %14912 = vst [vmem:[#allocation7_spill] sm:$0xff] %v11991_v16  ;;  %v12000_v40 = vadd.f32 %v3804_v13, %v14913_v50  ;;  %v14915_v20 = vld [vmem:[#allocation9_spill] sm:$0xff]  ;;  %v14917_v45 = vld [vmem:[#allocation10_spill] sm:$0xff]  ;;  %v3881_v50 = vmul.f32 %v6380_v5, %v6347_v25  ;;  %v3889_v25 = vmul.f32 %v6380_v5, %v6355_v62 }
 0x2c7   : > { %v12003_v27 = vadd.f32 %v3805_v28, %v14915_v20  ;;  %v12006_v46 = vadd.f32 %v3806_v9, %v14917_v45  ;;  %v14919_v38 = vld [vmem:[#allocation11_spill] sm:$0xff]  ;;  %v6358_v59 = vld [vmem:[%s7017_s30 + $0xf9] sm:$0xff]  ;;  %v14925_v28 = vld [vmem:[#allocation14_spill] sm:$0xff]  ;;  %v3882_v20 = vmul.f32 %v6380_v5, %v6348_v36  ;;  %v3883_v45 = vmul.f32 %v6380_v5, %v6349_v51 }
 0x2c8   : > { %14914 = vst [vmem:[#allocation8_spill] sm:$0xff] %v12000_v40  ;;  %v12009_v15 = vadd.f32 %v3807_v6, %v14919_v38  ;;  %v6359_v56 = vld [vmem:[%s7017_s30 + $0x109] sm:$0xff]  ;;  %v6360_v30 = vld [vmem:[%s7017_s30 + $0x111] sm:$0xff]  ;;  %v14923_v13 = vld [vmem:[#allocation13_spill] sm:$0xff]  ;;  %v12021_v48 = vadd.f32 %v3810_v60, %v14925_v28  ;;  %v3887_v28 = vmul.f32 %v6380_v5, %v6353_v54  ;;  %v3890_v36 = vmul.f32 %v6380_v5, %v6356_v61 }
 0x2c9   : > { %14916 = vst [vmem:[#allocation9_spill] sm:$0xff] %v12003_v27  ;;  %14918 = vst [vmem:[#allocation10_spill] sm:$0xff] %v12006_v46  ;;  %v14921_v4 = vld [vmem:[#allocation12_spill] sm:$0xff]  ;;  %v12018_v24 = vadd.f32 %v3809_v14, %v14923_v13  ;;  %v14927_v9 = vld [vmem:[#allocation15_spill] sm:$0xff]  ;;  %v3884_v14 = vmul.f32 %v6380_v5, %v6350_v19  ;;  %v3886_v13 = vmul.f32 %v6380_v5, %v6352_v29 }
 0x2ca   : > { %14920 = vst [vmem:[#allocation11_spill] sm:$0xff] %v12009_v15  ;;  %v12015_v42 = vadd.f32 %v3808_v0, %v14921_v4  ;;  %14926 = vst [vmem:[#allocation14_spill] sm:$0xff] %v12021_v48  ;;  %v12024_v52 = vadd.f32 %v3811_v1, %v14927_v9  ;;  %v6361_v6 = vld [vmem:[%s7017_s30 + $0x121] sm:$0xff]  ;;  %v6362_v21 = vld [vmem:[%s7017_s30 + $0x129] sm:$0xff]  ;;  %v3885_v4 = vmul.f32 %v6380_v5, %v6351_v18 }
 0x2cb   : > { %14924 = vst [vmem:[#allocation13_spill] sm:$0xff] %v12018_v24  ;;  %v6363_v23 = vld [vmem:[%s7017_s30 + $0x139] sm:$0xff]  ;;  %v6364_v41 = vld [vmem:[%s7017_s30 + $0x141] sm:$0xff]  ;;  %v6365_v22 = vld [vmem:[%s7017_s30 + $0x151] sm:$0xff]  ;;  %v3888_v9 = vmul.f32 %v6380_v5, %v6354_v63  ;;  %v3891_v51 = vmul.f32 %v6380_v5, %v6357_v47  ;;  %v3893_v27 = vmul.f32 %v6380_v5, %v6359_v56  ;;  %v3894_v40 = vmul.f32 %v6380_v5, %v6360_v30 }
 0x2cc   : > { %14922 = vst [vmem:[#allocation12_spill] sm:$0xff] %v12015_v42  ;;  %14928 = vst [vmem:[#allocation15_spill] sm:$0xff] %v12024_v52  ;;  %v6366_v0 = vld [vmem:[%s7017_s30 + $0x159] sm:$0xff]  ;;  %v6367_v60 = vld [vmem:[%s7017_s30 + $0x169] sm:$0xff]  ;;  %v3892_v42 = vmul.f32 %v6380_v5, %v6358_v59  ;;  %v3895_v16 = vmul.f32 %v6380_v5, %v6361_v6  ;;  %v3896_v18 = vmul.f32 %v6380_v5, %v6362_v21 }
 0x2cd   : > { %v6368_v38 = vld [vmem:[%s7017_s30 + $0x171] sm:$0xff]  ;;  %v6369_v1 = vld [vmem:[%s7017_s30 + $0x181] sm:$0xff]  ;;  %v6370_v52 = vld [vmem:[%s7017_s30 + $0x189] sm:$0xff]  ;;  %v3897_v63 = vmul.f32 %v6380_v5, %v6363_v23  ;;  %v3898_v8 = vmul.f32 %v6380_v5, %v6364_v41  ;;  %v3899_v3 = vmul.f32 %v6380_v5, %v6365_v22  ;;  %v3900_v53 = vmul.f32 %v6380_v5, %v6366_v0 }
 0x2ce   : > { %v6371_v48 = vld [vmem:[%s7017_s30 + $0x199] sm:$0xff]  ;;  %v6372_v24 = vld [vmem:[%s7017_s30 + $0x1a1] sm:$0xff]  ;;  %v6373_v19 = vld [vmem:[%s7017_s30 + $0x1b1] sm:$0xff]  ;;  %v3901_v57 = vmul.f32 %v6380_v5, %v6367_v60  ;;  %v3902_v34 = vmul.f32 %v6380_v5, %v6368_v38  ;;  %v3903_v62 = vmul.f32 %v6380_v5, %v6369_v1  ;;  %v3904_v61 = vmul.f32 %v6380_v5, %v6370_v52 }
 0x2cf   : > { %v6374_v15 = vld [vmem:[%s7017_s30 + $0x1b9] sm:$0xff]  ;;  %v6375_v46 = vld [vmem:[%s7017_s30 + $0x1c9] sm:$0xff]  ;;  %v6376_v29 = vld [vmem:[%s7017_s30 + $0x1d1] sm:$0xff]  ;;  %v3905_v47 = vmul.f32 %v6380_v5, %v6371_v48  ;;  %v3906_v59 = vmul.f32 %v6380_v5, %v6372_v24  ;;  %v3907_v55 = vmul.f32 %v6380_v5, %v6373_v19  ;;  %v12045_v21 = vadd.f32 %v3881_v50, %v11914_v35 }
 0x2d0   : > { %v6377_v54 = vld [vmem:[%s7017_s30 + $0x1e1] sm:$0xff]  ;;  %v6378_v11 = vld [vmem:[%s7017_s30 + $0x1e9] sm:$0xff]  ;;  %v3908_v58 = vmul.f32 %v6380_v5, %v6374_v15  ;;  %v3909_v43 = vmul.f32 %v6380_v5, %v6375_v46  ;;  %v3910_v56 = vmul.f32 %v6380_v5, %v6376_v29  ;;  %v12048_v23 = vadd.f32 %v3882_v20, %v11917_v37  ;;  %v6383_v52 = vld [vmem:[%s7017_s30 + $0x92] sm:$0xff] }
 0x2d1   : > { %v3911_v30 = vmul.f32 %v6380_v5, %v6377_v54  ;;  %v3912_v6 = vmul.f32 %v6380_v5, %v6378_v11  ;;  %v12051_v41 = vadd.f32 %v3883_v45, %v11920_v17  ;;  %v12054_v24 = vadd.f32 %v3884_v14, %v11923_v7  ;;  %v6381_v48 = vld [vmem:[%s7017_s30 + $0x7a] sm:$0xff]  ;;  %v6385_v50 = vld [vmem:[%s7017_s30 + $0xaa] sm:$0xff]  ;;  %v6386_v20 = vld [vmem:[%s7017_s30 + $0xb2] sm:$0xff] }
 0x2d2   : > { %v12057_v46 = vadd.f32 %v3885_v4, %v11926_v32  ;;  %v12060_v11 = vadd.f32 %v3886_v13, %v11929_v39  ;;  %v12063_v35 = vadd.f32 %v3887_v28, %v11932_v10  ;;  %v12066_v37 = vadd.f32 %v3888_v9, %v11935_v49  ;;  %v6387_v45 = vld [vmem:[%s7017_s30 + $0xc2] sm:$0xff]  ;;  %v6388_v14 = vld [vmem:[%s7017_s30 + $0xca] sm:$0xff] }
 0x2d3   : > { %v12069_v17 = vadd.f32 %v3889_v25, %v11938_v44  ;;  %v12072_v7 = vadd.f32 %v3890_v36, %v11941_v26  ;;  %v12075_v32 = vadd.f32 %v3891_v51, %v11944_v12  ;;  %v12078_v39 = vadd.f32 %v3892_v42, %v11947_v2  ;;  %v14929_v44 = vld [vmem:[#allocation16_spill] sm:$0xff]  ;;  %v14931_v26 = vld [vmem:[#allocation17_spill] sm:$0xff]  ;;  %v14933_v42 = vld [vmem:[#allocation18_spill] sm:$0xff] }
 0x2d4   : > { %v12081_v10 = vadd.f32 %v3893_v27, %v11950_v31  ;;  %v12084_v49 = vadd.f32 %v3894_v40, %v11953_v33  ;;  %v12087_v5 = vadd.f32 %v3895_v16, %v14929_v44  ;;  %v12090_v15 = vadd.f32 %v3896_v18, %v14931_v26  ;;  %v6382_v12 = vld [vmem:[%s7017_s30 + $0x82] sm:$0xff]  ;;  %v6384_v2 = vld [vmem:[%s7017_s30 + $0x9a] sm:$0xff]  ;;  %v14935_v31 = vld [vmem:[#allocation19_spill] sm:$0xff] }
 0x2d5   : > { %v12097_v22 = vadd.f32 %v3897_v63, %v14933_v42  ;;  %v12100_v27 = vadd.f32 %v3898_v8, %v14935_v31  ;;  %v14937_v33 = vld [vmem:[#allocation20_spill] sm:$0xff]  ;;  %v14939_v16 = vld [vmem:[#allocation21_spill] sm:$0xff]  ;;  %v14941_v60 = vld [vmem:[#allocation22_spill] sm:$0xff] }
 0x2d6   : > { %14930 = vst [vmem:[#allocation16_spill] sm:$0xff] %v12087_v5  ;;  %14932 = vst [vmem:[#allocation17_spill] sm:$0xff] %v12090_v15  ;;  %v12103_v40 = vadd.f32 %v3899_v3, %v14937_v33  ;;  %v12106_v0 = vadd.f32 %v3900_v53, %v14939_v16  ;;  %v12113_v38 = vadd.f32 %v3901_v57, %v14941_v60  ;;  %v14943_v1 = vld [vmem:[#allocation5_spill] sm:$0xff]  ;;  %v14945_v8 = vld [vmem:[#allocation6_spill] sm:$0xff] }
 0x2d7   : > { %14934 = vst [vmem:[#allocation18_spill] sm:$0xff] %v12097_v22  ;;  %14936 = vst [vmem:[#allocation19_spill] sm:$0xff] %v12100_v27  ;;  %v12116_v4 = vadd.f32 %v3902_v34, %v14943_v1  ;;  %v12119_v13 = vadd.f32 %v3903_v62, %v14945_v8  ;;  %v14947_v3 = vld [vmem:[#allocation7_spill] sm:$0xff]  ;;  %v6389_v53 = vld [vmem:[%s7017_s30 + $0xda] sm:$0xff] }
 0x2d8   : > { %14938 = vst [vmem:[#allocation20_spill] sm:$0xff] %v12103_v40  ;;  %14940 = vst [vmem:[#allocation21_spill] sm:$0xff] %v12106_v0  ;;  %v12122_v28 = vadd.f32 %v3904_v61, %v14947_v3  ;;  %v6390_v9 = vld [vmem:[%s7017_s30 + $0xe2] sm:$0xff]  ;;  %v6391_v25 = vld [vmem:[%s7017_s30 + $0xf2] sm:$0xff] }
 0x2d9   : > { %14942 = vst [vmem:[#allocation22_spill] sm:$0xff] %v12113_v38  ;;  %14944 = vst [vmem:[#allocation5_spill] sm:$0xff] %v12116_v4  ;;  %v6414_v57 = vld [vmem:[%s13780_s1 + $0x2a] ss:$0 sm:$0xff]  ;;  %v14949_v36 = vld [vmem:[#allocation8_spill] sm:$0xff] }
 0x2da   : > { %14946 = vst [vmem:[#allocation6_spill] sm:$0xff] %v12119_v13  ;;  %14948 = vst [vmem:[#allocation7_spill] sm:$0xff] %v12122_v28  ;;  %v12131_v34 = vadd.f32 %v3905_v47, %v14949_v36  ;;  %v14951_v51 = vld [vmem:[#allocation9_spill] sm:$0xff]  ;;  %v14953_v18 = vld [vmem:[#allocation10_spill] sm:$0xff]  ;;  %v3982_v36 = vmul.f32 %v6414_v57, %v6381_v48  ;;  %v3990_v48 = vmul.f32 %v6414_v57, %v6389_v53 }
 0x2db   : > { %v12134_v19 = vadd.f32 %v3906_v59, %v14951_v51  ;;  %v12137_v29 = vadd.f32 %v3907_v55, %v14953_v18  ;;  %v14955_v54 = vld [vmem:[#allocation11_spill] sm:$0xff]  ;;  %v6392_v62 = vld [vmem:[%s7017_s30 + $0xfa] sm:$0xff]  ;;  %v14961_v59 = vld [vmem:[#allocation14_spill] sm:$0xff]  ;;  %v3983_v51 = vmul.f32 %v6414_v57, %v6382_v12  ;;  %v3984_v18 = vmul.f32 %v6414_v57, %v6383_v52 }
 0x2dc   : > { %14950 = vst [vmem:[#allocation8_spill] sm:$0xff] %v12131_v34  ;;  %v12140_v63 = vadd.f32 %v3908_v58, %v14955_v54  ;;  %v6393_v61 = vld [vmem:[%s7017_s30 + $0x10a] sm:$0xff]  ;;  %v6394_v44 = vld [vmem:[%s7017_s30 + $0x112] sm:$0xff]  ;;  %v14959_v47 = vld [vmem:[#allocation13_spill] sm:$0xff]  ;;  %v12152_v33 = vadd.f32 %v3911_v30, %v14961_v59  ;;  %v3988_v59 = vmul.f32 %v6414_v57, %v6387_v45  ;;  %v3991_v12 = vmul.f32 %v6414_v57, %v6390_v9 }
 0x2dd   : > { %14952 = vst [vmem:[#allocation9_spill] sm:$0xff] %v12134_v19  ;;  %14954 = vst [vmem:[#allocation10_spill] sm:$0xff] %v12137_v29  ;;  %v14957_v26 = vld [vmem:[#allocation12_spill] sm:$0xff]  ;;  %v12149_v31 = vadd.f32 %v3910_v56, %v14959_v47  ;;  %v14963_v55 = vld [vmem:[#allocation15_spill] sm:$0xff]  ;;  %v3985_v56 = vmul.f32 %v6414_v57, %v6384_v2  ;;  %v3987_v47 = vmul.f32 %v6414_v57, %v6386_v20 }
 0x2de   : > { %14956 = vst [vmem:[#allocation11_spill] sm:$0xff] %v12140_v63  ;;  %v12146_v42 = vadd.f32 %v3909_v43, %v14957_v26  ;;  %14962 = vst [vmem:[#allocation14_spill] sm:$0xff] %v12152_v33  ;;  %v12155_v16 = vadd.f32 %v3912_v6, %v14963_v55  ;;  %v6395_v58 = vld [vmem:[%s7017_s30 + $0x122] sm:$0xff]  ;;  %v6396_v60 = vld [vmem:[%s7017_s30 + $0x12a] sm:$0xff]  ;;  %v3986_v26 = vmul.f32 %v6414_v57, %v6385_v50 }
 0x2df   : > { %14960 = vst [vmem:[#allocation13_spill] sm:$0xff] %v12149_v31  ;;  %v6397_v1 = vld [vmem:[%s7017_s30 + $0x13a] sm:$0xff]  ;;  %v6398_v8 = vld [vmem:[%s7017_s30 + $0x142] sm:$0xff]  ;;  %v6399_v3 = vld [vmem:[%s7017_s30 + $0x152] sm:$0xff]  ;;  %v3989_v55 = vmul.f32 %v6414_v57, %v6388_v14  ;;  %v3992_v52 = vmul.f32 %v6414_v57, %v6391_v25  ;;  %v3994_v19 = vmul.f32 %v6414_v57, %v6393_v61  ;;  %v3995_v34 = vmul.f32 %v6414_v57, %v6394_v44 }
 0x2e0   : > { %14958 = vst [vmem:[#allocation12_spill] sm:$0xff] %v12146_v42  ;;  %14964 = vst [vmem:[#allocation15_spill] sm:$0xff] %v12155_v16  ;;  %v6400_v43 = vld [vmem:[%s7017_s30 + $0x15a] sm:$0xff]  ;;  %v6401_v30 = vld [vmem:[%s7017_s30 + $0x16a] sm:$0xff]  ;;  %v3993_v42 = vmul.f32 %v6414_v57, %v6392_v62  ;;  %v3996_v28 = vmul.f32 %v6414_v57, %v6395_v58  ;;  %v3997_v50 = vmul.f32 %v6414_v57, %v6396_v60 }
 0x2e1   : > { %v6402_v54 = vld [vmem:[%s7017_s30 + $0x172] sm:$0xff]  ;;  %v6403_v6 = vld [vmem:[%s7017_s30 + $0x182] sm:$0xff]  ;;  %v6404_v16 = vld [vmem:[%s7017_s30 + $0x18a] sm:$0xff]  ;;  %v3998_v14 = vmul.f32 %v6414_v57, %v6397_v1  ;;  %v3999_v4 = vmul.f32 %v6414_v57, %v6398_v8  ;;  %v4000_v38 = vmul.f32 %v6414_v57, %v6399_v3  ;;  %v4001_v0 = vmul.f32 %v6414_v57, %v6400_v43 }
 0x2e2   : > { %v6405_v33 = vld [vmem:[%s7017_s30 + $0x19a] sm:$0xff]  ;;  %v6406_v31 = vld [vmem:[%s7017_s30 + $0x1a2] sm:$0xff]  ;;  %v6407_v2 = vld [vmem:[%s7017_s30 + $0x1b2] sm:$0xff]  ;;  %v4002_v40 = vmul.f32 %v6414_v57, %v6401_v30  ;;  %v4003_v27 = vmul.f32 %v6414_v57, %v6402_v54  ;;  %v4004_v53 = vmul.f32 %v6414_v57, %v6403_v6  ;;  %v4005_v9 = vmul.f32 %v6414_v57, %v6404_v16 }
 0x2e3   : > { %v6408_v63 = vld [vmem:[%s7017_s30 + $0x1ba] sm:$0xff]  ;;  %v6409_v29 = vld [vmem:[%s7017_s30 + $0x1ca] sm:$0xff]  ;;  %v6410_v20 = vld [vmem:[%s7017_s30 + $0x1d2] sm:$0xff]  ;;  %v4006_v25 = vmul.f32 %v6414_v57, %v6405_v33  ;;  %v4007_v62 = vmul.f32 %v6414_v57, %v6406_v31  ;;  %v4008_v22 = vmul.f32 %v6414_v57, %v6407_v2  ;;  %v12176_v60 = vadd.f32 %v3982_v36, %v12045_v21 }
 0x2e4   : > { %v6411_v45 = vld [vmem:[%s7017_s30 + $0x1e2] sm:$0xff]  ;;  %v6412_v13 = vld [vmem:[%s7017_s30 + $0x1ea] sm:$0xff]  ;;  %v4009_v15 = vmul.f32 %v6414_v57, %v6408_v63  ;;  %v4010_v5 = vmul.f32 %v6414_v57, %v6409_v29  ;;  %v4011_v61 = vmul.f32 %v6414_v57, %v6410_v20  ;;  %v12179_v1 = vadd.f32 %v3983_v51, %v12048_v23  ;;  %v6417_v16 = vld [vmem:[%s7017_s30 + $0x93] sm:$0xff] }
 0x2e5   : > { %v4012_v44 = vmul.f32 %v6414_v57, %v6411_v45  ;;  %v4013_v58 = vmul.f32 %v6414_v57, %v6412_v13  ;;  %v12182_v8 = vadd.f32 %v3984_v18, %v12051_v41  ;;  %v12185_v31 = vadd.f32 %v3985_v56, %v12054_v24  ;;  %v6415_v33 = vld [vmem:[%s7017_s30 + $0x7b] sm:$0xff]  ;;  %v6419_v36 = vld [vmem:[%s7017_s30 + $0xab] sm:$0xff]  ;;  %v6420_v51 = vld [vmem:[%s7017_s30 + $0xb3] sm:$0xff] }
 0x2e6   : > { %v12188_v29 = vadd.f32 %v3986_v26, %v12057_v46  ;;  %v12191_v13 = vadd.f32 %v3987_v47, %v12060_v11  ;;  %v12194_v21 = vadd.f32 %v3988_v59, %v12063_v35  ;;  %v12197_v23 = vadd.f32 %v3989_v55, %v12066_v37  ;;  %v6421_v18 = vld [vmem:[%s7017_s30 + $0xc3] sm:$0xff]  ;;  %v6422_v56 = vld [vmem:[%s7017_s30 + $0xcb] sm:$0xff] }
 0x2e7   : > { %v12200_v41 = vadd.f32 %v3990_v48, %v12069_v17  ;;  %v12203_v24 = vadd.f32 %v3991_v12, %v12072_v7  ;;  %v12206_v46 = vadd.f32 %v3992_v52, %v12075_v32  ;;  %v12209_v11 = vadd.f32 %v3993_v42, %v12078_v39  ;;  %v14965_v17 = vld [vmem:[#allocation16_spill] sm:$0xff]  ;;  %v14967_v7 = vld [vmem:[#allocation17_spill] sm:$0xff]  ;;  %v14969_v42 = vld [vmem:[#allocation18_spill] sm:$0xff] }
 0x2e8   : > { %v12212_v35 = vadd.f32 %v3994_v19, %v12081_v10  ;;  %v12215_v37 = vadd.f32 %v3995_v34, %v12084_v49  ;;  %v12218_v57 = vadd.f32 %v3996_v28, %v14965_v17  ;;  %v12221_v63 = vadd.f32 %v3997_v50, %v14967_v7  ;;  %v6416_v32 = vld [vmem:[%s7017_s30 + $0x83] sm:$0xff]  ;;  %v6418_v39 = vld [vmem:[%s7017_s30 + $0x9b] sm:$0xff]  ;;  %v14971_v10 = vld [vmem:[#allocation19_spill] sm:$0xff] }
 0x2e9   : > { %v12228_v3 = vadd.f32 %v3998_v14, %v14969_v42  ;;  %v12231_v19 = vadd.f32 %v3999_v4, %v14971_v10  ;;  %v14973_v49 = vld [vmem:[#allocation20_spill] sm:$0xff]  ;;  %v14975_v28 = vld [vmem:[#allocation21_spill] sm:$0xff]  ;;  %v14977_v30 = vld [vmem:[#allocation22_spill] sm:$0xff] }
 0x2ea   : > { %14966 = vst [vmem:[#allocation16_spill] sm:$0xff] %v12218_v57  ;;  %14968 = vst [vmem:[#allocation17_spill] sm:$0xff] %v12221_v63  ;;  %v12234_v34 = vadd.f32 %v4000_v38, %v14973_v49  ;;  %v12237_v43 = vadd.f32 %v4001_v0, %v14975_v28  ;;  %v12244_v54 = vadd.f32 %v4002_v40, %v14977_v30  ;;  %v14979_v6 = vld [vmem:[#allocation5_spill] sm:$0xff]  ;;  %v14981_v4 = vld [vmem:[#allocation6_spill] sm:$0xff] }
 0x2eb   : > { %14970 = vst [vmem:[#allocation18_spill] sm:$0xff] %v12228_v3  ;;  %14972 = vst [vmem:[#allocation19_spill] sm:$0xff] %v12231_v19  ;;  %v12247_v26 = vadd.f32 %v4003_v27, %v14979_v6  ;;  %v12250_v47 = vadd.f32 %v4004_v53, %v14981_v4  ;;  %v14983_v38 = vld [vmem:[#allocation7_spill] sm:$0xff]  ;;  %v6423_v0 = vld [vmem:[%s7017_s30 + $0xdb] sm:$0xff] }
 0x2ec   : > { %14974 = vst [vmem:[#allocation20_spill] sm:$0xff] %v12234_v34  ;;  %14976 = vst [vmem:[#allocation21_spill] sm:$0xff] %v12237_v43  ;;  %v12253_v59 = vadd.f32 %v4005_v9, %v14983_v38  ;;  %v6424_v55 = vld [vmem:[%s7017_s30 + $0xe3] sm:$0xff]  ;;  %v6425_v48 = vld [vmem:[%s7017_s30 + $0xf3] sm:$0xff] }
 0x2ed   : > { %14978 = vst [vmem:[#allocation22_spill] sm:$0xff] %v12244_v54  ;;  %14980 = vst [vmem:[#allocation5_spill] sm:$0xff] %v12247_v26  ;;  %v6448_v40 = vld [vmem:[%s13780_s1 + $0x2b] ss:$0 sm:$0xff]  ;;  %v14985_v12 = vld [vmem:[#allocation8_spill] sm:$0xff] }
 0x2ee   : > { %14982 = vst [vmem:[#allocation6_spill] sm:$0xff] %v12250_v47  ;;  %14984 = vst [vmem:[#allocation7_spill] sm:$0xff] %v12253_v59  ;;  %v12262_v27 = vadd.f32 %v4006_v25, %v14985_v12  ;;  %v14987_v52 = vld [vmem:[#allocation9_spill] sm:$0xff]  ;;  %v14989_v50 = vld [vmem:[#allocation10_spill] sm:$0xff]  ;;  %v4083_v12 = vmul.f32 %v6448_v40, %v6415_v33  ;;  %v4091_v33 = vmul.f32 %v6448_v40, %v6423_v0 }
 0x2ef   : > { %v12265_v2 = vadd.f32 %v4007_v62, %v14987_v52  ;;  %v12268_v20 = vadd.f32 %v4008_v22, %v14989_v50  ;;  %v14991_v45 = vld [vmem:[#allocation11_spill] sm:$0xff]  ;;  %v6426_v53 = vld [vmem:[%s7017_s30 + $0xfb] sm:$0xff]  ;;  %v14997_v62 = vld [vmem:[#allocation14_spill] sm:$0xff]  ;;  %v4084_v52 = vmul.f32 %v6448_v40, %v6416_v32  ;;  %v4085_v50 = vmul.f32 %v6448_v40, %v6417_v16 }
 0x2f0   : > { %14986 = vst [vmem:[#allocation8_spill] sm:$0xff] %v12262_v27  ;;  %v12271_v14 = vadd.f32 %v4009_v15, %v14991_v45  ;;  %v6427_v9 = vld [vmem:[%s7017_s30 + $0x10b] sm:$0xff]  ;;  %v6428_v17 = vld [vmem:[%s7017_s30 + $0x113] sm:$0xff]  ;;  %v14995_v25 = vld [vmem:[#allocation13_spill] sm:$0xff]  ;;  %v12283_v49 = vadd.f32 %v4012_v44, %v14997_v62  ;;  %v4089_v62 = vmul.f32 %v6448_v40, %v6421_v18  ;;  %v4092_v32 = vmul.f32 %v6448_v40, %v6424_v55 }
 0x2f1   : > { %14988 = vst [vmem:[#allocation9_spill] sm:$0xff] %v12265_v2  ;;  %14990 = vst [vmem:[#allocation10_spill] sm:$0xff] %v12268_v20  ;;  %v14993_v7 = vld [vmem:[#allocation12_spill] sm:$0xff]  ;;  %v12280_v10 = vadd.f32 %v4011_v61, %v14995_v25  ;;  %v14999_v22 = vld [vmem:[#allocation15_spill] sm:$0xff]  ;;  %v4086_v61 = vmul.f32 %v6448_v40, %v6418_v39  ;;  %v4088_v25 = vmul.f32 %v6448_v40, %v6420_v51 }
 0x2f2   : > { %14992 = vst [vmem:[#allocation11_spill] sm:$0xff] %v12271_v14  ;;  %v12277_v42 = vadd.f32 %v4010_v5, %v14993_v7  ;;  %14998 = vst [vmem:[#allocation14_spill] sm:$0xff] %v12283_v49  ;;  %v12286_v28 = vadd.f32 %v4013_v58, %v14999_v22  ;;  %v6429_v15 = vld [vmem:[%s7017_s30 + $0x123] sm:$0xff]  ;;  %v6430_v30 = vld [vmem:[%s7017_s30 + $0x12b] sm:$0xff]  ;;  %v4087_v7 = vmul.f32 %v6448_v40, %v6419_v36 }
 0x2f3   : > { %14996 = vst [vmem:[#allocation13_spill] sm:$0xff] %v12280_v10  ;;  %v6431_v6 = vld [vmem:[%s7017_s30 + $0x13b] sm:$0xff]  ;;  %v6432_v4 = vld [vmem:[%s7017_s30 + $0x143] sm:$0xff]  ;;  %v6433_v38 = vld [vmem:[%s7017_s30 + $0x153] sm:$0xff]  ;;  %v4090_v22 = vmul.f32 %v6448_v40, %v6422_v56  ;;  %v4093_v16 = vmul.f32 %v6448_v40, %v6425_v48  ;;  %v4095_v2 = vmul.f32 %v6448_v40, %v6427_v9  ;;  %v4096_v27 = vmul.f32 %v6448_v40, %v6428_v17 }
 0x2f4   : > { %14994 = vst [vmem:[#allocation12_spill] sm:$0xff] %v12277_v42  ;;  %15000 = vst [vmem:[#allocation15_spill] sm:$0xff] %v12286_v28  ;;  %v6434_v5 = vld [vmem:[%s7017_s30 + $0x15b] sm:$0xff]  ;;  %v6435_v44 = vld [vmem:[%s7017_s30 + $0x16b] sm:$0xff]  ;;  %v4094_v42 = vmul.f32 %v6448_v40, %v6426_v53  ;;  %v4097_v59 = vmul.f32 %v6448_v40, %v6429_v15  ;;  %v4098_v36 = vmul.f32 %v6448_v40, %v6430_v30 }
 0x2f5   : > { %v6436_v45 = vld [vmem:[%s7017_s30 + $0x173] sm:$0xff]  ;;  %v6437_v58 = vld [vmem:[%s7017_s30 + $0x183] sm:$0xff]  ;;  %v6438_v28 = vld [vmem:[%s7017_s30 + $0x18b] sm:$0xff]  ;;  %v4099_v56 = vmul.f32 %v6448_v40, %v6431_v6  ;;  %v4100_v26 = vmul.f32 %v6448_v40, %v6432_v4  ;;  %v4101_v54 = vmul.f32 %v6448_v40, %v6433_v38  ;;  %v4102_v43 = vmul.f32 %v6448_v40, %v6434_v5 }
 0x2f6   : > { %v6439_v49 = vld [vmem:[%s7017_s30 + $0x19b] sm:$0xff]  ;;  %v6440_v10 = vld [vmem:[%s7017_s30 + $0x1a3] sm:$0xff]  ;;  %v6441_v39 = vld [vmem:[%s7017_s30 + $0x1b3] sm:$0xff]  ;;  %v4103_v34 = vmul.f32 %v6448_v40, %v6435_v44  ;;  %v4104_v19 = vmul.f32 %v6448_v40, %v6436_v45  ;;  %v4105_v0 = vmul.f32 %v6448_v40, %v6437_v58  ;;  %v4106_v55 = vmul.f32 %v6448_v40, %v6438_v28 }
 0x2f7   : > { %v6442_v14 = vld [vmem:[%s7017_s30 + $0x1bb] sm:$0xff]  ;;  %v6443_v20 = vld [vmem:[%s7017_s30 + $0x1cb] sm:$0xff]  ;;  %v6444_v51 = vld [vmem:[%s7017_s30 + $0x1d3] sm:$0xff]  ;;  %v4107_v48 = vmul.f32 %v6448_v40, %v6439_v49  ;;  %v4108_v53 = vmul.f32 %v6448_v40, %v6440_v10  ;;  %v4109_v3 = vmul.f32 %v6448_v40, %v6441_v39  ;;  %v12307_v30 = vadd.f32 %v4083_v12, %v12176_v60 }
 0x2f8   : > { %v6445_v18 = vld [vmem:[%s7017_s30 + $0x1e3] sm:$0xff]  ;;  %v6446_v47 = vld [vmem:[%s7017_s30 + $0x1eb] sm:$0xff]  ;;  %v4110_v63 = vmul.f32 %v6448_v40, %v6442_v14  ;;  %v4111_v57 = vmul.f32 %v6448_v40, %v6443_v20  ;;  %v4112_v9 = vmul.f32 %v6448_v40, %v6444_v51  ;;  %v12310_v6 = vadd.f32 %v4084_v52, %v12179_v1  ;;  %v6451_v28 = vld [vmem:[%s7017_s30 + $0x94] sm:$0xff] }
 0x2f9   : > { %v4113_v17 = vmul.f32 %v6448_v40, %v6445_v18  ;;  %v4114_v15 = vmul.f32 %v6448_v40, %v6446_v47  ;;  %v12313_v4 = vadd.f32 %v4085_v50, %v12182_v8  ;;  %v12316_v10 = vadd.f32 %v4086_v61, %v12185_v31  ;;  %v6449_v49 = vld [vmem:[%s7017_s30 + $0x7c] sm:$0xff]  ;;  %v6453_v12 = vld [vmem:[%s7017_s30 + $0xac] sm:$0xff]  ;;  %v6454_v52 = vld [vmem:[%s7017_s30 + $0xb4] sm:$0xff] }
 0x2fa   : > { %v12319_v20 = vadd.f32 %v4087_v7, %v12188_v29  ;;  %v12322_v47 = vadd.f32 %v4088_v25, %v12191_v13  ;;  %v12325_v60 = vadd.f32 %v4089_v62, %v12194_v21  ;;  %v12328_v1 = vadd.f32 %v4090_v22, %v12197_v23  ;;  %v6455_v50 = vld [vmem:[%s7017_s30 + $0xc4] sm:$0xff]  ;;  %v6456_v61 = vld [vmem:[%s7017_s30 + $0xcc] sm:$0xff] }
 0x2fb   : > { %v12331_v8 = vadd.f32 %v4091_v33, %v12200_v41  ;;  %v12334_v31 = vadd.f32 %v4092_v32, %v12203_v24  ;;  %v12337_v29 = vadd.f32 %v4093_v16, %v12206_v46  ;;  %v12340_v13 = vadd.f32 %v4094_v42, %v12209_v11  ;;  %v15001_v41 = vld [vmem:[#allocation16_spill] sm:$0xff]  ;;  %v15003_v24 = vld [vmem:[#allocation17_spill] sm:$0xff]  ;;  %v15005_v42 = vld [vmem:[#allocation18_spill] sm:$0xff] }
 0x2fc   : > { %v12343_v21 = vadd.f32 %v4095_v2, %v12212_v35  ;;  %v12346_v23 = vadd.f32 %v4096_v27, %v12215_v37  ;;  %v12349_v40 = vadd.f32 %v4097_v59, %v15001_v41  ;;  %v12352_v14 = vadd.f32 %v4098_v36, %v15003_v24  ;;  %v6450_v46 = vld [vmem:[%s7017_s30 + $0x84] sm:$0xff]  ;;  %v6452_v11 = vld [vmem:[%s7017_s30 + $0x9c] sm:$0xff]  ;;  %v15007_v35 = vld [vmem:[#allocation19_spill] sm:$0xff] }
 0x2fd   : > { %v12359_v38 = vadd.f32 %v4099_v56, %v15005_v42  ;;  %v12362_v2 = vadd.f32 %v4100_v26, %v15007_v35  ;;  %v15009_v37 = vld [vmem:[#allocation20_spill] sm:$0xff]  ;;  %v15011_v59 = vld [vmem:[#allocation21_spill] sm:$0xff]  ;;  %v15013_v44 = vld [vmem:[#allocation22_spill] sm:$0xff] }
 0x2fe   : > { %15002 = vst [vmem:[#allocation16_spill] sm:$0xff] %v12349_v40  ;;  %15004 = vst [vmem:[#allocation17_spill] sm:$0xff] %v12352_v14  ;;  %v12365_v27 = vadd.f32 %v4101_v54, %v15009_v37  ;;  %v12368_v5 = vadd.f32 %v4102_v43, %v15011_v59  ;;  %v12375_v45 = vadd.f32 %v4103_v34, %v15013_v44  ;;  %v15015_v58 = vld [vmem:[#allocation5_spill] sm:$0xff]  ;;  %v15017_v26 = vld [vmem:[#allocation6_spill] sm:$0xff] }
 0x2ff   : > { %15006 = vst [vmem:[#allocation18_spill] sm:$0xff] %v12359_v38  ;;  %15008 = vst [vmem:[#allocation19_spill] sm:$0xff] %v12362_v2  ;;  %v12378_v7 = vadd.f32 %v4104_v19, %v15015_v58  ;;  %v12381_v25 = vadd.f32 %v4105_v0, %v15017_v26  ;;  %v15019_v54 = vld [vmem:[#allocation7_spill] sm:$0xff]  ;;  %v6457_v43 = vld [vmem:[%s7017_s30 + $0xdc] sm:$0xff] }
 0x300   : > { %15010 = vst [vmem:[#allocation20_spill] sm:$0xff] %v12365_v27  ;;  %15012 = vst [vmem:[#allocation21_spill] sm:$0xff] %v12368_v5  ;;  %v12384_v62 = vadd.f32 %v4106_v55, %v15019_v54  ;;  %v6458_v22 = vld [vmem:[%s7017_s30 + $0xe4] sm:$0xff]  ;;  %v6459_v33 = vld [vmem:[%s7017_s30 + $0xf4] sm:$0xff] }
 0x301   : > { %15014 = vst [vmem:[#allocation22_spill] sm:$0xff] %v12375_v45  ;;  %15016 = vst [vmem:[#allocation5_spill] sm:$0xff] %v12378_v7  ;;  %v6482_v34 = vld [vmem:[%s13780_s1 + $0x2c] ss:$0 sm:$0xff]  ;;  %v15021_v32 = vld [vmem:[#allocation8_spill] sm:$0xff] }
 0x302   : > { %15018 = vst [vmem:[#allocation6_spill] sm:$0xff] %v12381_v25  ;;  %15020 = vst [vmem:[#allocation7_spill] sm:$0xff] %v12384_v62  ;;  %v12393_v19 = vadd.f32 %v4107_v48, %v15021_v32  ;;  %v15023_v16 = vld [vmem:[#allocation9_spill] sm:$0xff]  ;;  %v15025_v36 = vld [vmem:[#allocation10_spill] sm:$0xff]  ;;  %v4184_v32 = vmul.f32 %v6482_v34, %v6449_v49  ;;  %v4192_v49 = vmul.f32 %v6482_v34, %v6457_v43 }
 0x303   : > { %v12396_v39 = vadd.f32 %v4108_v53, %v15023_v16  ;;  %v12399_v51 = vadd.f32 %v4109_v3, %v15025_v36  ;;  %v15027_v18 = vld [vmem:[#allocation11_spill] sm:$0xff]  ;;  %v6460_v0 = vld [vmem:[%s7017_s30 + $0xfc] sm:$0xff]  ;;  %v15033_v53 = vld [vmem:[#allocation14_spill] sm:$0xff]  ;;  %v4185_v16 = vmul.f32 %v6482_v34, %v6450_v46  ;;  %v4186_v36 = vmul.f32 %v6482_v34, %v6451_v28 }
 0x304   : > { %15022 = vst [vmem:[#allocation8_spill] sm:$0xff] %v12393_v19  ;;  %v12402_v56 = vadd.f32 %v4110_v63, %v15027_v18  ;;  %v6461_v55 = vld [vmem:[%s7017_s30 + $0x10c] sm:$0xff]  ;;  %v6462_v41 = vld [vmem:[%s7017_s30 + $0x114] sm:$0xff]  ;;  %v15031_v48 = vld [vmem:[#allocation13_spill] sm:$0xff]  ;;  %v12414_v37 = vadd.f32 %v4113_v17, %v15033_v53  ;;  %v4190_v53 = vmul.f32 %v6482_v34, %v6455_v50  ;;  %v4193_v46 = vmul.f32 %v6482_v34, %v6458_v22 }
 0x305   : > { %15024 = vst [vmem:[#allocation9_spill] sm:$0xff] %v12396_v39  ;;  %15026 = vst [vmem:[#allocation10_spill] sm:$0xff] %v12399_v51  ;;  %v15029_v24 = vld [vmem:[#allocation12_spill] sm:$0xff]  ;;  %v12411_v35 = vadd.f32 %v4112_v9, %v15031_v48  ;;  %v15035_v3 = vld [vmem:[#allocation15_spill] sm:$0xff]  ;;  %v4187_v9 = vmul.f32 %v6482_v34, %v6452_v11  ;;  %v4189_v48 = vmul.f32 %v6482_v34, %v6454_v52 }
 0x306   : > { %15028 = vst [vmem:[#allocation11_spill] sm:$0xff] %v12402_v56  ;;  %v12408_v42 = vadd.f32 %v4111_v57, %v15029_v24  ;;  %15034 = vst [vmem:[#allocation14_spill] sm:$0xff] %v12414_v37  ;;  %v12417_v59 = vadd.f32 %v4114_v15, %v15035_v3  ;;  %v6463_v63 = vld [vmem:[%s7017_s30 + $0x124] sm:$0xff]  ;;  %v6464_v44 = vld [vmem:[%s7017_s30 + $0x12c] sm:$0xff]  ;;  %v4188_v24 = vmul.f32 %v6482_v34, %v6453_v12 }
 0x307   : > { %15032 = vst [vmem:[#allocation13_spill] sm:$0xff] %v12411_v35  ;;  %v6465_v58 = vld [vmem:[%s7017_s30 + $0x13c] sm:$0xff]  ;;  %v6466_v26 = vld [vmem:[%s7017_s30 + $0x144] sm:$0xff]  ;;  %v6467_v54 = vld [vmem:[%s7017_s30 + $0x154] sm:$0xff]  ;;  %v4191_v3 = vmul.f32 %v6482_v34, %v6456_v61  ;;  %v4194_v28 = vmul.f32 %v6482_v34, %v6459_v33  ;;  %v4196_v39 = vmul.f32 %v6482_v34, %v6461_v55  ;;  %v4197_v19 = vmul.f32 %v6482_v34, %v6462_v41 }
 0x308   : > { %15030 = vst [vmem:[#allocation12_spill] sm:$0xff] %v12408_v42  ;;  %15036 = vst [vmem:[#allocation15_spill] sm:$0xff] %v12417_v59  ;;  %v6468_v57 = vld [vmem:[%s7017_s30 + $0x15c] sm:$0xff]  ;;  %v6469_v17 = vld [vmem:[%s7017_s30 + $0x16c] sm:$0xff]  ;;  %v4195_v42 = vmul.f32 %v6482_v34, %v6460_v0  ;;  %v4198_v62 = vmul.f32 %v6482_v34, %v6463_v63  ;;  %v4199_v12 = vmul.f32 %v6482_v34, %v6464_v44 }
 0x309   : > { %v6470_v18 = vld [vmem:[%s7017_s30 + $0x174] sm:$0xff]  ;;  %v6471_v15 = vld [vmem:[%s7017_s30 + $0x184] sm:$0xff]  ;;  %v6472_v59 = vld [vmem:[%s7017_s30 + $0x18c] sm:$0xff]  ;;  %v4200_v61 = vmul.f32 %v6482_v34, %v6465_v58  ;;  %v4201_v7 = vmul.f32 %v6482_v34, %v6466_v26  ;;  %v4202_v45 = vmul.f32 %v6482_v34, %v6467_v54  ;;  %v4203_v5 = vmul.f32 %v6482_v34, %v6468_v57 }
 0x30a   : > { %v6473_v37 = vld [vmem:[%s7017_s30 + $0x19c] sm:$0xff]  ;;  %v6474_v35 = vld [vmem:[%s7017_s30 + $0x1a4] sm:$0xff]  ;;  %v6475_v11 = vld [vmem:[%s7017_s30 + $0x1b4] sm:$0xff]  ;;  %v4204_v27 = vmul.f32 %v6482_v34, %v6469_v17  ;;  %v4205_v2 = vmul.f32 %v6482_v34, %v6470_v18  ;;  %v4206_v43 = vmul.f32 %v6482_v34, %v6471_v15  ;;  %v4207_v22 = vmul.f32 %v6482_v34, %v6472_v59 }
 0x30b   : > { %v6476_v56 = vld [vmem:[%s7017_s30 + $0x1bc] sm:$0xff]  ;;  %v6477_v51 = vld [vmem:[%s7017_s30 + $0x1cc] sm:$0xff]  ;;  %v6478_v52 = vld [vmem:[%s7017_s30 + $0x1d4] sm:$0xff]  ;;  %v4208_v33 = vmul.f32 %v6482_v34, %v6473_v37  ;;  %v4209_v0 = vmul.f32 %v6482_v34, %v6474_v35  ;;  %v4210_v38 = vmul.f32 %v6482_v34, %v6475_v11  ;;  %v12438_v44 = vadd.f32 %v4184_v32, %v12307_v30 }
 0x30c   : > { %v6479_v50 = vld [vmem:[%s7017_s30 + $0x1e4] sm:$0xff]  ;;  %v6480_v25 = vld [vmem:[%s7017_s30 + $0x1ec] sm:$0xff]  ;;  %v4211_v14 = vmul.f32 %v6482_v34, %v6476_v56  ;;  %v4212_v40 = vmul.f32 %v6482_v34, %v6477_v51  ;;  %v4213_v55 = vmul.f32 %v6482_v34, %v6478_v52  ;;  %v12441_v58 = vadd.f32 %v4185_v16, %v12310_v6  ;;  %v6485_v59 = vld [vmem:[%s7017_s30 + $0x95] sm:$0xff] }
 0x30d   : > { %v4214_v41 = vmul.f32 %v6482_v34, %v6479_v50  ;;  %v4215_v63 = vmul.f32 %v6482_v34, %v6480_v25  ;;  %v12444_v26 = vadd.f32 %v4186_v36, %v12313_v4  ;;  %v12447_v35 = vadd.f32 %v4187_v9, %v12316_v10  ;;  %v6483_v37 = vld [vmem:[%s7017_s30 + $0x7d] sm:$0xff]  ;;  %v6487_v32 = vld [vmem:[%s7017_s30 + $0xad] sm:$0xff]  ;;  %v6488_v16 = vld [vmem:[%s7017_s30 + $0xb5] sm:$0xff] }
 0x30e   : > { %v12450_v51 = vadd.f32 %v4188_v24, %v12319_v20  ;;  %v12453_v25 = vadd.f32 %v4189_v48, %v12322_v47  ;;  %v12456_v30 = vadd.f32 %v4190_v53, %v12325_v60  ;;  %v12459_v6 = vadd.f32 %v4191_v3, %v12328_v1  ;;  %v6489_v36 = vld [vmem:[%s7017_s30 + $0xc5] sm:$0xff]  ;;  %v6490_v9 = vld [vmem:[%s7017_s30 + $0xcd] sm:$0xff] }
 0x30f   : > { %v12462_v4 = vadd.f32 %v4192_v49, %v12331_v8  ;;  %v12465_v10 = vadd.f32 %v4193_v46, %v12334_v31  ;;  %v12468_v20 = vadd.f32 %v4194_v28, %v12337_v29  ;;  %v12471_v47 = vadd.f32 %v4195_v42, %v12340_v13  ;;  %v15037_v8 = vld [vmem:[#allocation16_spill] sm:$0xff]  ;;  %v15039_v31 = vld [vmem:[#allocation17_spill] sm:$0xff]  ;;  %v15041_v42 = vld [vmem:[#allocation18_spill] sm:$0xff] }
 0x310   : > { %v12474_v60 = vadd.f32 %v4196_v39, %v12343_v21  ;;  %v12477_v1 = vadd.f32 %v4197_v19, %v12346_v23  ;;  %v12480_v34 = vadd.f32 %v4198_v62, %v15037_v8  ;;  %v12483_v56 = vadd.f32 %v4199_v12, %v15039_v31  ;;  %v6484_v29 = vld [vmem:[%s7017_s30 + $0x85] sm:$0xff]  ;;  %v6486_v13 = vld [vmem:[%s7017_s30 + $0x9d] sm:$0xff]  ;;  %v15043_v21 = vld [vmem:[#allocation19_spill] sm:$0xff] }
 0x311   : > { %v12490_v54 = vadd.f32 %v4200_v61, %v15041_v42  ;;  %v12493_v39 = vadd.f32 %v4201_v7, %v15043_v21  ;;  %v15045_v23 = vld [vmem:[#allocation20_spill] sm:$0xff]  ;;  %v15047_v62 = vld [vmem:[#allocation21_spill] sm:$0xff]  ;;  %v15049_v17 = vld [vmem:[#allocation22_spill] sm:$0xff] }
 0x312   : > { %15038 = vst [vmem:[#allocation16_spill] sm:$0xff] %v12480_v34  ;;  %15040 = vst [vmem:[#allocation17_spill] sm:$0xff] %v12483_v56  ;;  %v12496_v19 = vadd.f32 %v4202_v45, %v15045_v23  ;;  %v12499_v57 = vadd.f32 %v4203_v5, %v15047_v62  ;;  %v12506_v18 = vadd.f32 %v4204_v27, %v15049_v17  ;;  %v15051_v15 = vld [vmem:[#allocation5_spill] sm:$0xff]  ;;  %v15053_v7 = vld [vmem:[#allocation6_spill] sm:$0xff] }
 0x313   : > { %15042 = vst [vmem:[#allocation18_spill] sm:$0xff] %v12490_v54  ;;  %15044 = vst [vmem:[#allocation19_spill] sm:$0xff] %v12493_v39  ;;  %v12509_v24 = vadd.f32 %v4205_v2, %v15051_v15  ;;  %v12512_v48 = vadd.f32 %v4206_v43, %v15053_v7  ;;  %v15055_v45 = vld [vmem:[#allocation7_spill] sm:$0xff]  ;;  %v6491_v5 = vld [vmem:[%s7017_s30 + $0xdd] sm:$0xff] }
 0x314   : > { %15046 = vst [vmem:[#allocation20_spill] sm:$0xff] %v12496_v19  ;;  %15048 = vst [vmem:[#allocation21_spill] sm:$0xff] %v12499_v57  ;;  %v12515_v53 = vadd.f32 %v4207_v22, %v15055_v45  ;;  %v6492_v3 = vld [vmem:[%s7017_s30 + $0xe5] sm:$0xff]  ;;  %v6493_v49 = vld [vmem:[%s7017_s30 + $0xf5] sm:$0xff] }
 0x315   : > { %15050 = vst [vmem:[#allocation22_spill] sm:$0xff] %v12506_v18  ;;  %15052 = vst [vmem:[#allocation5_spill] sm:$0xff] %v12509_v24  ;;  %v6516_v27 = vld [vmem:[%s13780_s1 + $0x2d] ss:$0 sm:$0xff]  ;;  %v15057_v46 = vld [vmem:[#allocation8_spill] sm:$0xff] }
 0x316   : > { %15054 = vst [vmem:[#allocation6_spill] sm:$0xff] %v12512_v48  ;;  %15056 = vst [vmem:[#allocation7_spill] sm:$0xff] %v12515_v53  ;;  %v12524_v2 = vadd.f32 %v4208_v33, %v15057_v46  ;;  %v15059_v28 = vld [vmem:[#allocation9_spill] sm:$0xff]  ;;  %v15061_v12 = vld [vmem:[#allocation10_spill] sm:$0xff]  ;;  %v4285_v46 = vmul.f32 %v6516_v27, %v6483_v37  ;;  %v4293_v37 = vmul.f32 %v6516_v27, %v6491_v5 }
 0x317   : > { %v12527_v11 = vadd.f32 %v4209_v0, %v15059_v28  ;;  %v12530_v52 = vadd.f32 %v4210_v38, %v15061_v12  ;;  %v15063_v50 = vld [vmem:[#allocation11_spill] sm:$0xff]  ;;  %v6494_v43 = vld [vmem:[%s7017_s30 + $0xfd] sm:$0xff]  ;;  %v15069_v0 = vld [vmem:[#allocation14_spill] sm:$0xff]  ;;  %v4286_v28 = vmul.f32 %v6516_v27, %v6484_v29  ;;  %v4287_v12 = vmul.f32 %v6516_v27, %v6485_v59 }
 0x318   : > { %15058 = vst [vmem:[#allocation8_spill] sm:$0xff] %v12524_v2  ;;  %v12533_v61 = vadd.f32 %v4211_v14, %v15063_v50  ;;  %v6495_v22 = vld [vmem:[%s7017_s30 + $0x10d] sm:$0xff]  ;;  %v6496_v8 = vld [vmem:[%s7017_s30 + $0x115] sm:$0xff]  ;;  %v15067_v33 = vld [vmem:[#allocation13_spill] sm:$0xff]  ;;  %v12545_v23 = vadd.f32 %v4214_v41, %v15069_v0  ;;  %v4291_v0 = vmul.f32 %v6516_v27, %v6489_v36  ;;  %v4294_v29 = vmul.f32 %v6516_v27, %v6492_v3 }
 0x319   : > { %15060 = vst [vmem:[#allocation9_spill] sm:$0xff] %v12527_v11  ;;  %15062 = vst [vmem:[#allocation10_spill] sm:$0xff] %v12530_v52  ;;  %v15065_v31 = vld [vmem:[#allocation12_spill] sm:$0xff]  ;;  %v12542_v21 = vadd.f32 %v4213_v55, %v15067_v33  ;;  %v15071_v38 = vld [vmem:[#allocation15_spill] sm:$0xff]  ;;  %v4288_v55 = vmul.f32 %v6516_v27, %v6486_v13  ;;  %v4290_v33 = vmul.f32 %v6516_v27, %v6488_v16 }
 0x31a   : > { %15064 = vst [vmem:[#allocation11_spill] sm:$0xff] %v12533_v61  ;;  %v12539_v42 = vadd.f32 %v4212_v40, %v15065_v31  ;;  %15070 = vst [vmem:[#allocation14_spill] sm:$0xff] %v12545_v23  ;;  %v12548_v62 = vadd.f32 %v4215_v63, %v15071_v38  ;;  %v6497_v14 = vld [vmem:[%s7017_s30 + $0x125] sm:$0xff]  ;;  %v6498_v17 = vld [vmem:[%s7017_s30 + $0x12d] sm:$0xff]  ;;  %v4289_v31 = vmul.f32 %v6516_v27, %v6487_v32 }
 0x31b   : > { %15068 = vst [vmem:[#allocation13_spill] sm:$0xff] %v12542_v21  ;;  %v6499_v15 = vld [vmem:[%s7017_s30 + $0x13d] sm:$0xff]  ;;  %v6500_v7 = vld [vmem:[%s7017_s30 + $0x145] sm:$0xff]  ;;  %v6501_v45 = vld [vmem:[%s7017_s30 + $0x155] sm:$0xff]  ;;  %v4292_v38 = vmul.f32 %v6516_v27, %v6490_v9  ;;  %v4295_v59 = vmul.f32 %v6516_v27, %v6493_v49  ;;  %v4297_v11 = vmul.f32 %v6516_v27, %v6495_v22  ;;  %v4298_v2 = vmul.f32 %v6516_v27, %v6496_v8 }
 0x31c   : > { %15066 = vst [vmem:[#allocation12_spill] sm:$0xff] %v12539_v42  ;;  %15072 = vst [vmem:[#allocation15_spill] sm:$0xff] %v12548_v62  ;;  %v6502_v40 = vld [vmem:[%s7017_s30 + $0x15d] sm:$0xff]  ;;  %v6503_v41 = vld [vmem:[%s7017_s30 + $0x16d] sm:$0xff]  ;;  %v4296_v42 = vmul.f32 %v6516_v27, %v6494_v43  ;;  %v4299_v53 = vmul.f32 %v6516_v27, %v6497_v14  ;;  %v4300_v32 = vmul.f32 %v6516_v27, %v6498_v17 }
 0x31d   : > { %v6504_v50 = vld [vmem:[%s7017_s30 + $0x175] sm:$0xff]  ;;  %v6505_v63 = vld [vmem:[%s7017_s30 + $0x185] sm:$0xff]  ;;  %v6506_v62 = vld [vmem:[%s7017_s30 + $0x18d] sm:$0xff]  ;;  %v4301_v9 = vmul.f32 %v6516_v27, %v6499_v15  ;;  %v4302_v24 = vmul.f32 %v6516_v27, %v6500_v7  ;;  %v4303_v18 = vmul.f32 %v6516_v27, %v6501_v45  ;;  %v4304_v57 = vmul.f32 %v6516_v27, %v6502_v40 }
 0x31e   : > { %v6507_v23 = vld [vmem:[%s7017_s30 + $0x19d] sm:$0xff]  ;;  %v6508_v21 = vld [vmem:[%s7017_s30 + $0x1a5] sm:$0xff]  ;;  %v6509_v13 = vld [vmem:[%s7017_s30 + $0x1b5] sm:$0xff]  ;;  %v4305_v19 = vmul.f32 %v6516_v27, %v6503_v41  ;;  %v4306_v39 = vmul.f32 %v6516_v27, %v6504_v50  ;;  %v4307_v5 = vmul.f32 %v6516_v27, %v6505_v63  ;;  %v4308_v3 = vmul.f32 %v6516_v27, %v6506_v62 }
 0x31f   : > { %v6510_v61 = vld [vmem:[%s7017_s30 + $0x1bd] sm:$0xff]  ;;  %v6511_v52 = vld [vmem:[%s7017_s30 + $0x1cd] sm:$0xff]  ;;  %v6512_v16 = vld [vmem:[%s7017_s30 + $0x1d5] sm:$0xff]  ;;  %v4309_v49 = vmul.f32 %v6516_v27, %v6507_v23  ;;  %v4310_v43 = vmul.f32 %v6516_v27, %v6508_v21  ;;  %v4311_v54 = vmul.f32 %v6516_v27, %v6509_v13  ;;  %v12569_v17 = vadd.f32 %v4285_v46, %v12438_v44 }
 0x320   : > { %v6513_v36 = vld [vmem:[%s7017_s30 + $0x1e5] sm:$0xff]  ;;  %v6514_v48 = vld [vmem:[%s7017_s30 + $0x1ed] sm:$0xff]  ;;  %v4312_v56 = vmul.f32 %v6516_v27, %v6510_v61  ;;  %v4313_v34 = vmul.f32 %v6516_v27, %v6511_v52  ;;  %v4314_v22 = vmul.f32 %v6516_v27, %v6512_v16  ;;  %v12572_v15 = vadd.f32 %v4286_v28, %v12441_v58  ;;  %v6519_v62 = vld [vmem:[%s7017_s30 + $0x96] sm:$0xff] }
 0x321   : > { %v4315_v8 = vmul.f32 %v6516_v27, %v6513_v36  ;;  %v4316_v14 = vmul.f32 %v6516_v27, %v6514_v48  ;;  %v12575_v7 = vadd.f32 %v4287_v12, %v12444_v26  ;;  %v12578_v21 = vadd.f32 %v4288_v55, %v12447_v35  ;;  %v6517_v23 = vld [vmem:[%s7017_s30 + $0x7e] sm:$0xff]  ;;  %v6521_v46 = vld [vmem:[%s7017_s30 + $0xae] sm:$0xff]  ;;  %v6522_v28 = vld [vmem:[%s7017_s30 + $0xb6] sm:$0xff] }
 0x322   : > { %v12581_v52 = vadd.f32 %v4289_v31, %v12450_v51  ;;  %v12584_v48 = vadd.f32 %v4290_v33, %v12453_v25  ;;  %v12587_v44 = vadd.f32 %v4291_v0, %v12456_v30  ;;  %v12590_v58 = vadd.f32 %v4292_v38, %v12459_v6  ;;  %v6523_v12 = vld [vmem:[%s7017_s30 + $0xc6] sm:$0xff]  ;;  %v6524_v55 = vld [vmem:[%s7017_s30 + $0xce] sm:$0xff] }
 0x323   : > { %v12593_v26 = vadd.f32 %v4293_v37, %v12462_v4  ;;  %v12596_v35 = vadd.f32 %v4294_v29, %v12465_v10  ;;  %v12599_v51 = vadd.f32 %v4295_v59, %v12468_v20  ;;  %v12602_v25 = vadd.f32 %v4296_v42, %v12471_v47  ;;  %v15073_v4 = vld [vmem:[#allocation16_spill] sm:$0xff]  ;;  %v15075_v10 = vld [vmem:[#allocation17_spill] sm:$0xff]  ;;  %v15077_v42 = vld [vmem:[#allocation18_spill] sm:$0xff] }
 0x324   : > { %v12605_v30 = vadd.f32 %v4297_v11, %v12474_v60  ;;  %v12608_v6 = vadd.f32 %v4298_v2, %v12477_v1  ;;  %v12611_v27 = vadd.f32 %v4299_v53, %v15073_v4  ;;  %v12614_v61 = vadd.f32 %v4300_v32, %v15075_v10  ;;  %v6518_v20 = vld [vmem:[%s7017_s30 + $0x86] sm:$0xff]  ;;  %v6520_v47 = vld [vmem:[%s7017_s30 + $0x9e] sm:$0xff]  ;;  %v15079_v60 = vld [vmem:[#allocation19_spill] sm:$0xff] }
 0x325   : > { %v12621_v45 = vadd.f32 %v4301_v9, %v15077_v42  ;;  %v12624_v11 = vadd.f32 %v4302_v24, %v15079_v60  ;;  %v15081_v1 = vld [vmem:[#allocation20_spill] sm:$0xff]  ;;  %v15083_v53 = vld [vmem:[#allocation21_spill] sm:$0xff]  ;;  %v15085_v41 = vld [vmem:[#allocation22_spill] sm:$0xff] }
 0x326   : > { %15074 = vst [vmem:[#allocation16_spill] sm:$0xff] %v12611_v27  ;;  %15076 = vst [vmem:[#allocation17_spill] sm:$0xff] %v12614_v61  ;;  %v12627_v2 = vadd.f32 %v4303_v18, %v15081_v1  ;;  %v12630_v40 = vadd.f32 %v4304_v57, %v15083_v53  ;;  %v12637_v50 = vadd.f32 %v4305_v19, %v15085_v41  ;;  %v15087_v63 = vld [vmem:[#allocation5_spill] sm:$0xff]  ;;  %v15089_v24 = vld [vmem:[#allocation6_spill] sm:$0xff] }
 0x327   : > { %15078 = vst [vmem:[#allocation18_spill] sm:$0xff] %v12621_v45  ;;  %15080 = vst [vmem:[#allocation19_spill] sm:$0xff] %v12624_v11  ;;  %v12640_v31 = vadd.f32 %v4306_v39, %v15087_v63  ;;  %v12643_v33 = vadd.f32 %v4307_v5, %v15089_v24  ;;  %v15091_v18 = vld [vmem:[#allocation7_spill] sm:$0xff]  ;;  %v6525_v57 = vld [vmem:[%s7017_s30 + $0xde] sm:$0xff] }
 0x328   : > { %15082 = vst [vmem:[#allocation20_spill] sm:$0xff] %v12627_v2  ;;  %15084 = vst [vmem:[#allocation21_spill] sm:$0xff] %v12630_v40  ;;  %v12646_v0 = vadd.f32 %v4308_v3, %v15091_v18  ;;  %v6526_v38 = vld [vmem:[%s7017_s30 + $0xe6] sm:$0xff]  ;;  %v6527_v37 = vld [vmem:[%s7017_s30 + $0xf6] sm:$0xff] }
 0x329   : > { %15086 = vst [vmem:[#allocation22_spill] sm:$0xff] %v12637_v50  ;;  %15088 = vst [vmem:[#allocation5_spill] sm:$0xff] %v12640_v31  ;;  %v6550_v19 = vld [vmem:[%s13780_s1 + $0x2e] ss:$0 sm:$0xff]  ;;  %v15093_v29 = vld [vmem:[#allocation8_spill] sm:$0xff] }
 0x32a   : > { %15090 = vst [vmem:[#allocation6_spill] sm:$0xff] %v12643_v33  ;;  %15092 = vst [vmem:[#allocation7_spill] sm:$0xff] %v12646_v0  ;;  %v12655_v39 = vadd.f32 %v4309_v49, %v15093_v29  ;;  %v15095_v59 = vld [vmem:[#allocation9_spill] sm:$0xff]  ;;  %v15097_v32 = vld [vmem:[#allocation10_spill] sm:$0xff]  ;;  %v4386_v29 = vmul.f32 %v6550_v19, %v6517_v23  ;;  %v4394_v23 = vmul.f32 %v6550_v19, %v6525_v57 }
 0x32b   : > { %v12658_v13 = vadd.f32 %v4310_v43, %v15095_v59  ;;  %v12661_v16 = vadd.f32 %v4311_v54, %v15097_v32  ;;  %v15099_v36 = vld [vmem:[#allocation11_spill] sm:$0xff]  ;;  %v6528_v5 = vld [vmem:[%s7017_s30 + $0xfe] sm:$0xff]  ;;  %v15105_v43 = vld [vmem:[#allocation14_spill] sm:$0xff]  ;;  %v4387_v59 = vmul.f32 %v6550_v19, %v6518_v20  ;;  %v4388_v32 = vmul.f32 %v6550_v19, %v6519_v62 }
 0x32c   : > { %15094 = vst [vmem:[#allocation8_spill] sm:$0xff] %v12655_v39  ;;  %v12664_v9 = vadd.f32 %v4312_v56, %v15099_v36  ;;  %v6529_v3 = vld [vmem:[%s7017_s30 + $0x10e] sm:$0xff]  ;;  %v6530_v4 = vld [vmem:[%s7017_s30 + $0x116] sm:$0xff]  ;;  %v15103_v49 = vld [vmem:[#allocation13_spill] sm:$0xff]  ;;  %v12676_v1 = vadd.f32 %v4315_v8, %v15105_v43  ;;  %v4392_v43 = vmul.f32 %v6550_v19, %v6523_v12  ;;  %v4395_v20 = vmul.f32 %v6550_v19, %v6526_v38 }
 0x32d   : > { %15096 = vst [vmem:[#allocation9_spill] sm:$0xff] %v12658_v13  ;;  %15098 = vst [vmem:[#allocation10_spill] sm:$0xff] %v12661_v16  ;;  %v15101_v10 = vld [vmem:[#allocation12_spill] sm:$0xff]  ;;  %v12673_v60 = vadd.f32 %v4314_v22, %v15103_v49  ;;  %v15107_v54 = vld [vmem:[#allocation15_spill] sm:$0xff]  ;;  %v4389_v22 = vmul.f32 %v6550_v19, %v6520_v47  ;;  %v4391_v49 = vmul.f32 %v6550_v19, %v6522_v28 }
 0x32e   : > { %15100 = vst [vmem:[#allocation11_spill] sm:$0xff] %v12664_v9  ;;  %v12670_v42 = vadd.f32 %v4313_v34, %v15101_v10  ;;  %15106 = vst [vmem:[#allocation14_spill] sm:$0xff] %v12676_v1  ;;  %v12679_v53 = vadd.f32 %v4316_v14, %v15107_v54  ;;  %v6531_v56 = vld [vmem:[%s7017_s30 + $0x126] sm:$0xff]  ;;  %v6532_v41 = vld [vmem:[%s7017_s30 + $0x12e] sm:$0xff]  ;;  %v4390_v10 = vmul.f32 %v6550_v19, %v6521_v46 }
 0x32f   : > { %15104 = vst [vmem:[#allocation13_spill] sm:$0xff] %v12673_v60  ;;  %v6533_v63 = vld [vmem:[%s7017_s30 + $0x13e] sm:$0xff]  ;;  %v6534_v24 = vld [vmem:[%s7017_s30 + $0x146] sm:$0xff]  ;;  %v6535_v18 = vld [vmem:[%s7017_s30 + $0x156] sm:$0xff]  ;;  %v4393_v54 = vmul.f32 %v6550_v19, %v6524_v55  ;;  %v4396_v62 = vmul.f32 %v6550_v19, %v6527_v37  ;;  %v4398_v13 = vmul.f32 %v6550_v19, %v6529_v3  ;;  %v4399_v39 = vmul.f32 %v6550_v19, %v6530_v4 }
 0x330   : > { %15102 = vst [vmem:[#allocation12_spill] sm:$0xff] %v12670_v42  ;;  %15108 = vst [vmem:[#allocation15_spill] sm:$0xff] %v12679_v53  ;;  %v6536_v34 = vld [vmem:[%s7017_s30 + $0x15e] sm:$0xff]  ;;  %v6537_v8 = vld [vmem:[%s7017_s30 + $0x16e] sm:$0xff]  ;;  %v4397_v42 = vmul.f32 %v6550_v19, %v6528_v5  ;;  %v4400_v0 = vmul.f32 %v6550_v19, %v6531_v56  ;;  %v4401_v46 = vmul.f32 %v6550_v19, %v6532_v41 }
 0x331   : > { %v6538_v36 = vld [vmem:[%s7017_s30 + $0x176] sm:$0xff]  ;;  %v6539_v14 = vld [vmem:[%s7017_s30 + $0x186] sm:$0xff]  ;;  %v6540_v53 = vld [vmem:[%s7017_s30 + $0x18e] sm:$0xff]  ;;  %v4402_v55 = vmul.f32 %v6550_v19, %v6533_v63  ;;  %v4403_v31 = vmul.f32 %v6550_v19, %v6534_v24  ;;  %v4404_v50 = vmul.f32 %v6550_v19, %v6535_v18  ;;  %v4405_v40 = vmul.f32 %v6550_v19, %v6536_v34 }
 0x332   : > { %v6541_v1 = vld [vmem:[%s7017_s30 + $0x19e] sm:$0xff]  ;;  %v6542_v60 = vld [vmem:[%s7017_s30 + $0x1a6] sm:$0xff]  ;;  %v6543_v47 = vld [vmem:[%s7017_s30 + $0x1b6] sm:$0xff]  ;;  %v4406_v2 = vmul.f32 %v6550_v19, %v6537_v8  ;;  %v4407_v11 = vmul.f32 %v6550_v19, %v6538_v36  ;;  %v4408_v57 = vmul.f32 %v6550_v19, %v6539_v14  ;;  %v4409_v38 = vmul.f32 %v6550_v19, %v6540_v53 }
 0x333   : > { %v6544_v9 = vld [vmem:[%s7017_s30 + $0x1be] sm:$0xff]  ;;  %v6545_v16 = vld [vmem:[%s7017_s30 + $0x1ce] sm:$0xff]  ;;  %v6546_v28 = vld [vmem:[%s7017_s30 + $0x1d6] sm:$0xff]  ;;  %v4410_v37 = vmul.f32 %v6550_v19, %v6541_v1  ;;  %v4411_v5 = vmul.f32 %v6550_v19, %v6542_v60  ;;  %v4412_v45 = vmul.f32 %v6550_v19, %v6543_v47  ;;  %v12700_v41 = vadd.f32 %v4386_v29, %v12569_v17 }
 0x334   : > { %v6547_v12 = vld [vmem:[%s7017_s30 + $0x1e6] sm:$0xff]  ;;  %v6548_v33 = vld [vmem:[%s7017_s30 + $0x1ee] sm:$0xff]  ;;  %v4413_v61 = vmul.f32 %v6550_v19, %v6544_v9  ;;  %v4414_v27 = vmul.f32 %v6550_v19, %v6545_v16  ;;  %v4415_v3 = vmul.f32 %v6550_v19, %v6546_v28  ;;  %v12703_v63 = vadd.f32 %v4387_v59, %v12572_v15 }
 0x335   : > { %v4416_v4 = vmul.f32 %v6550_v19, %v6547_v12  ;;  %v4417_v56 = vmul.f32 %v6550_v19, %v6548_v33  ;;  %v12706_v24 = vadd.f32 %v4388_v32, %v12575_v7  ;;  %v12709_v60 = vadd.f32 %v4389_v22, %v12578_v21  ;;  %v6551_v1 = vld [vmem:[%s7017_s30 + $0x90] sm:$0xff]  ;;  %v6553_v53 = vld [vmem:[%s7017_s30 + $0xa8] sm:$0xff]  ;;  %v6555_v29 = vld [vmem:[%s7017_s30 + $0xc0] sm:$0xff] }
 0x336   : > { %v12712_v16 = vadd.f32 %v4390_v10, %v12581_v52  ;;  %v12715_v33 = vadd.f32 %v4391_v49, %v12584_v48  ;;  %v12718_v17 = vadd.f32 %v4392_v43, %v12587_v44  ;;  %v12721_v15 = vadd.f32 %v4393_v54, %v12590_v58  ;;  %v6556_v59 = vld [vmem:[%s7017_s30 + $0xc8] sm:$0xff]  ;;  %v6557_v32 = vld [vmem:[%s7017_s30 + $0xd8] sm:$0xff]  ;;  %v6558_v22 = vld [vmem:[%s7017_s30 + $0xe0] sm:$0xff] }
 0x337   : > { %v12724_v7 = vadd.f32 %v4394_v23, %v12593_v26  ;;  %v12727_v21 = vadd.f32 %v4395_v20, %v12596_v35  ;;  %v12730_v52 = vadd.f32 %v4396_v62, %v12599_v51  ;;  %v12733_v48 = vadd.f32 %v4397_v42, %v12602_v25  ;;  %v15109_v26 = vld [vmem:[#allocation16_spill] sm:$0xff]  ;;  %v15111_v35 = vld [vmem:[#allocation17_spill] sm:$0xff]  ;;  %v6554_v25 = vld [vmem:[%s7017_s30 + $0xb0] sm:$0xff] }
 0x338   : > { %v12736_v44 = vadd.f32 %v4398_v13, %v12605_v30  ;;  %v12739_v58 = vadd.f32 %v4399_v39, %v12608_v6  ;;  %v12742_v19 = vadd.f32 %v4400_v0, %v15109_v26  ;;  %v12745_v9 = vadd.f32 %v4401_v46, %v15111_v35  ;;  %v6552_v51 = vld [vmem:[%s7017_s30 + $0x98] sm:$0xff]  ;;  %v15113_v42 = vld [vmem:[#allocation18_spill] sm:$0xff]  ;;  %v15115_v30 = vld [vmem:[#allocation19_spill] sm:$0xff] }
 0x339   : > { %v12752_v18 = vadd.f32 %v4402_v55, %v15113_v42  ;;  %v12755_v13 = vadd.f32 %v4403_v31, %v15115_v30  ;;  %v15117_v6 = vld [vmem:[#allocation20_spill] sm:$0xff]  ;;  %v15119_v0 = vld [vmem:[#allocation21_spill] sm:$0xff]  ;;  %v15121_v8 = vld [vmem:[#allocation22_spill] sm:$0xff] }
 0x33a   : > { %15110 = vst [vmem:[#allocation16_spill] sm:$0xff] %v12742_v19  ;;  %15112 = vst [vmem:[#allocation17_spill] sm:$0xff] %v12745_v9  ;;  %v12758_v39 = vadd.f32 %v4404_v50, %v15117_v6  ;;  %v12761_v34 = vadd.f32 %v4405_v40, %v15119_v0  ;;  %v12768_v36 = vadd.f32 %v4406_v2, %v15121_v8  ;;  %v15123_v14 = vld [vmem:[#allocation5_spill] sm:$0xff]  ;;  %v15125_v31 = vld [vmem:[#allocation6_spill] sm:$0xff] }
 0x33b   : > { %15114 = vst [vmem:[#allocation18_spill] sm:$0xff] %v12752_v18  ;;  %15116 = vst [vmem:[#allocation19_spill] sm:$0xff] %v12755_v13  ;;  %v12771_v10 = vadd.f32 %v4407_v11, %v15123_v14  ;;  %v12774_v49 = vadd.f32 %v4408_v57, %v15125_v31  ;;  %v15127_v50 = vld [vmem:[#allocation7_spill] sm:$0xff]  ;;  %v6560_v54 = vld [vmem:[%s7017_s30 + $0xf8] sm:$0xff] }
 0x33c   : > { %15118 = vst [vmem:[#allocation20_spill] sm:$0xff] %v12758_v39  ;;  %15120 = vst [vmem:[#allocation21_spill] sm:$0xff] %v12761_v34  ;;  %v12777_v43 = vadd.f32 %v4409_v38, %v15127_v50  ;;  %v6559_v40 = vld [vmem:[%s7017_s30 + $0xf0] sm:$0xff]  ;;  %v6561_v23 = vld [vmem:[%s7017_s30 + $0x108] sm:$0xff] }
 0x33d   : > { %15122 = vst [vmem:[#allocation22_spill] sm:$0xff] %v12768_v36  ;;  %15124 = vst [vmem:[#allocation5_spill] sm:$0xff] %v12771_v10  ;;  %v6584_v2 = vld [vmem:[%s13780_s1 + $0x30] ss:$0 sm:$0xff]  ;;  %v15129_v20 = vld [vmem:[#allocation8_spill] sm:$0xff] }
 0x33e   : > { %15126 = vst [vmem:[#allocation6_spill] sm:$0xff] %v12774_v49  ;;  %15128 = vst [vmem:[#allocation7_spill] sm:$0xff] %v12777_v43  ;;  %v12786_v11 = vadd.f32 %v4410_v37, %v15129_v20  ;;  %v15131_v62 = vld [vmem:[#allocation9_spill] sm:$0xff]  ;;  %v15133_v46 = vld [vmem:[#allocation10_spill] sm:$0xff]  ;;  %v4491_v20 = vmul.f32 %v6584_v2, %v6551_v1  ;;  %v4499_v1 = vmul.f32 %v6584_v2, %v6559_v40 }
 0x33f   : > { %v12789_v47 = vadd.f32 %v4411_v5, %v15131_v62  ;;  %v12792_v28 = vadd.f32 %v4412_v45, %v15133_v46  ;;  %v15135_v12 = vld [vmem:[#allocation11_spill] sm:$0xff]  ;;  %v6563_v38 = vld [vmem:[%s7017_s30 + $0x120] sm:$0xff]  ;;  %v6564_v26 = vld [vmem:[%s7017_s30 + $0x128] sm:$0xff]  ;;  %v4492_v62 = vmul.f32 %v6584_v2, %v6552_v51  ;;  %v4493_v46 = vmul.f32 %v6584_v2, %v6553_v53 }
 0x340   : > { %15130 = vst [vmem:[#allocation8_spill] sm:$0xff] %v12786_v11  ;;  %v12795_v55 = vadd.f32 %v4413_v61, %v15135_v12  ;;  %v6562_v57 = vld [vmem:[%s7017_s30 + $0x110] sm:$0xff]  ;;  %v15137_v35 = vld [vmem:[#allocation12_spill] sm:$0xff]  ;;  %v15139_v37 = vld [vmem:[#allocation13_spill] sm:$0xff]  ;;  %v4500_v51 = vmul.f32 %v6584_v2, %v6560_v54  ;;  %v4501_v53 = vmul.f32 %v6584_v2, %v6561_v23  ;;  %v4504_v11 = vmul.f32 %v6584_v2, %v6564_v26 }
 0x341   : > { %15132 = vst [vmem:[#allocation9_spill] sm:$0xff] %v12789_v47  ;;  %15134 = vst [vmem:[#allocation10_spill] sm:$0xff] %v12792_v28  ;;  %v12801_v42 = vadd.f32 %v4414_v27, %v15137_v35  ;;  %v12804_v30 = vadd.f32 %v4415_v3, %v15139_v37  ;;  %v15141_v5 = vld [vmem:[#allocation14_spill] sm:$0xff]  ;;  %v15143_v45 = vld [vmem:[#allocation15_spill] sm:$0xff]  ;;  %v4494_v3 = vmul.f32 %v6584_v2, %v6554_v25 }
 0x342   : > { %15136 = vst [vmem:[#allocation11_spill] sm:$0xff] %v12795_v55  ;;  %v12807_v6 = vadd.f32 %v4416_v4, %v15141_v5  ;;  %v12810_v0 = vadd.f32 %v4417_v56, %v15143_v45  ;;  %v6565_v61 = vld [vmem:[%s7017_s30 + $0x138] sm:$0xff]  ;;  %v6566_v8 = vld [vmem:[%s7017_s30 + $0x140] sm:$0xff]  ;;  %v6567_v14 = vld [vmem:[%s7017_s30 + $0x150] sm:$0xff]  ;;  %v4495_v35 = vmul.f32 %v6584_v2, %v6555_v29  ;;  %v4496_v37 = vmul.f32 %v6584_v2, %v6556_v59 }
 0x343   : > { %15138 = vst [vmem:[#allocation12_spill] sm:$0xff] %v12801_v42  ;;  %15140 = vst [vmem:[#allocation13_spill] sm:$0xff] %v12804_v30  ;;  %v6568_v31 = vld [vmem:[%s7017_s30 + $0x158] sm:$0xff]  ;;  %v6569_v50 = vld [vmem:[%s7017_s30 + $0x168] sm:$0xff]  ;;  %v4497_v5 = vmul.f32 %v6584_v2, %v6557_v32  ;;  %v4498_v45 = vmul.f32 %v6584_v2, %v6558_v22  ;;  %v4502_v42 = vmul.f32 %v6584_v2, %v6562_v57 }
 0x344   : > { %15142 = vst [vmem:[#allocation14_spill] sm:$0xff] %v12807_v6  ;;  %15144 = vst [vmem:[#allocation15_spill] sm:$0xff] %v12810_v0  ;;  %v6570_v27 = vld [vmem:[%s7017_s30 + $0x170] sm:$0xff]  ;;  %v6571_v4 = vld [vmem:[%s7017_s30 + $0x180] sm:$0xff]  ;;  %v4503_v47 = vmul.f32 %v6584_v2, %v6563_v38  ;;  %v4505_v43 = vmul.f32 %v6584_v2, %v6565_v61  ;;  %v4506_v29 = vmul.f32 %v6584_v2, %v6566_v8 }
 0x345   : > { %v6572_v12 = vld [vmem:[%s7017_s30 + $0x188] sm:$0xff]  ;;  %v6573_v56 = vld [vmem:[%s7017_s30 + $0x198] sm:$0xff]  ;;  %v6574_v0 = vld [vmem:[%s7017_s30 + $0x1a0] sm:$0xff]  ;;  %v4507_v22 = vmul.f32 %v6584_v2, %v6567_v14  ;;  %v4508_v10 = vmul.f32 %v6584_v2, %v6568_v31  ;;  %v4509_v36 = vmul.f32 %v6584_v2, %v6569_v50  ;;  %v4510_v34 = vmul.f32 %v6584_v2, %v6570_v27 }
 0x346   : > { %v6575_v6 = vld [vmem:[%s7017_s30 + $0x1b0] sm:$0xff]  ;;  %v6576_v30 = vld [vmem:[%s7017_s30 + $0x1b8] sm:$0xff]  ;;  %v6577_v25 = vld [vmem:[%s7017_s30 + $0x1c8] sm:$0xff]  ;;  %v4511_v39 = vmul.f32 %v6584_v2, %v6571_v4  ;;  %v4512_v13 = vmul.f32 %v6584_v2, %v6572_v12  ;;  %v4513_v40 = vmul.f32 %v6584_v2, %v6573_v56  ;;  %v4514_v54 = vmul.f32 %v6584_v2, %v6574_v0 }
 0x347   : > { %v6578_v55 = vld [vmem:[%s7017_s30 + $0x1d0] sm:$0xff]  ;;  %v6579_v28 = vld [vmem:[%s7017_s30 + $0x1e0] sm:$0xff]  ;;  %v6580_v59 = vld [vmem:[%s7017_s30 + $0x1e8] sm:$0xff]  ;;  %v4515_v23 = vmul.f32 %v6584_v2, %v6575_v6  ;;  %v4516_v57 = vmul.f32 %v6584_v2, %v6576_v30  ;;  %v4517_v18 = vmul.f32 %v6584_v2, %v6577_v25  ;;  %v12831_v8 = vadd.f32 %v4491_v20, %v12700_v41 }
 0x348   : > { %v6581_v32 = vld [vmem:[%s7017_s30 + $0x1f8] sm:$0xff]  ;;  %v6582_v49 = vld [vmem:[%s7017_s30 + $0x200] sm:$0xff]  ;;  %v4518_v9 = vmul.f32 %v6584_v2, %v6578_v55  ;;  %v4519_v19 = vmul.f32 %v6584_v2, %v6579_v28  ;;  %v4520_v38 = vmul.f32 %v6584_v2, %v6580_v59  ;;  %v12834_v14 = vadd.f32 %v4492_v62, %v12703_v63  ;;  %v6587_v0 = vld [vmem:[%s7017_s30 + $0xa9] sm:$0xff] }
 0x349   : > { %v4521_v26 = vmul.f32 %v6584_v2, %v6581_v32  ;;  %v4522_v61 = vmul.f32 %v6584_v2, %v6582_v49  ;;  %v12837_v31 = vadd.f32 %v4493_v46, %v12706_v24  ;;  %v12840_v30 = vadd.f32 %v4494_v3, %v12709_v60  ;;  %v6585_v6 = vld [vmem:[%s7017_s30 + $0x91] sm:$0xff]  ;;  %v6589_v20 = vld [vmem:[%s7017_s30 + $0xc1] sm:$0xff]  ;;  %v6590_v62 = vld [vmem:[%s7017_s30 + $0xc9] sm:$0xff] }
 0x34a   : > { %v12843_v28 = vadd.f32 %v4495_v35, %v12712_v16  ;;  %v12846_v49 = vadd.f32 %v4496_v37, %v12715_v33  ;;  %v12849_v41 = vadd.f32 %v4497_v5, %v12718_v17  ;;  %v12852_v63 = vadd.f32 %v4498_v45, %v12721_v15  ;;  %v6591_v46 = vld [vmem:[%s7017_s30 + $0xd9] sm:$0xff]  ;;  %v6592_v3 = vld [vmem:[%s7017_s30 + $0xe1] sm:$0xff]  ;;  %v15171_v32 = vld [vmem:[#allocation11_spill] sm:$0xff] }
 0x34b   : > { %v12855_v24 = vadd.f32 %v4499_v1, %v12724_v7  ;;  %v12858_v60 = vadd.f32 %v4500_v51, %v12727_v21  ;;  %v12861_v16 = vadd.f32 %v4501_v53, %v12730_v52  ;;  %v12864_v33 = vadd.f32 %v4502_v42, %v12733_v48  ;;  %v15145_v7 = vld [vmem:[#allocation16_spill] sm:$0xff]  ;;  %v15147_v21 = vld [vmem:[#allocation17_spill] sm:$0xff]  ;;  %v15149_v42 = vld [vmem:[#allocation18_spill] sm:$0xff] }
 0x34c   : > { %v12867_v17 = vadd.f32 %v4503_v47, %v12736_v44  ;;  %v12870_v15 = vadd.f32 %v4504_v11, %v12739_v58  ;;  %v12873_v2 = vadd.f32 %v4505_v43, %v15145_v7  ;;  %v12876_v55 = vadd.f32 %v4506_v29, %v15147_v21  ;;  %v6586_v52 = vld [vmem:[%s7017_s30 + $0x99] sm:$0xff]  ;;  %v6588_v48 = vld [vmem:[%s7017_s30 + $0xb1] sm:$0xff]  ;;  %v15157_v4 = vld [vmem:[#allocation22_spill] sm:$0xff] }
 0x34d   : > { %v12883_v50 = vadd.f32 %v4507_v22, %v15149_v42  ;;  %v15151_v44 = vld [vmem:[#allocation19_spill] sm:$0xff]  ;;  %v15153_v58 = vld [vmem:[#allocation20_spill] sm:$0xff]  ;;  %v15155_v43 = vld [vmem:[#allocation21_spill] sm:$0xff]  ;;  %v12899_v12 = vadd.f32 %v4511_v39, %v15157_v4  ;;  %v12926_v22 = vadd.f32 %v4518_v9, %v15171_v32 }
 0x34e   : > { %15146 = vst [vmem:[#allocation16_spill] sm:$0xff] %v12873_v2  ;;  %15148 = vst [vmem:[#allocation17_spill] sm:$0xff] %v12876_v55  ;;  %v12886_v47 = vadd.f32 %v4508_v10, %v15151_v44  ;;  %v12889_v11 = vadd.f32 %v4509_v36, %v15153_v58  ;;  %v12892_v27 = vadd.f32 %v4510_v34, %v15155_v43  ;;  %v15159_v56 = vld [vmem:[#allocation5_spill] sm:$0xff]  ;;  %v15161_v10 = vld [vmem:[#allocation6_spill] sm:$0xff] }
 0x34f   : > { %15150 = vst [vmem:[#allocation18_spill] sm:$0xff] %v12883_v50  ;;  %15158 = vst [vmem:[#allocation22_spill] sm:$0xff] %v12899_v12  ;;  %v12902_v35 = vadd.f32 %v4512_v13, %v15159_v56  ;;  %v12905_v37 = vadd.f32 %v4513_v40, %v15161_v10  ;;  %v15163_v36 = vld [vmem:[#allocation7_spill] sm:$0xff]  ;;  %v6594_v45 = vld [vmem:[%s7017_s30 + $0xf9] sm:$0xff] }
 0x350   : > { %15152 = vst [vmem:[#allocation19_spill] sm:$0xff] %v12886_v47  ;;  %15154 = vst [vmem:[#allocation20_spill] sm:$0xff] %v12889_v11  ;;  %v12908_v5 = vadd.f32 %v4514_v54, %v15163_v36  ;;  %v6593_v34 = vld [vmem:[%s7017_s30 + $0xf1] sm:$0xff]  ;;  %v6595_v1 = vld [vmem:[%s7017_s30 + $0x109] sm:$0xff] }
 0x351   : > { %15156 = vst [vmem:[#allocation21_spill] sm:$0xff] %v12892_v27  ;;  %15160 = vst [vmem:[#allocation5_spill] sm:$0xff] %v12902_v35  ;;  %v6618_v39 = vld [vmem:[%s13780_s1 + $0x31] ss:$0 sm:$0xff]  ;;  %v15165_v51 = vld [vmem:[#allocation8_spill] sm:$0xff] }
 0x352   : > { %15162 = vst [vmem:[#allocation6_spill] sm:$0xff] %v12905_v37  ;;  %15164 = vst [vmem:[#allocation7_spill] sm:$0xff] %v12908_v5  ;;  %v12917_v13 = vadd.f32 %v4515_v23, %v15165_v51  ;;  %v15167_v53 = vld [vmem:[#allocation9_spill] sm:$0xff]  ;;  %v15169_v29 = vld [vmem:[#allocation10_spill] sm:$0xff]  ;;  %v4592_v51 = vmul.f32 %v6618_v39, %v6585_v6  ;;  %v4600_v6 = vmul.f32 %v6618_v39, %v6593_v34 }
 0x353   : > { %v12920_v25 = vadd.f32 %v4516_v57, %v15167_v53  ;;  %v12923_v59 = vadd.f32 %v4517_v18, %v15169_v29  ;;  %15172 = vst [vmem:[#allocation11_spill] sm:$0xff] %v12926_v22  ;;  %v6596_v40 = vld [vmem:[%s7017_s30 + $0x111] sm:$0xff]  ;;  %v6597_v54 = vld [vmem:[%s7017_s30 + $0x121] sm:$0xff]  ;;  %v6598_v7 = vld [vmem:[%s7017_s30 + $0x129] sm:$0xff]  ;;  %v4593_v53 = vmul.f32 %v6618_v39, %v6586_v52  ;;  %v4594_v29 = vmul.f32 %v6618_v39, %v6587_v0 }
 0x354   : > { %15166 = vst [vmem:[#allocation8_spill] sm:$0xff] %v12917_v13  ;;  %v15173_v21 = vld [vmem:[#allocation12_spill] sm:$0xff]  ;;  %v15175_v23 = vld [vmem:[#allocation13_spill] sm:$0xff]  ;;  %v15177_v57 = vld [vmem:[#allocation14_spill] sm:$0xff]  ;;  %v4601_v52 = vmul.f32 %v6618_v39, %v6594_v45  ;;  %v4602_v0 = vmul.f32 %v6618_v39, %v6595_v1  ;;  %v4605_v13 = vmul.f32 %v6618_v39, %v6598_v7 }
 0x355   : > { %15168 = vst [vmem:[#allocation9_spill] sm:$0xff] %v12920_v25  ;;  %15170 = vst [vmem:[#allocation10_spill] sm:$0xff] %v12923_v59  ;;  %v12932_v42 = vadd.f32 %v4519_v19, %v15173_v21  ;;  %v12935_v44 = vadd.f32 %v4520_v38, %v15175_v23  ;;  %v12938_v58 = vadd.f32 %v4521_v26, %v15177_v57  ;;  %v15179_v18 = vld [vmem:[#allocation15_spill] sm:$0xff]  ;;  %v6599_v9 = vld [vmem:[%s7017_s30 + $0x139] sm:$0xff] }
 0x356   : > { %v12941_v43 = vadd.f32 %v4522_v61, %v15179_v18  ;;  %v6600_v4 = vld [vmem:[%s7017_s30 + $0x141] sm:$0xff]  ;;  %v6601_v56 = vld [vmem:[%s7017_s30 + $0x151] sm:$0xff]  ;;  %v6602_v10 = vld [vmem:[%s7017_s30 + $0x159] sm:$0xff]  ;;  %v4595_v38 = vmul.f32 %v6618_v39, %v6588_v48  ;;  %v4596_v21 = vmul.f32 %v6618_v39, %v6589_v20  ;;  %v4597_v23 = vmul.f32 %v6618_v39, %v6590_v62 }
 0x357   : > { %15174 = vst [vmem:[#allocation12_spill] sm:$0xff] %v12932_v42  ;;  %15176 = vst [vmem:[#allocation13_spill] sm:$0xff] %v12935_v44  ;;  %v6603_v36 = vld [vmem:[%s7017_s30 + $0x169] sm:$0xff]  ;;  %v6604_v19 = vld [vmem:[%s7017_s30 + $0x171] sm:$0xff]  ;;  %v4598_v57 = vmul.f32 %v6618_v39, %v6591_v46  ;;  %v4599_v18 = vmul.f32 %v6618_v39, %v6592_v3  ;;  %v4603_v42 = vmul.f32 %v6618_v39, %v6596_v40 }
 0x358   : > { %15178 = vst [vmem:[#allocation14_spill] sm:$0xff] %v12938_v58  ;;  %15180 = vst [vmem:[#allocation15_spill] sm:$0xff] %v12941_v43  ;;  %v6605_v26 = vld [vmem:[%s7017_s30 + $0x181] sm:$0xff]  ;;  %v6606_v32 = vld [vmem:[%s7017_s30 + $0x189] sm:$0xff]  ;;  %v4604_v25 = vmul.f32 %v6618_v39, %v6597_v54  ;;  %v4606_v5 = vmul.f32 %v6618_v39, %v6599_v9  ;;  %v4607_v20 = vmul.f32 %v6618_v39, %v6600_v4 }
 0x359   : > { %v6607_v61 = vld [vmem:[%s7017_s30 + $0x199] sm:$0xff]  ;;  %v6608_v43 = vld [vmem:[%s7017_s30 + $0x1a1] sm:$0xff]  ;;  %v6609_v58 = vld [vmem:[%s7017_s30 + $0x1b1] sm:$0xff]  ;;  %v4608_v3 = vmul.f32 %v6618_v39, %v6601_v56  ;;  %v4609_v35 = vmul.f32 %v6618_v39, %v6602_v10  ;;  %v4610_v12 = vmul.f32 %v6618_v39, %v6603_v36  ;;  %v4611_v27 = vmul.f32 %v6618_v39, %v6604_v19 }
 0x35a   : > { %v6610_v44 = vld [vmem:[%s7017_s30 + $0x1b9] sm:$0xff]  ;;  %v6611_v48 = vld [vmem:[%s7017_s30 + $0x1c9] sm:$0xff]  ;;  %v6612_v22 = vld [vmem:[%s7017_s30 + $0x1d1] sm:$0xff]  ;;  %v4612_v11 = vmul.f32 %v6618_v39, %v6605_v26  ;;  %v4613_v47 = vmul.f32 %v6618_v39, %v6606_v32  ;;  %v4614_v34 = vmul.f32 %v6618_v39, %v6607_v61  ;;  %v4615_v45 = vmul.f32 %v6618_v39, %v6608_v43 }
 0x35b   : > { %v6613_v59 = vld [vmem:[%s7017_s30 + $0x1e1] sm:$0xff]  ;;  %v6614_v62 = vld [vmem:[%s7017_s30 + $0x1e9] sm:$0xff]  ;;  %v6615_v46 = vld [vmem:[%s7017_s30 + $0x1f9] sm:$0xff]  ;;  %v4616_v1 = vmul.f32 %v6618_v39, %v6609_v58  ;;  %v4617_v40 = vmul.f32 %v6618_v39, %v6610_v44  ;;  %v4618_v50 = vmul.f32 %v6618_v39, %v6611_v48  ;;  %v4619_v55 = vmul.f32 %v6618_v39, %v6612_v22 }
 0x35c   : > { %v6616_v37 = vld [vmem:[%s7017_s30 + $0x201] sm:$0xff]  ;;  %v4620_v2 = vmul.f32 %v6618_v39, %v6613_v59  ;;  %v4621_v54 = vmul.f32 %v6618_v39, %v6614_v62  ;;  %v4622_v7 = vmul.f32 %v6618_v39, %v6615_v46  ;;  %v12962_v4 = vadd.f32 %v4592_v51, %v12831_v8  ;;  %v6619_v58 = vld [vmem:[%s7017_s30 + $0x92] sm:$0xff]  ;;  %v6621_v43 = vld [vmem:[%s7017_s30 + $0xaa] sm:$0xff] }
 0x35d   : > { %v4623_v9 = vmul.f32 %v6618_v39, %v6616_v37  ;;  %v12965_v56 = vadd.f32 %v4593_v53, %v12834_v14  ;;  %v12968_v10 = vadd.f32 %v4594_v29, %v12837_v31  ;;  %v12971_v44 = vadd.f32 %v4595_v38, %v12840_v30  ;;  %v6623_v51 = vld [vmem:[%s7017_s30 + $0xc2] sm:$0xff]  ;;  %v6624_v53 = vld [vmem:[%s7017_s30 + $0xca] sm:$0xff]  ;;  %v6625_v29 = vld [vmem:[%s7017_s30 + $0xda] sm:$0xff] }
 0x35e   : > { %v12974_v59 = vadd.f32 %v4596_v21, %v12843_v28  ;;  %v12977_v37 = vadd.f32 %v4597_v23, %v12846_v49  ;;  %v12980_v8 = vadd.f32 %v4598_v57, %v12849_v41  ;;  %v12983_v14 = vadd.f32 %v4599_v18, %v12852_v63  ;;  %v6626_v38 = vld [vmem:[%s7017_s30 + $0xe2] sm:$0xff]  ;;  %v6628_v18 = vld [vmem:[%s7017_s30 + $0xfa] sm:$0xff]  ;;  %v15207_v46 = vld [vmem:[#allocation11_spill] sm:$0xff] }
 0x35f   : > { %v12986_v31 = vadd.f32 %v4600_v6, %v12855_v24  ;;  %v12989_v30 = vadd.f32 %v4601_v52, %v12858_v60  ;;  %v12992_v28 = vadd.f32 %v4602_v0, %v12861_v16  ;;  %v12995_v49 = vadd.f32 %v4603_v42, %v12864_v33  ;;  %v15181_v24 = vld [vmem:[#allocation16_spill] sm:$0xff]  ;;  %v15183_v60 = vld [vmem:[#allocation17_spill] sm:$0xff]  ;;  %v15185_v42 = vld [vmem:[#allocation18_spill] sm:$0xff] }
 0x360   : > { %v12998_v41 = vadd.f32 %v4604_v25, %v12867_v17  ;;  %v13001_v63 = vadd.f32 %v4605_v13, %v12870_v15  ;;  %v13004_v39 = vadd.f32 %v4606_v5, %v15181_v24  ;;  %v13007_v22 = vadd.f32 %v4607_v20, %v15183_v60  ;;  %v6620_v16 = vld [vmem:[%s7017_s30 + $0x9a] sm:$0xff]  ;;  %v6622_v33 = vld [vmem:[%s7017_s30 + $0xb2] sm:$0xff]  ;;  %v15193_v26 = vld [vmem:[#allocation22_spill] sm:$0xff] }
 0x361   : > { %v13014_v36 = vadd.f32 %v4608_v3, %v15185_v42  ;;  %v15187_v17 = vld [vmem:[#allocation19_spill] sm:$0xff]  ;;  %v15189_v15 = vld [vmem:[#allocation20_spill] sm:$0xff]  ;;  %v15191_v5 = vld [vmem:[#allocation21_spill] sm:$0xff]  ;;  %v13030_v32 = vadd.f32 %v4612_v11, %v15193_v26  ;;  %v13057_v3 = vadd.f32 %v4619_v55, %v15207_v46 }
 0x362   : > { %15182 = vst [vmem:[#allocation16_spill] sm:$0xff] %v13004_v39  ;;  %15184 = vst [vmem:[#allocation17_spill] sm:$0xff] %v13007_v22  ;;  %v13017_v25 = vadd.f32 %v4609_v35, %v15187_v17  ;;  %v13020_v13 = vadd.f32 %v4610_v12, %v15189_v15  ;;  %v13023_v19 = vadd.f32 %v4611_v27, %v15191_v5  ;;  %v15195_v61 = vld [vmem:[#allocation5_spill] sm:$0xff]  ;;  %v15197_v35 = vld [vmem:[#allocation6_spill] sm:$0xff] }
 0x363   : > { %15186 = vst [vmem:[#allocation18_spill] sm:$0xff] %v13014_v36  ;;  %15194 = vst [vmem:[#allocation22_spill] sm:$0xff] %v13030_v32  ;;  %v13033_v21 = vadd.f32 %v4613_v47, %v15195_v61  ;;  %v13036_v23 = vadd.f32 %v4614_v34, %v15197_v35  ;;  %v15199_v12 = vld [vmem:[#allocation7_spill] sm:$0xff]  ;;  %v15201_v52 = vld [vmem:[#allocation8_spill] sm:$0xff] }
 0x364   : > { %15188 = vst [vmem:[#allocation19_spill] sm:$0xff] %v13017_v25  ;;  %15190 = vst [vmem:[#allocation20_spill] sm:$0xff] %v13020_v13  ;;  %v13039_v57 = vadd.f32 %v4615_v45, %v15199_v12  ;;  %v6627_v27 = vld [vmem:[%s7017_s30 + $0xf2] sm:$0xff]  ;;  %v6629_v6 = vld [vmem:[%s7017_s30 + $0x10a] sm:$0xff]  ;;  %v13048_v47 = vadd.f32 %v4616_v1, %v15201_v52 }
 0x365   : > { %15192 = vst [vmem:[#allocation21_spill] sm:$0xff] %v13023_v19  ;;  %15196 = vst [vmem:[#allocation5_spill] sm:$0xff] %v13033_v21  ;;  %v6652_v11 = vld [vmem:[%s13780_s1 + $0x32] ss:$0 sm:$0xff]  ;;  %v15203_v0 = vld [vmem:[#allocation9_spill] sm:$0xff] }
 0x366   : > { %15198 = vst [vmem:[#allocation6_spill] sm:$0xff] %v13036_v23  ;;  %15200 = vst [vmem:[#allocation7_spill] sm:$0xff] %v13039_v57  ;;  %v13051_v48 = vadd.f32 %v4617_v40, %v15203_v0  ;;  %v15205_v20 = vld [vmem:[#allocation10_spill] sm:$0xff]  ;;  %v6630_v34 = vld [vmem:[%s7017_s30 + $0x112] sm:$0xff]  ;;  %v4693_v52 = vmul.f32 %v6652_v11, %v6619_v58  ;;  %v4694_v0 = vmul.f32 %v6652_v11, %v6620_v16 }
 0x367   : > { %15202 = vst [vmem:[#allocation8_spill] sm:$0xff] %v13048_v47  ;;  %v13054_v62 = vadd.f32 %v4618_v50, %v15205_v20  ;;  %15208 = vst [vmem:[#allocation11_spill] sm:$0xff] %v13057_v3  ;;  %v6631_v45 = vld [vmem:[%s7017_s30 + $0x122] sm:$0xff]  ;;  %v6632_v24 = vld [vmem:[%s7017_s30 + $0x12a] sm:$0xff]  ;;  %v4695_v20 = vmul.f32 %v6652_v11, %v6621_v43  ;;  %v4701_v58 = vmul.f32 %v6652_v11, %v6627_v27 }
 0x368   : > { %15204 = vst [vmem:[#allocation9_spill] sm:$0xff] %v13051_v48  ;;  %v15209_v60 = vld [vmem:[#allocation12_spill] sm:$0xff]  ;;  %v15211_v1 = vld [vmem:[#allocation13_spill] sm:$0xff]  ;;  %v15213_v40 = vld [vmem:[#allocation14_spill] sm:$0xff]  ;;  %v4702_v16 = vmul.f32 %v6652_v11, %v6628_v18  ;;  %v4703_v43 = vmul.f32 %v6652_v11, %v6629_v6  ;;  %v4705_v48 = vmul.f32 %v6652_v11, %v6631_v45  ;;  %v4706_v47 = vmul.f32 %v6652_v11, %v6632_v24 }
 0x369   : > { %15206 = vst [vmem:[#allocation10_spill] sm:$0xff] %v13054_v62  ;;  %v13063_v42 = vadd.f32 %v4620_v2, %v15209_v60  ;;  %v13066_v17 = vadd.f32 %v4621_v54, %v15211_v1  ;;  %v13069_v15 = vadd.f32 %v4622_v7, %v15213_v40  ;;  %v15215_v50 = vld [vmem:[#allocation15_spill] sm:$0xff]  ;;  %v6633_v55 = vld [vmem:[%s7017_s30 + $0x13a] sm:$0xff]  ;;  %v6634_v26 = vld [vmem:[%s7017_s30 + $0x142] sm:$0xff]  ;;  %v4696_v54 = vmul.f32 %v6652_v11, %v6622_v33 }
 0x36a   : > { %v13072_v5 = vadd.f32 %v4623_v9, %v15215_v50  ;;  %v6635_v61 = vld [vmem:[%s7017_s30 + $0x152] sm:$0xff]  ;;  %v6636_v35 = vld [vmem:[%s7017_s30 + $0x15a] sm:$0xff]  ;;  %v6637_v12 = vld [vmem:[%s7017_s30 + $0x16a] sm:$0xff]  ;;  %v4697_v60 = vmul.f32 %v6652_v11, %v6623_v51  ;;  %v4698_v1 = vmul.f32 %v6652_v11, %v6624_v53  ;;  %v4699_v40 = vmul.f32 %v6652_v11, %v6625_v29 }
 0x36b   : > { %15210 = vst [vmem:[#allocation12_spill] sm:$0xff] %v13063_v42  ;;  %15212 = vst [vmem:[#allocation13_spill] sm:$0xff] %v13066_v17  ;;  %v6638_v2 = vld [vmem:[%s7017_s30 + $0x172] sm:$0xff]  ;;  %v6639_v7 = vld [vmem:[%s7017_s30 + $0x182] sm:$0xff]  ;;  %v4700_v50 = vmul.f32 %v6652_v11, %v6626_v38  ;;  %v4704_v42 = vmul.f32 %v6652_v11, %v6630_v34  ;;  %v4707_v57 = vmul.f32 %v6652_v11, %v6633_v55 }
 0x36c   : > { %15214 = vst [vmem:[#allocation14_spill] sm:$0xff] %v13069_v15  ;;  %15216 = vst [vmem:[#allocation15_spill] sm:$0xff] %v13072_v5  ;;  %v6640_v46 = vld [vmem:[%s7017_s30 + $0x18a] sm:$0xff]  ;;  %v6641_v9 = vld [vmem:[%s7017_s30 + $0x19a] sm:$0xff]  ;;  %v4708_v51 = vmul.f32 %v6652_v11, %v6634_v26  ;;  %v4709_v38 = vmul.f32 %v6652_v11, %v6635_v61  ;;  %v4710_v21 = vmul.f32 %v6652_v11, %v6636_v35 }
 0x36d   : > { %v6642_v5 = vld [vmem:[%s7017_s30 + $0x1a2] sm:$0xff]  ;;  %v6643_v15 = vld [vmem:[%s7017_s30 + $0x1b2] sm:$0xff]  ;;  %v6644_v17 = vld [vmem:[%s7017_s30 + $0x1ba] sm:$0xff]  ;;  %v4711_v32 = vmul.f32 %v6652_v11, %v6637_v12  ;;  %v4712_v19 = vmul.f32 %v6652_v11, %v6638_v2  ;;  %v4713_v13 = vmul.f32 %v6652_v11, %v6639_v7  ;;  %v4714_v25 = vmul.f32 %v6652_v11, %v6640_v46 }
 0x36e   : > { %v6645_v33 = vld [vmem:[%s7017_s30 + $0x1ca] sm:$0xff]  ;;  %v6646_v3 = vld [vmem:[%s7017_s30 + $0x1d2] sm:$0xff]  ;;  %v6647_v62 = vld [vmem:[%s7017_s30 + $0x1e2] sm:$0xff]  ;;  %v4715_v27 = vmul.f32 %v6652_v11, %v6641_v9  ;;  %v4716_v18 = vmul.f32 %v6652_v11, %v6642_v5  ;;  %v4717_v6 = vmul.f32 %v6652_v11, %v6643_v15  ;;  %v4718_v34 = vmul.f32 %v6652_v11, %v6644_v17 }
 0x36f   : > { %v6648_v53 = vld [vmem:[%s7017_s30 + $0x1ea] sm:$0xff]  ;;  %v6649_v29 = vld [vmem:[%s7017_s30 + $0x1fa] sm:$0xff]  ;;  %v6650_v23 = vld [vmem:[%s7017_s30 + $0x202] sm:$0xff]  ;;  %v4719_v36 = vmul.f32 %v6652_v11, %v6645_v33  ;;  %v4720_v22 = vmul.f32 %v6652_v11, %v6646_v3  ;;  %v4721_v39 = vmul.f32 %v6652_v11, %v6647_v62  ;;  %v13093_v26 = vadd.f32 %v4693_v52, %v12962_v4 }
 0x370   : > { %v4722_v45 = vmul.f32 %v6652_v11, %v6648_v53  ;;  %v4723_v24 = vmul.f32 %v6652_v11, %v6649_v29  ;;  %v4724_v55 = vmul.f32 %v6652_v11, %v6650_v23  ;;  %v13096_v61 = vadd.f32 %v4694_v0, %v12965_v56  ;;  %v6653_v15 = vld [vmem:[%s7017_s30 + $0x93] sm:$0xff]  ;;  %v6655_v5 = vld [vmem:[%s7017_s30 + $0xab] sm:$0xff]  ;;  %v6657_v52 = vld [vmem:[%s7017_s30 + $0xc3] sm:$0xff] }
 0x371   : > { %v13099_v35 = vadd.f32 %v4695_v20, %v12968_v10  ;;  %v13102_v17 = vadd.f32 %v4696_v54, %v12971_v44  ;;  %v13105_v62 = vadd.f32 %v4697_v60, %v12974_v59  ;;  %v13108_v23 = vadd.f32 %v4698_v1, %v12977_v37  ;;  %v6658_v0 = vld [vmem:[%s7017_s30 + $0xcb] sm:$0xff]  ;;  %v6659_v20 = vld [vmem:[%s7017_s30 + $0xdb] sm:$0xff]  ;;  %v6660_v54 = vld [vmem:[%s7017_s30 + $0xe3] sm:$0xff] }
 0x372   : > { %v13111_v4 = vadd.f32 %v4699_v40, %v12980_v8  ;;  %v13114_v56 = vadd.f32 %v4700_v50, %v12983_v14  ;;  %v13117_v10 = vadd.f32 %v4701_v58, %v12986_v31  ;;  %v13120_v44 = vadd.f32 %v4702_v16, %v12989_v30  ;;  %v15217_v31 = vld [vmem:[#allocation16_spill] sm:$0xff]  ;;  %v15219_v30 = vld [vmem:[#allocation17_spill] sm:$0xff]  ;;  %v15229_v7 = vld [vmem:[#allocation22_spill] sm:$0xff] }
 0x373   : > { %v13123_v59 = vadd.f32 %v4703_v43, %v12992_v28  ;;  %v13126_v37 = vadd.f32 %v4704_v42, %v12995_v49  ;;  %v13129_v8 = vadd.f32 %v4705_v48, %v12998_v41  ;;  %v13132_v14 = vadd.f32 %v4706_v47, %v13001_v63  ;;  %v6654_v28 = vld [vmem:[%s7017_s30 + $0x9b] sm:$0xff]  ;;  %v6656_v49 = vld [vmem:[%s7017_s30 + $0xb3] sm:$0xff]  ;;  %v15221_v42 = vld [vmem:[#allocation18_spill] sm:$0xff] }
 0x374   : > { %v13135_v11 = vadd.f32 %v4707_v57, %v15217_v31  ;;  %v13138_v3 = vadd.f32 %v4708_v51, %v15219_v30  ;;  %v13145_v12 = vadd.f32 %v4709_v38, %v15221_v42  ;;  %v15223_v41 = vld [vmem:[#allocation19_spill] sm:$0xff]  ;;  %v15225_v63 = vld [vmem:[#allocation20_spill] sm:$0xff]  ;;  %v15227_v57 = vld [vmem:[#allocation21_spill] sm:$0xff]  ;;  %v13161_v46 = vadd.f32 %v4713_v13, %v15229_v7 }
 0x375   : > { %v13148_v48 = vadd.f32 %v4710_v21, %v15223_v41  ;;  %v13151_v47 = vadd.f32 %v4711_v32, %v15225_v63  ;;  %v13154_v2 = vadd.f32 %v4712_v19, %v15227_v57  ;;  %v15231_v9 = vld [vmem:[#allocation5_spill] sm:$0xff]  ;;  %v15233_v21 = vld [vmem:[#allocation6_spill] sm:$0xff]  ;;  %v15235_v32 = vld [vmem:[#allocation7_spill] sm:$0xff] }
 0x376   : > { %15218 = vst [vmem:[#allocation16_spill] sm:$0xff] %v13135_v11  ;;  %15220 = vst [vmem:[#allocation17_spill] sm:$0xff] %v13138_v3  ;;  %v13164_v60 = vadd.f32 %v4714_v25, %v15231_v9  ;;  %v13167_v1 = vadd.f32 %v4715_v27, %v15233_v21  ;;  %v13170_v40 = vadd.f32 %v4716_v18, %v15235_v32  ;;  %v6661_v19 = vld [vmem:[%s7017_s30 + $0xf3] sm:$0xff]  ;;  %v6662_v50 = vld [vmem:[%s7017_s30 + $0xfb] sm:$0xff] }
 0x377   : > { %15222 = vst [vmem:[#allocation18_spill] sm:$0xff] %v13145_v12  ;;  %15224 = vst [vmem:[#allocation19_spill] sm:$0xff] %v13148_v48  ;;  %v6663_v58 = vld [vmem:[%s7017_s30 + $0x10b] sm:$0xff]  ;;  %v6686_v13 = vld [vmem:[%s13780_s1 + $0x33] ss:$0 sm:$0xff] }
 0x378   : > { %15226 = vst [vmem:[#allocation20_spill] sm:$0xff] %v13151_v47  ;;  %15228 = vst [vmem:[#allocation21_spill] sm:$0xff] %v13154_v2  ;;  %v15237_v16 = vld [vmem:[#allocation8_spill] sm:$0xff]  ;;  %v15239_v43 = vld [vmem:[#allocation9_spill] sm:$0xff] }
 0x379   : > { %15230 = vst [vmem:[#allocation22_spill] sm:$0xff] %v13161_v46  ;;  %15232 = vst [vmem:[#allocation5_spill] sm:$0xff] %v13164_v60  ;;  %v13179_v25 = vadd.f32 %v4717_v6, %v15237_v16  ;;  %v13182_v33 = vadd.f32 %v4718_v34, %v15239_v43  ;;  %v15241_v51 = vld [vmem:[#allocation10_spill] sm:$0xff]  ;;  %v15243_v29 = vld [vmem:[#allocation11_spill] sm:$0xff]  ;;  %v4794_v16 = vmul.f32 %v6686_v13, %v6653_v15 }
 0x37a   : > { %15234 = vst [vmem:[#allocation6_spill] sm:$0xff] %v13167_v1  ;;  %15236 = vst [vmem:[#allocation7_spill] sm:$0xff] %v13170_v40  ;;  %v13185_v53 = vadd.f32 %v4719_v36, %v15241_v51  ;;  %v13188_v38 = vadd.f32 %v4720_v22, %v15243_v29  ;;  %v6664_v27 = vld [vmem:[%s7017_s30 + $0x113] sm:$0xff]  ;;  %v6665_v18 = vld [vmem:[%s7017_s30 + $0x123] sm:$0xff]  ;;  %v4795_v43 = vmul.f32 %v6686_v13, %v6654_v28 }
 0x37b   : > { %15238 = vst [vmem:[#allocation8_spill] sm:$0xff] %v13179_v25  ;;  %15240 = vst [vmem:[#allocation9_spill] sm:$0xff] %v13182_v33  ;;  %v6666_v31 = vld [vmem:[%s7017_s30 + $0x12b] sm:$0xff]  ;;  %v15245_v30 = vld [vmem:[#allocation12_spill] sm:$0xff]  ;;  %v4796_v51 = vmul.f32 %v6686_v13, %v6655_v5  ;;  %v4802_v15 = vmul.f32 %v6686_v13, %v6661_v19  ;;  %v4803_v28 = vmul.f32 %v6686_v13, %v6662_v50 }
 0x37c   : > { %15242 = vst [vmem:[#allocation10_spill] sm:$0xff] %v13185_v53  ;;  %15244 = vst [vmem:[#allocation11_spill] sm:$0xff] %v13188_v38  ;;  %v13194_v42 = vadd.f32 %v4721_v39, %v15245_v30  ;;  %v15247_v6 = vld [vmem:[#allocation13_spill] sm:$0xff]  ;;  %v15249_v34 = vld [vmem:[#allocation14_spill] sm:$0xff]  ;;  %v4798_v30 = vmul.f32 %v6686_v13, %v6657_v52  ;;  %v4804_v5 = vmul.f32 %v6686_v13, %v6663_v58 }
 0x37d   : > { %v13197_v41 = vadd.f32 %v4722_v45, %v15247_v6  ;;  %v13200_v63 = vadd.f32 %v4723_v24, %v15249_v34  ;;  %v15251_v36 = vld [vmem:[#allocation15_spill] sm:$0xff]  ;;  %v6667_v22 = vld [vmem:[%s7017_s30 + $0x13b] sm:$0xff]  ;;  %v6668_v7 = vld [vmem:[%s7017_s30 + $0x143] sm:$0xff]  ;;  %v4797_v45 = vmul.f32 %v6686_v13, %v6656_v49  ;;  %v4799_v6 = vmul.f32 %v6686_v13, %v6658_v0 }
 0x37e   : > { %15246 = vst [vmem:[#allocation12_spill] sm:$0xff] %v13194_v42  ;;  %v13203_v57 = vadd.f32 %v4724_v55, %v15251_v36  ;;  %v6669_v9 = vld [vmem:[%s7017_s30 + $0x153] sm:$0xff]  ;;  %v6670_v21 = vld [vmem:[%s7017_s30 + $0x15b] sm:$0xff]  ;;  %v6671_v32 = vld [vmem:[%s7017_s30 + $0x16b] sm:$0xff]  ;;  %v4800_v34 = vmul.f32 %v6686_v13, %v6659_v20  ;;  %v4801_v36 = vmul.f32 %v6686_v13, %v6660_v54  ;;  %v4805_v42 = vmul.f32 %v6686_v13, %v6664_v27 }
 0x37f   : > { %15248 = vst [vmem:[#allocation13_spill] sm:$0xff] %v13197_v41  ;;  %15250 = vst [vmem:[#allocation14_spill] sm:$0xff] %v13200_v63  ;;  %v6672_v39 = vld [vmem:[%s7017_s30 + $0x173] sm:$0xff]  ;;  %v6673_v24 = vld [vmem:[%s7017_s30 + $0x183] sm:$0xff]  ;;  %v4806_v33 = vmul.f32 %v6686_v13, %v6665_v18  ;;  %v4807_v25 = vmul.f32 %v6686_v13, %v6666_v31  ;;  %v4808_v40 = vmul.f32 %v6686_v13, %v6667_v22 }
 0x380   : > { %15252 = vst [vmem:[#allocation15_spill] sm:$0xff] %v13203_v57  ;;  %v6674_v29 = vld [vmem:[%s7017_s30 + $0x18b] sm:$0xff]  ;;  %v6675_v55 = vld [vmem:[%s7017_s30 + $0x19b] sm:$0xff]  ;;  %v6676_v57 = vld [vmem:[%s7017_s30 + $0x1a3] sm:$0xff]  ;;  %v4809_v52 = vmul.f32 %v6686_v13, %v6668_v7  ;;  %v4810_v54 = vmul.f32 %v6686_v13, %v6669_v9  ;;  %v4811_v60 = vmul.f32 %v6686_v13, %v6670_v21  ;;  %v4812_v46 = vmul.f32 %v6686_v13, %v6671_v32 }
 0x381   : > { %v6677_v63 = vld [vmem:[%s7017_s30 + $0x1b3] sm:$0xff]  ;;  %v6678_v41 = vld [vmem:[%s7017_s30 + $0x1bb] sm:$0xff]  ;;  %v6679_v49 = vld [vmem:[%s7017_s30 + $0x1cb] sm:$0xff]  ;;  %v4813_v2 = vmul.f32 %v6686_v13, %v6672_v39  ;;  %v4814_v47 = vmul.f32 %v6686_v13, %v6673_v24  ;;  %v4815_v48 = vmul.f32 %v6686_v13, %v6674_v29  ;;  %v4816_v19 = vmul.f32 %v6686_v13, %v6675_v55 }
 0x382   : > { %v6680_v38 = vld [vmem:[%s7017_s30 + $0x1d3] sm:$0xff]  ;;  %v6681_v53 = vld [vmem:[%s7017_s30 + $0x1e3] sm:$0xff]  ;;  %v6682_v0 = vld [vmem:[%s7017_s30 + $0x1eb] sm:$0xff]  ;;  %v4817_v50 = vmul.f32 %v6686_v13, %v6676_v57  ;;  %v4818_v58 = vmul.f32 %v6686_v13, %v6677_v63  ;;  %v4819_v27 = vmul.f32 %v6686_v13, %v6678_v41  ;;  %v4820_v12 = vmul.f32 %v6686_v13, %v6679_v49 }
 0x383   : > { %v6683_v20 = vld [vmem:[%s7017_s30 + $0x1fb] sm:$0xff]  ;;  %v6684_v1 = vld [vmem:[%s7017_s30 + $0x203] sm:$0xff]  ;;  %v4821_v3 = vmul.f32 %v6686_v13, %v6680_v38  ;;  %v4822_v11 = vmul.f32 %v6686_v13, %v6681_v53  ;;  %v4823_v18 = vmul.f32 %v6686_v13, %v6682_v0  ;;  %v13224_v7 = vadd.f32 %v4794_v16, %v13093_v26  ;;  %v6689_v57 = vld [vmem:[%s7017_s30 + $0xac] sm:$0xff] }
 0x384   : > { %v4824_v31 = vmul.f32 %v6686_v13, %v6683_v20  ;;  %v4825_v22 = vmul.f32 %v6686_v13, %v6684_v1  ;;  %v13227_v9 = vadd.f32 %v4795_v43, %v13096_v61  ;;  %v13230_v21 = vadd.f32 %v4796_v51, %v13099_v35  ;;  %v6687_v63 = vld [vmem:[%s7017_s30 + $0x94] sm:$0xff]  ;;  %v6691_v16 = vld [vmem:[%s7017_s30 + $0xc4] sm:$0xff]  ;;  %v6692_v43 = vld [vmem:[%s7017_s30 + $0xcc] sm:$0xff] }
 0x385   : > { %v13233_v41 = vadd.f32 %v4797_v45, %v13102_v17  ;;  %v13236_v53 = vadd.f32 %v4798_v30, %v13105_v62  ;;  %v13239_v1 = vadd.f32 %v4799_v6, %v13108_v23  ;;  %v13242_v26 = vadd.f32 %v4800_v34, %v13111_v4  ;;  %v6693_v51 = vld [vmem:[%s7017_s30 + $0xdc] sm:$0xff]  ;;  %v6694_v45 = vld [vmem:[%s7017_s30 + $0xe4] sm:$0xff]  ;;  %v15279_v20 = vld [vmem:[#allocation11_spill] sm:$0xff] }
 0x386   : > { %v13245_v61 = vadd.f32 %v4801_v36, %v13114_v56  ;;  %v13248_v35 = vadd.f32 %v4802_v15, %v13117_v10  ;;  %v13251_v17 = vadd.f32 %v4803_v28, %v13120_v44  ;;  %v13254_v62 = vadd.f32 %v4804_v5, %v13123_v59  ;;  %v15253_v10 = vld [vmem:[#allocation16_spill] sm:$0xff]  ;;  %v15255_v44 = vld [vmem:[#allocation17_spill] sm:$0xff]  ;;  %v15265_v24 = vld [vmem:[#allocation22_spill] sm:$0xff] }
 0x387   : > { %v13257_v23 = vadd.f32 %v4805_v42, %v13126_v37  ;;  %v13260_v4 = vadd.f32 %v4806_v33, %v13129_v8  ;;  %v13263_v56 = vadd.f32 %v4807_v25, %v13132_v14  ;;  %v13266_v13 = vadd.f32 %v4808_v40, %v15253_v10  ;;  %v6688_v59 = vld [vmem:[%s7017_s30 + $0x9c] sm:$0xff]  ;;  %v6690_v37 = vld [vmem:[%s7017_s30 + $0xb4] sm:$0xff]  ;;  %v15257_v42 = vld [vmem:[#allocation18_spill] sm:$0xff] }
 0x388   : > { %v13269_v38 = vadd.f32 %v4809_v52, %v15255_v44  ;;  %v13276_v32 = vadd.f32 %v4810_v54, %v15257_v42  ;;  %v15259_v8 = vld [vmem:[#allocation19_spill] sm:$0xff]  ;;  %v15261_v14 = vld [vmem:[#allocation20_spill] sm:$0xff]  ;;  %v15263_v40 = vld [vmem:[#allocation21_spill] sm:$0xff]  ;;  %v13292_v29 = vadd.f32 %v4814_v47, %v15265_v24  ;;  %v13319_v54 = vadd.f32 %v4821_v3, %v15279_v20 }
 0x389   : > { %15254 = vst [vmem:[#allocation16_spill] sm:$0xff] %v13266_v13  ;;  %v13279_v33 = vadd.f32 %v4811_v60, %v15259_v8  ;;  %v13282_v25 = vadd.f32 %v4812_v46, %v15261_v14  ;;  %v13285_v39 = vadd.f32 %v4813_v2, %v15263_v40  ;;  %v15267_v55 = vld [vmem:[#allocation5_spill] sm:$0xff]  ;;  %v15269_v60 = vld [vmem:[#allocation6_spill] sm:$0xff]  ;;  %v15271_v46 = vld [vmem:[#allocation7_spill] sm:$0xff] }
 0x38a   : > { %15256 = vst [vmem:[#allocation17_spill] sm:$0xff] %v13269_v38  ;;  %15258 = vst [vmem:[#allocation18_spill] sm:$0xff] %v13276_v32  ;;  %v13295_v30 = vadd.f32 %v4815_v48, %v15267_v55  ;;  %v13298_v6 = vadd.f32 %v4816_v19, %v15269_v60  ;;  %v13301_v34 = vadd.f32 %v4817_v50, %v15271_v46  ;;  %v6695_v2 = vld [vmem:[%s7017_s30 + $0xf4] sm:$0xff]  ;;  %v6696_v36 = vld [vmem:[%s7017_s30 + $0xfc] sm:$0xff] }
 0x38b   : > { %15260 = vst [vmem:[#allocation19_spill] sm:$0xff] %v13279_v33  ;;  %15262 = vst [vmem:[#allocation20_spill] sm:$0xff] %v13282_v25  ;;  %v6697_v15 = vld [vmem:[%s7017_s30 + $0x10c] sm:$0xff]  ;;  %v6720_v47 = vld [vmem:[%s13780_s1 + $0x34] ss:$0 sm:$0xff] }
 0x38c   : > { %15264 = vst [vmem:[#allocation21_spill] sm:$0xff] %v13285_v39  ;;  %15266 = vst [vmem:[#allocation22_spill] sm:$0xff] %v13292_v29  ;;  %v15273_v28 = vld [vmem:[#allocation8_spill] sm:$0xff]  ;;  %v15275_v5 = vld [vmem:[#allocation9_spill] sm:$0xff] }
 0x38d   : > { %15268 = vst [vmem:[#allocation5_spill] sm:$0xff] %v13295_v30  ;;  %15270 = vst [vmem:[#allocation6_spill] sm:$0xff] %v13298_v6  ;;  %v13310_v48 = vadd.f32 %v4818_v58, %v15273_v28  ;;  %v13313_v49 = vadd.f32 %v4819_v27, %v15275_v5  ;;  %v15277_v52 = vld [vmem:[#allocation10_spill] sm:$0xff]  ;;  %v6698_v19 = vld [vmem:[%s7017_s30 + $0x114] sm:$0xff]  ;;  %v4895_v28 = vmul.f32 %v6720_v47, %v6687_v63 }
 0x38e   : > { %15272 = vst [vmem:[#allocation7_spill] sm:$0xff] %v13301_v34  ;;  %v13316_v0 = vadd.f32 %v4820_v12, %v15277_v52  ;;  %15280 = vst [vmem:[#allocation11_spill] sm:$0xff] %v13319_v54  ;;  %v6699_v50 = vld [vmem:[%s7017_s30 + $0x124] sm:$0xff]  ;;  %v6700_v10 = vld [vmem:[%s7017_s30 + $0x12c] sm:$0xff]  ;;  %v4896_v5 = vmul.f32 %v6720_v47, %v6688_v59  ;;  %v4897_v52 = vmul.f32 %v6720_v47, %v6689_v57 }
 0x38f   : > { %15274 = vst [vmem:[#allocation8_spill] sm:$0xff] %v13310_v48  ;;  %15276 = vst [vmem:[#allocation9_spill] sm:$0xff] %v13313_v49  ;;  %v15281_v44 = vld [vmem:[#allocation12_spill] sm:$0xff]  ;;  %v15283_v58 = vld [vmem:[#allocation13_spill] sm:$0xff]  ;;  %v4903_v63 = vmul.f32 %v6720_v47, %v6695_v2  ;;  %v4904_v59 = vmul.f32 %v6720_v47, %v6696_v36  ;;  %v4905_v57 = vmul.f32 %v6720_v47, %v6697_v15 }
 0x390   : > { %15278 = vst [vmem:[#allocation10_spill] sm:$0xff] %v13316_v0  ;;  %v13325_v42 = vadd.f32 %v4822_v11, %v15281_v44  ;;  %v13328_v8 = vadd.f32 %v4823_v18, %v15283_v58  ;;  %v15285_v27 = vld [vmem:[#allocation14_spill] sm:$0xff]  ;;  %v15287_v12 = vld [vmem:[#allocation15_spill] sm:$0xff]  ;;  %v6701_v3 = vld [vmem:[%s7017_s30 + $0x13c] sm:$0xff]  ;;  %v4898_v18 = vmul.f32 %v6720_v47, %v6690_v37  ;;  %v4899_v44 = vmul.f32 %v6720_v47, %v6691_v16 }
 0x391   : > { %v13331_v14 = vadd.f32 %v4824_v31, %v15285_v27  ;;  %v13334_v40 = vadd.f32 %v4825_v22, %v15287_v12  ;;  %v6702_v24 = vld [vmem:[%s7017_s30 + $0x144] sm:$0xff]  ;;  %v6703_v55 = vld [vmem:[%s7017_s30 + $0x154] sm:$0xff]  ;;  %v6704_v60 = vld [vmem:[%s7017_s30 + $0x15c] sm:$0xff]  ;;  %v4900_v58 = vmul.f32 %v6720_v47, %v6692_v43  ;;  %v4901_v27 = vmul.f32 %v6720_v47, %v6693_v51 }
 0x392   : > { %15282 = vst [vmem:[#allocation12_spill] sm:$0xff] %v13325_v42  ;;  %15284 = vst [vmem:[#allocation13_spill] sm:$0xff] %v13328_v8  ;;  %v6705_v46 = vld [vmem:[%s7017_s30 + $0x16c] sm:$0xff]  ;;  %v6706_v11 = vld [vmem:[%s7017_s30 + $0x174] sm:$0xff]  ;;  %v4902_v12 = vmul.f32 %v6720_v47, %v6694_v45  ;;  %v4906_v42 = vmul.f32 %v6720_v47, %v6698_v19  ;;  %v4907_v49 = vmul.f32 %v6720_v47, %v6699_v50 }
 0x393   : > { %15286 = vst [vmem:[#allocation14_spill] sm:$0xff] %v13331_v14  ;;  %15288 = vst [vmem:[#allocation15_spill] sm:$0xff] %v13334_v40  ;;  %v6707_v31 = vld [vmem:[%s7017_s30 + $0x184] sm:$0xff]  ;;  %v6708_v20 = vld [vmem:[%s7017_s30 + $0x18c] sm:$0xff]  ;;  %v4908_v48 = vmul.f32 %v6720_v47, %v6700_v10  ;;  %v4909_v34 = vmul.f32 %v6720_v47, %v6701_v3  ;;  %v4910_v16 = vmul.f32 %v6720_v47, %v6702_v24 }
 0x394   : > { %v6709_v22 = vld [vmem:[%s7017_s30 + $0x19c] sm:$0xff]  ;;  %v6710_v40 = vld [vmem:[%s7017_s30 + $0x1a4] sm:$0xff]  ;;  %v6711_v14 = vld [vmem:[%s7017_s30 + $0x1b4] sm:$0xff]  ;;  %v4911_v45 = vmul.f32 %v6720_v47, %v6703_v55  ;;  %v4912_v30 = vmul.f32 %v6720_v47, %v6704_v60  ;;  %v4913_v29 = vmul.f32 %v6720_v47, %v6705_v46  ;;  %v4914_v39 = vmul.f32 %v6720_v47, %v6706_v11 }
 0x395   : > { %v6712_v8 = vld [vmem:[%s7017_s30 + $0x1bc] sm:$0xff]  ;;  %v6713_v37 = vld [vmem:[%s7017_s30 + $0x1cc] sm:$0xff]  ;;  %v6714_v54 = vld [vmem:[%s7017_s30 + $0x1d4] sm:$0xff]  ;;  %v4915_v25 = vmul.f32 %v6720_v47, %v6707_v31  ;;  %v4916_v33 = vmul.f32 %v6720_v47, %v6708_v20  ;;  %v4917_v2 = vmul.f32 %v6720_v47, %v6709_v22  ;;  %v4918_v36 = vmul.f32 %v6720_v47, %v6710_v40 }
 0x396   : > { %v6715_v0 = vld [vmem:[%s7017_s30 + $0x1e4] sm:$0xff]  ;;  %v6716_v43 = vld [vmem:[%s7017_s30 + $0x1ec] sm:$0xff]  ;;  %v6717_v51 = vld [vmem:[%s7017_s30 + $0x1fc] sm:$0xff]  ;;  %v4919_v15 = vmul.f32 %v6720_v47, %v6711_v14  ;;  %v4920_v19 = vmul.f32 %v6720_v47, %v6712_v8  ;;  %v4921_v32 = vmul.f32 %v6720_v47, %v6713_v37  ;;  %v4922_v38 = vmul.f32 %v6720_v47, %v6714_v54 }
 0x397   : > { %v6718_v6 = vld [vmem:[%s7017_s30 + $0x204] sm:$0xff]  ;;  %v4923_v13 = vmul.f32 %v6720_v47, %v6715_v0  ;;  %v4924_v50 = vmul.f32 %v6720_v47, %v6716_v43  ;;  %v4925_v10 = vmul.f32 %v6720_v47, %v6717_v51  ;;  %v13355_v24 = vadd.f32 %v4895_v28, %v13224_v7  ;;  %v6721_v14 = vld [vmem:[%s7017_s30 + $0x95] sm:$0xff]  ;;  %v6723_v40 = vld [vmem:[%s7017_s30 + $0xad] sm:$0xff] }
 0x398   : > { %v4926_v3 = vmul.f32 %v6720_v47, %v6718_v6  ;;  %v13358_v55 = vadd.f32 %v4896_v5, %v13227_v9  ;;  %v13361_v60 = vadd.f32 %v4897_v52, %v13230_v21  ;;  %v13364_v8 = vadd.f32 %v4898_v18, %v13233_v41  ;;  %v6725_v28 = vld [vmem:[%s7017_s30 + $0xc5] sm:$0xff]  ;;  %v6726_v5 = vld [vmem:[%s7017_s30 + $0xcd] sm:$0xff]  ;;  %v6727_v52 = vld [vmem:[%s7017_s30 + $0xdd] sm:$0xff] }
 0x399   : > { %v13367_v0 = vadd.f32 %v4899_v44, %v13236_v53  ;;  %v13370_v6 = vadd.f32 %v4900_v58, %v13239_v1  ;;  %v13373_v7 = vadd.f32 %v4901_v27, %v13242_v26  ;;  %v13376_v9 = vadd.f32 %v4902_v12, %v13245_v61  ;;  %v6728_v18 = vld [vmem:[%s7017_s30 + $0xe5] sm:$0xff]  ;;  %v6730_v12 = vld [vmem:[%s7017_s30 + $0xfd] sm:$0xff]  ;;  %v15315_v51 = vld [vmem:[#allocation11_spill] sm:$0xff] }
 0x39a   : > { %v13379_v21 = vadd.f32 %v4903_v63, %v13248_v35  ;;  %v13382_v41 = vadd.f32 %v4904_v59, %v13251_v17  ;;  %v13385_v53 = vadd.f32 %v4905_v57, %v13254_v62  ;;  %v13388_v1 = vadd.f32 %v4906_v42, %v13257_v23  ;;  %v15289_v35 = vld [vmem:[#allocation16_spill] sm:$0xff]  ;;  %v15291_v17 = vld [vmem:[#allocation17_spill] sm:$0xff]  ;;  %v15293_v42 = vld [vmem:[#allocation18_spill] sm:$0xff] }
 0x39b   : > { %v13391_v26 = vadd.f32 %v4907_v49, %v13260_v4  ;;  %v13394_v61 = vadd.f32 %v4908_v48, %v13263_v56  ;;  %v13397_v47 = vadd.f32 %v4909_v34, %v15289_v35  ;;  %v13400_v54 = vadd.f32 %v4910_v16, %v15291_v17  ;;  %v6722_v62 = vld [vmem:[%s7017_s30 + $0x9d] sm:$0xff]  ;;  %v6724_v23 = vld [vmem:[%s7017_s30 + $0xb5] sm:$0xff]  ;;  %v15301_v31 = vld [vmem:[#allocation22_spill] sm:$0xff] }
 0x39c   : > { %v13407_v46 = vadd.f32 %v4911_v45, %v15293_v42  ;;  %v15295_v4 = vld [vmem:[#allocation19_spill] sm:$0xff]  ;;  %v15297_v56 = vld [vmem:[#allocation20_spill] sm:$0xff]  ;;  %v15299_v34 = vld [vmem:[#allocation21_spill] sm:$0xff]  ;;  %v13423_v20 = vadd.f32 %v4915_v25, %v15301_v31  ;;  %v13450_v45 = vadd.f32 %v4922_v38, %v15315_v51 }
 0x39d   : > { %15290 = vst [vmem:[#allocation16_spill] sm:$0xff] %v13397_v47  ;;  %15292 = vst [vmem:[#allocation17_spill] sm:$0xff] %v13400_v54  ;;  %v13410_v49 = vadd.f32 %v4912_v30, %v15295_v4  ;;  %v13413_v48 = vadd.f32 %v4913_v29, %v15297_v56  ;;  %v13416_v11 = vadd.f32 %v4914_v39, %v15299_v34  ;;  %v15303_v22 = vld [vmem:[#allocation5_spill] sm:$0xff]  ;;  %v15305_v30 = vld [vmem:[#allocation6_spill] sm:$0xff] }
 0x39e   : > { %15294 = vst [vmem:[#allocation18_spill] sm:$0xff] %v13407_v46  ;;  %15302 = vst [vmem:[#allocation22_spill] sm:$0xff] %v13423_v20  ;;  %v13426_v44 = vadd.f32 %v4916_v33, %v15303_v22  ;;  %v13429_v58 = vadd.f32 %v4917_v2, %v15305_v30  ;;  %v15307_v29 = vld [vmem:[#allocation7_spill] sm:$0xff]  ;;  %v15309_v59 = vld [vmem:[#allocation8_spill] sm:$0xff] }
 0x39f   : > { %15296 = vst [vmem:[#allocation19_spill] sm:$0xff] %v13410_v49  ;;  %15298 = vst [vmem:[#allocation20_spill] sm:$0xff] %v13413_v48  ;;  %v13432_v27 = vadd.f32 %v4918_v36, %v15307_v29  ;;  %v6729_v39 = vld [vmem:[%s7017_s30 + $0xf5] sm:$0xff]  ;;  %v6731_v63 = vld [vmem:[%s7017_s30 + $0x10d] sm:$0xff]  ;;  %v13441_v33 = vadd.f32 %v4919_v15, %v15309_v59 }
 0x3a0   : > { %15300 = vst [vmem:[#allocation21_spill] sm:$0xff] %v13416_v11  ;;  %15304 = vst [vmem:[#allocation5_spill] sm:$0xff] %v13426_v44  ;;  %v6754_v25 = vld [vmem:[%s13780_s1 + $0x35] ss:$0 sm:$0xff]  ;;  %v15311_v57 = vld [vmem:[#allocation9_spill] sm:$0xff] }
 0x3a1   : > { %15306 = vst [vmem:[#allocation6_spill] sm:$0xff] %v13429_v58  ;;  %15308 = vst [vmem:[#allocation7_spill] sm:$0xff] %v13432_v27  ;;  %v13444_v37 = vadd.f32 %v4920_v19, %v15311_v57  ;;  %v15313_v16 = vld [vmem:[#allocation10_spill] sm:$0xff]  ;;  %v6732_v2 = vld [vmem:[%s7017_s30 + $0x115] sm:$0xff]  ;;  %v4996_v59 = vmul.f32 %v6754_v25, %v6721_v14  ;;  %v4997_v57 = vmul.f32 %v6754_v25, %v6722_v62 }
 0x3a2   : > { %15310 = vst [vmem:[#allocation8_spill] sm:$0xff] %v13441_v33  ;;  %v13447_v43 = vadd.f32 %v4921_v32, %v15313_v16  ;;  %15316 = vst [vmem:[#allocation11_spill] sm:$0xff] %v13450_v45  ;;  %v6733_v36 = vld [vmem:[%s7017_s30 + $0x125] sm:$0xff]  ;;  %v6734_v35 = vld [vmem:[%s7017_s30 + $0x12d] sm:$0xff]  ;;  %v4998_v16 = vmul.f32 %v6754_v25, %v6723_v40  ;;  %v5004_v14 = vmul.f32 %v6754_v25, %v6729_v39 }
 0x3a3   : > { %15312 = vst [vmem:[#allocation9_spill] sm:$0xff] %v13444_v37  ;;  %v15317_v17 = vld [vmem:[#allocation12_spill] sm:$0xff]  ;;  %v15319_v15 = vld [vmem:[#allocation13_spill] sm:$0xff]  ;;  %v15321_v19 = vld [vmem:[#allocation14_spill] sm:$0xff]  ;;  %v5005_v62 = vmul.f32 %v6754_v25, %v6730_v12  ;;  %v5006_v40 = vmul.f32 %v6754_v25, %v6731_v63  ;;  %v5008_v37 = vmul.f32 %v6754_v25, %v6733_v36  ;;  %v5009_v33 = vmul.f32 %v6754_v25, %v6734_v35 }
 0x3a4   : > { %15314 = vst [vmem:[#allocation10_spill] sm:$0xff] %v13447_v43  ;;  %v13456_v42 = vadd.f32 %v4923_v13, %v15317_v17  ;;  %v13459_v4 = vadd.f32 %v4924_v50, %v15319_v15  ;;  %v13462_v56 = vadd.f32 %v4925_v10, %v15321_v19  ;;  %v15323_v32 = vld [vmem:[#allocation15_spill] sm:$0xff]  ;;  %v6735_v38 = vld [vmem:[%s7017_s30 + $0x13d] sm:$0xff]  ;;  %v6736_v31 = vld [vmem:[%s7017_s30 + $0x145] sm:$0xff]  ;;  %v4999_v50 = vmul.f32 %v6754_v25, %v6724_v23 }
 0x3a5   : > { %v13465_v34 = vadd.f32 %v4926_v3, %v15323_v32  ;;  %v6737_v22 = vld [vmem:[%s7017_s30 + $0x155] sm:$0xff]  ;;  %v6738_v30 = vld [vmem:[%s7017_s30 + $0x15d] sm:$0xff]  ;;  %v6739_v29 = vld [vmem:[%s7017_s30 + $0x16d] sm:$0xff]  ;;  %v5000_v17 = vmul.f32 %v6754_v25, %v6725_v28  ;;  %v5001_v15 = vmul.f32 %v6754_v25, %v6726_v5  ;;  %v5002_v19 = vmul.f32 %v6754_v25, %v6727_v52 }
 0x3a6   : > { %15318 = vst [vmem:[#allocation12_spill] sm:$0xff] %v13456_v42  ;;  %15320 = vst [vmem:[#allocation13_spill] sm:$0xff] %v13459_v4  ;;  %v6740_v13 = vld [vmem:[%s7017_s30 + $0x175] sm:$0xff]  ;;  %v6741_v10 = vld [vmem:[%s7017_s30 + $0x185] sm:$0xff]  ;;  %v5003_v32 = vmul.f32 %v6754_v25, %v6728_v18  ;;  %v5007_v42 = vmul.f32 %v6754_v25, %v6732_v2  ;;  %v5010_v27 = vmul.f32 %v6754_v25, %v6735_v38 }
 0x3a7   : > { %15322 = vst [vmem:[#allocation14_spill] sm:$0xff] %v13462_v56  ;;  %15324 = vst [vmem:[#allocation15_spill] sm:$0xff] %v13465_v34  ;;  %v6742_v51 = vld [vmem:[%s7017_s30 + $0x18d] sm:$0xff]  ;;  %v6743_v3 = vld [vmem:[%s7017_s30 + $0x19d] sm:$0xff]  ;;  %v5011_v28 = vmul.f32 %v6754_v25, %v6736_v31  ;;  %v5012_v18 = vmul.f32 %v6754_v25, %v6737_v22  ;;  %v5013_v44 = vmul.f32 %v6754_v25, %v6738_v30 }
 0x3a8   : > { %v6744_v34 = vld [vmem:[%s7017_s30 + $0x1a5] sm:$0xff]  ;;  %v6745_v56 = vld [vmem:[%s7017_s30 + $0x1b5] sm:$0xff]  ;;  %v6746_v4 = vld [vmem:[%s7017_s30 + $0x1bd] sm:$0xff]  ;;  %v5014_v20 = vmul.f32 %v6754_v25, %v6739_v29  ;;  %v5015_v11 = vmul.f32 %v6754_v25, %v6740_v13  ;;  %v5016_v48 = vmul.f32 %v6754_v25, %v6741_v10  ;;  %v5017_v49 = vmul.f32 %v6754_v25, %v6742_v51 }
 0x3a9   : > { %v6747_v23 = vld [vmem:[%s7017_s30 + $0x1cd] sm:$0xff]  ;;  %v6748_v45 = vld [vmem:[%s7017_s30 + $0x1d5] sm:$0xff]  ;;  %v6749_v43 = vld [vmem:[%s7017_s30 + $0x1e5] sm:$0xff]  ;;  %v5018_v39 = vmul.f32 %v6754_v25, %v6743_v3  ;;  %v5019_v12 = vmul.f32 %v6754_v25, %v6744_v34  ;;  %v5020_v63 = vmul.f32 %v6754_v25, %v6745_v56  ;;  %v5021_v2 = vmul.f32 %v6754_v25, %v6746_v4 }
 0x3aa   : > { %v6750_v5 = vld [vmem:[%s7017_s30 + $0x1ed] sm:$0xff]  ;;  %v6751_v52 = vld [vmem:[%s7017_s30 + $0x1fd] sm:$0xff]  ;;  %v6752_v58 = vld [vmem:[%s7017_s30 + $0x205] sm:$0xff]  ;;  %v5022_v46 = vmul.f32 %v6754_v25, %v6747_v23  ;;  %v5023_v54 = vmul.f32 %v6754_v25, %v6748_v45  ;;  %v5024_v47 = vmul.f32 %v6754_v25, %v6749_v43  ;;  %v13486_v31 = vadd.f32 %v4996_v59, %v13355_v24 }
 0x3ab   : > { %v5025_v36 = vmul.f32 %v6754_v25, %v6750_v5  ;;  %v5026_v35 = vmul.f32 %v6754_v25, %v6751_v52  ;;  %v5027_v38 = vmul.f32 %v6754_v25, %v6752_v58  ;;  %v13489_v22 = vadd.f32 %v4997_v57, %v13358_v55  ;;  %v6755_v56 = vld [vmem:[%s7017_s30 + $0x96] sm:$0xff]  ;;  %v6757_v34 = vld [vmem:[%s7017_s30 + $0xae] sm:$0xff]  ;;  %v6759_v59 = vld [vmem:[%s7017_s30 + $0xc6] sm:$0xff] }
 0x3ac   : > { %v13492_v30 = vadd.f32 %v4998_v16, %v13361_v60  ;;  %v13495_v4 = vadd.f32 %v4999_v50, %v13364_v8  ;;  %v13498_v43 = vadd.f32 %v5000_v17, %v13367_v0  ;;  %v13501_v58 = vadd.f32 %v5001_v15, %v13370_v6  ;;  %v6760_v57 = vld [vmem:[%s7017_s30 + $0xce] sm:$0xff]  ;;  %v6761_v16 = vld [vmem:[%s7017_s30 + $0xde] sm:$0xff]  ;;  %v6762_v50 = vld [vmem:[%s7017_s30 + $0xe6] sm:$0xff] }
 0x3ad   : > { %v13504_v24 = vadd.f32 %v5002_v19, %v13373_v7  ;;  %v13507_v55 = vadd.f32 %v5003_v32, %v13376_v9  ;;  %v13510_v60 = vadd.f32 %v5004_v14, %v13379_v21  ;;  %v13513_v8 = vadd.f32 %v5005_v62, %v13382_v41  ;;  %v15325_v21 = vld [vmem:[#allocation16_spill] sm:$0xff]  ;;  %v15327_v41 = vld [vmem:[#allocation17_spill] sm:$0xff]  ;;  %v15337_v10 = vld [vmem:[#allocation22_spill] sm:$0xff] }
 0x3ae   : > { %v13516_v0 = vadd.f32 %v5006_v40, %v13385_v53  ;;  %v13519_v6 = vadd.f32 %v5007_v42, %v13388_v1  ;;  %v13522_v7 = vadd.f32 %v5008_v37, %v13391_v26  ;;  %v13525_v9 = vadd.f32 %v5009_v33, %v13394_v61  ;;  %v6756_v53 = vld [vmem:[%s7017_s30 + $0x9e] sm:$0xff]  ;;  %v6758_v1 = vld [vmem:[%s7017_s30 + $0xb6] sm:$0xff]  ;;  %v15329_v42 = vld [vmem:[#allocation18_spill] sm:$0xff] }
 0x3af   : > { %v13528_v25 = vadd.f32 %v5010_v27, %v15325_v21  ;;  %v13531_v45 = vadd.f32 %v5011_v28, %v15327_v41  ;;  %v13538_v29 = vadd.f32 %v5012_v18, %v15329_v42  ;;  %v15331_v26 = vld [vmem:[#allocation19_spill] sm:$0xff]  ;;  %v15333_v61 = vld [vmem:[#allocation20_spill] sm:$0xff]  ;;  %v15335_v27 = vld [vmem:[#allocation21_spill] sm:$0xff]  ;;  %v13554_v51 = vadd.f32 %v5016_v48, %v15337_v10 }
 0x3b0   : > { %v13541_v37 = vadd.f32 %v5013_v44, %v15331_v26  ;;  %v13544_v33 = vadd.f32 %v5014_v20, %v15333_v61  ;;  %v13547_v13 = vadd.f32 %v5015_v11, %v15335_v27  ;;  %v15339_v3 = vld [vmem:[#allocation5_spill] sm:$0xff]  ;;  %v15341_v44 = vld [vmem:[#allocation6_spill] sm:$0xff]  ;;  %v15343_v20 = vld [vmem:[#allocation7_spill] sm:$0xff] }
 0x3b1   : > { %15326 = vst [vmem:[#allocation16_spill] sm:$0xff] %v13528_v25  ;;  %15328 = vst [vmem:[#allocation17_spill] sm:$0xff] %v13531_v45  ;;  %v13557_v17 = vadd.f32 %v5017_v49, %v15339_v3  ;;  %v13560_v15 = vadd.f32 %v5018_v39, %v15341_v44  ;;  %v13563_v19 = vadd.f32 %v5019_v12, %v15343_v20  ;;  %v6763_v11 = vld [vmem:[%s7017_s30 + $0xf6] sm:$0xff]  ;;  %v6764_v32 = vld [vmem:[%s7017_s30 + $0xfe] sm:$0xff] }
 0x3b2   : > { %15330 = vst [vmem:[#allocation18_spill] sm:$0xff] %v13538_v29  ;;  %15332 = vst [vmem:[#allocation19_spill] sm:$0xff] %v13541_v37  ;;  %v6765_v14 = vld [vmem:[%s7017_s30 + $0x10e] sm:$0xff]  ;;  %v6788_v48 = vld [vmem:[%s13780_s1 + $0x36] ss:$0 sm:$0xff] }
 0x3b3   : > { %15334 = vst [vmem:[#allocation20_spill] sm:$0xff] %v13544_v33  ;;  %15336 = vst [vmem:[#allocation21_spill] sm:$0xff] %v13547_v13  ;;  %v15345_v62 = vld [vmem:[#allocation8_spill] sm:$0xff]  ;;  %v15347_v40 = vld [vmem:[#allocation9_spill] sm:$0xff] }
 0x3b4   : > { %15338 = vst [vmem:[#allocation22_spill] sm:$0xff] %v13554_v51  ;;  %15340 = vst [vmem:[#allocation5_spill] sm:$0xff] %v13557_v17  ;;  %v13572_v49 = vadd.f32 %v5020_v63, %v15345_v62  ;;  %v13575_v23 = vadd.f32 %v5021_v2, %v15347_v40  ;;  %v15349_v28 = vld [vmem:[#allocation10_spill] sm:$0xff]  ;;  %v15351_v52 = vld [vmem:[#allocation11_spill] sm:$0xff]  ;;  %v5097_v62 = vmul.f32 %v6788_v48, %v6755_v56 }
 0x3b5   : > { %15342 = vst [vmem:[#allocation6_spill] sm:$0xff] %v13560_v15  ;;  %15344 = vst [vmem:[#allocation7_spill] sm:$0xff] %v13563_v19  ;;  %v13578_v5 = vadd.f32 %v5022_v46, %v15349_v28  ;;  %v13581_v18 = vadd.f32 %v5023_v54, %v15351_v52  ;;  %v6766_v39 = vld [vmem:[%s7017_s30 + $0x116] sm:$0xff]  ;;  %v6767_v12 = vld [vmem:[%s7017_s30 + $0x126] sm:$0xff]  ;;  %v5098_v40 = vmul.f32 %v6788_v48, %v6756_v53 }
 0x3b6   : > { %15346 = vst [vmem:[#allocation8_spill] sm:$0xff] %v13572_v49  ;;  %15348 = vst [vmem:[#allocation9_spill] sm:$0xff] %v13575_v23  ;;  %v6768_v21 = vld [vmem:[%s7017_s30 + $0x12e] sm:$0xff]  ;;  %v15353_v41 = vld [vmem:[#allocation12_spill] sm:$0xff]  ;;  %v5099_v28 = vmul.f32 %v6788_v48, %v6757_v34  ;;  %v5105_v56 = vmul.f32 %v6788_v48, %v6763_v11  ;;  %v5106_v53 = vmul.f32 %v6788_v48, %v6764_v32 }
 0x3b7   : > { %15350 = vst [vmem:[#allocation10_spill] sm:$0xff] %v13578_v5  ;;  %15352 = vst [vmem:[#allocation11_spill] sm:$0xff] %v13581_v18  ;;  %v13587_v42 = vadd.f32 %v5024_v47, %v15353_v41  ;;  %v15355_v63 = vld [vmem:[#allocation13_spill] sm:$0xff]  ;;  %v15357_v2 = vld [vmem:[#allocation14_spill] sm:$0xff]  ;;  %v5101_v41 = vmul.f32 %v6788_v48, %v6759_v59  ;;  %v5107_v34 = vmul.f32 %v6788_v48, %v6765_v14 }
 0x3b8   : > { %v13590_v26 = vadd.f32 %v5025_v36, %v15355_v63  ;;  %v13593_v61 = vadd.f32 %v5026_v35, %v15357_v2  ;;  %v15359_v46 = vld [vmem:[#allocation15_spill] sm:$0xff]  ;;  %v6769_v54 = vld [vmem:[%s7017_s30 + $0x13e] sm:$0xff]  ;;  %v6770_v10 = vld [vmem:[%s7017_s30 + $0x146] sm:$0xff]  ;;  %v5100_v36 = vmul.f32 %v6788_v48, %v6758_v1  ;;  %v5102_v63 = vmul.f32 %v6788_v48, %v6760_v57 }
 0x3b9   : > { %15354 = vst [vmem:[#allocation12_spill] sm:$0xff] %v13587_v42  ;;  %v13596_v27 = vadd.f32 %v5027_v38, %v15359_v46  ;;  %v6771_v3 = vld [vmem:[%s7017_s30 + $0x156] sm:$0xff]  ;;  %v6772_v44 = vld [vmem:[%s7017_s30 + $0x15e] sm:$0xff]  ;;  %v6773_v20 = vld [vmem:[%s7017_s30 + $0x16e] sm:$0xff]  ;;  %v5103_v2 = vmul.f32 %v6788_v48, %v6761_v16  ;;  %v5104_v46 = vmul.f32 %v6788_v48, %v6762_v50  ;;  %v5108_v42 = vmul.f32 %v6788_v48, %v6766_v39 }
 0x3ba   : > { %15356 = vst [vmem:[#allocation13_spill] sm:$0xff] %v13590_v26  ;;  %15358 = vst [vmem:[#allocation14_spill] sm:$0xff] %v13593_v61  ;;  %v6774_v47 = vld [vmem:[%s7017_s30 + $0x176] sm:$0xff]  ;;  %v6775_v35 = vld [vmem:[%s7017_s30 + $0x186] sm:$0xff]  ;;  %v5109_v23 = vmul.f32 %v6788_v48, %v6767_v12  ;;  %v5110_v49 = vmul.f32 %v6788_v48, %v6768_v21  ;;  %v5111_v19 = vmul.f32 %v6788_v48, %v6769_v54 }
 0x3bb   : > { %15360 = vst [vmem:[#allocation15_spill] sm:$0xff] %v13596_v27  ;;  %v6776_v52 = vld [vmem:[%s7017_s30 + $0x18e] sm:$0xff]  ;;  %v6777_v38 = vld [vmem:[%s7017_s30 + $0x19e] sm:$0xff]  ;;  %v6778_v27 = vld [vmem:[%s7017_s30 + $0x1a6] sm:$0xff]  ;;  %v5112_v59 = vmul.f32 %v6788_v48, %v6770_v10  ;;  %v5113_v50 = vmul.f32 %v6788_v48, %v6771_v3  ;;  %v5114_v17 = vmul.f32 %v6788_v48, %v6772_v44  ;;  %v5115_v51 = vmul.f32 %v6788_v48, %v6773_v20 }
 0x3bc   : > { %v6779_v61 = vld [vmem:[%s7017_s30 + $0x1b6] sm:$0xff]  ;;  %v6780_v26 = vld [vmem:[%s7017_s30 + $0x1be] sm:$0xff]  ;;  %v6781_v1 = vld [vmem:[%s7017_s30 + $0x1ce] sm:$0xff]  ;;  %v5116_v13 = vmul.f32 %v6788_v48, %v6774_v47  ;;  %v5117_v33 = vmul.f32 %v6788_v48, %v6775_v35  ;;  %v5118_v11 = vmul.f32 %v6788_v48, %v6776_v52  ;;  %v5119_v32 = vmul.f32 %v6788_v48, %v6777_v38 }
 0x3bd   : > { %v6782_v18 = vld [vmem:[%s7017_s30 + $0x1d6] sm:$0xff]  ;;  %v6783_v5 = vld [vmem:[%s7017_s30 + $0x1e6] sm:$0xff]  ;;  %v6784_v57 = vld [vmem:[%s7017_s30 + $0x1ee] sm:$0xff]  ;;  %v5120_v14 = vmul.f32 %v6788_v48, %v6778_v27  ;;  %v5121_v39 = vmul.f32 %v6788_v48, %v6779_v61  ;;  %v5122_v37 = vmul.f32 %v6788_v48, %v6780_v26  ;;  %v5123_v29 = vmul.f32 %v6788_v48, %v6781_v1 }
 0x3be   : > { %v6785_v16 = vld [vmem:[%s7017_s30 + $0x1fe] sm:$0xff]  ;;  %v6786_v15 = vld [vmem:[%s7017_s30 + $0x206] sm:$0xff]  ;;  %v5124_v45 = vmul.f32 %v6788_v48, %v6782_v18  ;;  %v5125_v12 = vmul.f32 %v6788_v48, %v6783_v5  ;;  %v5126_v21 = vmul.f32 %v6788_v48, %v6784_v57  ;;  %v5129_v25 = vadd.f32 %v5097_v62, %v13486_v31  ;;  %s175_s30 = sand.u32 1, %s6916_s13   ;;  %v15364_v62 = vld [vmem:[#allocation19_spill] sm:$0xff] }
 0x3bf   : > { %v5127_v54 = vmul.f32 %v6788_v48, %v6785_v16  ;;  %v5128_v10 = vmul.f32 %v6788_v48, %v6786_v15  ;;  %v5130_v3 = vadd.f32 %v5098_v40, %v13489_v22  ;;  %v5131_v44 = vadd.f32 %v5099_v28, %v13492_v30  ;;  %v15361_v61 = vld [vmem:[#allocation16_spill] sm:$0xff]  ;;  %v15362_v47 = vld [vmem:[#allocation17_spill] sm:$0xff]  ;;  %s5352_s6 = sshll.u32 %s175_s30, 8  ;;  %s13733_s21 = scalar_lea.sflag [#allocation3], %s175_s30 }
 0x3c0   : > { %v5132_v20 = vadd.f32 %v5100_v36, %v13495_v4  ;;  %v5133_v27 = vadd.f32 %v5101_v41, %v13498_v43  ;;  %v5134_v26 = vadd.f32 %v5102_v63, %v13501_v58  ;;  %v5135_v18 = vadd.f32 %v5103_v2, %v13504_v24  ;;  %v15363_v24 = vld [vmem:[#allocation18_spill] sm:$0xff]  ;;  %v15365_v40 = vld [vmem:[#allocation20_spill] sm:$0xff]  ;;  %v15366_v28 = vld [vmem:[#allocation21_spill] sm:$0xff]  ;;  %s13668_s9 = scalar_lea.vmem [#allocation2], %s5352_s6 }
 0x3c1   : > { %v5136_v5 = vadd.f32 %v5104_v46, %v13507_v55  ;;  %v5137_v15 = vadd.f32 %v5105_v56, %v13510_v60  ;;  %v5138_v31 = vadd.f32 %v5106_v53, %v13513_v8  ;;  %v5139_v22 = vadd.f32 %v5107_v34, %v13516_v0  ;;  %v15370_v36 = vld [vmem:[#allocation7_spill] sm:$0xff]  ;;  %v15371_v52 = vld [vmem:[#allocation8_spill] sm:$0xff]  ;;  %v15376_v53 = vld [vmem:[#allocation13_spill] sm:$0xff]  ;;  %s5248_s11 = sshll.u32 %s13668_s9, 4  ;;  %s13713_s11 = int_to_ptr.vmem [resolvable:$true] %s5248_s11 }
 0x3c2   : > { %v5140_v48 = vadd.f32 %v5108_v42, %v13519_v6  ;;  %v5141_v30 = vadd.f32 %v5109_v23, %v13522_v7  ;;  %v5142_v4 = vadd.f32 %v5110_v49, %v13525_v9  ;;  %v5143_v43 = vadd.f32 %v5111_v19, %v15361_v61  ;;  %v13642_v6 = vld [vmem:[%s13781_s2] ss:$0 sm:$0xff]  ;;  %v15367_v7 = vld [vmem:[#allocation22_spill] sm:$0xff]  ;;  %v15375_v46 = vld [vmem:[#allocation12_spill] sm:$0xff]  ;;  %s6854_s23 = scalar_lea.vmem %s13713_s11, 4096  ;;  %p6861_p1 = scmp.lt.s32.totalorder %s13713_s11, %s6859_s27 }
 0x3c3   : > { %v5144_v58 = vadd.f32 %v5112_v59, %v15362_v47  ;;  %v5145_v55 = vadd.f32 %v5113_v50, %v15363_v24  ;;  %v5146_v60 = vadd.f32 %v5114_v17, %v15364_v62  ;;  %v5147_v8 = vadd.f32 %v5115_v51, %v15365_v40  ;;  %v15368_v19 = vld [vmem:[#allocation5_spill] sm:$0xff]  ;;  %v15369_v23 = vld [vmem:[#allocation6_spill] sm:$0xff]  ;;  %v15378_v59 = vld [vmem:[#allocation15_spill] sm:$0xff]  ;;  %p6855_p12 = scmp.ne.s32.totalorder %s13713_s11, %s6854_s23  ;;  %p6862_p2 = scmp.lt.s32.totalorder %s6860_s28, %s6854_s23 }
 0x3c4   : > { %v5148_v0 = vadd.f32 %v5116_v13, %v15366_v28  ;;  %v5149_v9 = vadd.f32 %v5117_v33, %v15367_v7  ;;  %v5150_v49 = vadd.f32 %v5118_v11, %v15368_v19  ;;  %v5151_v42 = vadd.f32 %v5119_v32, %v15369_v23  ;;  %v15372_v17 = vld [vmem:[#allocation9_spill] sm:$0xff]  ;;  %v15373_v51 = vld [vmem:[#allocation10_spill] sm:$0xff]  ;;  %v15374_v13 = vld [vmem:[#allocation11_spill] sm:$0xff] }
 0x3c5   : > { %v5152_v35 = vadd.f32 %v5120_v14, %v15370_v36  ;;  %v5153_v38 = vadd.f32 %v5121_v39, %v15371_v52  ;;  %v5154_v41 = vadd.f32 %v5122_v37, %v15372_v17  ;;  %v5155_v63 = vadd.f32 %v5123_v29, %v15373_v51  ;;  %v15377_v1 = vld [vmem:[#allocation14_spill] sm:$0xff]  ;;  %p6856_p13 = pnand %p6855_p12, %p6997_p4  ;;  %p6863_p3 = por %p6862_p2, %p6861_p1 }
 0x3c6   : > { %v5156_v2 = vadd.f32 %v5124_v45, %v15374_v13  ;;  %v5157_v56 = vadd.f32 %v5125_v12, %v15375_v46  ;;  %v5158_v34 = vadd.f32 %v5126_v21, %v15376_v53  ;;  %v5159_v33 = vadd.f32 %v5127_v54, %v15377_v1 }
 0x3c7   : > { %v5160_v57 = vadd.f32 %v5128_v10, %v15378_v59  ;;  %v5167_v16 = vadd.f32 %v13642_v6, %v5129_v25  ;;  %v5168_v50 = vadd.f32 %v13642_v6, %v5130_v3  ;;  %v5169_v11 = vadd.f32 %v13642_v6, %v5131_v44  ;;  %p6857_p0 = pneg %p6856_p13 }
 0x3c8   : > { %v5170_v37 = vadd.f32 %v13642_v6, %v5132_v20  ;;  %v5171_v29 = vadd.f32 %v13642_v6, %v5133_v27  ;;  %v5172_v45 = vadd.f32 %v13642_v6, %v5134_v26  ;;  %v5173_v32 = vadd.f32 %v13642_v6, %v5135_v18 }
 0x3c9   : > { %v5174_v14 = vadd.f32 %v13642_v6, %v5136_v5  ;;  %v5175_v39 = vadd.f32 %v13642_v6, %v5137_v15  ;;  %v5176_v12 = vadd.f32 %v13642_v6, %v5138_v31  ;;  %v5177_v25 = vadd.f32 %v13642_v6, %v5139_v22  ;;  %5199 = vst [vmem:[%s13668_s9] sm:$0xff] %v5167_v16  ;;  %p6864_p5 = pnand %p6863_p3, %p6857_p0 }
 0x3ca   : > { %v5178_v21 = vadd.f32 %v13642_v6, %v5140_v48  ;;  %5200 = vst [vmem:[%s13668_s9 + $0x8] sm:$0xff] %v5168_v50  ;;  %5201 = vst [vmem:[%s13668_s9 + $0x10] sm:$0xff] %v5169_v11  ;;  %v5179_v54 = vadd.f32 %v13642_v6, %v5141_v30  ;;  %v5180_v10 = vadd.f32 %v13642_v6, %v5142_v4 }
 0x3cb   : > { %5202 = vst [vmem:[%s13668_s9 + $0x18] sm:$0xff] %v5170_v37  ;;  %v5181_v3 = vadd.f32 %v13642_v6, %v5143_v43  ;;  %v5182_v44 = vadd.f32 %v13642_v6, %v5144_v58  ;;  %5203 = vst [vmem:[%s13668_s9 + $0x20] sm:$0xff] %v5171_v29  ;;  %v5183_v20 = vadd.f32 %v13642_v6, %v5145_v55 }
 0x3cc   : > { %5204 = vst [vmem:[%s13668_s9 + $0x28] sm:$0xff] %v5172_v45  ;;  %5205 = vst [vmem:[%s13668_s9 + $0x30] sm:$0xff] %v5173_v32  ;;  %v5184_v27 = vadd.f32 %v13642_v6, %v5146_v60  ;;  %v5185_v26 = vadd.f32 %v13642_v6, %v5147_v8  ;;  %v5186_v18 = vadd.f32 %v13642_v6, %v5148_v0 }
 0x3cd   : > { %5206 = vst [vmem:[%s13668_s9 + $0x38] sm:$0xff] %v5174_v14  ;;  %5207 = vst [vmem:[%s13668_s9 + $0x40] sm:$0xff] %v5175_v39  ;;  %v5187_v5 = vadd.f32 %v13642_v6, %v5149_v9  ;;  %v5188_v15 = vadd.f32 %v13642_v6, %v5150_v49  ;;  %v5189_v31 = vadd.f32 %v13642_v6, %v5151_v42 }
 0x3ce   : > { %5208 = vst [vmem:[%s13668_s9 + $0x48] sm:$0xff] %v5176_v12  ;;  %5209 = vst [vmem:[%s13668_s9 + $0x50] sm:$0xff] %v5177_v25  ;;  %v5190_v22 = vadd.f32 %v13642_v6, %v5152_v35  ;;  %v5191_v48 = vadd.f32 %v13642_v6, %v5153_v38  ;;  %v5192_v30 = vadd.f32 %v13642_v6, %v5154_v41 }
 0x3cf   : > { %5210 = vst [vmem:[%s13668_s9 + $0x58] sm:$0xff] %v5178_v21  ;;  %5211 = vst [vmem:[%s13668_s9 + $0x60] sm:$0xff] %v5179_v54  ;;  %v5193_v4 = vadd.f32 %v13642_v6, %v5155_v63  ;;  %v5194_v61 = vadd.f32 %v13642_v6, %v5156_v2  ;;  %v5195_v43 = vadd.f32 %v13642_v6, %v5157_v56 }
 0x3d0   : > { %5212 = vst [vmem:[%s13668_s9 + $0x68] sm:$0xff] %v5180_v10  ;;  %5213 = vst [vmem:[%s13668_s9 + $0x70] sm:$0xff] %v5181_v3  ;;  %v5196_v47 = vadd.f32 %v13642_v6, %v5158_v34  ;;  %v5197_v58 = vadd.f32 %v13642_v6, %v5159_v33  ;;  %v5198_v24 = vadd.f32 %v13642_v6, %v5160_v57 }
 0x3d1   : > { %5214 = vst [vmem:[%s13668_s9 + $0x78] sm:$0xff] %v5182_v44  ;;  %5215 = vst [vmem:[%s13668_s9 + $0x80] sm:$0xff] %v5183_v20 }
 0x3d2   : > { %5216 = vst [vmem:[%s13668_s9 + $0x88] sm:$0xff] %v5184_v27  ;;  %5217 = vst [vmem:[%s13668_s9 + $0x90] sm:$0xff] %v5185_v26 }
 0x3d3   : > { %5218 = vst [vmem:[%s13668_s9 + $0x98] sm:$0xff] %v5186_v18  ;;  %5219 = vst [vmem:[%s13668_s9 + $0xa0] sm:$0xff] %v5187_v5 }
 0x3d4   : > { %5220 = vst [vmem:[%s13668_s9 + $0xa8] sm:$0xff] %v5188_v15  ;;  %5221 = vst [vmem:[%s13668_s9 + $0xb0] sm:$0xff] %v5189_v31 }
 0x3d5   : > { %5222 = vst [vmem:[%s13668_s9 + $0xb8] sm:$0xff] %v5190_v22  ;;  %5223 = vst [vmem:[%s13668_s9 + $0xc0] sm:$0xff] %v5191_v48 }
 0x3d6   : > { %5224 = vst [vmem:[%s13668_s9 + $0xc8] sm:$0xff] %v5192_v30  ;;  %5225 = vst [vmem:[%s13668_s9 + $0xd0] sm:$0xff] %v5193_v4 }
 0x3d7   : > { %5226 = vst [vmem:[%s13668_s9 + $0xd8] sm:$0xff] %v5194_v61  ;;  %5227 = vst [vmem:[%s13668_s9 + $0xe0] sm:$0xff] %v5195_v43 }
 0x3d8   : > { %5228 = vst [vmem:[%s13668_s9 + $0xe8] sm:$0xff] %v5196_v47  ;;  %5229 = vst [vmem:[%s13668_s9 + $0xf0] sm:$0xff] %v5197_v58 }
 0x3d9   : > { %5230 = vst [vmem:[%s13668_s9 + $0xf8] sm:$0xff] %v5198_v24 }
 0x3da   : > { %6867 = shalt.err (!%p6864_p5)
}
 0x3db   : > { %s6868_s29 = scalar_lea.hbm %s13711_s19, 4096  ;;  %s6872_s30 = scalar_lea.hbm %s13782_s3, 8192 }
 0x3dc   : > { %p6869_p6 = scmp.ne.s32.totalorder %s13711_s19, %s6868_s29  ;;  %p6873_p10 = scmp.lt.u32.totalorder %s13711_s19, %s13782_s3 }
 0x3dd   : > { %p6874_p11 = scmp.lt.u32.totalorder %s6872_s30, %s6868_s29  ;;  %p6876_p13 = scmp.lt.u32.totalorder %s6868_s29, %s13711_s19 }
 0x3de   : > { %p6870_p7 = pnand %p6869_p6, %p6997_p4 }
 0x3df   : > { %p6875_p12 = por %p6874_p11, %p6873_p10 }
 0x3e0   : > { %p6871_p9 = pneg %p6870_p7 }
 0x3e1   : > { %p6877_p0 = por %p6876_p13, %p6875_p12 }
 0x3e3   : > { %p6878_p1 = pnand %p6877_p0, %p6871_p9 }
 0x3e5   : > { %6881 = shalt.err (!%p6878_p1)
}
 0x3e6   : > { %s6935_s8 = smov 128   ;;  %s6936_s9 = smov 8  }
 0x3e7   : > { %6797 = dma.vmem_to_hbm [thread:$0]  (%p6997_p4), %s13713_s11, 4096, %s13711_s19, %s13733_s21, %s6935_s8, %s6935_s8, %s6936_s9  }
 0x3e8 PF: > { %p6803_p2 = scmp.ge.s32.totalorder %s6932_s17, 2  ;;  %s5263_s10 = sand.u32 1, %s6912_s12  }
 0x3e9   : > { %s5264_s15 = scalar_lea.sflag [#allocation3], %s5263_s10 }
 0x3ea   : > { %p6800_p3 = pnand %p6803_p2, %p7004_p8 }
 0x3ec   : > { %6907 = dma.done.wait (!%p6800_p3), %s5264_s15, 4096  }
 0x3ed   : > { %6909 = vsyncadd (!%p6800_p3), %s5264_s15, 4294963200  ;;  %s16_s17 = sadd.s32 1, %s6932_s17   ;;  %s15379_s12 = smov %s6916_s13 }
 0x3ee   : > { %p13_p5 = scmp.ge.s32.totalorder %s16_s17, 4   ;;  %s15380_s13 = smov %s6920_s14 }
 0x3ef   : > { %s15381_s14 = smov %s7010_s25  ;;  %s15382_s15 = smov %s6928_s16 }
 0x3f0   : > { %s15383_s16 = smov %s15385_s20  ;;  %15 = sbr.rel (!%p13_p5) target bundleno = 4 (0x4), region = 80 }
 0x3f7   :  { %5269 = vsyncpa [#allocation3], 1 }
 0x3f8   :  { %5271 = vsyncpa [#allocation3 + $0x1], 1 }

</bundles_post_ra>
